<compile_context>
chip_gen: v5e
topology: v5e:2x2
jax: 0.10.0
libtpu: 0.0.40
codegen_flags: <defaults>
</compile_context>

<pallas_src>
import functools

import jax
import jax.numpy as jnp
from jax.experimental import pallas as pl
from jax.experimental.pallas import tpu as pltpu


# ------------------------------------------------------------------
# Fused forward kernel.  Every stage is a plain 2-D GEMM on VMEM-resident bf16
# weights with f32 accumulation; one lane-dense f32 output store.
# ------------------------------------------------------------------
def _fused_encoder_kernel(x_ref, m1p_ref, m1m_ref, b1p_ref, b1m_ref,
                          m2p_ref, m2m_ref, b2p_ref, b2m_ref,
                          wz_ref, bz_ref, w1h_ref, w1z_ref, bf1_ref,
                          w2_ref, bf2_ref, o_ref, *, slope):
    def leaky(y):
        return jnp.maximum(y, slope * y)

    def dot32(a, b_ref):
        return jnp.dot(a, b_ref[...], preferred_element_type=jnp.float32)

    x = x_ref[...].astype(jnp.bfloat16)                                  # (tb, 768)

    # conv1 (3x3, stride 2, pad 1), both encoders, as dense affine maps.
    h1p = leaky(dot32(x, m1p_ref) + b1p_ref[...]).astype(jnp.bfloat16)   # (tb, 1024)
    h1m = leaky(dot32(x, m1m_ref) + b1m_ref[...]).astype(jnp.bfloat16)   # (tb, 1024)

    # conv2 (3x3, stride 2, pad 1), per-encoder dense blocks.
    h2p = leaky(dot32(h1p, m2p_ref) + b2p_ref[...]).astype(jnp.bfloat16)  # (tb, 512)
    h2m = leaky(dot32(h1m, m2m_ref) + b2m_ref[...]).astype(jnp.bfloat16)  # (tb, 512)

    # e_pri head: z = flatten(h2_pri) @ Wz + bz
    z = dot32(h2p, wz_ref) + bz_ref[...]                                  # (tb, z) f32

    # e_mod MLP: h = leaky(concat([avgpool(h2_mod), z]) @ W1 + b1)
    # (average pool folded into w1h rows; the concat split into two GEMMs)
    hf = dot32(h2m, w1h_ref) + dot32(z.astype(jnp.bfloat16), w1z_ref) + bf1_ref[...]
    hf = leaky(hf).astype(jnp.bfloat16)                                   # (tb, 64)

    # final FC, pre-replicated num_ws times along lanes -> lane-dense store.
    o_ref[...] = (dot32(hf, w2_ref) + bf2_ref[...]).astype(o_ref.dtype)   # (tb, 128)


def pri_mod_encoders_forward(params, x, *, num_ws=4, slope=0.2):
    """z = e_pri(x); ws = e_mod(x, z); return ws  — one fused pallas_call."""
    B = x.shape[0]
    x_flat = x.reshape(B, -1)        # NCHW flatten; conv1 dense maps expect this order

    n_out = params["w2rep"].shape[1]                 # num_ws * w_dim
    w_dim = n_out // num_ws

    args = (x_flat,
            params["m1p"], params["m1m"], params["b1p"], params["b1m"],
            params["m2p"], params["m2m"], params["b2p"], params["b2m"],
            params["wz"], params["bz"], params["w1h"], params["w1z"], params["bf1"],
            params["w2rep"], params["bf2rep"])

    # Batch tiling: a single resident block at test sizes; a "parallel" grid
    # over the batch for large B (shards across v7x's two TensorCores).
    tb = B if B <= 256 else 256
    grid = (pl.cdiv(B, tb),)

    in_specs = [pl.BlockSpec((tb, x_flat.shape[1]), lambda i: (i, 0))]
    in_specs += [pl.BlockSpec(a.shape, lambda i: (0, 0)) for a in args[1:]]
    out_specs = pl.BlockSpec((tb, n_out), lambda i: (i, 0))

    k1, n1 = params["m1p"].shape
    k2, n2 = params["m2p"].shape
    z_dims = params["wz"].shape[1]
    h = params["w1h"].shape[1]
    flops = 2 * B * (2 * k1 * n1 + 2 * k2 * n2
                     + n2 * z_dims + n2 * h + z_dims * h + h * n_out)
    bytes_accessed = sum(int(a.size) * a.dtype.itemsize for a in args) + B * n_out * 4

    out = pl.pallas_call(
        functools.partial(_fused_encoder_kernel, slope=slope),
        out_shape=jax.ShapeDtypeStruct((B, n_out), jnp.float32),
        grid_spec=pltpu.PrefetchScalarGridSpec(
            num_scalar_prefetch=0,
            grid=grid,
            in_specs=in_specs,
            out_specs=out_specs),
        compiler_params=pltpu.CompilerParams(
            dimension_semantics=("parallel",),
            vmem_limit_bytes=32 * 1024 * 1024),
        cost_estimate=pl.CostEstimate(flops=flops, transcendentals=0,
                                      bytes_accessed=bytes_accessed),
    )(*args)
    return out.reshape(B, num_ws, w_dim)


# ------------------------------------------------------------------
# Parameters.  Raw weights use PyTorch layouts (OIHW convs); lower_params()
# does ALL layout work once at init: conv -> dense affine map, pool / concat /
# num_ws-broadcast folds, bf16 casts.
# ------------------------------------------------------------------
def _he(key, shape, fan_in):
    return jax.random.normal(key, shape, jnp.float32) * (2.0 / fan_in) ** 0.5


def make_raw_params(z_dims=32, w_dim=32):
    ks = jax.random.split(jax.random.PRNGKey(42), 8)
    return {
        "conv1_pri": _he(ks[0], (16, 3, 3, 3), 3 * 3 * 3),      # OIHW
        "conv1_mod": _he(ks[1], (16, 3, 3, 3), 3 * 3 * 3),
        "conv2_pri": _he(ks[2], (32, 16, 3, 3), 16 * 3 * 3),
        "conv2_mod": _he(ks[3], (32, 16, 3, 3), 16 * 3 * 3),
        "pri_wf":    _he(ks[4], (32 * 4 * 4, z_dims), 32 * 4 * 4),   # NHWC-flatten rows
        "mod_wf1":   _he(ks[5], (32 + z_dims, 64), 32 + z_dims),
        "mod_wf2":   _he(ks[6], (64, w_dim), 64),
    }


def _conv_to_dense(w_oihw, cin, hin, win, stride, pad, rows_nchw):
    """Dense affine map of a conv layer.

    Rows index the flattened input (NCHW order if rows_nchw else NHWC), columns
    the NHWC-flattened output (h, w, c_out).  Each basis vector activates a
    single input pixel, so every matrix entry is exactly one (or zero) original
    weight value — casting the matrix to bf16 == casting the conv weights.
    """
    k_in = cin * hin * win
    eye = jnp.eye(k_in, dtype=jnp.float32)
    if rows_nchw:
        basis = eye.reshape(k_in, cin, hin, win)
    else:
        basis = jnp.transpose(eye.reshape(k_in, hin, win, cin), (0, 3, 1, 2))
    out = jax.lax.conv_general_dilated(
        basis, w_oihw, window_strides=(stride, stride),
        padding=((pad, pad), (pad, pad)),
        dimension_numbers=("NCHW", "OIHW", "NCHW"))
    out = jnp.transpose(out, (0, 2, 3, 1))            # (k_in, Ho, Wo, Cout)
    return out.reshape(k_in, -1)


def lower_params(raw, num_ws=4):
    z_dims = raw["pri_wf"].shape[1]
    w_dim = raw["mod_wf2"].shape[1]
    bf = lambda a: a.astype(jnp.bfloat16)
    w1f, w1z = raw["mod_wf1"][:32], raw["mod_wf1"][32:]
    return {
        # conv1: rows = NCHW flatten of x (wrapper needs no transpose)
        "m1p": bf(_conv_to_dense(raw["conv1_pri"], 3, 16, 16, 2, 1, rows_nchw=True)),
        "m1m": bf(_conv_to_dense(raw["conv1_mod"], 3, 16, 16, 2, 1, rows_nchw=True)),
        "b1p": jnp.zeros((1, 8 * 8 * 16), jnp.float32),
        "b1m": jnp.zeros((1, 8 * 8 * 16), jnp.float32),
        # conv2: rows = NHWC flatten of h1 (matches conv1's column order)
        "m2p": bf(_conv_to_dense(raw["conv2_pri"], 16, 8, 8, 2, 1, rows_nchw=False)),
        "m2m": bf(_conv_to_dense(raw["conv2_mod"], 16, 8, 8, 2, 1, rows_nchw=False)),
        "b2p": jnp.zeros((1, 4 * 4 * 32), jnp.float32),
        "b2m": jnp.zeros((1, 4 * 4 * 32), jnp.float32),
        # e_pri head
        "wz": bf(raw["pri_wf"]),
        "bz": jnp.zeros((1, z_dims), jnp.float32),
        # e_mod MLP: global-average pool folded into w1h; concat([f, z]) split
        "w1h": bf(jnp.tile(w1f / 16.0, (16, 1))),                 # (512, 64)
        "w1z": bf(w1z),                                           # (z_dims, 64)
        "bf1": jnp.zeros((1, 64), jnp.float32),
        # final FC, replicated across the num_ws slots (lane-dense output)
        "w2rep": bf(jnp.tile(raw["mod_wf2"], (1, num_ws))),       # (64, num_ws*w_dim)
        "bf2rep": jnp.zeros((1, num_ws * w_dim), jnp.float32),
    }


# ------------------------------------------------------------------
# Pure-JAX reference (lax.conv based) with the same precision schedule.
# ------------------------------------------------------------------
def reference_forward(raw, x, *, num_ws=4, slope=0.2):
    leaky = lambda y: jnp.maximum(y, slope * y)
    dot32 = lambda a, b: jnp.dot(a.astype(jnp.bfloat16), b.astype(jnp.bfloat16),
                                 preferred_element_type=jnp.float32)

    def conv(h_nhwc, w_oihw):
        w_hwio = jnp.transpose(w_oihw, (2, 3, 1, 0)).astype(jnp.bfloat16)
        return jax.lax.conv_general_dilated(
            h_nhwc.astype(jnp.bfloat16), w_hwio, window_strides=(2, 2),
            padding=((1, 1), (1, 1)),
            dimension_numbers=("NHWC", "HWIO", "NHWC"),
            preferred_element_type=jnp.float32)

    B = x.shape[0]
    xh = jnp.transpose(x, (0, 2, 3, 1))
    h1p = leaky(conv(xh, raw["conv1_pri"]))
    h1m = leaky(conv(xh, raw["conv1_mod"]))
    h2p = leaky(conv(h1p, raw["conv2_pri"]))
    h2m = leaky(conv(h1m, raw["conv2_mod"]))
    z = dot32(h2p.reshape(B, -1), raw["pri_wf"])              # e_pri head
    f = jnp.mean(h2m, axis=(1, 2))                            # global average pool
    hf = leaky(dot32(f, raw["mod_wf1"][:32]) + dot32(z, raw["mod_wf1"][32:]))
    w = dot32(hf, raw["mod_wf2"])
    return jnp.broadcast_to(w[:, None, :], (B, num_ws, w.shape[-1]))


if __name__ == "__main__":
    # small shapes: batch=2, RGB 16x16 input, z_dims=32, w_dim=32, num_ws=4
    x = jax.random.normal(jax.random.PRNGKey(0), (2, 3, 16, 16), jnp.float32)
    raw = make_raw_params(z_dims=32, w_dim=32)
    params = lower_params(raw, num_ws=4)

    fwd = jax.jit(pri_mod_encoders_forward)
    ws = jax.block_until_ready(fwd(params, x))

    assert ws.shape == (2, 4, 32), ws.shape
    assert bool(jnp.all(jnp.isfinite(ws)))

    # correctness vs. the pure-JAX reference using the same underlying weights
    ws_ref = reference_forward(raw, x)
    err = float(jnp.max(jnp.abs(ws - ws_ref)))
    assert err < 5e-2, f"kernel/reference mismatch: max abs err = {err}"

    print("KERNEL_OK")
</pallas_src>

<mosaic_0001>
module attributes {stable_mosaic.version = 11 : i64} {
  func.func @_fused_encoder_kernel(%arg0: i32, %arg1: memref<2x768xf32, #tpu.memory_space<vmem>>, %arg2: memref<768x1024xbf16, #tpu.memory_space<vmem>>, %arg3: memref<768x1024xbf16, #tpu.memory_space<vmem>>, %arg4: memref<1x1024xf32, #tpu.memory_space<vmem>>, %arg5: memref<1x1024xf32, #tpu.memory_space<vmem>>, %arg6: memref<1024x512xbf16, #tpu.memory_space<vmem>>, %arg7: memref<1024x512xbf16, #tpu.memory_space<vmem>>, %arg8: memref<1x512xf32, #tpu.memory_space<vmem>>, %arg9: memref<1x512xf32, #tpu.memory_space<vmem>>, %arg10: memref<512x32xbf16, #tpu.memory_space<vmem>>, %arg11: memref<1x32xf32, #tpu.memory_space<vmem>>, %arg12: memref<512x64xbf16, #tpu.memory_space<vmem>>, %arg13: memref<32x64xbf16, #tpu.memory_space<vmem>>, %arg14: memref<1x64xf32, #tpu.memory_space<vmem>>, %arg15: memref<64x128xbf16, #tpu.memory_space<vmem>>, %arg16: memref<1x128xf32, #tpu.memory_space<vmem>>, %arg17: memref<2x128xf32, #tpu.memory_space<vmem>>) attributes {dimension_semantics = [#tpu.dimension_semantics<parallel>], iteration_bounds = array<i64: 1>, scalar_prefetch = 0 : i64, scratch_operands = 0 : i64, tpu.core_type = #tpu.core_type<tc>, window_params = [{transform_indices = @transform_0, window_bounds = array<i64: 2, 768>}, {pipeline_mode = #tpu.pipeline_mode<synchronous>, transform_indices = @transform_1, window_bounds = array<i64: 768, 1024>}, {pipeline_mode = #tpu.pipeline_mode<synchronous>, transform_indices = @transform_2, window_bounds = array<i64: 768, 1024>}, {pipeline_mode = #tpu.pipeline_mode<synchronous>, transform_indices = @transform_3, window_bounds = array<i64: 1, 1024>}, {pipeline_mode = #tpu.pipeline_mode<synchronous>, transform_indices = @transform_4, window_bounds = array<i64: 1, 1024>}, {pipeline_mode = #tpu.pipeline_mode<synchronous>, transform_indices = @transform_5, window_bounds = array<i64: 1024, 512>}, {pipeline_mode = #tpu.pipeline_mode<synchronous>, transform_indices = @transform_6, window_bounds = array<i64: 1024, 512>}, {pipeline_mode = #tpu.pipeline_mode<synchronous>, transform_indices = @transform_7, window_bounds = array<i64: 1, 512>}, {pipeline_mode = #tpu.pipeline_mode<synchronous>, transform_indices = @transform_8, window_bounds = array<i64: 1, 512>}, {pipeline_mode = #tpu.pipeline_mode<synchronous>, transform_indices = @transform_9, window_bounds = array<i64: 512, 32>}, {pipeline_mode = #tpu.pipeline_mode<synchronous>, transform_indices = @transform_10, window_bounds = array<i64: 1, 32>}, {pipeline_mode = #tpu.pipeline_mode<synchronous>, transform_indices = @transform_11, window_bounds = array<i64: 512, 64>}, {pipeline_mode = #tpu.pipeline_mode<synchronous>, transform_indices = @transform_12, window_bounds = array<i64: 32, 64>}, {pipeline_mode = #tpu.pipeline_mode<synchronous>, transform_indices = @transform_13, window_bounds = array<i64: 1, 64>}, {pipeline_mode = #tpu.pipeline_mode<synchronous>, transform_indices = @transform_14, window_bounds = array<i64: 64, 128>}, {pipeline_mode = #tpu.pipeline_mode<synchronous>, transform_indices = @transform_15, window_bounds = array<i64: 1, 128>}, {transform_indices = @transform_16, window_bounds = array<i64: 2, 128>}]} {
    %c0 = arith.constant 0 : index
    %c0_0 = arith.constant 0 : index
    %0 = vector.load %arg1[%c0, %c0_0] : memref<2x768xf32, #tpu.memory_space<vmem>>, vector<2x768xf32>
    %1 = arith.truncf %0 : vector<2x768xf32> to vector<2x768xbf16>
    %c0_1 = arith.constant 0 : index
    %c0_2 = arith.constant 0 : index
    %2 = vector.load %arg2[%c0_1, %c0_2] : memref<768x1024xbf16, #tpu.memory_space<vmem>>, vector<768x1024xbf16>
    %cst = arith.constant dense<0.000000e+00> : vector<2x1024xf32>
    %3 = tpu.matmul %1, %2, %cst {dimension_numbers = #tpu.dot_dimension_numbers<[1], [0], [0], [1], [0, 0, 1, 1], [], []>} : vector<2x768xbf16>, vector<768x1024xbf16>, vector<2x1024xf32> -> vector<2x1024xf32>
    %c0_3 = arith.constant 0 : index
    %c0_4 = arith.constant 0 : index
    %4 = vector.load %arg4[%c0_3, %c0_4] : memref<1x1024xf32, #tpu.memory_space<vmem>>, vector<1x1024xf32>
    %5 = vector.broadcast %4 : vector<1x1024xf32> to vector<2x1024xf32>
    %6 = arith.addf %3, %5 : vector<2x1024xf32>
    %cst_5 = arith.constant 2.000000e-01 : f32
    %7 = vector.broadcast %cst_5 : f32 to vector<2x1024xf32>
    %8 = arith.mulf %7, %6 : vector<2x1024xf32>
    %9 = arith.maximumf %6, %8 : vector<2x1024xf32>
    %10 = arith.truncf %9 : vector<2x1024xf32> to vector<2x1024xbf16>
    %c0_6 = arith.constant 0 : index
    %c0_7 = arith.constant 0 : index
    %11 = vector.load %arg3[%c0_6, %c0_7] : memref<768x1024xbf16, #tpu.memory_space<vmem>>, vector<768x1024xbf16>
    %cst_8 = arith.constant dense<0.000000e+00> : vector<2x1024xf32>
    %12 = tpu.matmul %1, %11, %cst_8 {dimension_numbers = #tpu.dot_dimension_numbers<[1], [0], [0], [1], [0, 0, 1, 1], [], []>} : vector<2x768xbf16>, vector<768x1024xbf16>, vector<2x1024xf32> -> vector<2x1024xf32>
    %c0_9 = arith.constant 0 : index
    %c0_10 = arith.constant 0 : index
    %13 = vector.load %arg5[%c0_9, %c0_10] : memref<1x1024xf32, #tpu.memory_space<vmem>>, vector<1x1024xf32>
    %14 = vector.broadcast %13 : vector<1x1024xf32> to vector<2x1024xf32>
    %15 = arith.addf %12, %14 : vector<2x1024xf32>
    %cst_11 = arith.constant 2.000000e-01 : f32
    %16 = vector.broadcast %cst_11 : f32 to vector<2x1024xf32>
    %17 = arith.mulf %16, %15 : vector<2x1024xf32>
    %18 = arith.maximumf %15, %17 : vector<2x1024xf32>
    %19 = arith.truncf %18 : vector<2x1024xf32> to vector<2x1024xbf16>
    %c0_12 = arith.constant 0 : index
    %c0_13 = arith.constant 0 : index
    %20 = vector.load %arg6[%c0_12, %c0_13] : memref<1024x512xbf16, #tpu.memory_space<vmem>>, vector<1024x512xbf16>
    %cst_14 = arith.constant dense<0.000000e+00> : vector<2x512xf32>
    %21 = tpu.matmul %10, %20, %cst_14 {dimension_numbers = #tpu.dot_dimension_numbers<[1], [0], [0], [1], [0, 0, 1, 1], [], []>} : vector<2x1024xbf16>, vector<1024x512xbf16>, vector<2x512xf32> -> vector<2x512xf32>
    %c0_15 = arith.constant 0 : index
    %c0_16 = arith.constant 0 : index
    %22 = vector.load %arg8[%c0_15, %c0_16] : memref<1x512xf32, #tpu.memory_space<vmem>>, vector<1x512xf32>
    %23 = vector.broadcast %22 : vector<1x512xf32> to vector<2x512xf32>
    %24 = arith.addf %21, %23 : vector<2x512xf32>
    %cst_17 = arith.constant 2.000000e-01 : f32
    %25 = vector.broadcast %cst_17 : f32 to vector<2x512xf32>
    %26 = arith.mulf %25, %24 : vector<2x512xf32>
    %27 = arith.maximumf %24, %26 : vector<2x512xf32>
    %28 = arith.truncf %27 : vector<2x512xf32> to vector<2x512xbf16>
    %c0_18 = arith.constant 0 : index
    %c0_19 = arith.constant 0 : index
    %29 = vector.load %arg7[%c0_18, %c0_19] : memref<1024x512xbf16, #tpu.memory_space<vmem>>, vector<1024x512xbf16>
    %cst_20 = arith.constant dense<0.000000e+00> : vector<2x512xf32>
    %30 = tpu.matmul %19, %29, %cst_20 {dimension_numbers = #tpu.dot_dimension_numbers<[1], [0], [0], [1], [0, 0, 1, 1], [], []>} : vector<2x1024xbf16>, vector<1024x512xbf16>, vector<2x512xf32> -> vector<2x512xf32>
    %c0_21 = arith.constant 0 : index
    %c0_22 = arith.constant 0 : index
    %31 = vector.load %arg9[%c0_21, %c0_22] : memref<1x512xf32, #tpu.memory_space<vmem>>, vector<1x512xf32>
    %32 = vector.broadcast %31 : vector<1x512xf32> to vector<2x512xf32>
    %33 = arith.addf %30, %32 : vector<2x512xf32>
    %cst_23 = arith.constant 2.000000e-01 : f32
    %34 = vector.broadcast %cst_23 : f32 to vector<2x512xf32>
    %35 = arith.mulf %34, %33 : vector<2x512xf32>
    %36 = arith.maximumf %33, %35 : vector<2x512xf32>
    %37 = arith.truncf %36 : vector<2x512xf32> to vector<2x512xbf16>
    %c0_24 = arith.constant 0 : index
    %c0_25 = arith.constant 0 : index
    %38 = vector.load %arg10[%c0_24, %c0_25] : memref<512x32xbf16, #tpu.memory_space<vmem>>, vector<512x32xbf16>
    %cst_26 = arith.constant dense<0.000000e+00> : vector<2x32xf32>
    %39 = tpu.matmul %28, %38, %cst_26 {dimension_numbers = #tpu.dot_dimension_numbers<[1], [0], [0], [1], [0, 0, 1, 1], [], []>} : vector<2x512xbf16>, vector<512x32xbf16>, vector<2x32xf32> -> vector<2x32xf32>
    %c0_27 = arith.constant 0 : index
    %c0_28 = arith.constant 0 : index
    %40 = vector.load %arg11[%c0_27, %c0_28] : memref<1x32xf32, #tpu.memory_space<vmem>>, vector<1x32xf32>
    %41 = vector.broadcast %40 : vector<1x32xf32> to vector<2x32xf32>
    %42 = arith.addf %39, %41 : vector<2x32xf32>
    %c0_29 = arith.constant 0 : index
    %c0_30 = arith.constant 0 : index
    %43 = vector.load %arg12[%c0_29, %c0_30] : memref<512x64xbf16, #tpu.memory_space<vmem>>, vector<512x64xbf16>
    %cst_31 = arith.constant dense<0.000000e+00> : vector<2x64xf32>
    %44 = tpu.matmul %37, %43, %cst_31 {dimension_numbers = #tpu.dot_dimension_numbers<[1], [0], [0], [1], [0, 0, 1, 1], [], []>} : vector<2x512xbf16>, vector<512x64xbf16>, vector<2x64xf32> -> vector<2x64xf32>
    %45 = arith.truncf %42 : vector<2x32xf32> to vector<2x32xbf16>
    %c0_32 = arith.constant 0 : index
    %c0_33 = arith.constant 0 : index
    %46 = vector.load %arg13[%c0_32, %c0_33] : memref<32x64xbf16, #tpu.memory_space<vmem>>, vector<32x64xbf16>
    %cst_34 = arith.constant dense<0.000000e+00> : vector<2x64xf32>
    %47 = tpu.matmul %45, %46, %cst_34 {dimension_numbers = #tpu.dot_dimension_numbers<[1], [0], [0], [1], [0, 0, 1, 1], [], []>} : vector<2x32xbf16>, vector<32x64xbf16>, vector<2x64xf32> -> vector<2x64xf32>
    %48 = arith.addf %44, %47 : vector<2x64xf32>
    %c0_35 = arith.constant 0 : index
    %c0_36 = arith.constant 0 : index
    %49 = vector.load %arg14[%c0_35, %c0_36] : memref<1x64xf32, #tpu.memory_space<vmem>>, vector<1x64xf32>
    %50 = vector.broadcast %49 : vector<1x64xf32> to vector<2x64xf32>
    %51 = arith.addf %48, %50 : vector<2x64xf32>
    %cst_37 = arith.constant 2.000000e-01 : f32
    %52 = vector.broadcast %cst_37 : f32 to vector<2x64xf32>
    %53 = arith.mulf %52, %51 : vector<2x64xf32>
    %54 = arith.maximumf %51, %53 : vector<2x64xf32>
    %55 = arith.truncf %54 : vector<2x64xf32> to vector<2x64xbf16>
    %c0_38 = arith.constant 0 : index
    %c0_39 = arith.constant 0 : index
    %56 = vector.load %arg15[%c0_38, %c0_39] : memref<64x128xbf16, #tpu.memory_space<vmem>>, vector<64x128xbf16>
    %cst_40 = arith.constant dense<0.000000e+00> : vector<2x128xf32>
    %57 = tpu.matmul %55, %56, %cst_40 {dimension_numbers = #tpu.dot_dimension_numbers<[1], [0], [0], [1], [0, 0, 1, 1], [], []>} : vector<2x64xbf16>, vector<64x128xbf16>, vector<2x128xf32> -> vector<2x128xf32>
    %c0_41 = arith.constant 0 : index
    %c0_42 = arith.constant 0 : index
    %58 = vector.load %arg16[%c0_41, %c0_42] : memref<1x128xf32, #tpu.memory_space<vmem>>, vector<1x128xf32>
    %59 = vector.broadcast %58 : vector<1x128xf32> to vector<2x128xf32>
    %60 = arith.addf %57, %59 : vector<2x128xf32>
    %c0_43 = arith.constant 0 : index
    %c0_44 = arith.constant 0 : index
    %61 = vector.load %arg17[%c0_43, %c0_44] : memref<2x128xf32, #tpu.memory_space<vmem>>, vector<2x128xf32>
    tpu.vector_store %arg17[%c0_43, %c0_44], %60 {strides = array<i32>} : memref<2x128xf32, #tpu.memory_space<vmem>>, vector<2x128xf32>,
    return
  }
  func.func @transform_0(%arg0: i32) -> (i32, i32) {
    %c0_i32 = arith.constant 0 : i32
    %c0_i32_0 = arith.constant 0 : i32
    return %arg0, %c0_i32 : i32, i32
  }
  func.func @transform_1(%arg0: i32) -> (i32, i32) {
    %c0_i32 = arith.constant 0 : i32
    %c0_i32_0 = arith.constant 0 : i32
    %c0_i32_1 = arith.constant 0 : i32
    return %c0_i32, %c0_i32_0 : i32, i32
  }
  func.func @transform_2(%arg0: i32) -> (i32, i32) {
    %c0_i32 = arith.constant 0 : i32
    %c0_i32_0 = arith.constant 0 : i32
    %c0_i32_1 = arith.constant 0 : i32
    return %c0_i32, %c0_i32_0 : i32, i32
  }
  func.func @transform_3(%arg0: i32) -> (i32, i32) {
    %c0_i32 = arith.constant 0 : i32
    %c0_i32_0 = arith.constant 0 : i32
    %c0_i32_1 = arith.constant 0 : i32
    return %c0_i32, %c0_i32_0 : i32, i32
  }
  func.func @transform_4(%arg0: i32) -> (i32, i32) {
    %c0_i32 = arith.constant 0 : i32
    %c0_i32_0 = arith.constant 0 : i32
    %c0_i32_1 = arith.constant 0 : i32
    return %c0_i32, %c0_i32_0 : i32, i32
  }
  func.func @transform_5(%arg0: i32) -> (i32, i32) {
    %c0_i32 = arith.constant 0 : i32
    %c0_i32_0 = arith.constant 0 : i32
    %c0_i32_1 = arith.constant 0 : i32
    return %c0_i32, %c0_i32_0 : i32, i32
  }
  func.func @transform_6(%arg0: i32) -> (i32, i32) {
    %c0_i32 = arith.constant 0 : i32
    %c0_i32_0 = arith.constant 0 : i32
    %c0_i32_1 = arith.constant 0 : i32
    return %c0_i32, %c0_i32_0 : i32, i32
  }
  func.func @transform_7(%arg0: i32) -> (i32, i32) {
    %c0_i32 = arith.constant 0 : i32
    %c0_i32_0 = arith.constant 0 : i32
    %c0_i32_1 = arith.constant 0 : i32
    return %c0_i32, %c0_i32_0 : i32, i32
  }
  func.func @transform_8(%arg0: i32) -> (i32, i32) {
    %c0_i32 = arith.constant 0 : i32
    %c0_i32_0 = arith.constant 0 : i32
    %c0_i32_1 = arith.constant 0 : i32
    return %c0_i32, %c0_i32_0 : i32, i32
  }
  func.func @transform_9(%arg0: i32) -> (i32, i32) {
    %c0_i32 = arith.constant 0 : i32
    %c0_i32_0 = arith.constant 0 : i32
    %c0_i32_1 = arith.constant 0 : i32
    return %c0_i32, %c0_i32_0 : i32, i32
  }
  func.func @transform_10(%arg0: i32) -> (i32, i32) {
    %c0_i32 = arith.constant 0 : i32
    %c0_i32_0 = arith.constant 0 : i32
    %c0_i32_1 = arith.constant 0 : i32
    return %c0_i32, %c0_i32_0 : i32, i32
  }
  func.func @transform_11(%arg0: i32) -> (i32, i32) {
    %c0_i32 = arith.constant 0 : i32
    %c0_i32_0 = arith.constant 0 : i32
    %c0_i32_1 = arith.constant 0 : i32
    return %c0_i32, %c0_i32_0 : i32, i32
  }
  func.func @transform_12(%arg0: i32) -> (i32, i32) {
    %c0_i32 = arith.constant 0 : i32
    %c0_i32_0 = arith.constant 0 : i32
    %c0_i32_1 = arith.constant 0 : i32
    return %c0_i32, %c0_i32_0 : i32, i32
  }
  func.func @transform_13(%arg0: i32) -> (i32, i32) {
    %c0_i32 = arith.constant 0 : i32
    %c0_i32_0 = arith.constant 0 : i32
    %c0_i32_1 = arith.constant 0 : i32
    return %c0_i32, %c0_i32_0 : i32, i32
  }
  func.func @transform_14(%arg0: i32) -> (i32, i32) {
    %c0_i32 = arith.constant 0 : i32
    %c0_i32_0 = arith.constant 0 : i32
    %c0_i32_1 = arith.constant 0 : i32
    return %c0_i32, %c0_i32_0 : i32, i32
  }
  func.func @transform_15(%arg0: i32) -> (i32, i32) {
    %c0_i32 = arith.constant 0 : i32
    %c0_i32_0 = arith.constant 0 : i32
    %c0_i32_1 = arith.constant 0 : i32
    return %c0_i32, %c0_i32_0 : i32, i32
  }
  func.func @transform_16(%arg0: i32) -> (i32, i32) {
    %c0_i32 = arith.constant 0 : i32
    %c0_i32_0 = arith.constant 0 : i32
    return %arg0, %c0_i32 : i32, i32
  }
}

</mosaic_0001>

<bundles_post_ra>
// kernel: pri_mod_encoders_forward.1
= control target key start
LH: loop header
LB: loop body
LE: loop exit
PB: predicated region body
PF: predicated region fallthrough
CT: control target
= control target key end

     0   :  { %s18756_s0 = inlined_call_operand.vmem [shape: f32[2,768], index: 0, kind: input, shape index: {}]   ;;  %s18757_s1 = inlined_call_operand.hbm [shape: bf16[768,1024], index: 1, kind: input, shape index: {}]   ;;  %s18758_s2 = inlined_call_operand.hbm [shape: bf16[768,1024], index: 2, kind: input, shape index: {}]   ;;  %s18759_s3 = inlined_call_operand.hbm [shape: f32[1,1024], index: 3, kind: input, shape index: {}]   ;;  %s18760_s4 = inlined_call_operand.hbm [shape: f32[1,1024], index: 4, kind: input, shape index: {}]   ;;  %s18761_s5 = inlined_call_operand.hbm [shape: bf16[1024,512], index: 5, kind: input, shape index: {}]   ;;  %s18762_s6 = inlined_call_operand.hbm [shape: bf16[1024,512], index: 6, kind: input, shape index: {}]   ;;  %s18763_s7 = inlined_call_operand.hbm [shape: f32[1,512], index: 7, kind: input, shape index: {}]   ;;  %s18764_s8 = inlined_call_operand.hbm [shape: f32[1,512], index: 8, kind: input, shape index: {}]   ;;  %s18765_s9 = inlined_call_operand.vmem [shape: bf16[512,32], index: 9, kind: input, shape index: {}]   ;;  %s18766_s10 = inlined_call_operand.hbm [shape: f32[1,32], index: 10, kind: input, shape index: {}]   ;;  %s18767_s11 = inlined_call_operand.vmem [shape: bf16[512,64], index: 11, kind: input, shape index: {}]   ;;  %s18768_s12 = inlined_call_operand.hbm [shape: bf16[32,64], index: 12, kind: input, shape index: {}]   ;;  %s18769_s13 = inlined_call_operand.hbm [shape: f32[1,64], index: 13, kind: input, shape index: {}]   ;;  %s18770_s14 = inlined_call_operand.hbm [shape: bf16[64,128], index: 14, kind: input, shape index: {}]   ;;  %s18771_s15 = inlined_call_operand.hbm [shape: f32[1,128], index: 15, kind: input, shape index: {}]   ;;  %s18772_s16 = inlined_call_operand.vmem [shape: f32[2,128], index: 16, kind: output, shape index: {}]  }
   0x1   :  { %18775 = sst [smem:[#allocation29_spill]] %s18756_s0 }
   0x2   :  { %21 = vsyncpa [#allocation3], 0 }
   0x3   :  { %22 = vsyncpa [#allocation5], 0 }
   0x4   :  { %23 = vsyncpa [#allocation8], 0 }
   0x5   :  { %24 = vsyncpa [#allocation11], 0 }
   0x6   :  { %25 = vsyncpa [#allocation14], 0 }
   0x7   :  { %26 = vsyncpa [#allocation17], 0 }
   0x8   :  { %27 = vsyncpa [#allocation20], 0  ;;  %s47_s23 = sshll.u32 %s18758_s2, 4  ;;  %s17988_s24 = smov [#allocation4]   ;;  %s48_s23 = int_to_ptr.hbm [resolvable:$true] %s47_s23 }
   0x9   :  { %s49_s25 = sshll.u32 %s17988_s24, 4  ;;  %s72_s28 = sshll.u32 %s18760_s4, 4  ;;  %s50_s25 = int_to_ptr.vmem [resolvable:$true] %s49_s25  ;;  %s73_s28 = int_to_ptr.hbm [resolvable:$true] %s72_s28 }
   0xa   :  { %s17989_s29 = smov 512   ;;  %s17990_s30 = smov 32  }
   0xb   :  { %55 = dma.hbm_to_vmem [thread:$0]  %s48_s23, 49152, %s50_s25, [#allocation5], %s17989_s29, %s17989_s29, %s17990_s30  }
   0xc   :  { %s17991_s0 = smov [#allocation7]   ;;  %s95_s19 = sshll.u32 %s18762_s6, 4  ;;  %s96_s19 = int_to_ptr.hbm [resolvable:$true] %s95_s19 }
   0xd   :  { %s74_s17 = sshll.u32 %s17991_s0, 4  ;;  %s17992_s20 = smov [#allocation10]   ;;  %s75_s17 = int_to_ptr.vmem [resolvable:$true] %s74_s17 }
   0xe   :  { %77 = dma.hbm_to_vmem [thread:$0]  %s73_s28, 128, %s75_s17, [#allocation8]  }
   0xf   :  { %s97_s21 = sshll.u32 %s17992_s20, 4  ;;  %s120_s24 = sshll.u32 %s18764_s8, 4  ;;  %s98_s21 = int_to_ptr.vmem [resolvable:$true] %s97_s21  ;;  %s121_s24 = int_to_ptr.hbm [resolvable:$true] %s120_s24 }
  0x10   :  { %s18774_s26 = smov 256   ;;  %s17994_s27 = smov 16  }
  0x11   :  { %103 = dma.hbm_to_vmem [thread:$0]  %s96_s19, 32768, %s98_s21, [#allocation11], %s18774_s26, %s18774_s26, %s17994_s27  }
  0x12   :  { %s17995_s23 = smov [#allocation13]   ;;  %s145_s6 = sshll.u32 %s18768_s12, 4  ;;  %s146_s6 = int_to_ptr.hbm [resolvable:$true] %s145_s6 }
  0x13   :  { %s122_s25 = sshll.u32 %s17995_s23, 4  ;;  %s17996_s17 = smov [#allocation16]   ;;  %s123_s25 = int_to_ptr.vmem [resolvable:$true] %s122_s25 }
  0x14   :  { %125 = dma.hbm_to_vmem [thread:$0]  %s121_s24, 64, %s123_s25, [#allocation14]  }
  0x15   :  { %s147_s2 = sshll.u32 %s17996_s17, 4  ;;  %s169_s20 = sshll.u32 %s18770_s14, 4  ;;  %s148_s2 = int_to_ptr.vmem [resolvable:$true] %s147_s2  ;;  %s170_s20 = int_to_ptr.hbm [resolvable:$true] %s169_s20 }
  0x16   :  { %s17997_s4 = smov 64   ;;  %s17998_s22 = smov 4  }
  0x17   :  { %153 = dma.hbm_to_vmem [thread:$0]  %s146_s6, 256, %s148_s2, [#allocation17], %s17997_s4, %s17997_s4, %s17998_s22  }
  0x18   :  { %s17999_s19 = smov [#allocation19]   ;;  %s34_s12 = sshll.u32 %s18757_s1, 4  ;;  %s35_s12 = int_to_ptr.hbm [resolvable:$true] %s34_s12 }
  0x19   :  { %s171_s21 = sshll.u32 %s17999_s19, 4  ;;  %s61_s28 = sshll.u32 %s18759_s3, 4  ;;  %s172_s21 = int_to_ptr.vmem [resolvable:$true] %s171_s21  ;;  %s62_s28 = int_to_ptr.hbm [resolvable:$true] %s61_s28 }
  0x1a   :  { %177 = dma.hbm_to_vmem [thread:$0]  %s170_s20, 512, %s172_s21, [#allocation20], %s17997_s4, %s17997_s4, %s17998_s22  }
  0x1b   :  { %s18000_s0 = smov [#allocation2]   ;;  %s18001_s14 = smov [#allocation6]  }
  0x1c   :  { %s36_s17 = sshll.u32 %s18000_s0, 4  ;;  %s63_s6 = sshll.u32 %s18001_s14, 4  ;;  %s37_s17 = int_to_ptr.vmem [resolvable:$true] %s36_s17  ;;  %s64_s6 = int_to_ptr.vmem [resolvable:$true] %s63_s6 }
  0x1d   :  { %42 = dma.hbm_to_vmem [thread:$0]  %s35_s12, 49152, %s37_s17, [#allocation3], %s17989_s29, %s17989_s29, %s17990_s30  }
  0x1e   :  { %s82_s1 = sshll.u32 %s18761_s5, 4  ;;  %s109_s3 = sshll.u32 %s18763_s7, 4  ;;  %s83_s1 = int_to_ptr.hbm [resolvable:$true] %s82_s1  ;;  %s110_s3 = int_to_ptr.hbm [resolvable:$true] %s109_s3 }
  0x1f   :  { %66 = dma.hbm_to_vmem [thread:$0]  %s62_s28, 128, %s64_s6, [#allocation5]  }
  0x20   :  { %s18002_s20 = smov [#allocation9]   ;;  %s18776_s22 = smov 256  }
  0x21   :  { %s84_s4 = sshll.u32 %s18002_s20, 4  ;;  %s18003_s29 = smov [#allocation12]   ;;  %s85_s4 = int_to_ptr.vmem [resolvable:$true] %s84_s4 }
  0x22   :  { %90 = dma.hbm_to_vmem [thread:$0]  %s83_s1, 32768, %s85_s4, [#allocation8], %s18776_s22, %s18776_s22, %s17994_s27  }
  0x23   :  { %s111_s30 = sshll.u32 %s18003_s29, 4  ;;  %s133_s5 = sshll.u32 %s18766_s10, 4  ;;  %s112_s30 = int_to_ptr.vmem [resolvable:$true] %s111_s30  ;;  %s134_s5 = int_to_ptr.hbm [resolvable:$true] %s133_s5 }
  0x24   :  { %114 = dma.hbm_to_vmem [thread:$0]  %s110_s3, 64, %s112_s30, [#allocation11]  }
  0x25   :  { %s159_s7 = sshll.u32 %s18769_s13, 4  ;;  %s18004_s24 = smov [#allocation15]   ;;  %s160_s7 = int_to_ptr.hbm [resolvable:$true] %s159_s7 }
  0x26   :  { %s135_s25 = sshll.u32 %s18004_s24, 4  ;;  %s18005_s28 = smov [#allocation18]   ;;  %s136_s25 = int_to_ptr.vmem [resolvable:$true] %s135_s25 }
  0x27   :  { %138 = dma.hbm_to_vmem [thread:$0]  %s134_s5, 16, %s136_s25, [#allocation14]  }
  0x28   :  { %s161_s27 = sshll.u32 %s18005_s28, 4  ;;  %s183_s14 = sshll.u32 %s18771_s15, 4  ;;  %s162_s27 = int_to_ptr.vmem [resolvable:$true] %s161_s27  ;;  %s184_s14 = int_to_ptr.hbm [resolvable:$true] %s183_s14 }
  0x29   :  { %164 = dma.hbm_to_vmem [thread:$0]  %s160_s7, 16, %s162_s27, [#allocation17]  }
  0x2a   :  { %s18006_s10 = smov [#allocation21]  }
  0x2b   :  { %s185_s6 = sshll.u32 %s18006_s10, 4  ;;  %s186_s6 = int_to_ptr.vmem [resolvable:$true] %s185_s6 }
  0x2c   :  { %188 = dma.hbm_to_vmem [thread:$0]  %s184_s14, 16, %s186_s6, [#allocation20]  }
  0x2d   :  { %17974 = dma.done.wait [#allocation3], 49152  }
  0x2e   :  { %17975 = vsyncadd [#allocation3], 4294918144 }
  0x2f   :  { %17976 = dma.done.wait [#allocation5], 49280  }
  0x30   :  { %17977 = vsyncadd [#allocation5], 4294918016 }
  0x31   :  { %17978 = dma.done.wait [#allocation8], 32896  }
  0x32   :  { %17979 = vsyncadd [#allocation8], 4294934400 }
  0x33   :  { %17980 = dma.done.wait [#allocation11], 32832  }
  0x34   :  { %17981 = vsyncadd [#allocation11], 4294934464 }
  0x35   :  { %17982 = dma.done.wait [#allocation14], 80  }
  0x36   :  { %17983 = vsyncadd [#allocation14], 4294967216 }
  0x37   :  { %17984 = dma.done.wait [#allocation17], 272  }
  0x38   :  { %17985 = vsyncadd [#allocation17], 4294967024 }
  0x39   :  { %17986 = dma.done.wait [#allocation20], 528  }
  0x3a   :  { %17987 = vsyncadd [#allocation20], 4294966768  ;;  %v11108_v0 = vld [vmem:[#allocation2 + $0x1c0] sm:$0xf]  ;;  %s18777_s2 = sld [smem:[#allocation29_spill]]  ;;  %vm10548_vm0 = vcmask 261120  }
  0x3b   :  { %v16344_v1 = vld [vmem:[#allocation2 + $0x1dc] sm:$0xf0]  ;;  %vm10853_vm1 = vcmask 523264  }
  0x3c   :  { %v11364_v2 = vld [vmem:[#allocation2 + $0x3c0] sm:$0xf]  ;;  %v11109_v3 = vor.u32 %v16344_v1, %v11108_v0 }
  0x3d   :  { %v16408_v4 = vld [vmem:[#allocation2 + $0x3dc] sm:$0xf0] }
  0x3e   :  { %v11620_v5 = vld [vmem:[#allocation2 + $0x5c0] sm:$0xf]  ;;  %v11365_v7 = vor.u32 %v16408_v4, %v11364_v2  ;;  %2589 = vmatpush.bf16.msra.mxu0 %v11109_v3 }
  0x3f   :  { %v16472_v6 = vld [vmem:[#allocation2 + $0x5dc] sm:$0xf0] }
  0x40   :  { %v11621_v8 = vor.u32 %v16472_v6, %v11620_v5  ;;  %v11876_v9 = vld [vmem:[#allocation2 + $0x7c0] sm:$0xf]  ;;  %2602 = vmatpush.bf16.msra.mxu1 %v11365_v7 }
  0x41   :  { %v16536_v10 = vld [vmem:[#allocation2 + $0x7dc] sm:$0xf0] }
  0x42   :  { %v11076_v11 = vld [vmem:[#allocation2 + $0x180] sm:$0xf]  ;;  %v11877_v12 = vor.u32 %v16536_v10, %v11876_v9  ;;  %2615 = vmatpush.bf16.msra.mxu2 %v11621_v8 }
  0x43   :  { %v16336_v13 = vld [vmem:[#allocation2 + $0x19c] sm:$0xf0] }
  0x44   :  { %v11332_v14 = vld [vmem:[#allocation2 + $0x380] sm:$0xf]  ;;  %v11077_v16 = vor.u32 %v16336_v13, %v11076_v11  ;;  %2628 = vmatpush.bf16.msra.mxu3 %v11877_v12 }
  0x45   :  { %v16400_v15 = vld [vmem:[#allocation2 + $0x39c] sm:$0xf0] }
  0x46   :  { %v11333_v17 = vor.u32 %v16400_v15, %v11332_v14  ;;  %v11588_v18 = vld [vmem:[#allocation2 + $0x580] sm:$0xf]  ;;  %2590 = vmatpush.bf16.msra.mxu0 %v11077_v16 }
  0x47   :  { %v16464_v19 = vld [vmem:[#allocation2 + $0x59c] sm:$0xf0] }
  0x48   :  { %v11844_v20 = vld [vmem:[#allocation2 + $0x780] sm:$0xf]  ;;  %v11589_v21 = vor.u32 %v16464_v19, %v11588_v18  ;;  %2603 = vmatpush.bf16.msra.mxu1 %v11333_v17 }
  0x49   :  { %v16528_v22 = vld [vmem:[#allocation2 + $0x79c] sm:$0xf0] }
  0x4a   :  { %v11044_v23 = vld [vmem:[#allocation2 + $0x140] sm:$0xf]  ;;  %v11845_v25 = vor.u32 %v16528_v22, %v11844_v20  ;;  %2616 = vmatpush.bf16.msra.mxu2 %v11589_v21 }
  0x4b   :  { %v16328_v24 = vld [vmem:[#allocation2 + $0x15c] sm:$0xf0] }
  0x4c   :  { %v11300_v26 = vld [vmem:[#allocation2 + $0x340] sm:$0xf]  ;;  %v11045_v29 = vor.u32 %v16328_v24, %v11044_v23  ;;  %2629 = vmatpush.bf16.msra.mxu3 %v11845_v25 }
  0x4d   :  { %v16392_v27 = vld [vmem:[#allocation2 + $0x35c] sm:$0xf0] }
  0x4e   :  { %v11556_v28 = vld [vmem:[#allocation2 + $0x540] sm:$0xf]  ;;  %v11301_v33 = vor.u32 %v16392_v27, %v11300_v26  ;;  %2591 = vmatpush.bf16.msra.mxu0 %v11045_v29 }
  0x4f   :  { %v16456_v30 = vld [vmem:[#allocation2 + $0x55c] sm:$0xf0] }
  0x50   :  { %v11812_v31 = vld [vmem:[#allocation2 + $0x740] sm:$0xf]  ;;  %v11557_v34 = vor.u32 %v16456_v30, %v11556_v28  ;;  %2604 = vmatpush.bf16.msra.mxu1 %v11301_v33  ;;  %v16340_v33 = vld [vmem:[#allocation2 + $0x1c4] sm:$0xf] }
  0x51   :  { %v16520_v32 = vld [vmem:[#allocation2 + $0x75c] sm:$0xf0] }
  0x52   :  { %v11012_v35 = vld [vmem:[#allocation2 + $0x100] sm:$0xf]  ;;  %v11813_v38 = vor.u32 %v16520_v32, %v11812_v31  ;;  %2617 = vmatpush.bf16.msra.mxu2 %v11557_v34  ;;  %v11110_v34 = vld [vmem:[#allocation2 + $0x1e0] sm:$0xf0] }
  0x53   :  { %v16320_v36 = vld [vmem:[#allocation2 + $0x11c] sm:$0xf0] }
  0x54   :  { %v11268_v37 = vld [vmem:[#allocation2 + $0x300] sm:$0xf]  ;;  %v11013_v44 = vor.u32 %v16320_v36, %v11012_v35  ;;  %2630 = vmatpush.bf16.msra.mxu3 %v11813_v38  ;;  %v11366_v38 = vld [vmem:[#allocation2 + $0x3e0] sm:$0xf0] }
  0x55   :  { %v16384_v39 = vld [vmem:[#allocation2 + $0x31c] sm:$0xf0] }
  0x56   :  { %v11524_v40 = vld [vmem:[#allocation2 + $0x500] sm:$0xf]  ;;  %v11269_v45 = vor.u32 %v16384_v39, %v11268_v37  ;;  %2592 = vmatpush.bf16.msra.mxu0 %v11013_v44  ;;  %v16404_v37 = vld [vmem:[#allocation2 + $0x3c4] sm:$0xf] }
  0x57   :  { %v16448_v41 = vld [vmem:[#allocation2 + $0x51c] sm:$0xf0] }
  0x58   :  { %v11780_v42 = vld [vmem:[#allocation2 + $0x700] sm:$0xf]  ;;  %v11525_v46 = vor.u32 %v16448_v41, %v11524_v40  ;;  %2605 = vmatpush.bf16.msra.mxu1 %v11269_v45 }
  0x59   :  { %v16512_v43 = vld [vmem:[#allocation2 + $0x71c] sm:$0xf0] }
  0x5a   :  { %v10980_v47 = vld [vmem:[#allocation2 + $0xc0] sm:$0xf]  ;;  %v11781_v50 = vor.u32 %v16512_v43, %v11780_v42  ;;  %2618 = vmatpush.bf16.msra.mxu2 %v11525_v46  ;;  %v11113_v42 = vor.u32 %v16340_v33, %v11110_v34  ;;  %v11369_v46 = vor.u32 %v16404_v37, %v11366_v38 }
  0x5b   :  { %v16312_v48 = vld [vmem:[#allocation2 + $0xdc] sm:$0xf0] }
  0x5c   :  { %v11236_v49 = vld [vmem:[#allocation2 + $0x2c0] sm:$0xf]  ;;  %v10981_v56 = vor.u32 %v16312_v48, %v10980_v47  ;;  %2631 = vmatpush.bf16.msra.mxu3 %v11781_v50  ;;  %v16332_v48 = vld [vmem:[#allocation2 + $0x184] sm:$0xf] }
  0x5d   :  { %v16376_v51 = vld [vmem:[#allocation2 + $0x2dc] sm:$0xf0]  ;;  %v16396_v50 = vld [vmem:[#allocation2 + $0x384] sm:$0xf] }
  0x5e   :  { %v11492_v52 = vld [vmem:[#allocation2 + $0x4c0] sm:$0xf]  ;;  %v11237_v57 = vor.u32 %v16376_v51, %v11236_v49  ;;  %2593 = vmatpush.bf16.msra.mxu0 %v10981_v56  ;;  %v11078_v49 = vld [vmem:[#allocation2 + $0x1a0] sm:$0xf0] }
  0x5f   :  { %v16440_v53 = vld [vmem:[#allocation2 + $0x4dc] sm:$0xf0]  ;;  %v11334_v51 = vld [vmem:[#allocation2 + $0x3a0] sm:$0xf0] }
  0x60   :  { %v11748_v54 = vld [vmem:[#allocation2 + $0x6c0] sm:$0xf]  ;;  %v11493_v58 = vor.u32 %v16440_v53, %v11492_v52  ;;  %2606 = vmatpush.bf16.msra.mxu1 %v11237_v57 }
  0x61   :  { %v16504_v55 = vld [vmem:[#allocation2 + $0x6dc] sm:$0xf0] }
  0x62   :  { %v10948_v59 = vld [vmem:[#allocation2 + $0x80] sm:$0xf]  ;;  %v11749_v62 = vor.u32 %v16504_v55, %v11748_v54  ;;  %2619 = vmatpush.bf16.msra.mxu2 %v11493_v58  ;;  %v11081_v54 = vor.u32 %v16332_v48, %v11078_v49  ;;  %v11337_v58 = vor.u32 %v16396_v50, %v11334_v51 }
  0x63   :  { %v16304_v60 = vld [vmem:[#allocation2 + $0x9c] sm:$0xf0] }
  0x64   :  { %v11204_v61 = vld [vmem:[#allocation2 + $0x280] sm:$0xf]  ;;  %v10949_v4 = vor.u32 %v16304_v60, %v10948_v59  ;;  %2632 = vmatpush.bf16.msra.mxu3 %v11749_v62  ;;  %v16324_v60 = vld [vmem:[#allocation2 + $0x144] sm:$0xf] }
  0x65   :  { %v16368_v63 = vld [vmem:[#allocation2 + $0x29c] sm:$0xf0]  ;;  %v16388_v62 = vld [vmem:[#allocation2 + $0x344] sm:$0xf] }
  0x66   :  { %v11460_v0 = vld [vmem:[#allocation2 + $0x480] sm:$0xf]  ;;  %v11205_v5 = vor.u32 %v16368_v63, %v11204_v61  ;;  %2594 = vmatpush.bf16.msra.mxu0 %v10949_v4  ;;  %v11046_v61 = vld [vmem:[#allocation2 + $0x160] sm:$0xf0] }
  0x67   :  { %v16432_v1 = vld [vmem:[#allocation2 + $0x49c] sm:$0xf0]  ;;  %v11302_v63 = vld [vmem:[#allocation2 + $0x360] sm:$0xf0]  ;;  %v11049_v4 = vor.u32 %v16324_v60, %v11046_v61 }
  0x68   :  { %v11716_v2 = vld [vmem:[#allocation2 + $0x680] sm:$0xf]  ;;  %v11461_v6 = vor.u32 %v16432_v1, %v11460_v0  ;;  %2607 = vmatpush.bf16.msra.mxu1 %v11205_v5 }
  0x69   :  { %v16496_v3 = vld [vmem:[#allocation2 + $0x69c] sm:$0xf0] }
  0x6a   :  { %v10916_v7 = vld [vmem:[#allocation2 + $0x40] sm:$0xf]  ;;  %v11717_v10 = vor.u32 %v16496_v3, %v11716_v2  ;;  %2620 = vmatpush.bf16.msra.mxu2 %v11461_v6  ;;  %v242_v2 = vld [vmem:[%s18777_s2] sm:$0xff] }
  0x6b   :  { %v16296_v8 = vld [vmem:[#allocation2 + $0x5c] sm:$0xf0]  ;;  %246 = vst [vmem:[#allocation1] ss:$4 sm:$0xff] %v242_v2  ;;  %v10886_v2 = vld [vmem:[#allocation2 + $0x20] sm:$0xf0] }
  0x6c   :  { %v11172_v9 = vld [vmem:[#allocation2 + $0x240] sm:$0xf]  ;;  %v10917_v16 = vor.u32 %v16296_v8, %v10916_v7  ;;  %2633 = vmatpush.bf16.msra.mxu3 %v11717_v10  ;;  %v11305_v7 = vor.u32 %v16388_v62, %v11302_v63  ;;  %v11014_v10 = vld [vmem:[#allocation2 + $0x120] sm:$0xf0] }
  0x6d   :  { %v16360_v11 = vld [vmem:[#allocation2 + $0x25c] sm:$0xf0] }
  0x6e   :  { %v11428_v12 = vld [vmem:[#allocation2 + $0x440] sm:$0xf]  ;;  %v11173_v19 = vor.u32 %v16360_v11, %v11172_v9  ;;  %2595 = vmatpush.bf16.msra.mxu0 %v10917_v16  ;;  %v16316_v9 = vld [vmem:[#allocation2 + $0x104] sm:$0xf] }
  0x6f   :  { %v16424_v13 = vld [vmem:[#allocation2 + $0x45c] sm:$0xf0]  ;;  %v16380_v11 = vld [vmem:[#allocation2 + $0x304] sm:$0xf]  ;;  %v11017_v16 = vor.u32 %v16316_v9, %v11014_v10 }
  0x70   :  { %v11684_v14 = vld [vmem:[#allocation2 + $0x640] sm:$0xf]  ;;  %v11429_v20 = vor.u32 %v16424_v13, %v11428_v12  ;;  %2608 = vmatpush.bf16.msra.mxu1 %v11173_v19  ;;  %v11270_v12 = vld [vmem:[#allocation2 + $0x320] sm:$0xf0] }
  0x71   :  { %v16488_v15 = vld [vmem:[#allocation2 + $0x65c] sm:$0xf0]  ;;  %v11878_v9 = vld [vmem:[#allocation2 + $0x7e0] sm:$0xf0] }
  0x72   :  { %v10884_v17 = vld [vmem:[#allocation2] sm:$0xf]  ;;  %v11685_v24 = vor.u32 %v16488_v15, %v11684_v14  ;;  %2621 = vmatpush.bf16.msra.mxu2 %v11429_v20  ;;  %v11273_v20 = vor.u32 %v16380_v11, %v11270_v12  ;;  %v16596_v11 = vld [vmem:[#allocation2 + $0x9c4] sm:$0xf] }
  0x73   :  { %v16288_v18 = vld [vmem:[#allocation2 + $0x1c] sm:$0xf0]  ;;  %v12134_v12 = vld [vmem:[#allocation2 + $0x9e0] sm:$0xf0] }
  0x74   :  { %v11140_v21 = vld [vmem:[#allocation2 + $0x200] sm:$0xf]  ;;  %v10885_v31 = vor.u32 %v16288_v18, %v10884_v17  ;;  %2634 = vmatpush.bf16.msra.mxu3 %v11685_v24  ;;  %v11238_v24 = vld [vmem:[#allocation2 + $0x2e0] sm:$0xf0] }
  0x75   :  { %v16352_v22 = vld [vmem:[#allocation2 + $0x21c] sm:$0xf0] }
  0x76   :  { %v11396_v23 = vld [vmem:[#allocation2 + $0x400] sm:$0xf]  ;;  %v11141_v35 = vor.u32 %v16352_v22, %v11140_v21  ;;  %2596 = vmatpush.bf16.msra.mxu0 %v10885_v31  ;;  %v16308_v21 = vld [vmem:[#allocation2 + $0xc4] sm:$0xf] }
  0x77   :  { %v16416_v25 = vld [vmem:[#allocation2 + $0x41c] sm:$0xf0]  ;;  %v10982_v22 = vld [vmem:[#allocation2 + $0xe0] sm:$0xf0] }
  0x78   :  { %v11652_v26 = vld [vmem:[#allocation2 + $0x600] sm:$0xf]  ;;  %v11397_v36 = vor.u32 %v16416_v25, %v11396_v23  ;;  %2609 = vmatpush.bf16.msra.mxu1 %v11141_v35  ;;  %v16372_v23 = vld [vmem:[#allocation2 + $0x2c4] sm:$0xf] }
  0x79   :  { %v16480_v27 = vld [vmem:[#allocation2 + $0x61c] sm:$0xf0]  ;;  %v251_v31 = vld.sshfl [vmem:[#allocation1 + $0x10] sm:$0xff pattern:$0x73625140]  ;;  %v11241_v37 = vor.u32 %v16372_v23, %v11238_v24 }
  0x7a   :  { %v12132_v28 = vld [vmem:[#allocation2 + $0x9c0] sm:$0xf]  ;;  %v11653_v39 = vor.u32 %v16480_v27, %v11652_v26  ;;  %2622 = vmatpush.bf16.msra.mxu2 %v11397_v36  ;;  %v18148_v34 = vpack.c.bf16 %v251_v31, %v251_v31  ;;  %v252_v36 = vld.sshfl [vmem:[#allocation1 + $0x18] sm:$0xff pattern:$0x73625140] }
  0x7b   :  { %v16600_v29 = vld [vmem:[#allocation2 + $0x9dc] sm:$0xf0]  ;;  %v16460_v23 = vld [vmem:[#allocation2 + $0x584] sm:$0xf] }
  0x7c   :  { %v12388_v30 = vld [vmem:[#allocation2 + $0xbc0] sm:$0xf]  ;;  %v12133_v40 = vor.u32 %v16600_v29, %v12132_v28  ;;  %2635 = vmatpush.bf16.msra.mxu3 %v11653_v39  ;;  %v16300_v39 = vld [vmem:[#allocation2 + $0x84] sm:$0xf] }
  0x7d   :  { %v16664_v32 = vld [vmem:[#allocation2 + $0xbdc] sm:$0xf0]  ;;  %2623 = vmatmul.bf16.vlgmr.msra.gmra.mxu2 %v18148_v34  ;;  %v11590_v24 = vld [vmem:[#allocation2 + $0x5a0] sm:$0xf0] }
  0x7e   :  { %v12389_v41 = vor.u32 %v16664_v32, %v12388_v30  ;;  %v12100_v43 = vld [vmem:[#allocation2 + $0x980] sm:$0xf]  ;;  %2641 = vmatpush.bf16.msrb.mxu0 %v12133_v40  ;;  %2667 = vmatpush.bf16.msrb.mxu2 %v11113_v42  ;;  %v249_v30 = vld.sshfl [vmem:[#allocation1] sm:$0xff pattern:$0x73625140]  ;;  %v10985_v32 = vor.u32 %v16308_v21, %v10982_v22  ;;  %v12137_v22 = vor.u32 %v16596_v11, %v12134_v12 }
  0x7f   :  { %v16592_v44 = vld [vmem:[#allocation2 + $0x99c] sm:$0xf0]  ;;  %v18146_v33 = vpack.c.bf16 %v249_v30, %v249_v30  ;;  %v10950_v40 = vld [vmem:[#allocation2 + $0xa0] sm:$0xf0] }
  0x80   :  { %v12356_v45 = vld [vmem:[#allocation2 + $0xb80] sm:$0xf]  ;;  %v12101_v52 = vor.u32 %v16592_v44, %v12100_v43  ;;  %2654 = vmatpush.bf16.msrb.mxu1 %v12389_v41  ;;  %2680 = vmatpush.bf16.msrb.mxu3 %v11369_v46  ;;  %v16364_v42 = vld [vmem:[#allocation2 + $0x284] sm:$0xf]  ;;  %v18154_v44 = vpack.c.bf16 %v252_v36, %v252_v36  ;;  %v10953_v49 = vor.u32 %v16300_v39, %v10950_v40 }
  0x81   :  { %v16656_v47 = vld [vmem:[#allocation2 + $0xb9c] sm:$0xf0]  ;;  %v11206_v43 = vld [vmem:[#allocation2 + $0x2a0] sm:$0xf0]  ;;  %2597 = vmatmul.bf16.vlgmr.msra.gmra.mxu0 %v18146_v33  ;;  %v11593_v36 = vor.u32 %v16460_v23, %v11590_v24 }
  0x82   :  { %v12357_v53 = vor.u32 %v16656_v47, %v12356_v45  ;;  %v12068_v55 = vld [vmem:[#allocation2 + $0x940] sm:$0xf]  ;;  %2642 = vmatpush.bf16.msrb.mxu0 %v12101_v52  ;;  %2668 = vmatpush.bf16.msrb.mxu2 %v11081_v54  ;;  %v16292_v54 = vld [vmem:[#allocation2 + $0x44] sm:$0xf] }
  0x83   :  { %v16584_v56 = vld [vmem:[#allocation2 + $0x95c] sm:$0xf0]  ;;  %2636 = vmatmul.bf16.vlgmr.msra.gmra.mxu3 %v18154_v44  ;;  %v16652_v31 = vld [vmem:[#allocation2 + $0xb84] sm:$0xf] }
  0x84   :  { %v12324_v57 = vld [vmem:[#allocation2 + $0xb40] sm:$0xf]  ;;  %v12069_v0 = vor.u32 %v16584_v56, %v12068_v55  ;;  %2655 = vmatpush.bf16.msrb.mxu1 %v12357_v53  ;;  %2681 = vmatpush.bf16.msrb.mxu3 %v11337_v58  ;;  %v11209_v53 = vor.u32 %v16364_v42, %v11206_v43  ;;  %v10918_v55 = vld [vmem:[#allocation2 + $0x60] sm:$0xf0] }
  0x85   :  { %v16648_v59 = vld [vmem:[#allocation2 + $0xb5c] sm:$0xf0]  ;;  %v16356_v56 = vld [vmem:[#allocation2 + $0x244] sm:$0xf]  ;;  %v10921_v63 = vor.u32 %v16292_v54, %v10918_v55 }
  0x86   :  { %v12036_v1 = vld [vmem:[#allocation2 + $0x900] sm:$0xf]  ;;  %v12325_v3 = vor.u32 %v16648_v59, %v12324_v57  ;;  %2643 = vmatpush.bf16.msrb.mxu0 %v12069_v0  ;;  %2669 = vmatpush.bf16.msrb.mxu2 %v11049_v4  ;;  %v11174_v57 = vld [vmem:[#allocation2 + $0x260] sm:$0xf0] }
  0x87   :  { %v16576_v5 = vld [vmem:[#allocation2 + $0x91c] sm:$0xf0]  ;;  %v16348_v4 = vld [vmem:[#allocation2 + $0x204] sm:$0xf] }
  0x88   :  { %v12292_v6 = vld [vmem:[#allocation2 + $0xb00] sm:$0xf]  ;;  %v12037_v13 = vor.u32 %v16576_v5, %v12036_v1  ;;  %2656 = vmatpush.bf16.msrb.mxu1 %v12325_v3  ;;  %2682 = vmatpush.bf16.msrb.mxu3 %v11305_v7  ;;  %v16284_v1 = vld [vmem:[#allocation2 + $0x4] sm:$0xf]  ;;  %v11177_v3 = vor.u32 %v16356_v56, %v11174_v57 }
  0x89   :  { %v16640_v8 = vld [vmem:[#allocation2 + $0xb1c] sm:$0xf0]  ;;  %v11142_v5 = vld [vmem:[#allocation2 + $0x220] sm:$0xf0] }
  0x8a   :  { %v12004_v14 = vld [vmem:[#allocation2 + $0x8c0] sm:$0xf]  ;;  %v12293_v15 = vor.u32 %v16640_v8, %v12292_v6  ;;  %2644 = vmatpush.bf16.msrb.mxu0 %v12037_v13  ;;  %2670 = vmatpush.bf16.msrb.mxu2 %v11017_v16  ;;  %v16468_v6 = vld [vmem:[#allocation2 + $0x5c4] sm:$0xf] }
  0x8b   :  { %v16568_v17 = vld [vmem:[#allocation2 + $0x8dc] sm:$0xf0]  ;;  %v11622_v7 = vld [vmem:[#allocation2 + $0x5e0] sm:$0xf0] }
  0x8c   :  { %v12260_v18 = vld [vmem:[#allocation2 + $0xac0] sm:$0xf]  ;;  %v12005_v27 = vor.u32 %v16568_v17, %v12004_v14  ;;  %2657 = vmatpush.bf16.msrb.mxu1 %v12293_v15  ;;  %2683 = vmatpush.bf16.msrb.mxu3 %v11273_v20  ;;  %v16532_v8 = vld [vmem:[#allocation2 + $0x7c4] sm:$0xf]  ;;  %v10889_v15 = vor.u32 %v16284_v1, %v10886_v2 }
  0x8d   :  { %v16632_v19 = vld [vmem:[#allocation2 + $0xadc] sm:$0xf0]  ;;  %v16660_v13 = vld [vmem:[#allocation2 + $0xbc4] sm:$0xf]  ;;  %v11881_v21 = vor.u32 %v16532_v8, %v11878_v9 }
  0x8e   :  { %v11972_v25 = vld [vmem:[#allocation2 + $0x880] sm:$0xf]  ;;  %v12261_v28 = vor.u32 %v16632_v19, %v12260_v18  ;;  %2645 = vmatpush.bf16.msrb.mxu0 %v12005_v27  ;;  %2671 = vmatpush.bf16.msrb.mxu2 %v10985_v32  ;;  %v12390_v16 = vld [vmem:[#allocation2 + $0xbe0] sm:$0xf0]  ;;  %v11145_v18 = vor.u32 %v16348_v4, %v11142_v5  ;;  %v11625_v19 = vor.u32 %v16468_v6, %v11622_v7 }
  0x8f   :  { %v16560_v26 = vld [vmem:[#allocation2 + $0x89c] sm:$0xf0]  ;;  %v11846_v27 = vld [vmem:[#allocation2 + $0x7a0] sm:$0xf0] }
  0x90   :  { %v12228_v29 = vld [vmem:[#allocation2 + $0xa80] sm:$0xf]  ;;  %v11973_v45 = vor.u32 %v16560_v26, %v11972_v25  ;;  %2658 = vmatpush.bf16.msrb.mxu1 %v12261_v28  ;;  %2684 = vmatpush.bf16.msrb.mxu3 %v11241_v37  ;;  %v16524_v25 = vld [vmem:[#allocation2 + $0x784] sm:$0xf]  ;;  %v12393_v26 = vor.u32 %v16660_v13, %v12390_v16 }
  0x91   :  { %v250_v35 = vld.sshfl [vmem:[#allocation1 + $0x8] sm:$0xff pattern:$0x73625140]  ;;  %v11849_v37 = vor.u32 %v16524_v25, %v11846_v27 }
  0x92   :  { %v16624_v38 = vld [vmem:[#allocation2 + $0xa9c] sm:$0xf0]  ;;  %v18150_v41 = vpack.c.bf16 %v250_v35, %v250_v35  ;;  %2646 = vmatpush.bf16.msrb.mxu0 %v11973_v45  ;;  %2672 = vmatpush.bf16.msrb.mxu2 %v10953_v49  ;;  %v16588_v28 = vld [vmem:[#allocation2 + $0x984] sm:$0xf] }
  0x93   :  { %v11940_v46 = vld [vmem:[#allocation2 + $0x840] sm:$0xf]  ;;  %v12229_v48 = vor.u32 %v16624_v38, %v12228_v29  ;;  %v12102_v29 = vld [vmem:[#allocation2 + $0x9a0] sm:$0xf0] }
  0x94   :  { %2610 = vmatmul.bf16.vlgmr.msra.gmra.mxu1 %v18150_v41  ;;  %v16552_v47 = vld [vmem:[#allocation2 + $0x85c] sm:$0xf0]  ;;  %2685 = vmatpush.bf16.msrb.mxu3 %v11209_v53  ;;  %v12358_v32 = vld [vmem:[#allocation2 + $0xba0] sm:$0xf0]  ;;  %v12105_v38 = vor.u32 %v16588_v28, %v12102_v29 }
  0x95   :  { %v12196_v50 = vld [vmem:[#allocation2 + $0xa40] sm:$0xf]  ;;  %v11941_v58 = vor.u32 %v16552_v47, %v11940_v46  ;;  %2659 = vmatpush.bf16.msrb.mxu1 %v12229_v48  ;;  %v16452_v39 = vld [vmem:[#allocation2 + $0x544] sm:$0xf]  ;;  %v12361_v43 = vor.u32 %v16652_v31, %v12358_v32 }
  0x96   :  { %v16616_v51 = vld [vmem:[#allocation2 + $0xa5c] sm:$0xf0]  ;;  %2673 = vmatpush.bf16.msrb.mxu2 %v10921_v63  ;;  %v11558_v40 = vld [vmem:[#allocation2 + $0x560] sm:$0xf0] }
  0x97   :  { %v243_v52 = vld [vmem:[%s18777_s2 + $0x8] sm:$0xf]  ;;  %v12197_v62 = vor.u32 %v16616_v51, %v12196_v50  ;;  %2647 = vmatpush.bf16.msrb.mxu0 %v11941_v58  ;;  %v16516_v42 = vld [vmem:[#allocation2 + $0x744] sm:$0xf]  ;;  %v11561_v50 = vor.u32 %v16452_v39, %v11558_v40 }
  0x98   :  { %248 = vst [vmem:[#allocation1 + $0x20] ss:$4 sm:$0xff] %v243_v52  ;;  %v11908_v59 = vld [vmem:[#allocation2 + $0x800] sm:$0xf]  ;;  %2686 = vmatpush.bf16.msrb.mxu3 %v11177_v3  ;;  %v11814_v45 = vld [vmem:[#allocation2 + $0x760] sm:$0xf0] }
  0x99   :  { %v16544_v60 = vld [vmem:[#allocation2 + $0x81c] sm:$0xf0]  ;;  %2660 = vmatpush.bf16.msrb.mxu1 %v12197_v62  ;;  %v16580_v46 = vld [vmem:[#allocation2 + $0x944] sm:$0xf]  ;;  %v11817_v51 = vor.u32 %v16516_v42, %v11814_v45 }
  0x9a   :  { %v12164_v61 = vld [vmem:[#allocation2 + $0xa00] sm:$0xf]  ;;  %v11909_v10 = vor.u32 %v16544_v60, %v11908_v59  ;;  %2674 = vmatpush.bf16.msrb.mxu2 %v10889_v15  ;;  %v12070_v47 = vld [vmem:[#allocation2 + $0x960] sm:$0xf0] }
  0x9b   :  { %v16608_v0 = vld [vmem:[#allocation2 + $0xa1c] sm:$0xf0]  ;;  %v16644_v48 = vld [vmem:[#allocation2 + $0xb44] sm:$0xf]  ;;  %v12073_v52 = vor.u32 %v16580_v46, %v12070_v47 }
  0x9c   :  { %v12165_v14 = vor.u32 %v16608_v0, %v12164_v61  ;;  %2648 = vmatpush.bf16.msrb.mxu0 %v11909_v10  ;;  %2687 = vmatpush.bf16.msrb.mxu3 %v11145_v18  ;;  %v12326_v49 = vld [vmem:[#allocation2 + $0xb60] sm:$0xf0] }
  0x9d   :  { %2675 = vmatmul.bf16.vlgmr.msrb.gmra.mxu2 %v18146_v33  ;;  %v16444_v53 = vld [vmem:[#allocation2 + $0x504] sm:$0xf]  ;;  %v12329_v56 = vor.u32 %v16644_v48, %v12326_v49 }
  0x9e   :  { %2661 = vmatpush.bf16.msrb.mxu1 %v12165_v14  ;;  %2719 = vmatpush.bf16.msra.mxu2 %v12137_v22  ;;  %v11526_v54 = vld [vmem:[#allocation2 + $0x520] sm:$0xf0] }
  0x9f   :  { %v253_v17 = vld.sshfl [vmem:[#allocation1 + $0x20] sm:$0xff pattern:$0x73625140]  ;;  %v254_v20 = vld.sshfl [vmem:[#allocation1 + $0x28] sm:$0xff pattern:$0x73625140]  ;;  %2688 = vmatmul.bf16.vlgmr.msrb.gmra.mxu3 %v18150_v41  ;;  %v11529_v62 = vor.u32 %v16444_v53, %v11526_v54 }
  0xa0   :  { %v18161_v30 = vpack.c.bf16 %v253_v17, %v253_v17  ;;  %v18163_v35 = vpack.c.bf16 %v254_v20, %v254_v20  ;;  %2693 = vmatpush.bf16.msra.mxu0 %v11625_v19  ;;  %2732 = vmatpush.bf16.msra.mxu3 %v12393_v26  ;;  %v16508_v55 = vld [vmem:[#allocation2 + $0x704] sm:$0xf]  ;;  %v16345_v53 = vld [vmem:[#allocation2 + $0x1e4] sm:$0xf0] }
  0xa1   :  { %v11782_v57 = vld [vmem:[#allocation2 + $0x720] sm:$0xf0]  ;;  %v11372_v54 = vld [vmem:[#allocation2 + $0x3c8] sm:$0xf] }
  0xa2   :  { %2706 = vmatpush.bf16.msra.mxu1 %v11881_v21  ;;  %2649 = vmatmul.bf16.vlgmr.msrb.gmra.mxu0 %v18161_v30  ;;  %v16572_v58 = vld [vmem:[#allocation2 + $0x904] sm:$0xf]  ;;  %v11785_v63 = vor.u32 %v16508_v55, %v11782_v57  ;;  %v16409_v55 = vld [vmem:[#allocation2 + $0x3e4] sm:$0xf0] }
  0xa3   :  { %2720 = vmatpush.bf16.msra.mxu2 %v12105_v38  ;;  %v12038_v59 = vld [vmem:[#allocation2 + $0x920] sm:$0xf0]  ;;  %v11628_v57 = vld [vmem:[#allocation2 + $0x5c8] sm:$0xf] }
  0xa4   :  { %2662 = vmatmul.bf16.vlgmr.msrb.gmra.mxu1 %v18163_v35  ;;  %2694 = vmatpush.bf16.msra.mxu0 %v11593_v36  ;;  %v16636_v60 = vld [vmem:[#allocation2 + $0xb04] sm:$0xf]  ;;  %v12041_v0 = vor.u32 %v16572_v58, %v12038_v59  ;;  %v16473_v58 = vld [vmem:[#allocation2 + $0x5e4] sm:$0xf0] }
  0xa5   :  { %2733 = vmatpush.bf16.msra.mxu3 %v12361_v43  ;;  %v12294_v61 = vld [vmem:[#allocation2 + $0xb20] sm:$0xf0] }
  0xa6   :  { %2707 = vmatpush.bf16.msra.mxu1 %v11849_v37  ;;  %v16436_v1 = vld [vmem:[#allocation2 + $0x4c4] sm:$0xf]  ;;  %v12297_v4 = vor.u32 %v16636_v60, %v12294_v61  ;;  %v11884_v61 = vld [vmem:[#allocation2 + $0x7c8] sm:$0xf] }
  0xa7   :  { %2721 = vmatpush.bf16.msra.mxu2 %v12073_v52  ;;  %v11494_v2 = vld [vmem:[#allocation2 + $0x4e0] sm:$0xf0]  ;;  %v11116_v52 = vld [vmem:[#allocation2 + $0x1c8] sm:$0xf] }
  0xa8   :  { %2695 = vmatpush.bf16.msra.mxu0 %v11561_v50  ;;  %v16500_v3 = vld [vmem:[#allocation2 + $0x6c4] sm:$0xf]  ;;  %v11497_v10 = vor.u32 %v16436_v1, %v11494_v2  ;;  %v11373_v1 = vor.u32 %v16409_v55, %v11372_v54  ;;  %v11629_v2 = vor.u32 %v16473_v58, %v11628_v57  ;;  %v10956_v57 = vld [vmem:[#allocation2 + $0x88] sm:$0xf] }
  0xa9   :  { %2734 = vmatpush.bf16.msra.mxu3 %v12329_v56  ;;  %v11750_v5 = vld [vmem:[#allocation2 + $0x6e0] sm:$0xf0]  ;;  %v16305_v58 = vld [vmem:[#allocation2 + $0xa4] sm:$0xf0] }
  0xaa   :  { %2708 = vmatpush.bf16.msra.mxu1 %v11817_v51  ;;  %v16564_v6 = vld [vmem:[#allocation2 + $0x8c4] sm:$0xf]  ;;  %v11753_v11 = vor.u32 %v16500_v3, %v11750_v5  ;;  %v11084_v3 = vld [vmem:[#allocation2 + $0x188] sm:$0xf] }
  0xab   :  { %v12006_v7 = vld [vmem:[#allocation2 + $0x8e0] sm:$0xf0]  ;;  %2722 = vmatpush.bf16.msra.mxu2 %v12041_v0  ;;  %v11117_v0 = vor.u32 %v16345_v53, %v11116_v52  ;;  %v11340_v5 = vld [vmem:[#allocation2 + $0x388] sm:$0xf] }
  0xac   :  { %v16628_v8 = vld [vmem:[#allocation2 + $0xac4] sm:$0xf]  ;;  %2696 = vmatpush.bf16.msra.mxu0 %v11529_v62  ;;  %v12009_v12 = vor.u32 %v16564_v6, %v12006_v7  ;;  %v16537_v62 = vld [vmem:[#allocation2 + $0x7e4] sm:$0xf0] }
  0xad   :  { %v12262_v9 = vld [vmem:[#allocation2 + $0xae0] sm:$0xf0]  ;;  %2735 = vmatpush.bf16.msra.mxu3 %v12297_v4  ;;  %v16337_v4 = vld [vmem:[#allocation2 + $0x1a4] sm:$0xf0]  ;;  %v11885_v6 = vor.u32 %v16537_v62, %v11884_v61 }
  0xae   :  { %2709 = vmatpush.bf16.msra.mxu1 %v11785_v63  ;;  %v16428_v13 = vld [vmem:[#allocation2 + $0x484] sm:$0xf]  ;;  %v12265_v16 = vor.u32 %v16628_v8, %v12262_v9  ;;  %v16401_v7 = vld [vmem:[#allocation2 + $0x3a4] sm:$0xf0] }
  0xaf   :  { %v11462_v14 = vld [vmem:[#allocation2 + $0x4a0] sm:$0xf0]  ;;  %2723 = vmatpush.bf16.msra.mxu2 %v12009_v12  ;;  %v11596_v8 = vld [vmem:[#allocation2 + $0x588] sm:$0xf]  ;;  %v11085_v12 = vor.u32 %v16337_v4, %v11084_v3 }
  0xb0   :  { %v16492_v15 = vld [vmem:[#allocation2 + $0x684] sm:$0xf]  ;;  %2697 = vmatpush.bf16.msra.mxu0 %v11497_v10  ;;  %v11465_v22 = vor.u32 %v16428_v13, %v11462_v14  ;;  %v16465_v9 = vld [vmem:[#allocation2 + $0x5a4] sm:$0xf0]  ;;  %v11341_v13 = vor.u32 %v16401_v7, %v11340_v5 }
  0xb1   :  { %v11718_v17 = vld [vmem:[#allocation2 + $0x6a0] sm:$0xf0]  ;;  %2736 = vmatpush.bf16.msra.mxu3 %v12265_v16  ;;  %v11852_v10 = vld [vmem:[#allocation2 + $0x788] sm:$0xf]  ;;  %v11597_v14 = vor.u32 %v16465_v9, %v11596_v8 }
  0xb2   :  { %v16556_v18 = vld [vmem:[#allocation2 + $0x884] sm:$0xf]  ;;  %2710 = vmatpush.bf16.msra.mxu1 %v11753_v11  ;;  %v11721_v23 = vor.u32 %v16492_v15, %v11718_v17  ;;  %v16529_v11 = vld [vmem:[#allocation2 + $0x7a4] sm:$0xf0] }
  0xb3   :  { %v11974_v19 = vld [vmem:[#allocation2 + $0x8a0] sm:$0xf0]  ;;  %v11052_v15 = vld [vmem:[#allocation2 + $0x148] sm:$0xf] }
  0xb4   :  { %v16620_v20 = vld [vmem:[#allocation2 + $0xa84] sm:$0xf]  ;;  %v11977_v24 = vor.u32 %v16556_v18, %v11974_v19  ;;  %2698 = vmatpush.bf16.msra.mxu0 %v11465_v22  ;;  %v16329_v16 = vld [vmem:[#allocation2 + $0x164] sm:$0xf0]  ;;  %v11853_v18 = vor.u32 %v16529_v11, %v11852_v10 }
  0xb5   :  { %v12230_v21 = vld [vmem:[#allocation2 + $0xaa0] sm:$0xf0]  ;;  %v11308_v17 = vld [vmem:[#allocation2 + $0x348] sm:$0xf] }
  0xb6   :  { %v16420_v25 = vld [vmem:[#allocation2 + $0x444] sm:$0xf]  ;;  %v12233_v28 = vor.u32 %v16620_v20, %v12230_v21  ;;  %2711 = vmatpush.bf16.msra.mxu1 %v11721_v23  ;;  %2724 = vmatpush.bf16.msra.mxu2 %v11977_v24  ;;  %v16393_v19 = vld [vmem:[#allocation2 + $0x364] sm:$0xf0]  ;;  %v11053_v24 = vor.u32 %v16329_v16, %v11052_v15 }
  0xb7   :  { %v11430_v26 = vld [vmem:[#allocation2 + $0x460] sm:$0xf0]  ;;  %v11564_v20 = vld [vmem:[#allocation2 + $0x548] sm:$0xf] }
  0xb8   :  { %v16484_v27 = vld [vmem:[#allocation2 + $0x644] sm:$0xf]  ;;  %v11433_v38 = vor.u32 %v16420_v25, %v11430_v26  ;;  %2737 = vmatpush.bf16.msra.mxu3 %v12233_v28  ;;  %v16457_v21 = vld [vmem:[#allocation2 + $0x564] sm:$0xf0]  ;;  %v11309_v25 = vor.u32 %v16393_v19, %v11308_v17 }
  0xb9   :  { %v11686_v29 = vld [vmem:[#allocation2 + $0x660] sm:$0xf0]  ;;  %v11820_v22 = vld [vmem:[#allocation2 + $0x748] sm:$0xf]  ;;  %v11565_v26 = vor.u32 %v16457_v21, %v11564_v20 }
  0xba   :  { %v16548_v31 = vld [vmem:[#allocation2 + $0x844] sm:$0xf]  ;;  %v11689_v43 = vor.u32 %v16484_v27, %v11686_v29  ;;  %2699 = vmatpush.bf16.msra.mxu0 %v11433_v38  ;;  %v16521_v23 = vld [vmem:[#allocation2 + $0x764] sm:$0xf0] }
  0xbb   :  { %v11942_v32 = vld [vmem:[#allocation2 + $0x860] sm:$0xf0]  ;;  %v11020_v27 = vld [vmem:[#allocation2 + $0x108] sm:$0xf] }
  0xbc   :  { %v16612_v36 = vld [vmem:[#allocation2 + $0xa44] sm:$0xf]  ;;  %v11945_v45 = vor.u32 %v16548_v31, %v11942_v32  ;;  %2712 = vmatpush.bf16.msra.mxu1 %v11689_v43  ;;  %v16321_v28 = vld [vmem:[#allocation2 + $0x124] sm:$0xf0]  ;;  %v11821_v31 = vor.u32 %v16521_v23, %v11820_v22 }
  0xbd   :  { %v12198_v37 = vld [vmem:[#allocation2 + $0xa60] sm:$0xf0]  ;;  %v11276_v29 = vld [vmem:[#allocation2 + $0x308] sm:$0xf] }
  0xbe   :  { %v16412_v39 = vld [vmem:[#allocation2 + $0x404] sm:$0xf]  ;;  %v12201_v49 = vor.u32 %v16612_v36, %v12198_v37  ;;  %2725 = vmatpush.bf16.msra.mxu2 %v11945_v45  ;;  %v16385_v32 = vld [vmem:[#allocation2 + $0x324] sm:$0xf0] }
  0xbf   :  { %v11398_v40 = vld [vmem:[#allocation2 + $0x420] sm:$0xf0]  ;;  %v11532_v36 = vld [vmem:[#allocation2 + $0x508] sm:$0xf] }
  0xc0   :  { %v16476_v42 = vld [vmem:[#allocation2 + $0x604] sm:$0xf]  ;;  %v11401_v56 = vor.u32 %v16412_v39, %v11398_v40  ;;  %2738 = vmatpush.bf16.msra.mxu3 %v12201_v49  ;;  %v16449_v37 = vld [vmem:[#allocation2 + $0x524] sm:$0xf0]  ;;  %v11021_v40 = vor.u32 %v16321_v28, %v11020_v27 }
  0xc1   :  { %v11654_v46 = vld [vmem:[#allocation2 + $0x620] sm:$0xf0]  ;;  %v11788_v38 = vld [vmem:[#allocation2 + $0x708] sm:$0xf]  ;;  %v11533_v43 = vor.u32 %v16449_v37, %v11532_v36  ;;  %v11118_v36 = vld [vmem:[#allocation2 + $0x1e8] sm:$0xf0] }
  0xc2   :  { %v16540_v47 = vld [vmem:[#allocation2 + $0x804] sm:$0xf]  ;;  %v11657_v59 = vor.u32 %v16476_v42, %v11654_v46  ;;  %2700 = vmatpush.bf16.msra.mxu0 %v11401_v56  ;;  %v16513_v39 = vld [vmem:[#allocation2 + $0x724] sm:$0xf0]  ;;  %v11277_v42 = vor.u32 %v16385_v32, %v11276_v29  ;;  %v16341_v32 = vld [vmem:[#allocation2 + $0x1cc] sm:$0xf] }
  0xc3   :  { %v11910_v48 = vld [vmem:[#allocation2 + $0x820] sm:$0xf0]  ;;  %v10988_v45 = vld [vmem:[#allocation2 + $0xc8] sm:$0xf] }
  0xc4   :  { %v16604_v50 = vld [vmem:[#allocation2 + $0xa04] sm:$0xf]  ;;  %v11913_v60 = vor.u32 %v16540_v47, %v11910_v48  ;;  %2713 = vmatpush.bf16.msra.mxu1 %v11657_v59  ;;  %v16313_v46 = vld [vmem:[#allocation2 + $0xe4] sm:$0xf0]  ;;  %v11789_v48 = vor.u32 %v16513_v39, %v11788_v38  ;;  %v16405_v39 = vld [vmem:[#allocation2 + $0x3cc] sm:$0xf] }
  0xc5   :  { %v12166_v51 = vld [vmem:[#allocation2 + $0xa20] sm:$0xf0]  ;;  %2701 = vmatmul.bf16.vlgmr.msra.gmra.mxu0 %v18148_v34  ;;  %v11244_v47 = vld [vmem:[#allocation2 + $0x2c8] sm:$0xf]  ;;  %v10989_v54 = vor.u32 %v16313_v46, %v10988_v45  ;;  %v11121_v46 = vor.u32 %v16341_v32, %v11118_v36 }
  0xc6   :  { %v12169_v63 = vor.u32 %v16604_v50, %v12166_v51  ;;  %2726 = vmatpush.bf16.msra.mxu2 %v11913_v60  ;;  %2745 = vmatpush.bf16.msrb.mxu0 %v11117_v0  ;;  %v16377_v49 = vld [vmem:[#allocation2 + $0x2e4] sm:$0xf0] }
  0xc7   :  { %2714 = vmatmul.bf16.vlgmr.msra.gmra.mxu1 %v18154_v44  ;;  %v11500_v50 = vld [vmem:[#allocation2 + $0x4c8] sm:$0xf]  ;;  %v11245_v55 = vor.u32 %v16377_v49, %v11244_v47 }
  0xc8   :  { %2739 = vmatpush.bf16.msra.mxu3 %v12169_v63  ;;  %2758 = vmatpush.bf16.msrb.mxu1 %v11373_v1  ;;  %v16441_v51 = vld [vmem:[#allocation2 + $0x4e4] sm:$0xf0] }
  0xc9   :  { %2727 = vmatmul.bf16.vlgmr.msra.gmra.mxu2 %v18161_v30  ;;  %v11756_v52 = vld [vmem:[#allocation2 + $0x6c8] sm:$0xf]  ;;  %v11501_v56 = vor.u32 %v16441_v51, %v11500_v50 }
  0xca   :  { %2771 = vmatpush.bf16.msrb.mxu2 %v11629_v2  ;;  %2746 = vmatpush.bf16.msrb.mxu0 %v11085_v12  ;;  %v16505_v53 = vld [vmem:[#allocation2 + $0x6e4] sm:$0xf0]  ;;  %v10957_v2 = vor.u32 %v16305_v58, %v10956_v57 }
  0xcb   :  { %2740 = vmatmul.bf16.vlgmr.msra.gmra.mxu3 %v18163_v35  ;;  %v11212_v59 = vld [vmem:[#allocation2 + $0x288] sm:$0xf]  ;;  %v11757_v60 = vor.u32 %v16505_v53, %v11756_v52  ;;  %v16333_v52 = vld [vmem:[#allocation2 + $0x18c] sm:$0xf] }
  0xcc   :  { %2784 = vmatpush.bf16.msrb.mxu3 %v11885_v6  ;;  %2759 = vmatpush.bf16.msrb.mxu1 %v11341_v13  ;;  %v16369_v61 = vld [vmem:[#allocation2 + $0x2a4] sm:$0xf0]  ;;  %v11086_v53 = vld [vmem:[#allocation2 + $0x1a8] sm:$0xf0] }
  0xcd   :  { %v11468_v62 = vld [vmem:[#allocation2 + $0x488] sm:$0xf]  ;;  %v11213_v3 = vor.u32 %v16369_v61, %v11212_v59  ;;  %v11089_v58 = vor.u32 %v16333_v52, %v11086_v53 }
  0xce   :  { %2772 = vmatpush.bf16.msrb.mxu2 %v11597_v14  ;;  %2747 = vmatpush.bf16.msrb.mxu0 %v11053_v24  ;;  %v16433_v63 = vld [vmem:[#allocation2 + $0x4a4] sm:$0xf0] }
  0xcf   :  { %v11724_v0 = vld [vmem:[#allocation2 + $0x688] sm:$0xf]  ;;  %v11469_v4 = vor.u32 %v16433_v63, %v11468_v62 }
  0xd0   :  { %2785 = vmatpush.bf16.msrb.mxu3 %v11853_v18  ;;  %2760 = vmatpush.bf16.msrb.mxu1 %v11309_v25  ;;  %v16497_v1 = vld [vmem:[#allocation2 + $0x6a4] sm:$0xf0] }
  0xd1   :  { %v10924_v5 = vld [vmem:[#allocation2 + $0x48] sm:$0xf]  ;;  %v11725_v8 = vor.u32 %v16497_v1, %v11724_v0  ;;  %v16325_v0 = vld [vmem:[#allocation2 + $0x14c] sm:$0xf] }
  0xd2   :  { %2773 = vmatpush.bf16.msrb.mxu2 %v11565_v26  ;;  %2748 = vmatpush.bf16.msrb.mxu0 %v11021_v40  ;;  %v16297_v6 = vld [vmem:[#allocation2 + $0x64] sm:$0xf0]  ;;  %v11374_v40 = vld [vmem:[#allocation2 + $0x3e8] sm:$0xf0] }
  0xd3   :  { %v11180_v7 = vld [vmem:[#allocation2 + $0x248] sm:$0xf]  ;;  %v10925_v14 = vor.u32 %v16297_v6, %v10924_v5  ;;  %v11377_v50 = vor.u32 %v16405_v39, %v11374_v40  ;;  %v11054_v1 = vld [vmem:[#allocation2 + $0x168] sm:$0xf0] }
  0xd4   :  { %2786 = vmatpush.bf16.msrb.mxu3 %v11821_v31  ;;  %2761 = vmatpush.bf16.msrb.mxu1 %v11277_v42  ;;  %v16361_v9 = vld [vmem:[#allocation2 + $0x264] sm:$0xf0]  ;;  %v11057_v6 = vor.u32 %v16325_v0, %v11054_v1  ;;  %v16301_v40 = vld [vmem:[#allocation2 + $0x8c] sm:$0xf] }
  0xd5   :  { %v11436_v10 = vld [vmem:[#allocation2 + $0x448] sm:$0xf]  ;;  %v11181_v17 = vor.u32 %v16361_v9, %v11180_v7  ;;  %v16285_v1 = vld [vmem:[#allocation2 + $0xc] sm:$0xf] }
  0xd6   :  { %2774 = vmatpush.bf16.msrb.mxu2 %v11533_v43  ;;  %2749 = vmatpush.bf16.msrb.mxu0 %v10989_v54  ;;  %v16425_v11 = vld [vmem:[#allocation2 + $0x464] sm:$0xf0]  ;;  %v16397_v54 = vld [vmem:[#allocation2 + $0x38c] sm:$0xf] }
  0xd7   :  { %v11692_v12 = vld [vmem:[#allocation2 + $0x648] sm:$0xf]  ;;  %v11437_v18 = vor.u32 %v16425_v11, %v11436_v10 }
  0xd8   :  { %2787 = vmatpush.bf16.msrb.mxu3 %v11789_v48  ;;  %2762 = vmatpush.bf16.msrb.mxu1 %v11245_v55  ;;  %v16489_v13 = vld [vmem:[#allocation2 + $0x664] sm:$0xf0]  ;;  %v11342_v55 = vld [vmem:[#allocation2 + $0x3a8] sm:$0xf0] }
  0xd9   :  { %v10892_v15 = vld [vmem:[#allocation2 + $0x8] sm:$0xf]  ;;  %v11693_v22 = vor.u32 %v16489_v13, %v11692_v12  ;;  %v11345_v62 = vor.u32 %v16397_v54, %v11342_v55  ;;  %v16317_v12 = vld [vmem:[#allocation2 + $0x10c] sm:$0xf] }
  0xda   :  { %2775 = vmatpush.bf16.msrb.mxu2 %v11501_v56  ;;  %2750 = vmatpush.bf16.msrb.mxu0 %v10957_v2  ;;  %v16289_v16 = vld [vmem:[#allocation2 + $0x24] sm:$0xf0]  ;;  %v16389_v2 = vld [vmem:[#allocation2 + $0x34c] sm:$0xf] }
  0xdb   :  { %v11148_v19 = vld [vmem:[#allocation2 + $0x208] sm:$0xf]  ;;  %v10893_v29 = vor.u32 %v16289_v16, %v10892_v15  ;;  %v11022_v13 = vld [vmem:[#allocation2 + $0x128] sm:$0xf0] }
  0xdc   :  { %2788 = vmatpush.bf16.msrb.mxu3 %v11757_v60  ;;  %2763 = vmatpush.bf16.msrb.mxu1 %v11213_v3  ;;  %v16353_v20 = vld [vmem:[#allocation2 + $0x224] sm:$0xf0]  ;;  %v11310_v3 = vld [vmem:[#allocation2 + $0x368] sm:$0xf0] }
  0xdd   :  { %v11404_v21 = vld [vmem:[#allocation2 + $0x408] sm:$0xf]  ;;  %v11149_v37 = vor.u32 %v16353_v20, %v11148_v19  ;;  %v11313_v10 = vor.u32 %v16389_v2, %v11310_v3  ;;  %v11278_v15 = vld [vmem:[#allocation2 + $0x328] sm:$0xf0] }
  0xde   :  { %2776 = vmatpush.bf16.msrb.mxu2 %v11469_v4  ;;  %v16417_v23 = vld [vmem:[#allocation2 + $0x424] sm:$0xf0]  ;;  %2751 = vmatpush.bf16.msrb.mxu0 %v10925_v14  ;;  %v16381_v14 = vld [vmem:[#allocation2 + $0x30c] sm:$0xf] }
  0xdf   :  { %v11660_v24 = vld [vmem:[#allocation2 + $0x608] sm:$0xf]  ;;  %v11405_v38 = vor.u32 %v16417_v23, %v11404_v21  ;;  %v16293_v54 = vld [vmem:[#allocation2 + $0x4c] sm:$0xf] }
  0xe0   :  { %2789 = vmatpush.bf16.msrb.mxu3 %v11725_v8  ;;  %v16481_v25 = vld [vmem:[#allocation2 + $0x624] sm:$0xf0]  ;;  %2764 = vmatpush.bf16.msrb.mxu1 %v11181_v17  ;;  %v10926_v55 = vld [vmem:[#allocation2 + $0x68] sm:$0xf0] }
  0xe1   :  { %v12140_v26 = vld [vmem:[#allocation2 + $0x9c8] sm:$0xf]  ;;  %v11661_v42 = vor.u32 %v16481_v25, %v11660_v24  ;;  %v16309_v24 = vld [vmem:[#allocation2 + $0xcc] sm:$0xf] }
  0xe2   :  { %v16601_v27 = vld [vmem:[#allocation2 + $0x9e4] sm:$0xf0]  ;;  %2777 = vmatpush.bf16.msrb.mxu2 %v11437_v18  ;;  %2752 = vmatpush.bf16.msrb.mxu0 %v10893_v29  ;;  %v11025_v18 = vor.u32 %v16317_v12, %v11022_v13  ;;  %v10990_v25 = vld [vmem:[#allocation2 + $0xe8] sm:$0xf0] }
  0xe3   :  { %v12396_v28 = vld [vmem:[#allocation2 + $0xbc8] sm:$0xf]  ;;  %v12141_v43 = vor.u32 %v16601_v27, %v12140_v26  ;;  %v16373_v26 = vld [vmem:[#allocation2 + $0x2cc] sm:$0xf] }
  0xe4   :  { %v16665_v31 = vld [vmem:[#allocation2 + $0xbe4] sm:$0xf0]  ;;  %2790 = vmatpush.bf16.msrb.mxu3 %v11693_v22  ;;  %2765 = vmatpush.bf16.msrb.mxu1 %v11149_v37  ;;  %v11281_v22 = vor.u32 %v16381_v14, %v11278_v15  ;;  %v11246_v27 = vld [vmem:[#allocation2 + $0x2e8] sm:$0xf0] }
  0xe5   :  { %v12397_v45 = vor.u32 %v16665_v31, %v12396_v28  ;;  %v12108_v47 = vld [vmem:[#allocation2 + $0x988] sm:$0xf]  ;;  %2753 = vmatmul.bf16.vlgmr.msrb.gmra.mxu0 %v18146_v33  ;;  %v10993_v31 = vor.u32 %v16309_v24, %v10990_v25  ;;  %v10894_v3 = vld [vmem:[#allocation2 + $0x28] sm:$0xf0] }
  0xe6   :  { %v16593_v48 = vld [vmem:[#allocation2 + $0x9a4] sm:$0xf0]  ;;  %2778 = vmatpush.bf16.msrb.mxu2 %v11405_v38  ;;  %2797 = vmatpush.bf16.msra.mxu0 %v12141_v43  ;;  %v11249_v38 = vor.u32 %v16373_v26, %v11246_v27  ;;  %v16365_v43 = vld [vmem:[#allocation2 + $0x28c] sm:$0xf]  ;;  %v10897_v14 = vor.u32 %v16285_v1, %v10894_v3 }
  0xe7   :  { %v12364_v49 = vld [vmem:[#allocation2 + $0xb88] sm:$0xf]  ;;  %v12109_v56 = vor.u32 %v16593_v48, %v12108_v47  ;;  %2766 = vmatmul.bf16.vlgmr.msrb.gmra.mxu1 %v18150_v41  ;;  %v12142_v12 = vld [vmem:[#allocation2 + $0x9e8] sm:$0xf0] }
  0xe8   :  { %v16657_v51 = vld [vmem:[#allocation2 + $0xba4] sm:$0xf0]  ;;  %2791 = vmatpush.bf16.msrb.mxu3 %v11661_v42  ;;  %2810 = vmatpush.bf16.msra.mxu1 %v12397_v45  ;;  %v10958_v42 = vld [vmem:[#allocation2 + $0xa8] sm:$0xf0] }
  0xe9   :  { %v12365_v57 = vor.u32 %v16657_v51, %v12364_v49  ;;  %v12076_v59 = vld [vmem:[#allocation2 + $0x948] sm:$0xf]  ;;  %2779 = vmatmul.bf16.vlgmr.msrb.gmra.mxu2 %v18148_v34  ;;  %v11214_v45 = vld [vmem:[#allocation2 + $0x2a8] sm:$0xf0]  ;;  %v10961_v48 = vor.u32 %v16301_v40, %v10958_v42 }
  0xea   :  { %2823 = vmatpush.bf16.msra.mxu2 %v11121_v46  ;;  %v16585_v60 = vld [vmem:[#allocation2 + $0x964] sm:$0xf0]  ;;  %2798 = vmatpush.bf16.msra.mxu0 %v12109_v56  ;;  %v11217_v52 = vor.u32 %v16365_v43, %v11214_v45  ;;  %v16357_v56 = vld [vmem:[#allocation2 + $0x24c] sm:$0xf] }
  0xeb   :  { %v12332_v61 = vld [vmem:[#allocation2 + $0xb48] sm:$0xf]  ;;  %v12077_v4 = vor.u32 %v16585_v60, %v12076_v59  ;;  %2792 = vmatmul.bf16.vlgmr.msrb.gmra.mxu3 %v18154_v44  ;;  %v16661_v15 = vld [vmem:[#allocation2 + $0xbcc] sm:$0xf] }
  0xec   :  { %2836 = vmatpush.bf16.msra.mxu3 %v11377_v50  ;;  %v16649_v63 = vld [vmem:[#allocation2 + $0xb64] sm:$0xf0]  ;;  %2811 = vmatpush.bf16.msra.mxu1 %v12365_v57  ;;  %v11182_v57 = vld [vmem:[#allocation2 + $0x268] sm:$0xf0] }
  0xed   :  { %v12333_v5 = vor.u32 %v16649_v63, %v12332_v61  ;;  %v12044_v7 = vld [vmem:[#allocation2 + $0x908] sm:$0xf]  ;;  %v11185_v2 = vor.u32 %v16357_v56, %v11182_v57  ;;  %v11854_v25 = vld [vmem:[#allocation2 + $0x7a8] sm:$0xf0] }
  0xee   :  { %2824 = vmatpush.bf16.msra.mxu2 %v11089_v58  ;;  %v16577_v8 = vld [vmem:[#allocation2 + $0x924] sm:$0xf0]  ;;  %2799 = vmatpush.bf16.msra.mxu0 %v12077_v4  ;;  %v16349_v4 = vld [vmem:[#allocation2 + $0x20c] sm:$0xf] }
  0xef   :  { %v12300_v9 = vld [vmem:[#allocation2 + $0xb08] sm:$0xf]  ;;  %v12045_v16 = vor.u32 %v16577_v8, %v12044_v7  ;;  %v11630_v7 = vld [vmem:[#allocation2 + $0x5e8] sm:$0xf0] }
  0xf0   :  { %2837 = vmatpush.bf16.msra.mxu3 %v11345_v62  ;;  %v16641_v11 = vld [vmem:[#allocation2 + $0xb24] sm:$0xf0]  ;;  %2812 = vmatpush.bf16.msra.mxu1 %v12333_v5  ;;  %v10929_v62 = vor.u32 %v16293_v54, %v10926_v55  ;;  %v11150_v5 = vld [vmem:[#allocation2 + $0x228] sm:$0xf0] }
  0xf1   :  { %v12301_v17 = vor.u32 %v16641_v11, %v12300_v9  ;;  %v12012_v19 = vld [vmem:[#allocation2 + $0x8c8] sm:$0xf]  ;;  %v16533_v8 = vld [vmem:[#allocation2 + $0x7cc] sm:$0xf] }
  0xf2   :  { %2825 = vmatpush.bf16.msra.mxu2 %v11057_v6  ;;  %v16569_v20 = vld [vmem:[#allocation2 + $0x8e4] sm:$0xf0]  ;;  %2800 = vmatpush.bf16.msra.mxu0 %v12045_v16  ;;  %v16469_v6 = vld [vmem:[#allocation2 + $0x5cc] sm:$0xf] }
  0xf3   :  { %v12268_v21 = vld [vmem:[#allocation2 + $0xac8] sm:$0xf]  ;;  %v12013_v28 = vor.u32 %v16569_v20, %v12012_v19  ;;  %v16597_v11 = vld [vmem:[#allocation2 + $0x9cc] sm:$0xf] }
  0xf4   :  { %2838 = vmatpush.bf16.msra.mxu3 %v11313_v10  ;;  %v16633_v23 = vld [vmem:[#allocation2 + $0xae4] sm:$0xf0]  ;;  %2813 = vmatpush.bf16.msra.mxu1 %v12301_v17  ;;  %v11886_v10 = vld [vmem:[#allocation2 + $0x7e8] sm:$0xf0]  ;;  %v11153_v17 = vor.u32 %v16349_v4, %v11150_v5  ;;  %v12145_v20 = vor.u32 %v16597_v11, %v12142_v12 }
  0xf5   :  { %v12269_v29 = vor.u32 %v16633_v23, %v12268_v21  ;;  %v11980_v32 = vld [vmem:[#allocation2 + $0x888] sm:$0xf]  ;;  %v12398_v16 = vld [vmem:[#allocation2 + $0xbe8] sm:$0xf0]  ;;  %v11889_v19 = vor.u32 %v16533_v8, %v11886_v10 }
  0xf6   :  { %2826 = vmatpush.bf16.msra.mxu2 %v11025_v18  ;;  %v16561_v36 = vld [vmem:[#allocation2 + $0x8a4] sm:$0xf0]  ;;  %2801 = vmatpush.bf16.msra.mxu0 %v12013_v28  ;;  %v11633_v18 = vor.u32 %v16469_v6, %v11630_v7  ;;  %v16461_v21 = vld [vmem:[#allocation2 + $0x58c] sm:$0xf]  ;;  %v12401_v24 = vor.u32 %v16661_v15, %v12398_v16 }
  0xf7   :  { %v12236_v37 = vld [vmem:[#allocation2 + $0xa88] sm:$0xf]  ;;  %v11981_v46 = vor.u32 %v16561_v36, %v11980_v32  ;;  %v16525_v23 = vld [vmem:[#allocation2 + $0x78c] sm:$0xf] }
  0xf8   :  { %2839 = vmatpush.bf16.msra.mxu3 %v11281_v22  ;;  %v16625_v39 = vld [vmem:[#allocation2 + $0xaa4] sm:$0xf0]  ;;  %2814 = vmatpush.bf16.msra.mxu1 %v12269_v29  ;;  %v11598_v22 = vld [vmem:[#allocation2 + $0x5a8] sm:$0xf0]  ;;  %v11857_v32 = vor.u32 %v16525_v23, %v11854_v25 }
  0xf9   :  { %v12237_v47 = vor.u32 %v16625_v39, %v12236_v37  ;;  %v11948_v49 = vld [vmem:[#allocation2 + $0x848] sm:$0xf]  ;;  %v16589_v26 = vld [vmem:[#allocation2 + $0x98c] sm:$0xf] }
  0xfa   :  { %2827 = vmatpush.bf16.msra.mxu2 %v10993_v31  ;;  %v16553_v50 = vld [vmem:[#allocation2 + $0x864] sm:$0xf0]  ;;  %2802 = vmatpush.bf16.msra.mxu0 %v11981_v46  ;;  %v12110_v27 = vld [vmem:[#allocation2 + $0x9a8] sm:$0xf0]  ;;  %v11601_v31 = vor.u32 %v16461_v21, %v11598_v22 }
  0xfb   :  { %v12204_v51 = vld [vmem:[#allocation2 + $0xa48] sm:$0xf]  ;;  %v11949_v58 = vor.u32 %v16553_v50, %v11948_v49  ;;  %v16653_v28 = vld [vmem:[#allocation2 + $0xb8c] sm:$0xf]  ;;  %v12113_v36 = vor.u32 %v16589_v26, %v12110_v27 }
  0xfc   :  { %2840 = vmatpush.bf16.msra.mxu3 %v11249_v38  ;;  %v16617_v53 = vld [vmem:[#allocation2 + $0xa64] sm:$0xf0]  ;;  %2815 = vmatpush.bf16.msra.mxu1 %v12237_v47  ;;  %v12366_v29 = vld [vmem:[#allocation2 + $0xba8] sm:$0xf0] }
  0xfd   :  { %v11916_v59 = vld [vmem:[#allocation2 + $0x808] sm:$0xf]  ;;  %v12205_v61 = vor.u32 %v16617_v53, %v12204_v51  ;;  %v16453_v37 = vld [vmem:[#allocation2 + $0x54c] sm:$0xf]  ;;  %v12369_v40 = vor.u32 %v16653_v28, %v12366_v29 }
  0xfe   :  { %v16545_v60 = vld [vmem:[#allocation2 + $0x824] sm:$0xf0]  ;;  %2828 = vmatpush.bf16.msra.mxu2 %v10961_v48  ;;  %2803 = vmatpush.bf16.msra.mxu0 %v11949_v58  ;;  %v11566_v38 = vld [vmem:[#allocation2 + $0x568] sm:$0xf0] }
  0xff   :  { %v12172_v63 = vld [vmem:[#allocation2 + $0xa08] sm:$0xf]  ;;  %v11917_v9 = vor.u32 %v16545_v60, %v11916_v59  ;;  %v16517_v39 = vld [vmem:[#allocation2 + $0x74c] sm:$0xf]  ;;  %v11569_v48 = vor.u32 %v16453_v37, %v11566_v38 }
 0x100   :  { %v16609_v0 = vld [vmem:[#allocation2 + $0xa24] sm:$0xf0]  ;;  %2841 = vmatpush.bf16.msra.mxu3 %v11217_v52  ;;  %2816 = vmatpush.bf16.msra.mxu1 %v12205_v61  ;;  %v11822_v42 = vld [vmem:[#allocation2 + $0x768] sm:$0xf0] }
 0x101   :  { %v12173_v13 = vor.u32 %v16609_v0, %v12172_v63  ;;  %v16581_v43 = vld [vmem:[#allocation2 + $0x94c] sm:$0xf]  ;;  %v11825_v49 = vor.u32 %v16517_v39, %v11822_v42  ;;  %v2598_v42 = vpop.f32.mrf.mxu0 }
 0x102   :  { %2829 = vmatpush.bf16.msra.mxu2 %v10929_v62  ;;  %2804 = vmatpush.bf16.msra.mxu0 %v11917_v9  ;;  %v12078_v45 = vld [vmem:[#allocation2 + $0x968] sm:$0xf0] }
 0x103   :  { %v16645_v46 = vld [vmem:[#allocation2 + $0xb4c] sm:$0xf]  ;;  %v12081_v50 = vor.u32 %v16581_v43, %v12078_v45 }
 0x104   :  { %2842 = vmatpush.bf16.msra.mxu3 %v11185_v2  ;;  %2817 = vmatpush.bf16.msra.mxu1 %v12173_v13  ;;  %v12334_v47 = vld [vmem:[#allocation2 + $0xb68] sm:$0xf0] }
 0x105   :  { %2805 = vmatmul.bf16.vlgmr.msra.gmra.mxu0 %v18161_v30  ;;  %v16445_v51 = vld [vmem:[#allocation2 + $0x50c] sm:$0xf]  ;;  %v12337_v54 = vor.u32 %v16645_v46, %v12334_v47 }
 0x106   :  { %2830 = vmatpush.bf16.msra.mxu2 %v10897_v14  ;;  %2849 = vmatpush.bf16.msrb.mxu0 %v11633_v18  ;;  %v11534_v52 = vld [vmem:[#allocation2 + $0x528] sm:$0xf0]  ;;  %v18181_v18 = vld [vmem:[#allocation6] sm:$0xff] }
 0x107   :  { %2818 = vmatmul.bf16.vlgmr.msra.gmra.mxu1 %v18163_v35  ;;  %v16509_v53 = vld [vmem:[#allocation2 + $0x70c] sm:$0xf]  ;;  %v11537_v60 = vor.u32 %v16445_v51, %v11534_v52  ;;  %v653_v27 = vperm.slane %v18181_v18, 0 }
 0x108   :  { %2843 = vmatpush.bf16.msra.mxu3 %v11153_v17  ;;  %2862 = vmatpush.bf16.msrb.mxu1 %v11889_v19  ;;  %v11790_v55 = vld [vmem:[#allocation2 + $0x728] sm:$0xf0] }
 0x109   :  { %2831 = vmatmul.bf16.vlgmr.msra.gmra.mxu2 %v18146_v33  ;;  %v16573_v56 = vld [vmem:[#allocation2 + $0x90c] sm:$0xf]  ;;  %v11793_v61 = vor.u32 %v16509_v53, %v11790_v55  ;;  %v11124_v55 = vld [vmem:[#allocation2 + $0x1d0] sm:$0xf] }
 0x10a   :  { %2875 = vmatpush.bf16.msrb.mxu2 %v12145_v20  ;;  %2850 = vmatpush.bf16.msrb.mxu0 %v11601_v31  ;;  %v12046_v57 = vld [vmem:[#allocation2 + $0x928] sm:$0xf0] }
 0x10b   :  { %2844 = vmatmul.bf16.vlgmr.msra.gmra.mxu3 %v18150_v41  ;;  %v16637_v58 = vld [vmem:[#allocation2 + $0xb0c] sm:$0xf]  ;;  %v12049_v62 = vor.u32 %v16573_v56, %v12046_v57  ;;  %v16346_v56 = vld [vmem:[#allocation2 + $0x1ec] sm:$0xf0] }
 0x10c   :  { %2888 = vmatpush.bf16.msrb.mxu3 %v12401_v24  ;;  %2863 = vmatpush.bf16.msrb.mxu1 %v11857_v32  ;;  %v12302_v59 = vld [vmem:[#allocation2 + $0xb28] sm:$0xf0]  ;;  %v11380_v57 = vld [vmem:[#allocation2 + $0x3d0] sm:$0xf] }
 0x10d   :  { %v16437_v63 = vld [vmem:[#allocation2 + $0x4cc] sm:$0xf]  ;;  %v12305_v2 = vor.u32 %v16637_v58, %v12302_v59 }
 0x10e   :  { %2876 = vmatpush.bf16.msrb.mxu2 %v12113_v36  ;;  %2851 = vmatpush.bf16.msrb.mxu0 %v11569_v48  ;;  %v11502_v0 = vld [vmem:[#allocation2 + $0x4e8] sm:$0xf0] }
 0x10f   :  { %v16501_v1 = vld [vmem:[#allocation2 + $0x6cc] sm:$0xf]  ;;  %v11505_v8 = vor.u32 %v16437_v63, %v11502_v0 }
 0x110   :  { %2889 = vmatpush.bf16.msrb.mxu3 %v12369_v40  ;;  %2864 = vmatpush.bf16.msrb.mxu1 %v11825_v49  ;;  %v11758_v3 = vld [vmem:[#allocation2 + $0x6e8] sm:$0xf0]  ;;  %v2599_v49 = vadd.f32 %v2598_v42, %v653_v27  ;;  %v11316_v27 = vld [vmem:[#allocation2 + $0x350] sm:$0xf] }
 0x111   :  { %v16565_v4 = vld [vmem:[#allocation2 + $0x8cc] sm:$0xf]  ;;  %v11761_v10 = vor.u32 %v16501_v1, %v11758_v3  ;;  %v11892_v1 = vld [vmem:[#allocation2 + $0x7d0] sm:$0xf] }
 0x112   :  { %2877 = vmatpush.bf16.msrb.mxu2 %v12081_v50  ;;  %v12014_v5 = vld [vmem:[#allocation2 + $0x8e8] sm:$0xf0]  ;;  %2852 = vmatpush.bf16.msrb.mxu0 %v11537_v60  ;;  %v2611_v50 = vpop.f32.mrf.mxu1  ;;  %v16410_v60 = vld [vmem:[#allocation2 + $0x3ec] sm:$0xf0] }
 0x113   :  { %v16629_v6 = vld [vmem:[#allocation2 + $0xacc] sm:$0xf]  ;;  %v12017_v11 = vor.u32 %v16565_v4, %v12014_v5  ;;  %v2612_v58 = vadd.f32 %v2611_v50, %v2599_v49  ;;  %v11125_v4 = vor.u32 %v16346_v56, %v11124_v55  ;;  %v2624_v5 = vpop.f32.mrf.mxu2  ;;  %v16386_v49 = vld [vmem:[#allocation2 + $0x32c] sm:$0xf0] }
 0x114   :  { %2890 = vmatpush.bf16.msrb.mxu3 %v12337_v54  ;;  %v12270_v7 = vld [vmem:[#allocation2 + $0xae8] sm:$0xf0]  ;;  %2865 = vmatpush.bf16.msrb.mxu1 %v11793_v61  ;;  %v11636_v61 = vld [vmem:[#allocation2 + $0x5d0] sm:$0xf] }
 0x115   :  { %v16429_v9 = vld [vmem:[#allocation2 + $0x48c] sm:$0xf]  ;;  %v12273_v15 = vor.u32 %v16629_v6, %v12270_v7  ;;  %v11381_v6 = vor.u32 %v16410_v60, %v11380_v57  ;;  %v11540_v50 = vld [vmem:[#allocation2 + $0x510] sm:$0xf] }
 0x116   :  { %2878 = vmatpush.bf16.msrb.mxu2 %v12049_v62  ;;  %v11470_v12 = vld [vmem:[#allocation2 + $0x4a8] sm:$0xf0]  ;;  %2853 = vmatpush.bf16.msrb.mxu0 %v11505_v8  ;;  %v16474_v62 = vld [vmem:[#allocation2 + $0x5ec] sm:$0xf0] }
 0x117   :  { %v16493_v13 = vld [vmem:[#allocation2 + $0x68c] sm:$0xf]  ;;  %v11473_v21 = vor.u32 %v16429_v9, %v11470_v12  ;;  %v11637_v7 = vor.u32 %v16474_v62, %v11636_v61  ;;  %v11092_v8 = vld [vmem:[#allocation2 + $0x190] sm:$0xf] }
 0x118   :  { %v11726_v14 = vld [vmem:[#allocation2 + $0x6a8] sm:$0xf0]  ;;  %2891 = vmatpush.bf16.msrb.mxu3 %v12305_v2  ;;  %2866 = vmatpush.bf16.msrb.mxu1 %v11761_v10  ;;  %v16538_v2 = vld [vmem:[#allocation2 + $0x7ec] sm:$0xf0] }
 0x119   :  { %v16557_v16 = vld [vmem:[#allocation2 + $0x88c] sm:$0xf]  ;;  %v11729_v23 = vor.u32 %v16493_v13, %v11726_v14  ;;  %v16338_v9 = vld [vmem:[#allocation2 + $0x1ac] sm:$0xf0]  ;;  %v11893_v12 = vor.u32 %v16538_v2, %v11892_v1 }
 0x11a   :  { %v11982_v17 = vld [vmem:[#allocation2 + $0x8a8] sm:$0xf0]  ;;  %2879 = vmatpush.bf16.msrb.mxu2 %v12017_v11  ;;  %2854 = vmatpush.bf16.msrb.mxu0 %v11473_v21  ;;  %v11348_v10 = vld [vmem:[#allocation2 + $0x390] sm:$0xf]  ;;  %v2625_v11 = vadd.f32 %v2624_v5, %v2612_v58  ;;  %v11093_v21 = vor.u32 %v16338_v9, %v11092_v8 }
 0x11b   :  { %v16621_v19 = vld [vmem:[#allocation2 + $0xa8c] sm:$0xf]  ;;  %v11985_v24 = vor.u32 %v16557_v16, %v11982_v17  ;;  %v16402_v13 = vld [vmem:[#allocation2 + $0x3ac] sm:$0xf0]  ;;  %v2600_v16 = vpop.f32.mrf.mxu0 }
 0x11c   :  { %v12238_v20 = vld [vmem:[#allocation2 + $0xaa8] sm:$0xf0]  ;;  %2892 = vmatpush.bf16.msrb.mxu3 %v12273_v15  ;;  %2867 = vmatpush.bf16.msrb.mxu1 %v11729_v23  ;;  %v11604_v14 = vld [vmem:[#allocation2 + $0x590] sm:$0xf]  ;;  %v11349_v23 = vor.u32 %v16402_v13, %v11348_v10 }
 0x11d   :  { %v16421_v22 = vld [vmem:[#allocation2 + $0x44c] sm:$0xf]  ;;  %v12241_v28 = vor.u32 %v16621_v19, %v12238_v20  ;;  %v16466_v15 = vld [vmem:[#allocation2 + $0x5ac] sm:$0xf0]  ;;  %v2613_v20 = vpop.f32.mrf.mxu1 }
 0x11e   :  { %v11438_v25 = vld [vmem:[#allocation2 + $0x468] sm:$0xf0]  ;;  %2880 = vmatpush.bf16.msrb.mxu2 %v11985_v24  ;;  %v11860_v17 = vld [vmem:[#allocation2 + $0x790] sm:$0xf]  ;;  %v11605_v24 = vor.u32 %v16466_v15, %v11604_v14 }
 0x11f   :  { %v16485_v26 = vld [vmem:[#allocation2 + $0x64c] sm:$0xf]  ;;  %v11441_v38 = vor.u32 %v16421_v22, %v11438_v25  ;;  %v16530_v19 = vld [vmem:[#allocation2 + $0x7ac] sm:$0xf0]  ;;  %v2637_v22 = vpop.f32.mrf.mxu3 }
 0x120   :  { %v11694_v29 = vld [vmem:[#allocation2 + $0x668] sm:$0xf0]  ;;  %2893 = vmatpush.bf16.msrb.mxu3 %v12241_v28  ;;  %v11060_v25 = vld [vmem:[#allocation2 + $0x150] sm:$0xf]  ;;  %v2638_v28 = vadd.f32 %v2637_v22, %v2625_v11 }
 0x121   :  { %v16549_v31 = vld [vmem:[#allocation2 + $0x84c] sm:$0xf]  ;;  %v11697_v43 = vor.u32 %v16485_v26, %v11694_v29  ;;  %2855 = vmatpush.bf16.msrb.mxu0 %v11441_v38  ;;  %v16330_v26 = vld [vmem:[#allocation2 + $0x16c] sm:$0xf0]  ;;  %v11861_v29 = vor.u32 %v16530_v19, %v11860_v17 }
 0x122   :  { %v11950_v32 = vld [vmem:[#allocation2 + $0x868] sm:$0xf0]  ;;  %v16522_v38 = vld [vmem:[#allocation2 + $0x76c] sm:$0xf0] }
 0x123   :  { %v16613_v36 = vld [vmem:[#allocation2 + $0xa4c] sm:$0xf]  ;;  %v11953_v45 = vor.u32 %v16549_v31, %v11950_v32  ;;  %2868 = vmatpush.bf16.msrb.mxu1 %v11697_v43  ;;  %v16394_v31 = vld [vmem:[#allocation2 + $0x36c] sm:$0xf0] }
 0x124   :  { %v12206_v37 = vld [vmem:[#allocation2 + $0xa68] sm:$0xf0]  ;;  %v11572_v32 = vld [vmem:[#allocation2 + $0x550] sm:$0xf]  ;;  %v11317_v42 = vor.u32 %v16394_v31, %v11316_v27 }
 0x125   :  { %v16413_v39 = vld [vmem:[#allocation2 + $0x40c] sm:$0xf]  ;;  %v12209_v51 = vor.u32 %v16613_v36, %v12206_v37  ;;  %2881 = vmatpush.bf16.msrb.mxu2 %v11953_v45  ;;  %v16458_v36 = vld [vmem:[#allocation2 + $0x56c] sm:$0xf0]  ;;  %v2663_v58 = vpop.f32.mrf.mxu1 }
 0x126   :  { %v11406_v40 = vld [vmem:[#allocation2 + $0x428] sm:$0xf0]  ;;  %v11828_v37 = vld [vmem:[#allocation2 + $0x750] sm:$0xf]  ;;  %v11573_v43 = vor.u32 %v16458_v36, %v11572_v32 }
 0x127   :  { %v16477_v46 = vld [vmem:[#allocation2 + $0x60c] sm:$0xf]  ;;  %v11409_v59 = vor.u32 %v16413_v39, %v11406_v40  ;;  %2894 = vmatpush.bf16.msrb.mxu3 %v12209_v51  ;;  %v11061_v39 = vor.u32 %v16330_v26, %v11060_v25  ;;  %v2626_v40 = vpop.f32.mrf.mxu2  ;;  %v11028_v45 = vld [vmem:[#allocation2 + $0x110] sm:$0xf]  ;;  %v2639_v56 = vpop.f32.mrf.mxu3 }
 0x128   :  { %v11662_v47 = vld [vmem:[#allocation2 + $0x628] sm:$0xf0]  ;;  %v16450_v51 = vld [vmem:[#allocation2 + $0x52c] sm:$0xf0] }
 0x129   :  { %v16541_v48 = vld [vmem:[#allocation2 + $0x80c] sm:$0xf]  ;;  %v11665_v63 = vor.u32 %v16477_v46, %v11662_v47  ;;  %2856 = vmatpush.bf16.msrb.mxu0 %v11409_v59  ;;  %v16322_v46 = vld [vmem:[#allocation2 + $0x12c] sm:$0xf0]  ;;  %v11541_v60 = vor.u32 %v16450_v51, %v11540_v50 }
 0x12a   :  { %v11918_v52 = vld [vmem:[#allocation2 + $0x828] sm:$0xf0]  ;;  %v11284_v47 = vld [vmem:[#allocation2 + $0x310] sm:$0xf]  ;;  %v11029_v55 = vor.u32 %v16322_v46, %v11028_v45 }
 0x12b   :  { %v16605_v53 = vld [vmem:[#allocation2 + $0xa0c] sm:$0xf]  ;;  %v11921_v0 = vor.u32 %v16541_v48, %v11918_v52  ;;  %2869 = vmatpush.bf16.msrb.mxu1 %v11665_v63  ;;  %v11829_v48 = vor.u32 %v16522_v38, %v11828_v37  ;;  %v11796_v52 = vld [vmem:[#allocation2 + $0x710] sm:$0xf]  ;;  %v11285_v59 = vor.u32 %v16386_v49, %v11284_v47 }
 0x12c   :  { %v12174_v54 = vld [vmem:[#allocation2 + $0xa28] sm:$0xf0]  ;;  %2857 = vmatmul.bf16.vlgmr.msrb.gmra.mxu0 %v18148_v34  ;;  %v10996_v61 = vld [vmem:[#allocation2 + $0xd0] sm:$0xf] }
 0x12d   :  { %v12177_v3 = vor.u32 %v16605_v53, %v12174_v54  ;;  %2882 = vmatpush.bf16.msrb.mxu2 %v11921_v0  ;;  %2901 = vmatpush.bf16.msra.mxu0 %v11125_v4  ;;  %v16514_v53 = vld [vmem:[#allocation2 + $0x72c] sm:$0xf0]  ;;  %v2650_v54 = vpop.f32.mrf.mxu0  ;;  %v2665_v25 = vpop.f32.mrf.mxu1 }
 0x12e   :  { %2870 = vmatmul.bf16.vlgmr.msrb.gmra.mxu1 %v18154_v44  ;;  %v2651_v57 = vadd.f32 %v2650_v54, %v2638_v28  ;;  %v16314_v62 = vld [vmem:[#allocation2 + $0xec] sm:$0xf0]  ;;  %v11797_v0 = vor.u32 %v16514_v53, %v11796_v52 }
 0x12f   :  { %2895 = vmatpush.bf16.msrb.mxu3 %v12177_v3  ;;  %2914 = vmatpush.bf16.msra.mxu1 %v11381_v6  ;;  %v11252_v63 = vld [vmem:[#allocation2 + $0x2d0] sm:$0xf]  ;;  %v10997_v8 = vor.u32 %v16314_v62, %v10996_v61  ;;  %v2676_v19 = vpop.f32.mrf.mxu2 }
 0x130   :  { %2883 = vmatmul.bf16.vlgmr.msrb.gmra.mxu2 %v18161_v30  ;;  %v16378_v1 = vld [vmem:[#allocation2 + $0x2ec] sm:$0xf0]  ;;  %v18188_v4 = vadd.f32 %v2663_v58, %v2651_v57 }
 0x131   :  { %2927 = vmatpush.bf16.msra.mxu2 %v11637_v7  ;;  %2902 = vmatpush.bf16.msra.mxu0 %v11093_v21  ;;  %v11508_v2 = vld [vmem:[#allocation2 + $0x4d0] sm:$0xf]  ;;  %v654_v7 = vperm.slane %v18181_v18, 1  ;;  %v11253_v9 = vor.u32 %v16378_v1, %v11252_v63  ;;  %v16342_v63 = vld [vmem:[#allocation2 + $0x1d4] sm:$0xf] }
 0x132   :  { %2896 = vmatmul.bf16.vlgmr.msrb.gmra.mxu3 %v18163_v35  ;;  %v16442_v3 = vld [vmem:[#allocation2 + $0x4ec] sm:$0xf0] }
 0x133   :  { %2940 = vmatpush.bf16.msra.mxu3 %v11893_v12  ;;  %2915 = vmatpush.bf16.msra.mxu1 %v11349_v23  ;;  %v11764_v5 = vld [vmem:[#allocation2 + $0x6d0] sm:$0xf]  ;;  %v11509_v10 = vor.u32 %v16442_v3, %v11508_v2  ;;  %v2677_v22 = vadd.f32 %v2676_v19, %v654_v7  ;;  %v16406_v3 = vld [vmem:[#allocation2 + $0x3d4] sm:$0xf] }
 0x134   :  { %v16506_v6 = vld [vmem:[#allocation2 + $0x6ec] sm:$0xf0]  ;;  %v16398_v19 = vld [vmem:[#allocation2 + $0x394] sm:$0xf] }
 0x135   :  { %2928 = vmatpush.bf16.msra.mxu2 %v11605_v24  ;;  %2903 = vmatpush.bf16.msra.mxu0 %v11061_v39  ;;  %v10964_v11 = vld [vmem:[#allocation2 + $0x90] sm:$0xf]  ;;  %v11765_v14 = vor.u32 %v16506_v6, %v11764_v5  ;;  %v2652_v23 = vpop.f32.mrf.mxu0  ;;  %v2689_v39 = vpop.f32.mrf.mxu3  ;;  %v11382_v5 = vld [vmem:[#allocation2 + $0x3f0] sm:$0xf0] }
 0x136   :  { %v16306_v12 = vld [vmem:[#allocation2 + $0xac] sm:$0xf0] }
 0x137   :  { %2941 = vmatpush.bf16.msra.mxu3 %v11861_v29  ;;  %2916 = vmatpush.bf16.msra.mxu1 %v11317_v42  ;;  %v11220_v13 = vld [vmem:[#allocation2 + $0x290] sm:$0xf]  ;;  %v10965_v24 = vor.u32 %v16306_v12, %v10964_v11  ;;  %v2678_v57 = vpop.f32.mrf.mxu2 }
 0x138   :  { %v16370_v15 = vld [vmem:[#allocation2 + $0x2ac] sm:$0xf0] }
 0x139   :  { %2929 = vmatpush.bf16.msra.mxu2 %v11573_v43  ;;  %2904 = vmatpush.bf16.msra.mxu0 %v11029_v55  ;;  %v11476_v16 = vld [vmem:[#allocation2 + $0x490] sm:$0xf]  ;;  %v11221_v26 = vor.u32 %v16370_v15, %v11220_v13  ;;  %v18191_v43 = vadd.f32 %v2689_v39, %v2677_v22 }
 0x13a   :  { %v16434_v17 = vld [vmem:[#allocation2 + $0x4ac] sm:$0xf0] }
 0x13b   :  { %2942 = vmatpush.bf16.msra.mxu3 %v11829_v48  ;;  %2917 = vmatpush.bf16.msra.mxu1 %v11285_v59  ;;  %v11732_v20 = vld [vmem:[#allocation2 + $0x690] sm:$0xf]  ;;  %v11477_v27 = vor.u32 %v16434_v17, %v11476_v16  ;;  %v16334_v16 = vld [vmem:[#allocation2 + $0x194] sm:$0xf] }
 0x13c   :  { %v16498_v21 = vld [vmem:[#allocation2 + $0x6ac] sm:$0xf0]  ;;  %v11094_v17 = vld [vmem:[#allocation2 + $0x1b0] sm:$0xf0] }
 0x13d   :  { %2930 = vmatpush.bf16.msra.mxu2 %v11541_v60  ;;  %2905 = vmatpush.bf16.msra.mxu0 %v10997_v8  ;;  %v10932_v28 = vld [vmem:[#allocation2 + $0x50] sm:$0xf]  ;;  %v11733_v32 = vor.u32 %v16498_v21, %v11732_v20  ;;  %v2691_v8 = vpop.f32.mrf.mxu3  ;;  %v11350_v20 = vld [vmem:[#allocation2 + $0x3b0] sm:$0xf0]  ;;  %v11097_v23 = vor.u32 %v16334_v16, %v11094_v17 }
 0x13e   :  { %v16298_v29 = vld [vmem:[#allocation2 + $0x6c] sm:$0xf0]  ;;  %v16366_v17 = vld [vmem:[#allocation2 + $0x294] sm:$0xf] }
 0x13f   :  { %2943 = vmatpush.bf16.msra.mxu3 %v11797_v0  ;;  %2918 = vmatpush.bf16.msra.mxu1 %v11253_v9  ;;  %v11188_v31 = vld [vmem:[#allocation2 + $0x250] sm:$0xf]  ;;  %v10933_v45 = vor.u32 %v16298_v29, %v10932_v28  ;;  %v11126_v0 = vld [vmem:[#allocation2 + $0x1f0] sm:$0xf0] }
 0x140   :  { %v16362_v36 = vld [vmem:[#allocation2 + $0x26c] sm:$0xf0]  ;;  %v16326_v29 = vld [vmem:[#allocation2 + $0x154] sm:$0xf] }
 0x141   :  { %2931 = vmatpush.bf16.msra.mxu2 %v11509_v10  ;;  %v11444_v37 = vld [vmem:[#allocation2 + $0x450] sm:$0xf]  ;;  %2906 = vmatpush.bf16.msra.mxu0 %v10965_v24  ;;  %v11189_v48 = vor.u32 %v16362_v36, %v11188_v31  ;;  %v11129_v10 = vor.u32 %v16342_v63, %v11126_v0  ;;  %v11062_v31 = vld [vmem:[#allocation2 + $0x170] sm:$0xf0] }
 0x142   :  { %v16426_v38 = vld [vmem:[#allocation2 + $0x46c] sm:$0xf0]  ;;  %v11318_v36 = vld [vmem:[#allocation2 + $0x370] sm:$0xf0]  ;;  %v11065_v39 = vor.u32 %v16326_v29, %v11062_v31 }
 0x143   :  { %2944 = vmatpush.bf16.msra.mxu3 %v11765_v14  ;;  %v11700_v40 = vld [vmem:[#allocation2 + $0x650] sm:$0xf]  ;;  %2919 = vmatpush.bf16.msra.mxu1 %v11221_v26  ;;  %v11445_v49 = vor.u32 %v16426_v38, %v11444_v37  ;;  %v11385_v14 = vor.u32 %v16406_v3, %v11382_v5  ;;  %v16310_v63 = vld [vmem:[#allocation2 + $0xd4] sm:$0xf] }
 0x144   :  { %v16490_v42 = vld [vmem:[#allocation2 + $0x66c] sm:$0xf0]  ;;  %v10998_v0 = vld [vmem:[#allocation2 + $0xf0] sm:$0xf0] }
 0x145   :  { %v10900_v46 = vld [vmem:[#allocation2 + $0x10] sm:$0xf]  ;;  %2932 = vmatpush.bf16.msra.mxu2 %v11477_v27  ;;  %v11701_v53 = vor.u32 %v16490_v42, %v11700_v40  ;;  %2907 = vmatpush.bf16.msra.mxu0 %v10933_v45  ;;  %v11353_v27 = vor.u32 %v16398_v19, %v11350_v20  ;;  %v11222_v19 = vld [vmem:[#allocation2 + $0x2b0] sm:$0xf0] }
 0x146   :  { %v16290_v47 = vld [vmem:[#allocation2 + $0x2c] sm:$0xf0]  ;;  %v11225_v29 = vor.u32 %v16366_v17, %v11222_v19 }
 0x147   :  { %v11156_v50 = vld [vmem:[#allocation2 + $0x210] sm:$0xf]  ;;  %2945 = vmatpush.bf16.msra.mxu3 %v11733_v32  ;;  %v10901_v61 = vor.u32 %v16290_v47, %v10900_v46  ;;  %2920 = vmatpush.bf16.msra.mxu1 %v11189_v48  ;;  %v16390_v32 = vld [vmem:[#allocation2 + $0x354] sm:$0xf] }
 0x148   :  { %v16354_v51 = vld [vmem:[#allocation2 + $0x22c] sm:$0xf0]  ;;  %v11321_v46 = vor.u32 %v16390_v32, %v11318_v36  ;;  %v16318_v48 = vld [vmem:[#allocation2 + $0x114] sm:$0xf] }
 0x149   :  { %v11412_v52 = vld [vmem:[#allocation2 + $0x410] sm:$0xf]  ;;  %2933 = vmatpush.bf16.msra.mxu2 %v11445_v49  ;;  %v11157_v1 = vor.u32 %v16354_v51, %v11156_v50  ;;  %2908 = vmatpush.bf16.msra.mxu0 %v10901_v61  ;;  %v11030_v49 = vld [vmem:[#allocation2 + $0x130] sm:$0xf0] }
 0x14a   :  { %v16418_v54 = vld [vmem:[#allocation2 + $0x42c] sm:$0xf0]  ;;  %v16382_v50 = vld [vmem:[#allocation2 + $0x314] sm:$0xf] }
 0x14b   :  { %v11668_v55 = vld [vmem:[#allocation2 + $0x610] sm:$0xf]  ;;  %v11413_v2 = vor.u32 %v16418_v54, %v11412_v52  ;;  %2946 = vmatpush.bf16.msra.mxu3 %v11701_v53  ;;  %2921 = vmatpush.bf16.msra.mxu1 %v11157_v1  ;;  %v11286_v51 = vld [vmem:[#allocation2 + $0x330] sm:$0xf0]  ;;  %v2702_v53 = vpop.f32.mrf.mxu0 }
 0x14c   :  { %v16482_v56 = vld [vmem:[#allocation2 + $0x62c] sm:$0xf0]  ;;  %2909 = vmatmul.bf16.vlgmr.msra.gmra.mxu0 %v18146_v33  ;;  %v11289_v61 = vor.u32 %v16382_v50, %v11286_v51  ;;  %v16374_v1 = vld [vmem:[#allocation2 + $0x2d4] sm:$0xf] }
 0x14d   :  { %v12148_v58 = vld [vmem:[#allocation2 + $0x9d0] sm:$0xf]  ;;  %v11669_v6 = vor.u32 %v16482_v56, %v11668_v55  ;;  %2934 = vmatpush.bf16.msra.mxu2 %v11413_v2  ;;  %v11033_v55 = vor.u32 %v16318_v48, %v11030_v49  ;;  %v11254_v2 = vld [vmem:[#allocation2 + $0x2f0] sm:$0xf0] }
 0x14e   :  { %v16602_v59 = vld [vmem:[#allocation2 + $0x9ec] sm:$0xf0]  ;;  %2922 = vmatmul.bf16.vlgmr.msra.gmra.mxu1 %v18150_v41  ;;  %v2741_v16 = vpop.f32.mrf.mxu3  ;;  %v16294_v32 = vld [vmem:[#allocation2 + $0x54] sm:$0xf] }
 0x14f   :  { %v12404_v60 = vld [vmem:[#allocation2 + $0xbd0] sm:$0xf]  ;;  %v12149_v7 = vor.u32 %v16602_v59, %v12148_v58  ;;  %2947 = vmatpush.bf16.msra.mxu3 %v11669_v6  ;;  %v2703_v59 = vadd.f32 %v2702_v53, %v18191_v43  ;;  %v11257_v43 = vor.u32 %v16374_v1, %v11254_v2  ;;  %v10934_v36 = vld [vmem:[#allocation2 + $0x70] sm:$0xf0] }
 0x150   :  { %v16666_v62 = vld [vmem:[#allocation2 + $0xbec] sm:$0xf0]  ;;  %2935 = vmatmul.bf16.vlgmr.msra.gmra.mxu2 %v18148_v34  ;;  %v16286_v49 = vld [vmem:[#allocation2 + $0x14] sm:$0xf] }
 0x151   :  { %v12405_v9 = vor.u32 %v16666_v62, %v12404_v60  ;;  %v12116_v11 = vld [vmem:[#allocation2 + $0x990] sm:$0xf]  ;;  %2953 = vmatpush.bf16.msrb.mxu0 %v12149_v7  ;;  %2979 = vmatpush.bf16.msrb.mxu2 %v11129_v10  ;;  %v2715_v60 = vpop.f32.mrf.mxu1  ;;  %v11001_v7 = vor.u32 %v16310_v63, %v10998_v0  ;;  %v16350_v53 = vld [vmem:[#allocation2 + $0x214] sm:$0xf] }
 0x152   :  { %v16594_v12 = vld [vmem:[#allocation2 + $0x9ac] sm:$0xf0]  ;;  %2948 = vmatmul.bf16.vlgmr.msra.gmra.mxu3 %v18154_v44  ;;  %v2716_v3 = vadd.f32 %v2715_v60, %v2703_v59  ;;  %v11894_v60 = vld [vmem:[#allocation2 + $0x7f0] sm:$0xf0] }
 0x153   :  { %v12372_v13 = vld [vmem:[#allocation2 + $0xb90] sm:$0xf]  ;;  %v12117_v21 = vor.u32 %v16594_v12, %v12116_v11  ;;  %2966 = vmatpush.bf16.msrb.mxu1 %v12405_v9  ;;  %2992 = vmatpush.bf16.msrb.mxu3 %v11385_v14  ;;  %v2728_v11 = vpop.f32.mrf.mxu2  ;;  %v10966_v14 = vld [vmem:[#allocation2 + $0xb0] sm:$0xf0] }
 0x154   :  { %v16658_v15 = vld [vmem:[#allocation2 + $0xbac] sm:$0xf0]  ;;  %v16662_v1 = vld [vmem:[#allocation2 + $0xbd4] sm:$0xf] }
 0x155   :  { %v12373_v22 = vor.u32 %v16658_v15, %v12372_v13  ;;  %v12084_v24 = vld [vmem:[#allocation2 + $0x950] sm:$0xf]  ;;  %2954 = vmatpush.bf16.msrb.mxu0 %v12117_v21  ;;  %2980 = vmatpush.bf16.msrb.mxu2 %v11097_v23  ;;  %v16302_v13 = vld [vmem:[#allocation2 + $0x94] sm:$0xf]  ;;  %v2729_v15 = vadd.f32 %v2728_v11, %v2716_v3 }
 0x156   :  { %v16586_v25 = vld [vmem:[#allocation2 + $0x96c] sm:$0xf0]  ;;  %v12406_v2 = vld [vmem:[#allocation2 + $0xbf0] sm:$0xf0] }
 0x157   :  { %v12340_v26 = vld [vmem:[#allocation2 + $0xb50] sm:$0xf]  ;;  %v12085_v37 = vor.u32 %v16586_v25, %v12084_v24  ;;  %2967 = vmatpush.bf16.msrb.mxu1 %v12373_v22  ;;  %2993 = vmatpush.bf16.msrb.mxu3 %v11353_v27  ;;  %v18198_v21 = vadd.f32 %v2741_v16, %v2729_v15  ;;  %v2704_v22 = vpop.f32.mrf.mxu0  ;;  %v10969_v24 = vor.u32 %v16302_v13, %v10966_v14  ;;  %v12118_v13 = vld [vmem:[#allocation2 + $0x9b0] sm:$0xf0] }
 0x158   :  { %v16650_v28 = vld [vmem:[#allocation2 + $0xb6c] sm:$0xf0]  ;;  %v12409_v11 = vor.u32 %v16662_v1, %v12406_v2  ;;  %v16654_v14 = vld [vmem:[#allocation2 + $0xb94] sm:$0xf] }
 0x159   :  { %v12341_v38 = vor.u32 %v16650_v28, %v12340_v26  ;;  %v12052_v40 = vld [vmem:[#allocation2 + $0x910] sm:$0xf]  ;;  %2955 = vmatpush.bf16.msrb.mxu0 %v12085_v37  ;;  %2981 = vmatpush.bf16.msrb.mxu2 %v11065_v39  ;;  %v2717_v28 = vpop.f32.mrf.mxu1  ;;  %v16358_v37 = vld [vmem:[#allocation2 + $0x254] sm:$0xf] }
 0x15a   :  { %v16578_v42 = vld [vmem:[#allocation2 + $0x92c] sm:$0xf0]  ;;  %v12374_v15 = vld [vmem:[#allocation2 + $0xbb0] sm:$0xf0] }
 0x15b   :  { %v12308_v45 = vld [vmem:[#allocation2 + $0xb10] sm:$0xf]  ;;  %v12053_v52 = vor.u32 %v16578_v42, %v12052_v40  ;;  %2968 = vmatpush.bf16.msrb.mxu1 %v12341_v38  ;;  %2994 = vmatpush.bf16.msrb.mxu3 %v11321_v46  ;;  %v11190_v38 = vld [vmem:[#allocation2 + $0x270] sm:$0xf0]  ;;  %v10937_v46 = vor.u32 %v16294_v32, %v10934_v36  ;;  %v2730_v50 = vpop.f32.mrf.mxu2  ;;  %v655_v32 = vperm.slane %v18181_v18, 2 }
 0x15c   :  { %v16642_v47 = vld [vmem:[#allocation2 + $0xb2c] sm:$0xf0]  ;;  %v11193_v51 = vor.u32 %v16358_v37, %v11190_v38  ;;  %v11574_v22 = vld [vmem:[#allocation2 + $0x570] sm:$0xf0] }
 0x15d   :  { %v12309_v54 = vor.u32 %v16642_v47, %v12308_v45  ;;  %v12020_v56 = vld [vmem:[#allocation2 + $0x8d0] sm:$0xf]  ;;  %2956 = vmatpush.bf16.msrb.mxu0 %v12053_v52  ;;  %2982 = vmatpush.bf16.msrb.mxu2 %v11033_v55  ;;  %v10902_v52 = vld [vmem:[#allocation2 + $0x30] sm:$0xf0]  ;;  %v2743_v55 = vpop.f32.mrf.mxu3 }
 0x15e   :  { %v16570_v57 = vld [vmem:[#allocation2 + $0x8ec] sm:$0xf0]  ;;  %v10905_v0 = vor.u32 %v16286_v49, %v10902_v52  ;;  %v16646_v28 = vld [vmem:[#allocation2 + $0xb54] sm:$0xf] }
 0x15f   :  { %v12276_v58 = vld [vmem:[#allocation2 + $0xad0] sm:$0xf]  ;;  %v12021_v5 = vor.u32 %v16570_v57, %v12020_v56  ;;  %2969 = vmatpush.bf16.msrb.mxu1 %v12309_v54  ;;  %2995 = vmatpush.bf16.msrb.mxu3 %v11289_v61  ;;  %v11158_v54 = vld [vmem:[#allocation2 + $0x230] sm:$0xf0] }
 0x160   :  { %v16634_v62 = vld [vmem:[#allocation2 + $0xaec] sm:$0xf0]  ;;  %v16470_v56 = vld [vmem:[#allocation2 + $0x5d4] sm:$0xf]  ;;  %v11161_v3 = vor.u32 %v16350_v53, %v11158_v54 }
 0x161   :  { %v12277_v6 = vor.u32 %v16634_v62, %v12276_v58  ;;  %v11988_v8 = vld [vmem:[#allocation2 + $0x890] sm:$0xf]  ;;  %2957 = vmatpush.bf16.msrb.mxu0 %v12021_v5  ;;  %2983 = vmatpush.bf16.msrb.mxu2 %v11001_v7  ;;  %v11638_v57 = vld [vmem:[#allocation2 + $0x5f0] sm:$0xf0] }
 0x162   :  { %v16562_v9 = vld [vmem:[#allocation2 + $0x8ac] sm:$0xf0]  ;;  %v16534_v58 = vld [vmem:[#allocation2 + $0x7d4] sm:$0xf]  ;;  %v11641_v5 = vor.u32 %v16470_v56, %v11638_v57  ;;  %v2754_v50 = vpop.f32.mrf.mxu0 }
 0x163   :  { %v12244_v10 = vld [vmem:[#allocation2 + $0xa90] sm:$0xf]  ;;  %v11989_v20 = vor.u32 %v16562_v9, %v11988_v8  ;;  %2970 = vmatpush.bf16.msrb.mxu1 %v12277_v6  ;;  %2996 = vmatpush.bf16.msrb.mxu3 %v11257_v43  ;;  %v16598_v61 = vld [vmem:[#allocation2 + $0x9d4] sm:$0xf]  ;;  %v11897_v6 = vor.u32 %v16534_v58, %v11894_v60  ;;  %v2755_v52 = vadd.f32 %v2754_v50, %v655_v32 }
 0x164   :  { %v16626_v12 = vld [vmem:[#allocation2 + $0xaac] sm:$0xf0]  ;;  %v12150_v62 = vld [vmem:[#allocation2 + $0x9f0] sm:$0xf0]  ;;  %v2767_v53 = vpop.f32.mrf.mxu1 }
 0x165   :  { %v12245_v23 = vor.u32 %v16626_v12, %v12244_v10  ;;  %v11956_v25 = vld [vmem:[#allocation2 + $0x850] sm:$0xf]  ;;  %2958 = vmatpush.bf16.msrb.mxu0 %v11989_v20  ;;  %2984 = vmatpush.bf16.msrb.mxu2 %v10969_v24  ;;  %v12153_v7 = vor.u32 %v16598_v61, %v12150_v62  ;;  %v16462_v8 = vld [vmem:[#allocation2 + $0x594] sm:$0xf]  ;;  %v12377_v24 = vor.u32 %v16654_v14, %v12374_v15 }
 0x166   :  { %v16554_v26 = vld [vmem:[#allocation2 + $0x86c] sm:$0xf0]  ;;  %v11606_v9 = vld [vmem:[#allocation2 + $0x5b0] sm:$0xf0]  ;;  %v2768_v62 = vadd.f32 %v2767_v53, %v2755_v52  ;;  %v11132_v53 = vld [vmem:[#allocation2 + $0x1d8] sm:$0xf] }
 0x167   :  { %v12212_v27 = vld [vmem:[#allocation2 + $0xa50] sm:$0xf]  ;;  %v11957_v39 = vor.u32 %v16554_v26, %v11956_v25  ;;  %2971 = vmatpush.bf16.msrb.mxu1 %v12245_v23  ;;  %2997 = vmatpush.bf16.msrb.mxu3 %v11225_v29  ;;  %v16526_v10 = vld [vmem:[#allocation2 + $0x794] sm:$0xf]  ;;  %v11609_v16 = vor.u32 %v16462_v8, %v11606_v9 }
 0x168   :  { %v16618_v31 = vld [vmem:[#allocation2 + $0xa6c] sm:$0xf0]  ;;  %v11862_v43 = vld [vmem:[#allocation2 + $0x7b0] sm:$0xf0] }
 0x169   :  { %v11924_v40 = vld [vmem:[#allocation2 + $0x810] sm:$0xf]  ;;  %v12213_v45 = vor.u32 %v16618_v31, %v12212_v27  ;;  %2959 = vmatpush.bf16.msrb.mxu0 %v11957_v39  ;;  %2985 = vmatpush.bf16.msrb.mxu2 %v10937_v46  ;;  %v16590_v12 = vld [vmem:[#allocation2 + $0x994] sm:$0xf]  ;;  %v11865_v17 = vor.u32 %v16526_v10, %v11862_v43 }
 0x16a   :  { %v16546_v42 = vld [vmem:[#allocation2 + $0x82c] sm:$0xf0]  ;;  %v12121_v19 = vor.u32 %v16590_v12, %v12118_v13  ;;  %v16454_v20 = vld [vmem:[#allocation2 + $0x554] sm:$0xf]  ;;  %v2756_v15 = vpop.f32.mrf.mxu0 }
 0x16b   :  { %v12180_v47 = vld [vmem:[#allocation2 + $0xa10] sm:$0xf]  ;;  %v11925_v59 = vor.u32 %v16546_v42, %v11924_v40  ;;  %2972 = vmatpush.bf16.msrb.mxu1 %v12213_v45  ;;  %2998 = vmatpush.bf16.msrb.mxu3 %v11193_v51  ;;  %v16518_v23 = vld [vmem:[#allocation2 + $0x754] sm:$0xf]  ;;  %v11577_v31 = vor.u32 %v16454_v20, %v11574_v22 }
 0x16c   :  { %v16610_v48 = vld [vmem:[#allocation2 + $0xa2c] sm:$0xf0]  ;;  %v11830_v25 = vld [vmem:[#allocation2 + $0x770] sm:$0xf0]  ;;  %v2780_v43 = vpop.f32.mrf.mxu2 }
 0x16d   :  { %v12181_v63 = vor.u32 %v16610_v48, %v12180_v47  ;;  %2960 = vmatpush.bf16.msrb.mxu0 %v11925_v59  ;;  %2986 = vmatpush.bf16.msrb.mxu2 %v10905_v0  ;;  %v16582_v26 = vld [vmem:[#allocation2 + $0x954] sm:$0xf]  ;;  %v11833_v36 = vor.u32 %v16518_v23, %v11830_v25  ;;  %v2781_v14 = vadd.f32 %v2780_v43, %v2768_v62  ;;  %v11900_v62 = vld [vmem:[#allocation2 + $0x7d8] sm:$0xf] }
 0x16e   :  { %v12086_v27 = vld [vmem:[#allocation2 + $0x970] sm:$0xf0]  ;;  %v11868_v43 = vld [vmem:[#allocation2 + $0x798] sm:$0xf] }
 0x16f   :  { %2973 = vmatpush.bf16.msrb.mxu1 %v12181_v63  ;;  %2999 = vmatpush.bf16.msrb.mxu3 %v11161_v3  ;;  %v12342_v29 = vld [vmem:[#allocation2 + $0xb70] sm:$0xf0]  ;;  %v12089_v37 = vor.u32 %v16582_v26, %v12086_v27 }
 0x170   :  { %2961 = vmatmul.bf16.vlgmr.msrb.gmra.mxu0 %v18161_v30  ;;  %2987 = vmatmul.bf16.vlgmr.msrb.gmra.mxu2 %v18146_v33  ;;  %v16446_v38 = vld [vmem:[#allocation2 + $0x514] sm:$0xf]  ;;  %v12345_v42 = vor.u32 %v16646_v28, %v12342_v29 }
 0x171   :  { %3005 = vmatpush.bf16.msra.mxu0 %v11641_v5  ;;  %3031 = vmatpush.bf16.msra.mxu2 %v12153_v7  ;;  %v11542_v39 = vld [vmem:[#allocation2 + $0x530] sm:$0xf0] }
 0x172   :  { %2974 = vmatmul.bf16.vlgmr.msrb.gmra.mxu1 %v18163_v35  ;;  %3000 = vmatmul.bf16.vlgmr.msrb.gmra.mxu3 %v18150_v41  ;;  %v16510_v40 = vld [vmem:[#allocation2 + $0x714] sm:$0xf]  ;;  %v11545_v51 = vor.u32 %v16446_v38, %v11542_v39 }
 0x173   :  { %3018 = vmatpush.bf16.msra.mxu1 %v11897_v6  ;;  %3044 = vmatpush.bf16.msra.mxu3 %v12409_v11  ;;  %v11798_v45 = vld [vmem:[#allocation2 + $0x730] sm:$0xf0] }
 0x174   :  { %v16574_v46 = vld [vmem:[#allocation2 + $0x914] sm:$0xf]  ;;  %v11801_v18 = vor.u32 %v16510_v40, %v11798_v45  ;;  %v2782_v52 = vpop.f32.mrf.mxu2 }
 0x175   :  { %3006 = vmatpush.bf16.msra.mxu0 %v11609_v16  ;;  %3032 = vmatpush.bf16.msra.mxu2 %v12121_v19  ;;  %v12054_v47 = vld [vmem:[#allocation2 + $0x930] sm:$0xf0]  ;;  %v2793_v16 = vpop.f32.mrf.mxu3  ;;  %v2769_v19 = vpop.f32.mrf.mxu1 }
 0x176   :  { %v16638_v48 = vld [vmem:[#allocation2 + $0xb14] sm:$0xf]  ;;  %v12057_v54 = vor.u32 %v16574_v46, %v12054_v47  ;;  %v18205_v26 = vadd.f32 %v2793_v16, %v2781_v14  ;;  %v11068_v16 = vld [vmem:[#allocation2 + $0x158] sm:$0xf] }
 0x177   :  { %3019 = vmatpush.bf16.msra.mxu1 %v11865_v17  ;;  %3045 = vmatpush.bf16.msra.mxu3 %v12377_v24  ;;  %v12310_v49 = vld [vmem:[#allocation2 + $0xb30] sm:$0xf0]  ;;  %v11324_v19 = vld [vmem:[#allocation2 + $0x358] sm:$0xf] }
 0x178   :  { %v16438_v55 = vld [vmem:[#allocation2 + $0x4d4] sm:$0xf]  ;;  %v12313_v58 = vor.u32 %v16638_v48, %v12310_v49 }
 0x179   :  { %3007 = vmatpush.bf16.msra.mxu0 %v11577_v31  ;;  %3033 = vmatpush.bf16.msra.mxu2 %v12089_v37  ;;  %v11510_v56 = vld [vmem:[#allocation2 + $0x4f0] sm:$0xf0] }
 0x17a   :  { %v16502_v57 = vld [vmem:[#allocation2 + $0x6d4] sm:$0xf]  ;;  %v11513_v1 = vor.u32 %v16438_v55, %v11510_v56 }
 0x17b   :  { %3020 = vmatpush.bf16.msra.mxu1 %v11833_v36  ;;  %3046 = vmatpush.bf16.msra.mxu3 %v12345_v42  ;;  %v11766_v59 = vld [vmem:[#allocation2 + $0x6f0] sm:$0xf0] }
 0x17c   :  { %v16566_v60 = vld [vmem:[#allocation2 + $0x8d4] sm:$0xf]  ;;  %v11769_v2 = vor.u32 %v16502_v57, %v11766_v59  ;;  %v16411_v57 = vld [vmem:[#allocation2 + $0x3f4] sm:$0xf0] }
 0x17d   :  { %v12022_v61 = vld [vmem:[#allocation2 + $0x8f0] sm:$0xf0]  ;;  %3008 = vmatpush.bf16.msra.mxu0 %v11545_v51  ;;  %3034 = vmatpush.bf16.msra.mxu2 %v12057_v54  ;;  %v11388_v54 = vld [vmem:[#allocation2 + $0x3d8] sm:$0xf]  ;;  %v2795_v55 = vpop.f32.mrf.mxu3 }
 0x17e   :  { %v16630_v63 = vld [vmem:[#allocation2 + $0xad4] sm:$0xf]  ;;  %v12025_v3 = vor.u32 %v16566_v60, %v12022_v61  ;;  %v16475_v59 = vld [vmem:[#allocation2 + $0x5f4] sm:$0xf0] }
 0x17f   :  { %v12278_v0 = vld [vmem:[#allocation2 + $0xaf0] sm:$0xf0]  ;;  %3021 = vmatpush.bf16.msra.mxu1 %v11801_v18  ;;  %3047 = vmatpush.bf16.msra.mxu3 %v12313_v58  ;;  %v16347_v18 = vld [vmem:[#allocation2 + $0x1f4] sm:$0xf0] }
 0x180   :  { %v16430_v5 = vld [vmem:[#allocation2 + $0x494] sm:$0xf]  ;;  %v12281_v8 = vor.u32 %v16630_v63, %v12278_v0  ;;  %v11644_v58 = vld [vmem:[#allocation2 + $0x5d8] sm:$0xf] }
 0x181   :  { %v11478_v6 = vld [vmem:[#allocation2 + $0x4b0] sm:$0xf0]  ;;  %3009 = vmatpush.bf16.msra.mxu0 %v11513_v1  ;;  %3035 = vmatpush.bf16.msra.mxu2 %v12025_v3  ;;  %v16539_v63 = vld [vmem:[#allocation2 + $0x7f4] sm:$0xf0]  ;;  %v11133_v1 = vor.u32 %v16347_v18, %v11132_v53  ;;  %v11645_v3 = vor.u32 %v16475_v59, %v11644_v58 }
 0x182   :  { %v16494_v7 = vld [vmem:[#allocation2 + $0x694] sm:$0xf]  ;;  %v11481_v17 = vor.u32 %v16430_v5, %v11478_v6  ;;  %v11100_v5 = vld [vmem:[#allocation2 + $0x198] sm:$0xf] }
 0x183   :  { %v11734_v9 = vld [vmem:[#allocation2 + $0x6b0] sm:$0xf0]  ;;  %3022 = vmatpush.bf16.msra.mxu1 %v11769_v2  ;;  %3048 = vmatpush.bf16.msra.mxu3 %v12281_v8  ;;  %v11389_v2 = vor.u32 %v16411_v57, %v11388_v54  ;;  %v16339_v6 = vld [vmem:[#allocation2 + $0x1b4] sm:$0xf0]  ;;  %v11901_v8 = vor.u32 %v16539_v63, %v11900_v62  ;;  %v18214_v62 = vld [vmem:[#allocation6] sm:$0xff] }
 0x184   :  { %v16558_v10 = vld [vmem:[#allocation2 + $0x894] sm:$0xf]  ;;  %v11737_v20 = vor.u32 %v16494_v7, %v11734_v9  ;;  %v11356_v7 = vld [vmem:[#allocation2 + $0x398] sm:$0xf] }
 0x185   :  { %v11990_v11 = vld [vmem:[#allocation2 + $0x8b0] sm:$0xf0]  ;;  %3010 = vmatpush.bf16.msra.mxu0 %v11481_v17  ;;  %v16403_v9 = vld [vmem:[#allocation2 + $0x3b4] sm:$0xf0] }
 0x186   :  { %v16622_v12 = vld [vmem:[#allocation2 + $0xa94] sm:$0xf]  ;;  %v11993_v22 = vor.u32 %v16558_v10, %v11990_v11  ;;  %v11612_v10 = vld [vmem:[#allocation2 + $0x598] sm:$0xf]  ;;  %v11357_v14 = vor.u32 %v16403_v9, %v11356_v7 }
 0x187   :  { %v12246_v13 = vld [vmem:[#allocation2 + $0xab0] sm:$0xf0]  ;;  %3023 = vmatpush.bf16.msra.mxu1 %v11737_v20  ;;  %v16467_v11 = vld [vmem:[#allocation2 + $0x5b4] sm:$0xf0] }
 0x188   :  { %v16422_v23 = vld [vmem:[#allocation2 + $0x454] sm:$0xf]  ;;  %v12249_v27 = vor.u32 %v16622_v12, %v12246_v13  ;;  %3036 = vmatpush.bf16.msra.mxu2 %v11993_v22  ;;  %v16531_v12 = vld [vmem:[#allocation2 + $0x7b4] sm:$0xf0]  ;;  %v11101_v13 = vor.u32 %v16339_v6, %v11100_v5  ;;  %v11613_v15 = vor.u32 %v16467_v11, %v11612_v10 }
 0x189   :  { %v11446_v24 = vld [vmem:[#allocation2 + $0x470] sm:$0xf0]  ;;  %v16331_v17 = vld [vmem:[#allocation2 + $0x174] sm:$0xf0]  ;;  %v11869_v20 = vor.u32 %v16531_v12, %v11868_v43 }
 0x18a   :  { %v16486_v25 = vld [vmem:[#allocation2 + $0x654] sm:$0xf]  ;;  %v11449_v37 = vor.u32 %v16422_v23, %v11446_v24  ;;  %3049 = vmatpush.bf16.msra.mxu3 %v12249_v27  ;;  %v16395_v22 = vld [vmem:[#allocation2 + $0x374] sm:$0xf0] }
 0x18b   :  { %v11702_v28 = vld [vmem:[#allocation2 + $0x670] sm:$0xf0]  ;;  %v11580_v23 = vld [vmem:[#allocation2 + $0x558] sm:$0xf] }
 0x18c   :  { %v16550_v29 = vld [vmem:[#allocation2 + $0x854] sm:$0xf]  ;;  %v11705_v40 = vor.u32 %v16486_v25, %v11702_v28  ;;  %3011 = vmatpush.bf16.msra.mxu0 %v11449_v37  ;;  %v16459_v24 = vld [vmem:[#allocation2 + $0x574] sm:$0xf0]  ;;  %v11069_v28 = vor.u32 %v16331_v17, %v11068_v16  ;;  %v2832_v10 = vpop.f32.mrf.mxu2 }
 0x18d   :  { %v11958_v31 = vld [vmem:[#allocation2 + $0x870] sm:$0xf0]  ;;  %v11836_v25 = vld [vmem:[#allocation2 + $0x758] sm:$0xf] }
 0x18e   :  { %v16614_v32 = vld [vmem:[#allocation2 + $0xa54] sm:$0xf]  ;;  %v11961_v42 = vor.u32 %v16550_v29, %v11958_v31  ;;  %3024 = vmatpush.bf16.msra.mxu1 %v11705_v40  ;;  %v16523_v27 = vld [vmem:[#allocation2 + $0x774] sm:$0xf0]  ;;  %v11325_v29 = vor.u32 %v16395_v22, %v11324_v19  ;;  %v11581_v31 = vor.u32 %v16459_v24, %v11580_v23 }
 0x18f   :  { %v12214_v36 = vld [vmem:[#allocation2 + $0xa70] sm:$0xf0]  ;;  %v11292_v37 = vld [vmem:[#allocation2 + $0x318] sm:$0xf] }
 0x190   :  { %v16414_v38 = vld [vmem:[#allocation2 + $0x414] sm:$0xf]  ;;  %v12217_v48 = vor.u32 %v16614_v32, %v12214_v36  ;;  %3037 = vmatpush.bf16.msra.mxu2 %v11961_v42  ;;  %v11036_v32 = vld [vmem:[#allocation2 + $0x118] sm:$0xf] }
 0x191   :  { %v11414_v39 = vld [vmem:[#allocation2 + $0x430] sm:$0xf0]  ;;  %v16323_v36 = vld [vmem:[#allocation2 + $0x134] sm:$0xf0] }
 0x192   :  { %v16478_v45 = vld [vmem:[#allocation2 + $0x614] sm:$0xf]  ;;  %v11417_v56 = vor.u32 %v16414_v38, %v11414_v39  ;;  %3050 = vmatpush.bf16.msra.mxu3 %v12217_v48  ;;  %v11837_v38 = vor.u32 %v16523_v27, %v11836_v25  ;;  %v16387_v39 = vld [vmem:[#allocation2 + $0x334] sm:$0xf0]  ;;  %v11037_v48 = vor.u32 %v16323_v36, %v11036_v32 }
 0x193   :  { %v11670_v46 = vld [vmem:[#allocation2 + $0x630] sm:$0xf0]  ;;  %v11548_v40 = vld [vmem:[#allocation2 + $0x518] sm:$0xf] }
 0x194   :  { %v16542_v47 = vld [vmem:[#allocation2 + $0x814] sm:$0xf]  ;;  %v11673_v60 = vor.u32 %v16478_v45, %v11670_v46  ;;  %3012 = vmatpush.bf16.msra.mxu0 %v11417_v56  ;;  %v16451_v42 = vld [vmem:[#allocation2 + $0x534] sm:$0xf0] }
 0x195   :  { %v11926_v49 = vld [vmem:[#allocation2 + $0x830] sm:$0xf0]  ;;  %v11804_v45 = vld [vmem:[#allocation2 + $0x718] sm:$0xf]  ;;  %v11549_v52 = vor.u32 %v16451_v42, %v11548_v40 }
 0x196   :  { %v16606_v50 = vld [vmem:[#allocation2 + $0xa14] sm:$0xf]  ;;  %v11929_v61 = vor.u32 %v16542_v47, %v11926_v49  ;;  %3025 = vmatpush.bf16.msra.mxu1 %v11673_v60  ;;  %v16515_v46 = vld [vmem:[#allocation2 + $0x734] sm:$0xf0]  ;;  %v2806_v47 = vpop.f32.mrf.mxu0 }
 0x197   :  { %v12182_v51 = vld [vmem:[#allocation2 + $0xa30] sm:$0xf0]  ;;  %3013 = vmatmul.bf16.vlgmr.msra.gmra.mxu0 %v18148_v34  ;;  %v2807_v49 = vadd.f32 %v2806_v47, %v18205_v26  ;;  %v11004_v53 = vld [vmem:[#allocation2 + $0xd8] sm:$0xf]  ;;  %v11805_v55 = vor.u32 %v16515_v46, %v11804_v45  ;;  %v656_v26 = vperm.slane %v18214_v62, 3 }
 0x198   :  { %v12185_v0 = vor.u32 %v16606_v50, %v12182_v51  ;;  %3038 = vmatpush.bf16.msra.mxu2 %v11929_v61  ;;  %3057 = vmatpush.bf16.msrb.mxu0 %v11133_v1  ;;  %v2819_v50 = vpop.f32.mrf.mxu1  ;;  %v11293_v51 = vor.u32 %v16387_v39, %v11292_v37  ;;  %v16315_v18 = vld [vmem:[#allocation2 + $0xf4] sm:$0xf0] }
 0x199   :  { %3026 = vmatmul.bf16.vlgmr.msra.gmra.mxu1 %v18154_v44  ;;  %v11260_v54 = vld [vmem:[#allocation2 + $0x2d8] sm:$0xf]  ;;  %v18212_v59 = vadd.f32 %v2819_v50, %v2807_v49  ;;  %v11005_v63 = vor.u32 %v16315_v18, %v11004_v53  ;;  %v2833_v12 = vadd.f32 %v2832_v10, %v656_v26  ;;  %v16407_v26 = vld [vmem:[#allocation2 + $0x3dc] sm:$0xf] }
 0x19a   :  { %3051 = vmatpush.bf16.msra.mxu3 %v12185_v0  ;;  %3070 = vmatpush.bf16.msrb.mxu1 %v11389_v2  ;;  %v16379_v56 = vld [vmem:[#allocation2 + $0x2f4] sm:$0xf0]  ;;  %v16335_v10 = vld [vmem:[#allocation2 + $0x19c] sm:$0xf] }
 0x19b   :  { %3039 = vmatmul.bf16.vlgmr.msra.gmra.mxu2 %v18161_v30  ;;  %v11516_v57 = vld [vmem:[#allocation2 + $0x4d8] sm:$0xf]  ;;  %v11261_v0 = vor.u32 %v16379_v56, %v11260_v54 }
 0x19c   :  { %3083 = vmatpush.bf16.msrb.mxu2 %v11645_v3  ;;  %3058 = vmatpush.bf16.msrb.mxu0 %v11101_v13  ;;  %v16443_v58 = vld [vmem:[#allocation2 + $0x4f4] sm:$0xf0]  ;;  %v2845_v13 = vpop.f32.mrf.mxu3 }
 0x19d   :  { %3052 = vmatmul.bf16.vlgmr.msra.gmra.mxu3 %v18163_v35  ;;  %v11772_v60 = vld [vmem:[#allocation2 + $0x6d8] sm:$0xf]  ;;  %v11517_v1 = vor.u32 %v16443_v58, %v11516_v57  ;;  %v18217_v24 = vadd.f32 %v2845_v13, %v2833_v12  ;;  %v16343_v57 = vld [vmem:[#allocation2 + $0x1dc] sm:$0xf] }
 0x19e   :  { %3096 = vmatpush.bf16.msrb.mxu3 %v11901_v8  ;;  %3071 = vmatpush.bf16.msrb.mxu1 %v11357_v14  ;;  %v16507_v61 = vld [vmem:[#allocation2 + $0x6f4] sm:$0xf0]  ;;  %v2808_v14 = vpop.f32.mrf.mxu0  ;;  %v11134_v58 = vld [vmem:[#allocation2 + $0x1f8] sm:$0xf0] }
 0x19f   :  { %v10972_v2 = vld [vmem:[#allocation2 + $0x98] sm:$0xf]  ;;  %v11773_v6 = vor.u32 %v16507_v61, %v11772_v60  ;;  %v11358_v12 = vld [vmem:[#allocation2 + $0x3b8] sm:$0xf0] }
 0x1a0   :  { %3084 = vmatpush.bf16.msrb.mxu2 %v11613_v15  ;;  %3059 = vmatpush.bf16.msrb.mxu0 %v11069_v28  ;;  %v16307_v3 = vld [vmem:[#allocation2 + $0xb4] sm:$0xf0]  ;;  %v2821_v16 = vpop.f32.mrf.mxu1 }
 0x1a1   :  { %v11228_v5 = vld [vmem:[#allocation2 + $0x298] sm:$0xf]  ;;  %v10973_v15 = vor.u32 %v16307_v3, %v10972_v2  ;;  %v11137_v3 = vor.u32 %v16343_v57, %v11134_v58  ;;  %v16311_v58 = vld [vmem:[#allocation2 + $0xdc] sm:$0xf] }
 0x1a2   :  { %3097 = vmatpush.bf16.msrb.mxu3 %v11869_v20  ;;  %3072 = vmatpush.bf16.msrb.mxu1 %v11325_v29  ;;  %v16371_v7 = vld [vmem:[#allocation2 + $0x2b4] sm:$0xf0] }
 0x1a3   :  { %v11484_v8 = vld [vmem:[#allocation2 + $0x498] sm:$0xf]  ;;  %v11229_v17 = vor.u32 %v16371_v7, %v11228_v5 }
 0x1a4   :  { %3085 = vmatpush.bf16.msrb.mxu2 %v11581_v31  ;;  %3060 = vmatpush.bf16.msrb.mxu0 %v11037_v48  ;;  %v16435_v9 = vld [vmem:[#allocation2 + $0x4b4] sm:$0xf0]  ;;  %v2847_v54 = vpop.f32.mrf.mxu3 }
 0x1a5   :  { %v11740_v11 = vld [vmem:[#allocation2 + $0x698] sm:$0xf]  ;;  %v11485_v19 = vor.u32 %v16435_v9, %v11484_v8 }
 0x1a6   :  { %3098 = vmatpush.bf16.msrb.mxu3 %v11837_v38  ;;  %3073 = vmatpush.bf16.msrb.mxu1 %v11293_v51  ;;  %v16499_v43 = vld [vmem:[#allocation2 + $0x6b4] sm:$0xf0]  ;;  %v2834_v51 = vpop.f32.mrf.mxu2 }
 0x1a7   :  { %v10940_v20 = vld [vmem:[#allocation2 + $0x58] sm:$0xf]  ;;  %v11741_v25 = vor.u32 %v16499_v43, %v11740_v11  ;;  %v11102_v11 = vld [vmem:[#allocation2 + $0x1b8] sm:$0xf0] }
 0x1a8   :  { %3086 = vmatpush.bf16.msrb.mxu2 %v11549_v52  ;;  %3061 = vmatpush.bf16.msrb.mxu0 %v11005_v63  ;;  %v16299_v22 = vld [vmem:[#allocation2 + $0x74] sm:$0xf0]  ;;  %v11390_v63 = vld [vmem:[#allocation2 + $0x3f8] sm:$0xf0] }
 0x1a9   :  { %v11196_v23 = vld [vmem:[#allocation2 + $0x258] sm:$0xf]  ;;  %v10941_v36 = vor.u32 %v16299_v22, %v10940_v20  ;;  %v11393_v8 = vor.u32 %v16407_v26, %v11390_v63  ;;  %v16399_v43 = vld [vmem:[#allocation2 + $0x39c] sm:$0xf] }
 0x1aa   :  { %3099 = vmatpush.bf16.msrb.mxu3 %v11805_v55  ;;  %3074 = vmatpush.bf16.msrb.mxu1 %v11261_v0  ;;  %v16363_v27 = vld [vmem:[#allocation2 + $0x274] sm:$0xf0]  ;;  %v11361_v20 = vor.u32 %v16399_v43, %v11358_v12  ;;  %v11262_v26 = vld [vmem:[#allocation2 + $0x2f8] sm:$0xf0] }
 0x1ab   :  { %v11452_v28 = vld [vmem:[#allocation2 + $0x458] sm:$0xf]  ;;  %v11197_v39 = vor.u32 %v16363_v27, %v11196_v23  ;;  %v16327_v23 = vld [vmem:[#allocation2 + $0x15c] sm:$0xf] }
 0x1ac   :  { %3087 = vmatpush.bf16.msrb.mxu2 %v11517_v1  ;;  %v16427_v29 = vld [vmem:[#allocation2 + $0x474] sm:$0xf0]  ;;  %3062 = vmatpush.bf16.msrb.mxu0 %v10973_v15  ;;  %v11105_v15 = vor.u32 %v16335_v10, %v11102_v11  ;;  %v16391_v27 = vld [vmem:[#allocation2 + $0x35c] sm:$0xf] }
 0x1ad   :  { %v11708_v31 = vld [vmem:[#allocation2 + $0x658] sm:$0xf]  ;;  %v11453_v40 = vor.u32 %v16427_v29, %v11452_v28  ;;  %v11326_v28 = vld [vmem:[#allocation2 + $0x378] sm:$0xf0] }
 0x1ae   :  { %3100 = vmatpush.bf16.msrb.mxu3 %v11773_v6  ;;  %v16491_v32 = vld [vmem:[#allocation2 + $0x674] sm:$0xf0]  ;;  %3075 = vmatpush.bf16.msrb.mxu1 %v11229_v17  ;;  %v10974_v10 = vld [vmem:[#allocation2 + $0xb8] sm:$0xf0] }
 0x1af   :  { %v10908_v37 = vld [vmem:[#allocation2 + $0x18] sm:$0xf]  ;;  %v11709_v47 = vor.u32 %v16491_v32, %v11708_v31  ;;  %v16367_v12 = vld [vmem:[#allocation2 + $0x29c] sm:$0xf] }
 0x1b0   :  { %v16291_v38 = vld [vmem:[#allocation2 + $0x34] sm:$0xf0]  ;;  %3088 = vmatpush.bf16.msrb.mxu2 %v11485_v19  ;;  %3063 = vmatpush.bf16.msrb.mxu0 %v10941_v36 }
 0x1b1   :  { %v11164_v42 = vld [vmem:[#allocation2 + $0x218] sm:$0xf]  ;;  %v10909_v55 = vor.u32 %v16291_v38, %v10908_v37 }
 0x1b2   :  { %v16355_v45 = vld [vmem:[#allocation2 + $0x234] sm:$0xf0]  ;;  %3101 = vmatpush.bf16.msrb.mxu3 %v11741_v25  ;;  %3076 = vmatpush.bf16.msrb.mxu1 %v11197_v39  ;;  %v11070_v25 = vld [vmem:[#allocation2 + $0x178] sm:$0xf0]  ;;  %v11329_v39 = vor.u32 %v16391_v27, %v11326_v28 }
 0x1b3   :  { %v11420_v46 = vld [vmem:[#allocation2 + $0x418] sm:$0xf]  ;;  %v11165_v60 = vor.u32 %v16355_v45, %v11164_v42  ;;  %v11073_v32 = vor.u32 %v16327_v23, %v11070_v25  ;;  %v16319_v42 = vld [vmem:[#allocation2 + $0x11c] sm:$0xf] }
 0x1b4   :  { %v16419_v48 = vld [vmem:[#allocation2 + $0x434] sm:$0xf0]  ;;  %3089 = vmatpush.bf16.msrb.mxu2 %v11453_v40  ;;  %3064 = vmatpush.bf16.msrb.mxu0 %v10909_v55  ;;  %v11038_v45 = vld [vmem:[#allocation2 + $0x138] sm:$0xf0]  ;;  %v2871_v55 = vpop.f32.mrf.mxu1 }
 0x1b5   :  { %v11676_v49 = vld [vmem:[#allocation2 + $0x618] sm:$0xf]  ;;  %v11421_v61 = vor.u32 %v16419_v48, %v11420_v46  ;;  %v16383_v46 = vld [vmem:[#allocation2 + $0x31c] sm:$0xf]  ;;  %v11041_v51 = vor.u32 %v16319_v42, %v11038_v45  ;;  %v2897_v43 = vpop.f32.mrf.mxu3 }
 0x1b6   :  { %v16483_v50 = vld [vmem:[#allocation2 + $0x634] sm:$0xf0]  ;;  %3102 = vmatpush.bf16.msrb.mxu3 %v11709_v47  ;;  %3077 = vmatpush.bf16.msrb.mxu1 %v11165_v60  ;;  %v11294_v47 = vld [vmem:[#allocation2 + $0x338] sm:$0xf0] }
 0x1b7   :  { %v12156_v52 = vld [vmem:[#allocation2 + $0x9d8] sm:$0xf]  ;;  %v11677_v0 = vor.u32 %v16483_v50, %v11676_v49  ;;  %3065 = vmatmul.bf16.vlgmr.msrb.gmra.mxu0 %v18146_v33  ;;  %v2858_v49 = vpop.f32.mrf.mxu0  ;;  %v11006_v60 = vld [vmem:[#allocation2 + $0xf8] sm:$0xf0] }
 0x1b8   :  { %v16603_v53 = vld [vmem:[#allocation2 + $0x9f4] sm:$0xf0]  ;;  %3090 = vmatpush.bf16.msrb.mxu2 %v11421_v61  ;;  %v2859_v54 = vadd.f32 %v2858_v49, %v18217_v24  ;;  %v16375_v61 = vld [vmem:[#allocation2 + $0x2dc] sm:$0xf] }
 0x1b9   :  { %v12412_v18 = vld [vmem:[#allocation2 + $0xbd8] sm:$0xf]  ;;  %v12157_v1 = vor.u32 %v16603_v53, %v12156_v52  ;;  %3078 = vmatmul.bf16.vlgmr.msrb.gmra.mxu1 %v18150_v41  ;;  %v11265_v24 = vor.u32 %v16375_v61, %v11262_v26 }
 0x1ba   :  { %v16667_v56 = vld [vmem:[#allocation2 + $0xbf4] sm:$0xf0]  ;;  %3103 = vmatpush.bf16.msrb.mxu3 %v11677_v0  ;;  %v2872_v63 = vadd.f32 %v2871_v55, %v2859_v54  ;;  %v11646_v54 = vld [vmem:[#allocation2 + $0x5f8] sm:$0xf0] }
 0x1bb   :  { %v12413_v2 = vor.u32 %v16667_v56, %v12412_v18  ;;  %v12124_v5 = vld [vmem:[#allocation2 + $0x998] sm:$0xf]  ;;  %3109 = vmatpush.bf16.msra.mxu0 %v12157_v1  ;;  %3091 = vmatmul.bf16.vlgmr.msrb.gmra.mxu2 %v18148_v34  ;;  %v11297_v56 = vor.u32 %v16383_v46, %v11294_v47  ;;  %v16287_v47 = vld [vmem:[#allocation2 + $0x1c] sm:$0xf] }
 0x1bc   :  { %v16595_v6 = vld [vmem:[#allocation2 + $0x9b4] sm:$0xf0]  ;;  %3135 = vmatpush.bf16.msra.mxu2 %v11137_v3  ;;  %v2873_v25 = vpop.f32.mrf.mxu1  ;;  %v16535_v55 = vld [vmem:[#allocation2 + $0x7dc] sm:$0xf] }
 0x1bd   :  { %v12380_v7 = vld [vmem:[#allocation2 + $0xb98] sm:$0xf]  ;;  %v12125_v13 = vor.u32 %v16595_v6, %v12124_v5  ;;  %3122 = vmatpush.bf16.msra.mxu1 %v12413_v2  ;;  %3104 = vmatmul.bf16.vlgmr.msrb.gmra.mxu3 %v18154_v44  ;;  %v11009_v2 = vor.u32 %v16311_v58, %v11006_v60  ;;  %v16599_v58 = vld [vmem:[#allocation2 + $0x9dc] sm:$0xf] }
 0x1be   :  { %v16659_v9 = vld [vmem:[#allocation2 + $0xbb4] sm:$0xf0]  ;;  %3148 = vmatpush.bf16.msra.mxu3 %v11393_v8  ;;  %v12158_v60 = vld [vmem:[#allocation2 + $0x9f8] sm:$0xf0] }
 0x1bf   :  { %v12381_v14 = vor.u32 %v16659_v9, %v12380_v7  ;;  %v12092_v16 = vld [vmem:[#allocation2 + $0x958] sm:$0xf]  ;;  %3110 = vmatpush.bf16.msra.mxu0 %v12125_v13  ;;  %v2884_v7 = vpop.f32.mrf.mxu2  ;;  %v16303_v9 = vld [vmem:[#allocation2 + $0x9c] sm:$0xf] }
 0x1c0   :  { %v16587_v17 = vld [vmem:[#allocation2 + $0x974] sm:$0xf0]  ;;  %3136 = vmatpush.bf16.msra.mxu2 %v11105_v15  ;;  %v2885_v11 = vadd.f32 %v2884_v7, %v2872_v63  ;;  %v11230_v13 = vld [vmem:[#allocation2 + $0x2b8] sm:$0xf0] }
 0x1c1   :  { %v12348_v19 = vld [vmem:[#allocation2 + $0xb58] sm:$0xf]  ;;  %v12093_v29 = vor.u32 %v16587_v17, %v12092_v16  ;;  %3123 = vmatpush.bf16.msra.mxu1 %v12381_v14  ;;  %v2860_v16 = vpop.f32.mrf.mxu0  ;;  %v11233_v27 = vor.u32 %v16367_v12, %v11230_v13  ;;  %v16663_v63 = vld [vmem:[#allocation2 + $0xbdc] sm:$0xf] }
 0x1c2   :  { %v16651_v22 = vld [vmem:[#allocation2 + $0xb74] sm:$0xf0]  ;;  %3149 = vmatpush.bf16.msra.mxu3 %v11361_v20  ;;  %v18224_v15 = vadd.f32 %v2897_v43, %v2885_v11  ;;  %v11614_v7 = vld [vmem:[#allocation2 + $0x5b8] sm:$0xf0] }
 0x1c3   :  { %v12349_v31 = vor.u32 %v16651_v22, %v12348_v19  ;;  %v12060_v36 = vld [vmem:[#allocation2 + $0x918] sm:$0xf]  ;;  %3111 = vmatpush.bf16.msra.mxu0 %v12093_v29  ;;  %v10977_v19 = vor.u32 %v16303_v9, %v10974_v10  ;;  %v16295_v29 = vld [vmem:[#allocation2 + $0x5c] sm:$0xf] }
 0x1c4   :  { %v16579_v37 = vld [vmem:[#allocation2 + $0x934] sm:$0xf0]  ;;  %3137 = vmatpush.bf16.msra.mxu2 %v11073_v32  ;;  %v16359_v32 = vld [vmem:[#allocation2 + $0x25c] sm:$0xf] }
 0x1c5   :  { %v12316_v38 = vld [vmem:[#allocation2 + $0xb18] sm:$0xf]  ;;  %v12061_v48 = vor.u32 %v16579_v37, %v12060_v36  ;;  %3124 = vmatpush.bf16.msra.mxu1 %v12349_v31  ;;  %v10942_v31 = vld [vmem:[#allocation2 + $0x78] sm:$0xf0] }
 0x1c6   :  { %v16643_v40 = vld [vmem:[#allocation2 + $0xb34] sm:$0xf0]  ;;  %3150 = vmatpush.bf16.msra.mxu3 %v11329_v39  ;;  %v11198_v36 = vld [vmem:[#allocation2 + $0x278] sm:$0xf0]  ;;  %v10945_v42 = vor.u32 %v16295_v29, %v10942_v31 }
 0x1c7   :  { %v12317_v50 = vor.u32 %v16643_v40, %v12316_v38  ;;  %v12028_v52 = vld [vmem:[#allocation2 + $0x8d8] sm:$0xf]  ;;  %3112 = vmatpush.bf16.msra.mxu0 %v12061_v48  ;;  %v2886_v48 = vpop.f32.mrf.mxu2  ;;  %v11201_v49 = vor.u32 %v16359_v32, %v11198_v36  ;;  %v11870_v9 = vld [vmem:[#allocation2 + $0x7b8] sm:$0xf0]  ;;  %v657_v32 = vperm.slane %v18214_v62, 4 }
 0x1c8   :  { %v16571_v53 = vld [vmem:[#allocation2 + $0x8f4] sm:$0xf0]  ;;  %3138 = vmatpush.bf16.msra.mxu2 %v11041_v51  ;;  %v16351_v51 = vld [vmem:[#allocation2 + $0x21c] sm:$0xf] }
 0x1c9   :  { %v12284_v18 = vld [vmem:[#allocation2 + $0xad8] sm:$0xf]  ;;  %v12029_v0 = vor.u32 %v16571_v53, %v12028_v52  ;;  %3125 = vmatpush.bf16.msra.mxu1 %v12317_v50  ;;  %v10910_v50 = vld [vmem:[#allocation2 + $0x38] sm:$0xf0]  ;;  %v2899_v53 = vpop.f32.mrf.mxu3 }
 0x1ca   :  { %v16635_v57 = vld [vmem:[#allocation2 + $0xaf4] sm:$0xf0]  ;;  %3151 = vmatpush.bf16.msra.mxu3 %v11297_v56  ;;  %v11166_v52 = vld [vmem:[#allocation2 + $0x238] sm:$0xf0]  ;;  %v10913_v26 = vor.u32 %v16287_v47, %v10910_v50  ;;  %v2910_v50 = vpop.f32.mrf.mxu0 }
 0x1cb   :  { %v12285_v1 = vor.u32 %v16635_v57, %v12284_v18  ;;  %v11996_v3 = vld [vmem:[#allocation2 + $0x898] sm:$0xf]  ;;  %3113 = vmatpush.bf16.msra.mxu0 %v12029_v0  ;;  %v16471_v18 = vld [vmem:[#allocation2 + $0x5dc] sm:$0xf]  ;;  %v2923_v53 = vpop.f32.mrf.mxu1 }
 0x1cc   :  { %v16563_v5 = vld [vmem:[#allocation2 + $0x8b4] sm:$0xf0]  ;;  %3139 = vmatpush.bf16.msra.mxu2 %v11009_v2  ;;  %v11902_v57 = vld [vmem:[#allocation2 + $0x7f8] sm:$0xf0]  ;;  %v11649_v2 = vor.u32 %v16471_v18, %v11646_v54 }
 0x1cd   :  { %v12252_v6 = vld [vmem:[#allocation2 + $0xa98] sm:$0xf]  ;;  %v11997_v14 = vor.u32 %v16563_v5, %v11996_v3  ;;  %3126 = vmatpush.bf16.msra.mxu1 %v12285_v1  ;;  %v12414_v0 = vld [vmem:[#allocation2 + $0xbf8] sm:$0xf0]  ;;  %v11169_v1 = vor.u32 %v16351_v51, %v11166_v52  ;;  %v11905_v3 = vor.u32 %v16535_v55, %v11902_v57  ;;  %v12161_v5 = vor.u32 %v16599_v58, %v12158_v60 }
 0x1ce   :  { %v16627_v8 = vld [vmem:[#allocation2 + $0xab4] sm:$0xf0]  ;;  %3152 = vmatpush.bf16.msra.mxu3 %v11265_v24  ;;  %v16527_v24 = vld [vmem:[#allocation2 + $0x79c] sm:$0xf]  ;;  %v2911_v52 = vadd.f32 %v2910_v50, %v657_v32 }
 0x1cf   :  { %v12253_v17 = vor.u32 %v16627_v8, %v12252_v6  ;;  %v11964_v20 = vld [vmem:[#allocation2 + $0x858] sm:$0xf]  ;;  %3114 = vmatpush.bf16.msra.mxu0 %v11997_v14  ;;  %v16463_v6 = vld [vmem:[#allocation2 + $0x59c] sm:$0xf]  ;;  %v12417_v8 = vor.u32 %v16663_v63, %v12414_v0  ;;  %v11873_v14 = vor.u32 %v16527_v24, %v11870_v9 }
 0x1d0   :  { %v16555_v22 = vld [vmem:[#allocation2 + $0x874] sm:$0xf0]  ;;  %3140 = vmatpush.bf16.msra.mxu2 %v10977_v19  ;;  %v16591_v10 = vld [vmem:[#allocation2 + $0x99c] sm:$0xf]  ;;  %v11617_v13 = vor.u32 %v16463_v6, %v11614_v7  ;;  %v2924_v63 = vadd.f32 %v2923_v53, %v2911_v52 }
 0x1d1   :  { %v12220_v23 = vld [vmem:[#allocation2 + $0xa58] sm:$0xf]  ;;  %v11965_v37 = vor.u32 %v16555_v22, %v11964_v20  ;;  %3127 = vmatpush.bf16.msra.mxu1 %v12253_v17  ;;  %v12126_v11 = vld [vmem:[#allocation2 + $0x9b8] sm:$0xf0] }
 0x1d2   :  { %v16619_v28 = vld [vmem:[#allocation2 + $0xa74] sm:$0xf0]  ;;  %3153 = vmatpush.bf16.msra.mxu3 %v11233_v27  ;;  %v16655_v43 = vld [vmem:[#allocation2 + $0xb9c] sm:$0xf]  ;;  %v12129_v16 = vor.u32 %v16591_v10, %v12126_v11 }
 0x1d3   :  { %v11932_v38 = vld [vmem:[#allocation2 + $0x818] sm:$0xf]  ;;  %v12221_v40 = vor.u32 %v16619_v28, %v12220_v23  ;;  %3115 = vmatpush.bf16.msra.mxu0 %v11965_v37  ;;  %v12382_v12 = vld [vmem:[#allocation2 + $0xbb8] sm:$0xf0] }
 0x1d4   :  { %v16547_v39 = vld [vmem:[#allocation2 + $0x834] sm:$0xf0]  ;;  %3141 = vmatpush.bf16.msra.mxu2 %v10945_v42  ;;  %v16455_v17 = vld [vmem:[#allocation2 + $0x55c] sm:$0xf]  ;;  %v12385_v22 = vor.u32 %v16655_v43, %v12382_v12  ;;  %v2936_v43 = vpop.f32.mrf.mxu2 }
 0x1d5   :  { %v12188_v45 = vld [vmem:[#allocation2 + $0xa18] sm:$0xf]  ;;  %v11933_v56 = vor.u32 %v16547_v39, %v11932_v38  ;;  %3128 = vmatpush.bf16.msra.mxu1 %v12221_v40  ;;  %v11582_v19 = vld [vmem:[#allocation2 + $0x578] sm:$0xf0] }
 0x1d6   :  { %v16611_v46 = vld [vmem:[#allocation2 + $0xa34] sm:$0xf0]  ;;  %3154 = vmatpush.bf16.msra.mxu3 %v11201_v49  ;;  %v16519_v20 = vld [vmem:[#allocation2 + $0x75c] sm:$0xf]  ;;  %v11585_v31 = vor.u32 %v16455_v17, %v11582_v19  ;;  %v2949_v17 = vpop.f32.mrf.mxu3 }
 0x1d7   :  { %v12189_v61 = vor.u32 %v16611_v46, %v12188_v45  ;;  %3116 = vmatpush.bf16.msra.mxu0 %v11933_v56  ;;  %v11838_v23 = vld [vmem:[#allocation2 + $0x778] sm:$0xf0] }
 0x1d8   :  { %3142 = vmatpush.bf16.msra.mxu2 %v10913_v26  ;;  %v16583_v25 = vld [vmem:[#allocation2 + $0x95c] sm:$0xf]  ;;  %v11841_v36 = vor.u32 %v16519_v20, %v11838_v23  ;;  %v2925_v20 = vpop.f32.mrf.mxu1 }
 0x1d9   :  { %3129 = vmatpush.bf16.msra.mxu1 %v12189_v61  ;;  %v12094_v27 = vld [vmem:[#allocation2 + $0x978] sm:$0xf0] }
 0x1da   :  { %3155 = vmatpush.bf16.msra.mxu3 %v11169_v1  ;;  %3117 = vmatmul.bf16.vlgmr.msra.gmra.mxu0 %v18161_v30  ;;  %v16647_v28 = vld [vmem:[#allocation2 + $0xb5c] sm:$0xf]  ;;  %v12097_v37 = vor.u32 %v16583_v25, %v12094_v27 }
 0x1db   :  { %3161 = vmatpush.bf16.msrb.mxu0 %v11649_v2  ;;  %v12350_v29 = vld [vmem:[#allocation2 + $0xb78] sm:$0xf0]  ;;  %3143 = vmatmul.bf16.vlgmr.msra.gmra.mxu2 %v18146_v33 }
 0x1dc   :  { %3187 = vmatpush.bf16.msrb.mxu2 %v12161_v5  ;;  %3130 = vmatmul.bf16.vlgmr.msra.gmra.mxu1 %v18163_v35  ;;  %v16447_v38 = vld [vmem:[#allocation2 + $0x51c] sm:$0xf]  ;;  %v12353_v42 = vor.u32 %v16647_v28, %v12350_v29 }
 0x1dd   :  { %3174 = vmatpush.bf16.msrb.mxu1 %v11905_v3  ;;  %3156 = vmatmul.bf16.vlgmr.msra.gmra.mxu3 %v18150_v41  ;;  %v11550_v39 = vld [vmem:[#allocation2 + $0x538] sm:$0xf0] }
 0x1de   :  { %3200 = vmatpush.bf16.msrb.mxu3 %v12417_v8  ;;  %v16511_v40 = vld [vmem:[#allocation2 + $0x71c] sm:$0xf]  ;;  %v11553_v51 = vor.u32 %v16447_v38, %v11550_v39 }
 0x1df   :  { %3162 = vmatpush.bf16.msrb.mxu0 %v11617_v13  ;;  %v11806_v45 = vld [vmem:[#allocation2 + $0x738] sm:$0xf0] }
 0x1e0   :  { %3188 = vmatpush.bf16.msrb.mxu2 %v12129_v16  ;;  %v16575_v46 = vld [vmem:[#allocation2 + $0x91c] sm:$0xf]  ;;  %v11809_v18 = vor.u32 %v16511_v40, %v11806_v45  ;;  %v2912_v16 = vpop.f32.mrf.mxu0 }
 0x1e1   :  { %3175 = vmatpush.bf16.msrb.mxu1 %v11873_v14  ;;  %v12062_v47 = vld [vmem:[#allocation2 + $0x938] sm:$0xf0]  ;;  %v2937_v14 = vadd.f32 %v2936_v43, %v2924_v63  ;;  %v16856_v63 = vld [vmem:[#allocation4 + $0x5dc] sm:$0xf0] }
 0x1e2   :  { %3201 = vmatpush.bf16.msrb.mxu3 %v12385_v22  ;;  %v16639_v48 = vld [vmem:[#allocation2 + $0xb1c] sm:$0xf]  ;;  %v12065_v54 = vor.u32 %v16575_v46, %v12062_v47  ;;  %v16784_v43 = vld [vmem:[#allocation4 + $0x39c] sm:$0xf0] }
 0x1e3   :  { %v12318_v49 = vld [vmem:[#allocation2 + $0xb38] sm:$0xf0]  ;;  %3163 = vmatpush.bf16.msrb.mxu0 %v11585_v31  ;;  %v18231_v29 = vadd.f32 %v2949_v17, %v2937_v14  ;;  %v13380_v14 = vld [vmem:[#allocation4 + $0x780] sm:$0xf] }
 0x1e4   :  { %3189 = vmatpush.bf16.msrb.mxu2 %v12097_v37  ;;  %v16439_v55 = vld [vmem:[#allocation2 + $0x4dc] sm:$0xf]  ;;  %v12321_v58 = vor.u32 %v16639_v48, %v12318_v49  ;;  %v16912_v16 = vld [vmem:[#allocation4 + $0x79c] sm:$0xf0] }
 0x1e5   :  { %3176 = vmatpush.bf16.msrb.mxu1 %v11841_v36  ;;  %v11518_v56 = vld [vmem:[#allocation2 + $0x4f8] sm:$0xf0] }
 0x1e6   :  { %v16503_v57 = vld [vmem:[#allocation2 + $0x6dc] sm:$0xf]  ;;  %3202 = vmatpush.bf16.msrb.mxu3 %v12353_v42  ;;  %v11521_v2 = vor.u32 %v16439_v55, %v11518_v56  ;;  %v12644_v55 = vld [vmem:[#allocation4 + $0x1c0] sm:$0xf] }
 0x1e7   :  { %v11774_v60 = vld [vmem:[#allocation2 + $0x6f8] sm:$0xf0]  ;;  %3164 = vmatpush.bf16.msrb.mxu0 %v11553_v51  ;;  %v16728_v56 = vld [vmem:[#allocation4 + $0x1dc] sm:$0xf0] }
 0x1e8   :  { %v16567_v61 = vld [vmem:[#allocation2 + $0x8dc] sm:$0xf]  ;;  %3190 = vmatpush.bf16.msrb.mxu2 %v12065_v54  ;;  %v11777_v3 = vor.u32 %v16503_v57, %v11774_v60  ;;  %v2938_v54 = vpop.f32.mrf.mxu2  ;;  %v12900_v57 = vld [vmem:[#allocation4 + $0x3c0] sm:$0xf] }
 0x1e9   :  { %v12030_v26 = vld [vmem:[#allocation2 + $0x8f8] sm:$0xf0]  ;;  %3177 = vmatpush.bf16.msrb.mxu1 %v11809_v18 }
 0x1ea   :  { %v16631_v0 = vld [vmem:[#allocation2 + $0xadc] sm:$0xf]  ;;  %v12033_v5 = vor.u32 %v16567_v61, %v12030_v26  ;;  %3203 = vmatpush.bf16.msrb.mxu3 %v12321_v58  ;;  %v2951_v58 = vpop.f32.mrf.mxu3  ;;  %v16792_v61 = vld [vmem:[#allocation4 + $0x3dc] sm:$0xf0] }
 0x1eb   :  { %v12286_v1 = vld [vmem:[#allocation2 + $0xaf8] sm:$0xf0]  ;;  %3165 = vmatpush.bf16.msrb.mxu0 %v11521_v2  ;;  %v13156_v26 = vld [vmem:[#allocation4 + $0x5c0] sm:$0xf] }
 0x1ec   :  { %v16431_v6 = vld [vmem:[#allocation2 + $0x49c] sm:$0xf]  ;;  %v12289_v8 = vor.u32 %v16631_v0, %v12286_v1  ;;  %3191 = vmatpush.bf16.msrb.mxu2 %v12033_v5  ;;  %v13412_v2 = vld [vmem:[#allocation4 + $0x7c0] sm:$0xf] }
 0x1ed   :  { %v11486_v7 = vld [vmem:[#allocation2 + $0x4b8] sm:$0xf0]  ;;  %3178 = vmatpush.bf16.msrb.mxu1 %v11777_v3  ;;  %v16920_v3 = vld [vmem:[#allocation4 + $0x7dc] sm:$0xf0] }
 0x1ee   :  { %v16495_v24 = vld [vmem:[#allocation2 + $0x69c] sm:$0xf]  ;;  %v11489_v19 = vor.u32 %v16431_v6, %v11486_v7  ;;  %3204 = vmatpush.bf16.msrb.mxu3 %v12289_v8  ;;  %v12645_v6 = vor.u32 %v16728_v56, %v12644_v55  ;;  %v12901_v7 = vor.u32 %v16792_v61, %v12900_v57  ;;  %v12612_v8 = vld [vmem:[#allocation4 + $0x180] sm:$0xf] }
 0x1ef   :  { %v11742_v9 = vld [vmem:[#allocation2 + $0x6b8] sm:$0xf0]  ;;  %v2975_v55 = vpop.f32.mrf.mxu1  ;;  %v12516_v58 = vld [vmem:[#allocation4 + $0xc0] sm:$0xf] }
 0x1f0   :  { %v16559_v10 = vld [vmem:[#allocation2 + $0x89c] sm:$0xf]  ;;  %v11745_v22 = vor.u32 %v16495_v24, %v11742_v9  ;;  %3166 = vmatpush.bf16.msrb.mxu0 %v11489_v19  ;;  %v13157_v24 = vor.u32 %v16856_v63, %v13156_v26  ;;  %v16720_v9 = vld [vmem:[#allocation4 + $0x19c] sm:$0xf0] }
 0x1f1   :  { %v11998_v11 = vld [vmem:[#allocation2 + $0x8b8] sm:$0xf0]  ;;  %v12613_v17 = vor.u32 %v16720_v9, %v12612_v8  ;;  %v12772_v61 = vld [vmem:[#allocation4 + $0x2c0] sm:$0xf] }
 0x1f2   :  { %v16623_v12 = vld [vmem:[#allocation2 + $0xa9c] sm:$0xf]  ;;  %v12001_v23 = vor.u32 %v16559_v10, %v11998_v11  ;;  %3179 = vmatpush.bf16.msrb.mxu1 %v11745_v22  ;;  %v12868_v10 = vld [vmem:[#allocation4 + $0x380] sm:$0xf]  ;;  %v13413_v11 = vor.u32 %v16920_v3, %v13412_v2 }
 0x1f3   :  { %v12254_v13 = vld [vmem:[#allocation2 + $0xab8] sm:$0xf0]  ;;  %v12869_v19 = vor.u32 %v16784_v43, %v12868_v10  ;;  %v12580_v22 = vld [vmem:[#allocation4 + $0x140] sm:$0xf] }
 0x1f4   :  { %v16423_v25 = vld [vmem:[#allocation2 + $0x45c] sm:$0xf]  ;;  %v12257_v31 = vor.u32 %v16623_v12, %v12254_v13  ;;  %3192 = vmatpush.bf16.msrb.mxu2 %v12001_v23  ;;  %v13124_v12 = vld [vmem:[#allocation4 + $0x580] sm:$0xf] }
 0x1f5   :  { %v11454_v27 = vld [vmem:[#allocation2 + $0x478] sm:$0xf0]  ;;  %v16848_v13 = vld [vmem:[#allocation4 + $0x59c] sm:$0xf0] }
 0x1f6   :  { %v16487_v28 = vld [vmem:[#allocation2 + $0x65c] sm:$0xf]  ;;  %v11457_v40 = vor.u32 %v16423_v25, %v11454_v27  ;;  %3205 = vmatpush.bf16.msrb.mxu3 %v12257_v31  ;;  %v13125_v20 = vor.u32 %v16848_v13, %v13124_v12  ;;  %v16712_v23 = vld [vmem:[#allocation4 + $0x15c] sm:$0xf0]  ;;  %v13381_v27 = vor.u32 %v16912_v16, %v13380_v14  ;;  %v2988_v14 = vpop.f32.mrf.mxu2 }
 0x1f7   :  { %v11710_v32 = vld [vmem:[#allocation2 + $0x678] sm:$0xf0]  ;;  %v12836_v25 = vld [vmem:[#allocation4 + $0x340] sm:$0xf] }
 0x1f8   :  { %v16551_v36 = vld [vmem:[#allocation2 + $0x85c] sm:$0xf]  ;;  %v11713_v46 = vor.u32 %v16487_v28, %v11710_v32  ;;  %3167 = vmatpush.bf16.msrb.mxu0 %v11457_v40  ;;  %v16776_v28 = vld [vmem:[#allocation4 + $0x35c] sm:$0xf0] }
 0x1f9   :  { %v11966_v37 = vld [vmem:[#allocation2 + $0x878] sm:$0xf0]  ;;  %v13092_v31 = vld [vmem:[#allocation4 + $0x540] sm:$0xf] }
 0x1fa   :  { %v16615_v38 = vld [vmem:[#allocation2 + $0xa5c] sm:$0xf]  ;;  %v11969_v47 = vor.u32 %v16551_v36, %v11966_v37  ;;  %3180 = vmatpush.bf16.msrb.mxu1 %v11713_v46  ;;  %v16840_v32 = vld [vmem:[#allocation4 + $0x55c] sm:$0xf0] }
 0x1fb   :  { %v12222_v39 = vld [vmem:[#allocation2 + $0xa78] sm:$0xf0]  ;;  %v13348_v36 = vld [vmem:[#allocation4 + $0x740] sm:$0xf]  ;;  %v13093_v40 = vor.u32 %v16840_v32, %v13092_v31 }
 0x1fc   :  { %v16415_v42 = vld [vmem:[#allocation2 + $0x41c] sm:$0xf]  ;;  %v12225_v51 = vor.u32 %v16615_v38, %v12222_v39  ;;  %3193 = vmatpush.bf16.msrb.mxu2 %v11969_v47  ;;  %v16904_v37 = vld [vmem:[#allocation4 + $0x75c] sm:$0xf0]  ;;  %v12581_v38 = vor.u32 %v16712_v23, %v12580_v22  ;;  %v12837_v39 = vor.u32 %v16776_v28, %v12836_v25  ;;  %v2977_v23 = vpop.f32.mrf.mxu1 }
 0x1fd   :  { %v11422_v45 = vld [vmem:[#allocation2 + $0x438] sm:$0xf0]  ;;  %v12804_v46 = vld [vmem:[#allocation4 + $0x300] sm:$0xf]  ;;  %v13349_v47 = vor.u32 %v16904_v37, %v13348_v36 }
 0x1fe   :  { %v16479_v48 = vld [vmem:[#allocation2 + $0x61c] sm:$0xf]  ;;  %v11425_v60 = vor.u32 %v16415_v42, %v11422_v45  ;;  %3206 = vmatpush.bf16.msrb.mxu3 %v12225_v51  ;;  %v12548_v42 = vld [vmem:[#allocation4 + $0x100] sm:$0xf] }
 0x1ff   :  { %v11678_v49 = vld [vmem:[#allocation2 + $0x638] sm:$0xf0]  ;;  %v16704_v45 = vld [vmem:[#allocation4 + $0x11c] sm:$0xf0] }
 0x200   :  { %v16543_v50 = vld [vmem:[#allocation2 + $0x81c] sm:$0xf]  ;;  %v11681_v0 = vor.u32 %v16479_v48, %v11678_v49  ;;  %3168 = vmatpush.bf16.msrb.mxu0 %v11425_v60  ;;  %v16768_v48 = vld [vmem:[#allocation4 + $0x31c] sm:$0xf0] }
 0x201   :  { %v11934_v52 = vld [vmem:[#allocation2 + $0x838] sm:$0xf0]  ;;  %v13060_v49 = vld [vmem:[#allocation4 + $0x500] sm:$0xf]  ;;  %v12805_v56 = vor.u32 %v16768_v48, %v12804_v46 }
 0x202   :  { %v16607_v53 = vld [vmem:[#allocation2 + $0xa1c] sm:$0xf]  ;;  %v11937_v1 = vor.u32 %v16543_v50, %v11934_v52  ;;  %3181 = vmatpush.bf16.msrb.mxu1 %v11681_v0  ;;  %v16832_v50 = vld [vmem:[#allocation4 + $0x51c] sm:$0xf0] }
 0x203   :  { %v12190_v18 = vld [vmem:[#allocation2 + $0xa38] sm:$0xf0]  ;;  %3169 = vmatmul.bf16.vlgmr.msrb.gmra.mxu0 %v18148_v34  ;;  %v13316_v51 = vld [vmem:[#allocation4 + $0x700] sm:$0xf]  ;;  %v13061_v57 = vor.u32 %v16832_v50, %v13060_v49 }
 0x204   :  { %v12193_v5 = vor.u32 %v16607_v53, %v12190_v18  ;;  %3194 = vmatpush.bf16.msrb.mxu2 %v11937_v1  ;;  %5559 = vmatpush.bf16.msra.mxu0 %v12645_v6  ;;  %v16896_v52 = vld [vmem:[#allocation4 + $0x71c] sm:$0xf0]  ;;  %v2962_v53 = vpop.f32.mrf.mxu0  ;;  %v12549_v18 = vor.u32 %v16704_v45, %v12548_v42  ;;  %v658_v6 = vperm.slane %v18214_v62, 5 }
 0x205   :  { %3182 = vmatmul.bf16.vlgmr.msrb.gmra.mxu1 %v18154_v44  ;;  %v2963_v54 = vadd.f32 %v2962_v53, %v18231_v29  ;;  %v16696_v60 = vld [vmem:[#allocation4 + $0xdc] sm:$0xf0]  ;;  %v13317_v26 = vor.u32 %v16896_v52, %v13316_v51 }
 0x206   :  { %3207 = vmatpush.bf16.msrb.mxu3 %v12193_v5  ;;  %5572 = vmatpush.bf16.msra.mxu1 %v12901_v7  ;;  %v16760_v63 = vld [vmem:[#allocation4 + $0x2dc] sm:$0xf0]  ;;  %v12517_v29 = vor.u32 %v16696_v60, %v12516_v58 }
 0x207   :  { %3195 = vmatmul.bf16.vlgmr.msrb.gmra.mxu2 %v18161_v30  ;;  %v13028_v0 = vld [vmem:[#allocation4 + $0x4c0] sm:$0xf]  ;;  %v18238_v2 = vadd.f32 %v2975_v55, %v2963_v54  ;;  %v12773_v7 = vor.u32 %v16760_v63, %v12772_v61 }
 0x208   :  { %5585 = vmatpush.bf16.msra.mxu2 %v13157_v24  ;;  %5560 = vmatpush.bf16.msra.mxu0 %v12613_v17  ;;  %v16824_v1 = vld [vmem:[#allocation4 + $0x4dc] sm:$0xf0] }
 0x209   :  { %3208 = vmatmul.bf16.vlgmr.msrb.gmra.mxu3 %v18163_v35  ;;  %v13284_v3 = vld [vmem:[#allocation4 + $0x6c0] sm:$0xf]  ;;  %v13029_v24 = vor.u32 %v16824_v1, %v13028_v0  ;;  %v16724_v1 = vld [vmem:[#allocation4 + $0x1c4] sm:$0xf] }
 0x20a   :  { %5598 = vmatpush.bf16.msra.mxu3 %v13413_v11  ;;  %5573 = vmatpush.bf16.msra.mxu1 %v12869_v19  ;;  %v16888_v5 = vld [vmem:[#allocation4 + $0x6dc] sm:$0xf0]  ;;  %v2989_v19 = vadd.f32 %v2988_v14, %v658_v6 }
 0x20b   :  { %v12484_v8 = vld [vmem:[#allocation4 + $0x80] sm:$0xf]  ;;  %v13285_v11 = vor.u32 %v16888_v5, %v13284_v3  ;;  %v12646_v3 = vld [vmem:[#allocation4 + $0x1e0] sm:$0xf0] }
 0x20c   :  { %5586 = vmatpush.bf16.msra.mxu2 %v13125_v20  ;;  %5561 = vmatpush.bf16.msra.mxu0 %v12581_v38  ;;  %v16688_v9 = vld [vmem:[#allocation4 + $0x9c] sm:$0xf0]  ;;  %v3001_v20 = vpop.f32.mrf.mxu3  ;;  %v2964_v62 = vpop.f32.mrf.mxu0 }
 0x20d   :  { %v12740_v10 = vld [vmem:[#allocation4 + $0x280] sm:$0xf]  ;;  %v12485_v22 = vor.u32 %v16688_v9, %v12484_v8  ;;  %v18241_v36 = vadd.f32 %v3001_v20, %v2989_v19  ;;  %v16780_v19 = vld [vmem:[#allocation4 + $0x384] sm:$0xf] }
 0x20e   :  { %5599 = vmatpush.bf16.msra.mxu3 %v13381_v27  ;;  %5574 = vmatpush.bf16.msra.mxu1 %v12837_v39  ;;  %v16752_v43 = vld [vmem:[#allocation4 + $0x29c] sm:$0xf0]  ;;  %v12870_v20 = vld [vmem:[#allocation4 + $0x3a0] sm:$0xf0] }
 0x20f   :  { %v12996_v12 = vld [vmem:[#allocation4 + $0x480] sm:$0xf]  ;;  %v12741_v25 = vor.u32 %v16752_v43, %v12740_v10  ;;  %v12649_v10 = vor.u32 %v16724_v1, %v12646_v3 }
 0x210   :  { %5587 = vmatpush.bf16.msra.mxu2 %v13093_v40  ;;  %5562 = vmatpush.bf16.msra.mxu0 %v12549_v18  ;;  %v16816_v13 = vld [vmem:[#allocation4 + $0x49c] sm:$0xf0] }
 0x211   :  { %v13252_v16 = vld [vmem:[#allocation4 + $0x680] sm:$0xf]  ;;  %v12997_v27 = vor.u32 %v16816_v13, %v12996_v12 }
 0x212   :  { %5600 = vmatpush.bf16.msra.mxu3 %v13349_v47  ;;  %5575 = vmatpush.bf16.msra.mxu1 %v12805_v56  ;;  %v16880_v17 = vld [vmem:[#allocation4 + $0x69c] sm:$0xf0] }
 0x213   :  { %v12452_v28 = vld [vmem:[#allocation4 + $0x40] sm:$0xf]  ;;  %v13253_v37 = vor.u32 %v16880_v17, %v13252_v16  ;;  %v16716_v16 = vld [vmem:[#allocation4 + $0x184] sm:$0xf] }
 0x214   :  { %5588 = vmatpush.bf16.msra.mxu2 %v13061_v57  ;;  %5563 = vmatpush.bf16.msra.mxu0 %v12517_v29  ;;  %v16680_v31 = vld [vmem:[#allocation4 + $0x5c] sm:$0xf0]  ;;  %v2990_v57 = vpop.f32.mrf.mxu2  ;;  %v16788_v29 = vld [vmem:[#allocation4 + $0x3c4] sm:$0xf] }
 0x215   :  { %v12708_v32 = vld [vmem:[#allocation4 + $0x240] sm:$0xf]  ;;  %v12453_v46 = vor.u32 %v16680_v31, %v12452_v28  ;;  %v12614_v17 = vld [vmem:[#allocation4 + $0x1a0] sm:$0xf0]  ;;  %v12873_v31 = vor.u32 %v16780_v19, %v12870_v20 }
 0x216   :  { %5601 = vmatpush.bf16.msra.mxu3 %v13317_v26  ;;  %5576 = vmatpush.bf16.msra.mxu1 %v12773_v7  ;;  %v16744_v38 = vld [vmem:[#allocation4 + $0x25c] sm:$0xf0]  ;;  %v3003_v26 = vpop.f32.mrf.mxu3  ;;  %v12902_v7 = vld [vmem:[#allocation4 + $0x3e0] sm:$0xf0]  ;;  %v12617_v23 = vor.u32 %v16716_v16, %v12614_v17 }
 0x217   :  { %v12964_v39 = vld [vmem:[#allocation4 + $0x440] sm:$0xf]  ;;  %v12709_v49 = vor.u32 %v16744_v38, %v12708_v32  ;;  %v12905_v13 = vor.u32 %v16788_v29, %v12902_v7  ;;  %v12582_v38 = vld [vmem:[#allocation4 + $0x160] sm:$0xf0] }
 0x218   :  { %5589 = vmatpush.bf16.msra.mxu2 %v13029_v24  ;;  %v16808_v40 = vld [vmem:[#allocation4 + $0x45c] sm:$0xf0]  ;;  %5564 = vmatpush.bf16.msra.mxu0 %v12485_v22  ;;  %v16756_v29 = vld [vmem:[#allocation4 + $0x2c4] sm:$0xf] }
 0x219   :  { %v13220_v42 = vld [vmem:[#allocation4 + $0x640] sm:$0xf]  ;;  %v12965_v50 = vor.u32 %v16808_v40, %v12964_v39  ;;  %v16772_v39 = vld [vmem:[#allocation4 + $0x344] sm:$0xf] }
 0x21a   :  { %5602 = vmatpush.bf16.msra.mxu3 %v13285_v11  ;;  %v16872_v45 = vld [vmem:[#allocation4 + $0x65c] sm:$0xf0]  ;;  %5577 = vmatpush.bf16.msra.mxu1 %v12741_v25  ;;  %v12838_v40 = vld [vmem:[#allocation4 + $0x360] sm:$0xf0] }
 0x21b   :  { %v12420_v47 = vld [vmem:[#allocation4] sm:$0xf]  ;;  %v13221_v18 = vor.u32 %v16872_v45, %v13220_v42  ;;  %v12774_v7 = vld [vmem:[#allocation4 + $0x2e0] sm:$0xf0] }
 0x21c   :  { %v16672_v48 = vld [vmem:[#allocation4 + $0x1c] sm:$0xf0]  ;;  %5590 = vmatpush.bf16.msra.mxu2 %v12997_v27  ;;  %5565 = vmatpush.bf16.msra.mxu0 %v12453_v46  ;;  %v16684_v16 = vld [vmem:[#allocation4 + $0x84] sm:$0xf] }
 0x21d   :  { %v12676_v51 = vld [vmem:[#allocation4 + $0x200] sm:$0xf]  ;;  %v12421_v63 = vor.u32 %v16672_v48, %v12420_v47  ;;  %v12486_v17 = vld [vmem:[#allocation4 + $0xa0] sm:$0xf0] }
 0x21e   :  { %v16736_v52 = vld [vmem:[#allocation4 + $0x21c] sm:$0xf0]  ;;  %5603 = vmatpush.bf16.msra.mxu3 %v13253_v37  ;;  %5578 = vmatpush.bf16.msra.mxu1 %v12709_v49  ;;  %v16708_v37 = vld [vmem:[#allocation4 + $0x144] sm:$0xf] }
 0x21f   :  { %v12932_v53 = vld [vmem:[#allocation4 + $0x400] sm:$0xf]  ;;  %v12677_v5 = vor.u32 %v16736_v52, %v12676_v51  ;;  %v12585_v46 = vor.u32 %v16708_v37, %v12582_v38  ;;  %v16700_v52 = vld [vmem:[#allocation4 + $0x104] sm:$0xf] }
 0x220   :  { %v16800_v54 = vld [vmem:[#allocation4 + $0x41c] sm:$0xf0]  ;;  %5591 = vmatpush.bf16.msra.mxu2 %v12965_v50  ;;  %5566 = vmatpush.bf16.msra.mxu0 %v12421_v63  ;;  %v12841_v50 = vor.u32 %v16772_v39, %v12838_v40  ;;  %v3053_v20 = vpop.f32.mrf.mxu3 }
 0x221   :  { %v13188_v55 = vld [vmem:[#allocation4 + $0x600] sm:$0xf]  ;;  %v12933_v6 = vor.u32 %v16800_v54, %v12932_v53  ;;  %v12550_v53 = vld [vmem:[#allocation4 + $0x120] sm:$0xf0] }
 0x222   :  { %v16864_v56 = vld [vmem:[#allocation4 + $0x61c] sm:$0xf0]  ;;  %5604 = vmatpush.bf16.msra.mxu3 %v13221_v18  ;;  %5579 = vmatpush.bf16.msra.mxu1 %v12677_v5  ;;  %v16764_v18 = vld [vmem:[#allocation4 + $0x304] sm:$0xf] }
 0x223   :  { %v13668_v58 = vld [vmem:[#allocation4 + $0x9c0] sm:$0xf]  ;;  %v13189_v24 = vor.u32 %v16864_v56, %v13188_v55  ;;  %5567 = vmatmul.bf16.vlgmr.msra.gmra.mxu0 %v18146_v33  ;;  %v12806_v54 = vld [vmem:[#allocation4 + $0x320] sm:$0xf0]  ;;  %v3014_v56 = vpop.f32.mrf.mxu0 }
 0x224   :  { %v16984_v60 = vld [vmem:[#allocation4 + $0x9dc] sm:$0xf0]  ;;  %5592 = vmatpush.bf16.msra.mxu2 %v12933_v6  ;;  %v3015_v63 = vadd.f32 %v3014_v56, %v18241_v36  ;;  %v12809_v1 = vor.u32 %v16764_v18, %v12806_v54  ;;  %v16692_v5 = vld [vmem:[#allocation4 + $0xc4] sm:$0xf]  ;;  %v12777_v36 = vor.u32 %v16756_v29, %v12774_v7 }
 0x225   :  { %v13924_v61 = vld [vmem:[#allocation4 + $0xbc0] sm:$0xf]  ;;  %v13669_v8 = vor.u32 %v16984_v60, %v13668_v58  ;;  %5580 = vmatmul.bf16.vlgmr.msra.gmra.mxu1 %v18150_v41  ;;  %v12553_v58 = vor.u32 %v16700_v52, %v12550_v53  ;;  %v12518_v6 = vld [vmem:[#allocation4 + $0xe0] sm:$0xf0] }
 0x226   :  { %v17048_v0 = vld [vmem:[#allocation4 + $0xbdc] sm:$0xf0]  ;;  %5605 = vmatpush.bf16.msra.mxu3 %v13189_v24  ;;  %v13670_v29 = vld [vmem:[#allocation4 + $0x9e0] sm:$0xf0] }
 0x227   :  { %v13925_v9 = vor.u32 %v17048_v0, %v13924_v61  ;;  %v13636_v11 = vld [vmem:[#allocation4 + $0x980] sm:$0xf]  ;;  %5611 = vmatpush.bf16.msrb.mxu0 %v13669_v8  ;;  %5593 = vmatmul.bf16.vlgmr.msra.gmra.mxu2 %v18148_v34  ;;  %v3027_v0 = vpop.f32.mrf.mxu1 }
 0x228   :  { %v16976_v43 = vld [vmem:[#allocation4 + $0x99c] sm:$0xf0]  ;;  %5637 = vmatpush.bf16.msrb.mxu2 %v12649_v10  ;;  %v3028_v24 = vadd.f32 %v3027_v0, %v3015_v63  ;;  %v12521_v10 = vor.u32 %v16692_v5, %v12518_v6  ;;  %v16852_v63 = vld [vmem:[#allocation4 + $0x5c4] sm:$0xf] }
 0x229   :  { %v13892_v12 = vld [vmem:[#allocation4 + $0xb80] sm:$0xf]  ;;  %v13637_v62 = vor.u32 %v16976_v43, %v13636_v11  ;;  %5624 = vmatpush.bf16.msrb.mxu1 %v13925_v9  ;;  %5606 = vmatmul.bf16.vlgmr.msra.gmra.mxu3 %v18154_v44  ;;  %v13158_v0 = vld [vmem:[#allocation4 + $0x5e0] sm:$0xf0] }
 0x22a   :  { %v17040_v14 = vld [vmem:[#allocation4 + $0xb9c] sm:$0xf0]  ;;  %5650 = vmatpush.bf16.msrb.mxu3 %v12905_v13  ;;  %v3040_v13 = vpop.f32.mrf.mxu2  ;;  %v13414_v5 = vld [vmem:[#allocation4 + $0x7e0] sm:$0xf0] }
 0x22b   :  { %v13893_v22 = vor.u32 %v17040_v14, %v13892_v12  ;;  %v13604_v25 = vld [vmem:[#allocation4 + $0x940] sm:$0xf]  ;;  %5612 = vmatpush.bf16.msrb.mxu0 %v13637_v62  ;;  %v3041_v19 = vadd.f32 %v3040_v13, %v3028_v24  ;;  %v16748_v62 = vld [vmem:[#allocation4 + $0x284] sm:$0xf] }
 0x22c   :  { %v16968_v27 = vld [vmem:[#allocation4 + $0x95c] sm:$0xf0]  ;;  %5638 = vmatpush.bf16.msrb.mxu2 %v12617_v23  ;;  %v16980_v6 = vld [vmem:[#allocation4 + $0x9c4] sm:$0xf] }
 0x22d   :  { %v13860_v28 = vld [vmem:[#allocation4 + $0xb40] sm:$0xf]  ;;  %v13605_v42 = vor.u32 %v16968_v27, %v13604_v25  ;;  %5625 = vmatpush.bf16.msrb.mxu1 %v13893_v22  ;;  %v12742_v22 = vld [vmem:[#allocation4 + $0x2a0] sm:$0xf0]  ;;  %v18248_v25 = vadd.f32 %v3053_v20, %v3041_v19  ;;  %v3016_v27 = vpop.f32.mrf.mxu0 }
 0x22e   :  { %v17032_v32 = vld [vmem:[#allocation4 + $0xb5c] sm:$0xf0]  ;;  %5651 = vmatpush.bf16.msrb.mxu3 %v12873_v31  ;;  %v12489_v31 = vor.u32 %v16684_v16, %v12486_v17  ;;  %v12745_v40 = vor.u32 %v16748_v62, %v12742_v22  ;;  %v16844_v13 = vld [vmem:[#allocation4 + $0x584] sm:$0xf] }
 0x22f   :  { %v13861_v45 = vor.u32 %v17032_v32, %v13860_v28  ;;  %v13572_v47 = vld [vmem:[#allocation4 + $0x900] sm:$0xf]  ;;  %5613 = vmatpush.bf16.msrb.mxu0 %v13605_v42  ;;  %v3029_v39 = vpop.f32.mrf.mxu1  ;;  %v13382_v17 = vld [vmem:[#allocation4 + $0x7a0] sm:$0xf0] }
 0x230   :  { %v16960_v48 = vld [vmem:[#allocation4 + $0x91c] sm:$0xf0]  ;;  %5639 = vmatpush.bf16.msrb.mxu2 %v12585_v46  ;;  %v12454_v46 = vld [vmem:[#allocation4 + $0x60] sm:$0xf0] }
 0x231   :  { %v13828_v49 = vld [vmem:[#allocation4 + $0xb00] sm:$0xf]  ;;  %v13573_v55 = vor.u32 %v16960_v48, %v13572_v47  ;;  %5626 = vmatpush.bf16.msrb.mxu1 %v13861_v45  ;;  %v16676_v45 = vld [vmem:[#allocation4 + $0x44] sm:$0xf] }
 0x232   :  { %v17024_v51 = vld [vmem:[#allocation4 + $0xb1c] sm:$0xf0]  ;;  %5652 = vmatpush.bf16.msrb.mxu3 %v12841_v50  ;;  %v16740_v47 = vld [vmem:[#allocation4 + $0x244] sm:$0xf]  ;;  %v12457_v53 = vor.u32 %v16676_v45, %v12454_v46  ;;  %v3042_v56 = vpop.f32.mrf.mxu2 }
 0x233   :  { %v13829_v57 = vor.u32 %v17024_v51, %v13828_v49  ;;  %v13540_v60 = vld [vmem:[#allocation4 + $0x8c0] sm:$0xf]  ;;  %5614 = vmatpush.bf16.msrb.mxu0 %v13573_v55  ;;  %v12710_v48 = vld [vmem:[#allocation4 + $0x260] sm:$0xf0] }
 0x234   :  { %v16952_v61 = vld [vmem:[#allocation4 + $0x8dc] sm:$0xf0]  ;;  %5640 = vmatpush.bf16.msrb.mxu2 %v12553_v58  ;;  %v16668_v55 = vld [vmem:[#allocation4 + $0x4] sm:$0xf] }
 0x235   :  { %v13796_v26 = vld [vmem:[#allocation4 + $0xac0] sm:$0xf]  ;;  %v13541_v8 = vor.u32 %v16952_v61, %v13540_v60  ;;  %5627 = vmatpush.bf16.msrb.mxu1 %v13829_v57  ;;  %v12713_v57 = vor.u32 %v16740_v47, %v12710_v48  ;;  %v12422_v58 = vld [vmem:[#allocation4 + $0x20] sm:$0xf0] }
 0x236   :  { %v17016_v3 = vld [vmem:[#allocation4 + $0xadc] sm:$0xf0]  ;;  %5653 = vmatpush.bf16.msrb.mxu3 %v12809_v1  ;;  %v16732_v60 = vld [vmem:[#allocation4 + $0x204] sm:$0xf]  ;;  %v12425_v24 = vor.u32 %v16668_v55, %v12422_v58 }
 0x237   :  { %v13797_v9 = vor.u32 %v17016_v3, %v13796_v26  ;;  %v13508_v11 = vld [vmem:[#allocation4 + $0x880] sm:$0xf]  ;;  %5615 = vmatpush.bf16.msrb.mxu0 %v13541_v8  ;;  %v12678_v61 = vld [vmem:[#allocation4 + $0x220] sm:$0xf0]  ;;  %v3055_v26 = vpop.f32.mrf.mxu3 }
 0x238   :  { %v16944_v43 = vld [vmem:[#allocation4 + $0x89c] sm:$0xf0]  ;;  %5641 = vmatpush.bf16.msrb.mxu2 %v12521_v10  ;;  %v16916_v1 = vld [vmem:[#allocation4 + $0x7c4] sm:$0xf]  ;;  %v12681_v10 = vor.u32 %v16732_v60, %v12678_v61  ;;  %v3066_v61 = vpop.f32.mrf.mxu0 }
 0x239   :  { %v13764_v12 = vld [vmem:[#allocation4 + $0xa80] sm:$0xf]  ;;  %v13509_v23 = vor.u32 %v16944_v43, %v13508_v11  ;;  %5628 = vmatpush.bf16.msrb.mxu1 %v13797_v9  ;;  %v17044_v8 = vld [vmem:[#allocation4 + $0xbc4] sm:$0xf]  ;;  %v13161_v11 = vor.u32 %v16852_v63, %v13158_v0  ;;  %v13417_v43 = vor.u32 %v16916_v1, %v13414_v5  ;;  %v3079_v0 = vpop.f32.mrf.mxu1 }
 0x23a   :  { %v17008_v14 = vld [vmem:[#allocation4 + $0xa9c] sm:$0xf0]  ;;  %5654 = vmatpush.bf16.msrb.mxu3 %v12777_v36  ;;  %v13926_v9 = vld [vmem:[#allocation4 + $0xbe0] sm:$0xf0] }
 0x23b   :  { %v13765_v28 = vor.u32 %v17008_v14, %v13764_v12  ;;  %v13476_v32 = vld [vmem:[#allocation4 + $0x840] sm:$0xf]  ;;  %5616 = vmatpush.bf16.msrb.mxu0 %v13509_v23  ;;  %v13673_v12 = vor.u32 %v16980_v6, %v13670_v29  ;;  %v13126_v36 = vld [vmem:[#allocation4 + $0x5a0] sm:$0xf0]  ;;  %v13929_v16 = vor.u32 %v17044_v8, %v13926_v9 }
 0x23c   :  { %v16936_v37 = vld [vmem:[#allocation4 + $0x85c] sm:$0xf0]  ;;  %5642 = vmatpush.bf16.msrb.mxu2 %v12489_v31  ;;  %v16908_v14 = vld [vmem:[#allocation4 + $0x784] sm:$0xf]  ;;  %v13129_v23 = vor.u32 %v16844_v13, %v13126_v36 }
 0x23d   :  { %v13732_v38 = vld [vmem:[#allocation4 + $0xa40] sm:$0xf]  ;;  %v13477_v49 = vor.u32 %v16936_v37, %v13476_v32  ;;  %5629 = vmatpush.bf16.msrb.mxu1 %v13765_v28  ;;  %v16972_v19 = vld [vmem:[#allocation4 + $0x984] sm:$0xf]  ;;  %v13385_v27 = vor.u32 %v16908_v14, %v13382_v17 }
 0x23e   :  { %v17000_v42 = vld [vmem:[#allocation4 + $0xa5c] sm:$0xf0]  ;;  %5655 = vmatpush.bf16.msrb.mxu3 %v12745_v40  ;;  %v13638_v20 = vld [vmem:[#allocation4 + $0x9a0] sm:$0xf0] }
 0x23f   :  { %v13444_v50 = vld [vmem:[#allocation4 + $0x800] sm:$0xf]  ;;  %v13733_v52 = vor.u32 %v17000_v42, %v13732_v38  ;;  %5617 = vmatpush.bf16.msrb.mxu0 %v13477_v49  ;;  %v17036_v62 = vld [vmem:[#allocation4 + $0xb84] sm:$0xf]  ;;  %v13641_v28 = vor.u32 %v16972_v19, %v13638_v20 }
 0x240   :  { %v16928_v51 = vld [vmem:[#allocation4 + $0x81c] sm:$0xf0]  ;;  %5643 = vmatpush.bf16.msrb.mxu2 %v12457_v53  ;;  %v13894_v22 = vld [vmem:[#allocation4 + $0xba0] sm:$0xf0] }
 0x241   :  { %v13700_v18 = vld [vmem:[#allocation4 + $0xa00] sm:$0xf]  ;;  %v13445_v3 = vor.u32 %v16928_v51, %v13444_v50  ;;  %5630 = vmatpush.bf16.msrb.mxu1 %v13733_v52  ;;  %v16836_v31 = vld [vmem:[#allocation4 + $0x544] sm:$0xf]  ;;  %v13897_v38 = vor.u32 %v17036_v62, %v13894_v22 }
 0x242   :  { %v16992_v54 = vld [vmem:[#allocation4 + $0xa1c] sm:$0xf0]  ;;  %5656 = vmatpush.bf16.msrb.mxu3 %v12713_v57  ;;  %v13094_v32 = vld [vmem:[#allocation4 + $0x560] sm:$0xf0] }
 0x243   :  { %v13701_v7 = vor.u32 %v16992_v54, %v13700_v18  ;;  %5618 = vmatpush.bf16.msrb.mxu0 %v13445_v3  ;;  %v16900_v37 = vld [vmem:[#allocation4 + $0x744] sm:$0xf]  ;;  %v13097_v47 = vor.u32 %v16836_v31, %v13094_v32  ;;  %v3068_v32 = vpop.f32.mrf.mxu0 }
 0x244   :  { %5644 = vmatpush.bf16.msrb.mxu2 %v12425_v24  ;;  %v13350_v39 = vld [vmem:[#allocation4 + $0x760] sm:$0xf0]  ;;  %v16849_v32 = vld [vmem:[#allocation4 + $0x5a4] sm:$0xf0] }
 0x245   :  { %5631 = vmatpush.bf16.msrb.mxu1 %v13701_v7  ;;  %v16964_v40 = vld [vmem:[#allocation4 + $0x944] sm:$0xf]  ;;  %v13353_v50 = vor.u32 %v16900_v37, %v13350_v39  ;;  %v3105_v37 = vpop.f32.mrf.mxu3  ;;  %v3081_v39 = vpop.f32.mrf.mxu1 }
 0x246   :  { %5657 = vmatpush.bf16.msrb.mxu3 %v12681_v10  ;;  %5619 = vmatmul.bf16.vlgmr.msrb.gmra.mxu0 %v18161_v30  ;;  %v13606_v42 = vld [vmem:[#allocation4 + $0x960] sm:$0xf0] }
 0x247   :  { %5663 = vmatpush.bf16.msra.mxu0 %v13161_v11  ;;  %v17028_v45 = vld [vmem:[#allocation4 + $0xb44] sm:$0xf]  ;;  %5645 = vmatmul.bf16.vlgmr.msrb.gmra.mxu2 %v18146_v33  ;;  %v13609_v51 = vor.u32 %v16964_v40, %v13606_v42 }
 0x248   :  { %5689 = vmatpush.bf16.msra.mxu2 %v13673_v12  ;;  %v13862_v46 = vld [vmem:[#allocation4 + $0xb60] sm:$0xf0]  ;;  %5632 = vmatmul.bf16.vlgmr.msrb.gmra.mxu1 %v18163_v35 }
 0x249   :  { %5676 = vmatpush.bf16.msra.mxu1 %v13417_v43  ;;  %5658 = vmatmul.bf16.vlgmr.msrb.gmra.mxu3 %v18150_v41  ;;  %v18254_v48 = vld [vmem:[#allocation6] sm:$0xff]  ;;  %v13865_v54 = vor.u32 %v17028_v45, %v13862_v46 }
 0x24a   :  { %5702 = vmatpush.bf16.msra.mxu3 %v13929_v16  ;;  %v659_v49 = vperm.slane %v18254_v48, 6  ;;  %v16828_v52 = vld [vmem:[#allocation4 + $0x504] sm:$0xf] }
 0x24b   :  { %5664 = vmatpush.bf16.msra.mxu0 %v13129_v23  ;;  %v13062_v53 = vld [vmem:[#allocation4 + $0x520] sm:$0xf0]  ;;  %v3092_v23 = vpop.f32.mrf.mxu2 }
 0x24c   :  { %5690 = vmatpush.bf16.msra.mxu2 %v13641_v28  ;;  %v16892_v18 = vld [vmem:[#allocation4 + $0x704] sm:$0xf]  ;;  %v13065_v26 = vor.u32 %v16828_v52, %v13062_v53  ;;  %v3067_v63 = vadd.f32 %v3066_v61, %v659_v49 }
 0x24d   :  { %5677 = vmatpush.bf16.msra.mxu1 %v13385_v27  ;;  %v13318_v55 = vld [vmem:[#allocation4 + $0x720] sm:$0xf0] }
 0x24e   :  { %5703 = vmatpush.bf16.msra.mxu3 %v13897_v38  ;;  %v16956_v56 = vld [vmem:[#allocation4 + $0x904] sm:$0xf]  ;;  %v13321_v1 = vor.u32 %v16892_v18, %v13318_v55  ;;  %v3080_v10 = vadd.f32 %v3079_v0, %v3067_v63 }
 0x24f   :  { %v13574_v57 = vld [vmem:[#allocation4 + $0x920] sm:$0xf0]  ;;  %5665 = vmatpush.bf16.msra.mxu0 %v13097_v47 }
 0x250   :  { %v17020_v58 = vld [vmem:[#allocation4 + $0xb04] sm:$0xf]  ;;  %5691 = vmatpush.bf16.msra.mxu2 %v13609_v51  ;;  %v13577_v3 = vor.u32 %v16956_v56, %v13574_v57  ;;  %v3093_v31 = vadd.f32 %v3092_v23, %v3080_v10  ;;  %v16793_v10 = vld [vmem:[#allocation4 + $0x3e4] sm:$0xf0] }
 0x251   :  { %v13830_v60 = vld [vmem:[#allocation4 + $0xb20] sm:$0xf0]  ;;  %5678 = vmatpush.bf16.msra.mxu1 %v13353_v50  ;;  %v12876_v23 = vld [vmem:[#allocation4 + $0x388] sm:$0xf] }
 0x252   :  { %v16820_v5 = vld [vmem:[#allocation4 + $0x4c4] sm:$0xf]  ;;  %5704 = vmatpush.bf16.msra.mxu3 %v13865_v54  ;;  %v13833_v7 = vor.u32 %v17020_v58, %v13830_v60  ;;  %v18257_v49 = vadd.f32 %v3105_v37, %v3093_v31  ;;  %v13132_v31 = vld [vmem:[#allocation4 + $0x588] sm:$0xf] }
 0x253   :  { %v13030_v6 = vld [vmem:[#allocation4 + $0x4e0] sm:$0xf0]  ;;  %5666 = vmatpush.bf16.msra.mxu0 %v13065_v26  ;;  %v13388_v37 = vld [vmem:[#allocation4 + $0x788] sm:$0xf] }
 0x254   :  { %v16884_v29 = vld [vmem:[#allocation4 + $0x6c4] sm:$0xf]  ;;  %v13033_v12 = vor.u32 %v16820_v5, %v13030_v6  ;;  %5692 = vmatpush.bf16.msra.mxu2 %v13577_v3  ;;  %v3094_v6 = vpop.f32.mrf.mxu2 }
 0x255   :  { %v13286_v24 = vld [vmem:[#allocation4 + $0x6e0] sm:$0xf0]  ;;  %5679 = vmatpush.bf16.msra.mxu1 %v13321_v1 }
 0x256   :  { %v16948_v8 = vld [vmem:[#allocation4 + $0x8c4] sm:$0xf]  ;;  %v13289_v13 = vor.u32 %v16884_v29, %v13286_v24  ;;  %5705 = vmatpush.bf16.msra.mxu3 %v13833_v7  ;;  %v12652_v29 = vld [vmem:[#allocation4 + $0x1c8] sm:$0xf] }
 0x257   :  { %v13542_v9 = vld [vmem:[#allocation4 + $0x8e0] sm:$0xf0]  ;;  %5667 = vmatpush.bf16.msra.mxu0 %v13033_v12  ;;  %v16729_v7 = vld [vmem:[#allocation4 + $0x1e4] sm:$0xf0]  ;;  %v3118_v6 = vpop.f32.mrf.mxu0 }
 0x258   :  { %v17012_v11 = vld [vmem:[#allocation4 + $0xac4] sm:$0xf]  ;;  %v13545_v36 = vor.u32 %v16948_v8, %v13542_v9  ;;  %v12908_v24 = vld [vmem:[#allocation4 + $0x3c8] sm:$0xf]  ;;  %v3107_v8 = vpop.f32.mrf.mxu3 }
 0x259   :  { %v13798_v43 = vld [vmem:[#allocation4 + $0xae0] sm:$0xf0]  ;;  %5680 = vmatpush.bf16.msra.mxu1 %v13289_v13 }
 0x25a   :  { %v16812_v14 = vld [vmem:[#allocation4 + $0x484] sm:$0xf]  ;;  %v13801_v19 = vor.u32 %v17012_v11, %v13798_v43  ;;  %5693 = vmatpush.bf16.msra.mxu2 %v13545_v36  ;;  %v13164_v11 = vld [vmem:[#allocation4 + $0x5c8] sm:$0xf] }
 0x25b   :  { %v12998_v16 = vld [vmem:[#allocation4 + $0x4a0] sm:$0xf0]  ;;  %v16857_v43 = vld [vmem:[#allocation4 + $0x5e4] sm:$0xf0] }
 0x25c   :  { %v16876_v17 = vld [vmem:[#allocation4 + $0x684] sm:$0xf]  ;;  %v13001_v38 = vor.u32 %v16812_v14, %v12998_v16  ;;  %5706 = vmatpush.bf16.msra.mxu3 %v13801_v19  ;;  %v13420_v36 = vld [vmem:[#allocation4 + $0x7c8] sm:$0xf]  ;;  %v12909_v19 = vor.u32 %v16793_v10, %v12908_v24  ;;  %v3131_v24 = vpop.f32.mrf.mxu1 }
 0x25d   :  { %v13254_v20 = vld [vmem:[#allocation4 + $0x6a0] sm:$0xf0]  ;;  %v16921_v14 = vld [vmem:[#allocation4 + $0x7e4] sm:$0xf0] }
 0x25e   :  { %v16940_v62 = vld [vmem:[#allocation4 + $0x884] sm:$0xf]  ;;  %v13257_v40 = vor.u32 %v16876_v17, %v13254_v20  ;;  %5668 = vmatpush.bf16.msra.mxu0 %v13001_v38  ;;  %v12653_v17 = vor.u32 %v16729_v7, %v12652_v29  ;;  %v13165_v20 = vor.u32 %v16857_v43, %v13164_v11  ;;  %v16913_v38 = vld [vmem:[#allocation4 + $0x7a4] sm:$0xf0]  ;;  %v3119_v7 = vadd.f32 %v3118_v6, %v18257_v49 }
 0x25f   :  { %v13510_v22 = vld [vmem:[#allocation4 + $0x8a0] sm:$0xf0]  ;;  %v12524_v10 = vld [vmem:[#allocation4 + $0xc8] sm:$0xf] }
 0x260   :  { %v17004_v27 = vld [vmem:[#allocation4 + $0xa84] sm:$0xf]  ;;  %v13513_v42 = vor.u32 %v16940_v62, %v13510_v22  ;;  %5681 = vmatpush.bf16.msra.mxu1 %v13257_v40  ;;  %v12620_v62 = vld [vmem:[#allocation4 + $0x188] sm:$0xf] }
 0x261   :  { %v13766_v28 = vld [vmem:[#allocation4 + $0xaa0] sm:$0xf0]  ;;  %v16721_v22 = vld [vmem:[#allocation4 + $0x1a4] sm:$0xf0] }
 0x262   :  { %v16804_v45 = vld [vmem:[#allocation4 + $0x444] sm:$0xf]  ;;  %v13769_v50 = vor.u32 %v17004_v27, %v13766_v28  ;;  %5694 = vmatpush.bf16.msra.mxu2 %v13513_v42  ;;  %v13421_v27 = vor.u32 %v16921_v14, %v13420_v36  ;;  %v16785_v28 = vld [vmem:[#allocation4 + $0x3a4] sm:$0xf0]  ;;  %v12621_v39 = vor.u32 %v16721_v22, %v12620_v62  ;;  %v13133_v42 = vor.u32 %v16849_v32, %v13132_v31 }
 0x263   :  { %v12966_v46 = vld [vmem:[#allocation4 + $0x460] sm:$0xf0]  ;;  %v12877_v40 = vor.u32 %v16785_v28, %v12876_v23  ;;  %v16697_v11 = vld [vmem:[#allocation4 + $0xe4] sm:$0xf0] }
 0x264   :  { %v16868_v47 = vld [vmem:[#allocation4 + $0x644] sm:$0xf]  ;;  %v12969_v55 = vor.u32 %v16804_v45, %v12966_v46  ;;  %5707 = vmatpush.bf16.msra.mxu3 %v13769_v50  ;;  %v12588_v45 = vld [vmem:[#allocation4 + $0x148] sm:$0xf]  ;;  %v13389_v50 = vor.u32 %v16913_v38, %v13388_v37  ;;  %v12525_v49 = vor.u32 %v16697_v11, %v12524_v10 }
 0x265   :  { %v13222_v51 = vld [vmem:[#allocation4 + $0x660] sm:$0xf0]  ;;  %v16713_v46 = vld [vmem:[#allocation4 + $0x164] sm:$0xf0] }
 0x266   :  { %v16932_v52 = vld [vmem:[#allocation4 + $0x844] sm:$0xf]  ;;  %v13225_v58 = vor.u32 %v16868_v47, %v13222_v51  ;;  %5669 = vmatpush.bf16.msra.mxu0 %v12969_v55  ;;  %v12844_v47 = vld [vmem:[#allocation4 + $0x348] sm:$0xf]  ;;  %v12589_v55 = vor.u32 %v16713_v46, %v12588_v45  ;;  %v3157_v46 = vpop.f32.mrf.mxu3 }
 0x267   :  { %v13478_v53 = vld [vmem:[#allocation4 + $0x860] sm:$0xf0]  ;;  %v16777_v51 = vld [vmem:[#allocation4 + $0x364] sm:$0xf0] }
 0x268   :  { %v16996_v18 = vld [vmem:[#allocation4 + $0xa44] sm:$0xf]  ;;  %v13481_v60 = vor.u32 %v16932_v52, %v13478_v53  ;;  %5682 = vmatpush.bf16.msra.mxu1 %v13225_v58  ;;  %v13100_v52 = vld [vmem:[#allocation4 + $0x548] sm:$0xf] }
 0x269   :  { %v13734_v54 = vld [vmem:[#allocation4 + $0xa60] sm:$0xf0]  ;;  %v16841_v53 = vld [vmem:[#allocation4 + $0x564] sm:$0xf0] }
 0x26a   :  { %v16796_v56 = vld [vmem:[#allocation4 + $0x404] sm:$0xf]  ;;  %v13737_v0 = vor.u32 %v16996_v18, %v13734_v54  ;;  %5695 = vmatpush.bf16.msra.mxu2 %v13481_v60  ;;  %v13356_v18 = vld [vmem:[#allocation4 + $0x748] sm:$0xf] }
 0x26b   :  { %v12934_v57 = vld [vmem:[#allocation4 + $0x420] sm:$0xf0]  ;;  %v16905_v54 = vld [vmem:[#allocation4 + $0x764] sm:$0xf0] }
 0x26c   :  { %v16860_v61 = vld [vmem:[#allocation4 + $0x604] sm:$0xf]  ;;  %v12937_v9 = vor.u32 %v16796_v56, %v12934_v57  ;;  %5708 = vmatpush.bf16.msra.mxu3 %v13737_v0  ;;  %v12845_v56 = vor.u32 %v16777_v51, %v12844_v47  ;;  %v13101_v57 = vor.u32 %v16841_v53, %v13100_v52  ;;  %v12556_v58 = vld [vmem:[#allocation4 + $0x108] sm:$0xf] }
 0x26d   :  { %v13190_v26 = vld [vmem:[#allocation4 + $0x620] sm:$0xf0]  ;;  %v16705_v60 = vld [vmem:[#allocation4 + $0x124] sm:$0xf0] }
 0x26e   :  { %v16924_v63 = vld [vmem:[#allocation4 + $0x804] sm:$0xf]  ;;  %v13193_v12 = vor.u32 %v16860_v61, %v13190_v26  ;;  %5670 = vmatpush.bf16.msra.mxu0 %v12937_v9  ;;  %v12812_v61 = vld [vmem:[#allocation4 + $0x308] sm:$0xf]  ;;  %v13357_v26 = vor.u32 %v16905_v54, %v13356_v18  ;;  %v12557_v29 = vor.u32 %v16705_v60, %v12556_v58 }
 0x26f   :  { %v13446_v1 = vld [vmem:[#allocation4 + $0x820] sm:$0xf0]  ;;  %v13068_v0 = vld [vmem:[#allocation4 + $0x508] sm:$0xf] }
 0x270   :  { %v16988_v3 = vld [vmem:[#allocation4 + $0xa04] sm:$0xf]  ;;  %v13449_v13 = vor.u32 %v16924_v63, %v13446_v1  ;;  %5683 = vmatpush.bf16.msra.mxu1 %v13193_v12  ;;  %v16769_v63 = vld [vmem:[#allocation4 + $0x324] sm:$0xf0] }
 0x271   :  { %v13702_v5 = vld [vmem:[#allocation4 + $0xa20] sm:$0xf0]  ;;  %5671 = vmatmul.bf16.vlgmr.msra.gmra.mxu0 %v18148_v34  ;;  %v16833_v1 = vld [vmem:[#allocation4 + $0x524] sm:$0xf0]  ;;  %v12813_v8 = vor.u32 %v16769_v63, %v12812_v61 }
 0x272   :  { %v13705_v16 = vor.u32 %v16988_v3, %v13702_v5  ;;  %5696 = vmatpush.bf16.msra.mxu2 %v13449_v13  ;;  %5715 = vmatpush.bf16.msrb.mxu0 %v12653_v17  ;;  %v13324_v3 = vld [vmem:[#allocation4 + $0x708] sm:$0xf]  ;;  %v13069_v9 = vor.u32 %v16833_v1, %v13068_v0 }
 0x273   :  { %5684 = vmatmul.bf16.vlgmr.msra.gmra.mxu1 %v18154_v44  ;;  %v16897_v5 = vld [vmem:[#allocation4 + $0x724] sm:$0xf0] }
 0x274   :  { %5709 = vmatpush.bf16.msra.mxu3 %v13705_v16  ;;  %5728 = vmatpush.bf16.msrb.mxu1 %v12909_v19  ;;  %v12780_v43 = vld [vmem:[#allocation4 + $0x2c8] sm:$0xf]  ;;  %v13325_v12 = vor.u32 %v16897_v5, %v13324_v3  ;;  %v18264_v16 = vadd.f32 %v3131_v24, %v3119_v7 }
 0x275   :  { %5697 = vmatmul.bf16.vlgmr.msra.gmra.mxu2 %v18161_v30  ;;  %v16761_v13 = vld [vmem:[#allocation4 + $0x2e4] sm:$0xf0] }
 0x276   :  { %5741 = vmatpush.bf16.msrb.mxu2 %v13165_v20  ;;  %5716 = vmatpush.bf16.msrb.mxu0 %v12621_v39  ;;  %v13036_v36 = vld [vmem:[#allocation4 + $0x4c8] sm:$0xf]  ;;  %v660_v20 = vperm.slane %v18254_v48, 7  ;;  %v12781_v62 = vor.u32 %v16761_v13, %v12780_v43  ;;  %v3144_v39 = vpop.f32.mrf.mxu2  ;;  %v3120_v48 = vpop.f32.mrf.mxu0 }
 0x277   :  { %5710 = vmatmul.bf16.vlgmr.msra.gmra.mxu3 %v18163_v35  ;;  %v16825_v14 = vld [vmem:[#allocation4 + $0x4e4] sm:$0xf0]  ;;  %v16781_v48 = vld [vmem:[#allocation4 + $0x38c] sm:$0xf] }
 0x278   :  { %5754 = vmatpush.bf16.msrb.mxu3 %v13421_v27  ;;  %5729 = vmatpush.bf16.msrb.mxu1 %v12877_v40  ;;  %v13292_v17 = vld [vmem:[#allocation4 + $0x6c8] sm:$0xf]  ;;  %v13037_v22 = vor.u32 %v16825_v14, %v13036_v36  ;;  %v3145_v45 = vadd.f32 %v3144_v39, %v660_v20  ;;  %v3159_v36 = vpop.f32.mrf.mxu3  ;;  %v12654_v20 = vld [vmem:[#allocation4 + $0x1e8] sm:$0xf0] }
 0x279   :  { %v16889_v19 = vld [vmem:[#allocation4 + $0x6e4] sm:$0xf0] }
 0x27a   :  { %5742 = vmatpush.bf16.msrb.mxu2 %v13133_v42  ;;  %5717 = vmatpush.bf16.msrb.mxu0 %v12589_v55  ;;  %v12492_v23 = vld [vmem:[#allocation4 + $0x88] sm:$0xf]  ;;  %v13293_v31 = vor.u32 %v16889_v19, %v13292_v17  ;;  %v18267_v55 = vadd.f32 %v3157_v46, %v3145_v45  ;;  %v16725_v19 = vld [vmem:[#allocation4 + $0x1cc] sm:$0xf] }
 0x27b   :  { %v16689_v27 = vld [vmem:[#allocation4 + $0xa4] sm:$0xf0]  ;;  %v16717_v45 = vld [vmem:[#allocation4 + $0x18c] sm:$0xf] }
 0x27c   :  { %5755 = vmatpush.bf16.msrb.mxu3 %v13389_v50  ;;  %5730 = vmatpush.bf16.msrb.mxu1 %v12845_v56  ;;  %v12748_v28 = vld [vmem:[#allocation4 + $0x288] sm:$0xf]  ;;  %v12493_v47 = vor.u32 %v16689_v27, %v12492_v23  ;;  %v3133_v50 = vpop.f32.mrf.mxu1  ;;  %v12910_v23 = vld [vmem:[#allocation4 + $0x3e8] sm:$0xf0] }
 0x27d   :  { %v16753_v32 = vld [vmem:[#allocation4 + $0x2a4] sm:$0xf0]  ;;  %v12622_v46 = vld [vmem:[#allocation4 + $0x1a8] sm:$0xf0] }
 0x27e   :  { %5743 = vmatpush.bf16.msrb.mxu2 %v13101_v57  ;;  %5718 = vmatpush.bf16.msrb.mxu0 %v12557_v29  ;;  %v13004_v37 = vld [vmem:[#allocation4 + $0x488] sm:$0xf]  ;;  %v12749_v51 = vor.u32 %v16753_v32, %v12748_v28  ;;  %v3146_v11 = vpop.f32.mrf.mxu2  ;;  %v12657_v32 = vor.u32 %v16725_v19, %v12654_v20 }
 0x27f   :  { %v16817_v38 = vld [vmem:[#allocation4 + $0x4a4] sm:$0xf0] }
 0x280   :  { %5756 = vmatpush.bf16.msrb.mxu3 %v13357_v26  ;;  %5731 = vmatpush.bf16.msrb.mxu1 %v12813_v8  ;;  %v13260_v40 = vld [vmem:[#allocation4 + $0x688] sm:$0xf]  ;;  %v13005_v52 = vor.u32 %v16817_v38, %v13004_v37 }
 0x281   :  { %v16881_v42 = vld [vmem:[#allocation4 + $0x6a4] sm:$0xf0] }
 0x282   :  { %5744 = vmatpush.bf16.msrb.mxu2 %v13069_v9  ;;  %5719 = vmatpush.bf16.msrb.mxu0 %v12525_v49  ;;  %v12460_v53 = vld [vmem:[#allocation4 + $0x48] sm:$0xf]  ;;  %v13261_v56 = vor.u32 %v16881_v42, %v13260_v40 }
 0x283   :  { %v16681_v18 = vld [vmem:[#allocation4 + $0x64] sm:$0xf0] }
 0x284   :  { %5757 = vmatpush.bf16.msrb.mxu3 %v13325_v12  ;;  %5732 = vmatpush.bf16.msrb.mxu1 %v12781_v62  ;;  %v12716_v54 = vld [vmem:[#allocation4 + $0x248] sm:$0xf]  ;;  %v12461_v63 = vor.u32 %v16681_v18, %v12460_v53  ;;  %v3183_v20 = vpop.f32.mrf.mxu1 }
 0x285   :  { %v16745_v57 = vld [vmem:[#allocation4 + $0x264] sm:$0xf0] }
 0x286   :  { %5745 = vmatpush.bf16.msrb.mxu2 %v13037_v22  ;;  %v12972_v58 = vld [vmem:[#allocation4 + $0x448] sm:$0xf]  ;;  %5720 = vmatpush.bf16.msrb.mxu0 %v12493_v47  ;;  %v12717_v3 = vor.u32 %v16745_v57, %v12716_v54  ;;  %v16789_v22 = vld [vmem:[#allocation4 + $0x3cc] sm:$0xf] }
 0x287   :  { %v16809_v60 = vld [vmem:[#allocation4 + $0x464] sm:$0xf0]  ;;  %v12913_v40 = vor.u32 %v16789_v22, %v12910_v23  ;;  %v12878_v47 = vld [vmem:[#allocation4 + $0x3a8] sm:$0xf0] }
 0x288   :  { %5758 = vmatpush.bf16.msrb.mxu3 %v13293_v31  ;;  %v13228_v61 = vld [vmem:[#allocation4 + $0x648] sm:$0xf]  ;;  %5733 = vmatpush.bf16.msrb.mxu1 %v12749_v51  ;;  %v12973_v5 = vor.u32 %v16809_v60, %v12972_v58  ;;  %v16709_v58 = vld [vmem:[#allocation4 + $0x14c] sm:$0xf] }
 0x289   :  { %v16873_v26 = vld [vmem:[#allocation4 + $0x664] sm:$0xf0]  ;;  %v12590_v60 = vld [vmem:[#allocation4 + $0x168] sm:$0xf0] }
 0x28a   :  { %v12428_v0 = vld [vmem:[#allocation4 + $0x8] sm:$0xf]  ;;  %5746 = vmatpush.bf16.msrb.mxu2 %v13005_v52  ;;  %v13229_v24 = vor.u32 %v16873_v26, %v13228_v61  ;;  %5721 = vmatpush.bf16.msrb.mxu0 %v12461_v63  ;;  %v12625_v52 = vor.u32 %v16717_v45, %v12622_v46  ;;  %v16773_v61 = vld [vmem:[#allocation4 + $0x34c] sm:$0xf]  ;;  %v3196_v45 = vpop.f32.mrf.mxu2 }
 0x28b   :  { %v16673_v1 = vld [vmem:[#allocation4 + $0x24] sm:$0xf0]  ;;  %v12846_v26 = vld [vmem:[#allocation4 + $0x368] sm:$0xf0] }
 0x28c   :  { %v12684_v6 = vld [vmem:[#allocation4 + $0x208] sm:$0xf]  ;;  %5759 = vmatpush.bf16.msrb.mxu3 %v13261_v56  ;;  %v12429_v14 = vor.u32 %v16673_v1, %v12428_v0  ;;  %5734 = vmatpush.bf16.msrb.mxu1 %v12717_v3  ;;  %v12881_v56 = vor.u32 %v16781_v48, %v12878_v47  ;;  %v12593_v1 = vor.u32 %v16709_v58, %v12590_v60  ;;  %v16693_v22 = vld [vmem:[#allocation4 + $0xcc] sm:$0xf] }
 0x28d   :  { %v16737_v29 = vld [vmem:[#allocation4 + $0x224] sm:$0xf0]  ;;  %v12526_v23 = vld [vmem:[#allocation4 + $0xe8] sm:$0xf0] }
 0x28e   :  { %v12940_v7 = vld [vmem:[#allocation4 + $0x408] sm:$0xf]  ;;  %5747 = vmatpush.bf16.msrb.mxu2 %v12973_v5  ;;  %v12685_v49 = vor.u32 %v16737_v29, %v12684_v6  ;;  %5722 = vmatpush.bf16.msrb.mxu0 %v12429_v14  ;;  %v12849_v29 = vor.u32 %v16773_v61, %v12846_v26  ;;  %v16685_v48 = vld [vmem:[#allocation4 + $0x8c] sm:$0xf] }
 0x28f   :  { %v16801_v8 = vld [vmem:[#allocation4 + $0x424] sm:$0xf0]  ;;  %v12494_v47 = vld [vmem:[#allocation4 + $0xa8] sm:$0xf0] }
 0x290   :  { %v13196_v9 = vld [vmem:[#allocation4 + $0x608] sm:$0xf]  ;;  %v12941_v62 = vor.u32 %v16801_v8, %v12940_v7  ;;  %5760 = vmatpush.bf16.msrb.mxu3 %v13229_v24  ;;  %5735 = vmatpush.bf16.msrb.mxu1 %v12685_v49  ;;  %v16701_v24 = vld [vmem:[#allocation4 + $0x10c] sm:$0xf]  ;;  %v12497_v58 = vor.u32 %v16685_v48, %v12494_v47 }
 0x291   :  { %v16865_v10 = vld [vmem:[#allocation4 + $0x624] sm:$0xf0]  ;;  %5723 = vmatmul.bf16.vlgmr.msrb.gmra.mxu0 %v18146_v33  ;;  %v12558_v8 = vld [vmem:[#allocation4 + $0x128] sm:$0xf0] }
 0x292   :  { %v13676_v43 = vld [vmem:[#allocation4 + $0x9c8] sm:$0xf]  ;;  %v13197_v27 = vor.u32 %v16865_v10, %v13196_v9  ;;  %5748 = vmatpush.bf16.msrb.mxu2 %v12941_v62  ;;  %v16765_v9 = vld [vmem:[#allocation4 + $0x30c] sm:$0xf] }
 0x293   :  { %v16985_v12 = vld [vmem:[#allocation4 + $0x9e4] sm:$0xf0]  ;;  %5736 = vmatmul.bf16.vlgmr.msrb.gmra.mxu1 %v18150_v41  ;;  %v12814_v10 = vld [vmem:[#allocation4 + $0x328] sm:$0xf0] }
 0x294   :  { %v13932_v13 = vld [vmem:[#allocation4 + $0xbc8] sm:$0xf]  ;;  %v13677_v28 = vor.u32 %v16985_v12, %v13676_v43  ;;  %5761 = vmatpush.bf16.msrb.mxu3 %v13197_v27  ;;  %v3170_v43 = vpop.f32.mrf.mxu0  ;;  %v12817_v49 = vor.u32 %v16765_v9, %v12814_v10  ;;  %v16757_v27 = vld [vmem:[#allocation4 + $0x2cc] sm:$0xf] }
 0x295   :  { %v17049_v17 = vld [vmem:[#allocation4 + $0xbe4] sm:$0xf0]  ;;  %5749 = vmatmul.bf16.vlgmr.msrb.gmra.mxu2 %v18148_v34  ;;  %v3171_v19 = vadd.f32 %v3170_v43, %v18267_v55  ;;  %v13134_v48 = vld [vmem:[#allocation4 + $0x5a8] sm:$0xf0] }
 0x296   :  { %v13933_v31 = vor.u32 %v17049_v17, %v13932_v13  ;;  %v13644_v37 = vld [vmem:[#allocation4 + $0x988] sm:$0xf]  ;;  %5767 = vmatpush.bf16.msra.mxu0 %v13677_v28  ;;  %5793 = vmatpush.bf16.msra.mxu2 %v12657_v32  ;;  %v12561_v13 = vor.u32 %v16701_v24, %v12558_v8  ;;  %v12782_v28 = vld [vmem:[#allocation4 + $0x2e8] sm:$0xf0] }
 0x297   :  { %v16977_v38 = vld [vmem:[#allocation4 + $0x9a4] sm:$0xf0]  ;;  %5762 = vmatmul.bf16.vlgmr.msrb.gmra.mxu3 %v18154_v44  ;;  %v12785_v55 = vor.u32 %v16757_v27, %v12782_v28  ;;  %v13422_v27 = vld [vmem:[#allocation4 + $0x7e8] sm:$0xf0] }
 0x298   :  { %v13900_v39 = vld [vmem:[#allocation4 + $0xb88] sm:$0xf]  ;;  %v13645_v50 = vor.u32 %v16977_v38, %v13644_v37  ;;  %5780 = vmatpush.bf16.msra.mxu1 %v13933_v31  ;;  %5806 = vmatpush.bf16.msra.mxu3 %v12913_v40  ;;  %v3184_v31 = vadd.f32 %v3183_v20, %v3171_v19  ;;  %v12529_v38 = vor.u32 %v16693_v22, %v12526_v23  ;;  %v12686_v19 = vld [vmem:[#allocation4 + $0x228] sm:$0xf0] }
 0x299   :  { %v17041_v42 = vld [vmem:[#allocation4 + $0xba4] sm:$0xf0]  ;;  %v16917_v22 = vld [vmem:[#allocation4 + $0x7cc] sm:$0xf] }
 0x29a   :  { %v13901_v51 = vor.u32 %v17041_v42, %v13900_v39  ;;  %v13612_v53 = vld [vmem:[#allocation4 + $0x948] sm:$0xf]  ;;  %5768 = vmatpush.bf16.msra.mxu0 %v13645_v50  ;;  %5794 = vmatpush.bf16.msra.mxu2 %v12625_v52  ;;  %v3197_v50 = vadd.f32 %v3196_v45, %v3184_v31  ;;  %v16749_v52 = vld [vmem:[#allocation4 + $0x28c] sm:$0xf]  ;;  %v13425_v45 = vor.u32 %v16917_v22, %v13422_v27 }
 0x29b   :  { %v16969_v18 = vld [vmem:[#allocation4 + $0x964] sm:$0xf0]  ;;  %v16981_v28 = vld [vmem:[#allocation4 + $0x9cc] sm:$0xf] }
 0x29c   :  { %v13868_v54 = vld [vmem:[#allocation4 + $0xb48] sm:$0xf]  ;;  %v13613_v63 = vor.u32 %v16969_v18, %v13612_v53  ;;  %5781 = vmatpush.bf16.msra.mxu1 %v13901_v51  ;;  %5807 = vmatpush.bf16.msra.mxu3 %v12881_v56  ;;  %v3209_v51 = vpop.f32.mrf.mxu3  ;;  %v12750_v53 = vld [vmem:[#allocation4 + $0x2a8] sm:$0xf0]  ;;  %v3172_v56 = vpop.f32.mrf.mxu0 }
 0x29d   :  { %v17033_v57 = vld [vmem:[#allocation4 + $0xb64] sm:$0xf0]  ;;  %v13678_v31 = vld [vmem:[#allocation4 + $0x9e8] sm:$0xf0] }
 0x29e   :  { %v13869_v0 = vor.u32 %v17033_v57, %v13868_v54  ;;  %v13580_v3 = vld [vmem:[#allocation4 + $0x908] sm:$0xf]  ;;  %5769 = vmatpush.bf16.msra.mxu0 %v13613_v63  ;;  %5795 = vmatpush.bf16.msra.mxu2 %v12593_v1  ;;  %v18274_v54 = vadd.f32 %v3209_v51, %v3197_v50  ;;  %v3185_v63 = vpop.f32.mrf.mxu1  ;;  %v16909_v47 = vld [vmem:[#allocation4 + $0x78c] sm:$0xf] }
 0x29f   :  { %v16961_v5 = vld [vmem:[#allocation4 + $0x924] sm:$0xf0]  ;;  %v13390_v51 = vld [vmem:[#allocation4 + $0x7a8] sm:$0xf0] }
 0x2a0   :  { %v13836_v6 = vld [vmem:[#allocation4 + $0xb08] sm:$0xf]  ;;  %v13581_v11 = vor.u32 %v16961_v5, %v13580_v3  ;;  %5782 = vmatpush.bf16.msra.mxu1 %v13869_v0  ;;  %5808 = vmatpush.bf16.msra.mxu3 %v12849_v29  ;;  %v12753_v0 = vor.u32 %v16749_v52, %v12750_v53  ;;  %v16677_v3 = vld [vmem:[#allocation4 + $0x4c] sm:$0xf] }
 0x2a1   :  { %v17025_v7 = vld [vmem:[#allocation4 + $0xb24] sm:$0xf0]  ;;  %v12462_v5 = vld [vmem:[#allocation4 + $0x68] sm:$0xf0] }
 0x2a2   :  { %v13837_v12 = vor.u32 %v17025_v7, %v13836_v6  ;;  %v13548_v36 = vld [vmem:[#allocation4 + $0x8c8] sm:$0xf]  ;;  %5770 = vmatpush.bf16.msra.mxu0 %v13581_v11  ;;  %5796 = vmatpush.bf16.msra.mxu2 %v12561_v13  ;;  %v16741_v6 = vld [vmem:[#allocation4 + $0x24c] sm:$0xf]  ;;  %v12465_v10 = vor.u32 %v16677_v3, %v12462_v5  ;;  %v3198_v13 = vpop.f32.mrf.mxu2 }
 0x2a3   :  { %v16953_v14 = vld [vmem:[#allocation4 + $0x8e4] sm:$0xf0]  ;;  %v12718_v29 = vld [vmem:[#allocation4 + $0x268] sm:$0xf0] }
 0x2a4   :  { %v13804_v17 = vld [vmem:[#allocation4 + $0xac8] sm:$0xf]  ;;  %v13549_v32 = vor.u32 %v16953_v14, %v13548_v36  ;;  %5783 = vmatpush.bf16.msra.mxu1 %v13837_v12  ;;  %5809 = vmatpush.bf16.msra.mxu3 %v12817_v49  ;;  %v16669_v12 = vld [vmem:[#allocation4 + $0xc] sm:$0xf]  ;;  %v12721_v36 = vor.u32 %v16741_v6, %v12718_v29  ;;  %v3211_v20 = vpop.f32.mrf.mxu3 }
 0x2a5   :  { %v17017_v62 = vld [vmem:[#allocation4 + $0xae4] sm:$0xf0]  ;;  %v12430_v14 = vld [vmem:[#allocation4 + $0x28] sm:$0xf0] }
 0x2a6   :  { %v13805_v37 = vor.u32 %v17017_v62, %v13804_v17  ;;  %v13516_v39 = vld [vmem:[#allocation4 + $0x888] sm:$0xf]  ;;  %5771 = vmatpush.bf16.msra.mxu0 %v13549_v32  ;;  %5797 = vmatpush.bf16.msra.mxu2 %v12529_v38  ;;  %v16733_v17 = vld [vmem:[#allocation4 + $0x20c] sm:$0xf] }
 0x2a7   :  { %v16945_v40 = vld [vmem:[#allocation4 + $0x8a4] sm:$0xf0]  ;;  %v16853_v49 = vld [vmem:[#allocation4 + $0x5cc] sm:$0xf] }
 0x2a8   :  { %v13772_v42 = vld [vmem:[#allocation4 + $0xa88] sm:$0xf]  ;;  %v13517_v18 = vor.u32 %v16945_v40, %v13516_v39  ;;  %5784 = vmatpush.bf16.msra.mxu1 %v13805_v37  ;;  %5810 = vmatpush.bf16.msra.mxu3 %v12785_v55  ;;  %v13166_v62 = vld [vmem:[#allocation4 + $0x5e8] sm:$0xf0]  ;;  %v12433_v37 = vor.u32 %v16669_v12, %v12430_v14  ;;  %v12689_v40 = vor.u32 %v16733_v17, %v12686_v19 }
 0x2a9   :  { %v17009_v46 = vld [vmem:[#allocation4 + $0xaa4] sm:$0xf0]  ;;  %v17045_v38 = vld [vmem:[#allocation4 + $0xbcc] sm:$0xf]  ;;  %v13681_v55 = vor.u32 %v16981_v28, %v13678_v31 }
 0x2aa   :  { %v13773_v57 = vor.u32 %v17009_v46, %v13772_v42  ;;  %v13484_v60 = vld [vmem:[#allocation4 + $0x848] sm:$0xf]  ;;  %5772 = vmatpush.bf16.msra.mxu0 %v13517_v18  ;;  %5798 = vmatpush.bf16.msra.mxu2 %v12497_v58  ;;  %v13934_v39 = vld [vmem:[#allocation4 + $0xbe8] sm:$0xf0]  ;;  %v13169_v42 = vor.u32 %v16853_v49, %v13166_v62  ;;  %v5568_v49 = vpop.f32.mrf.mxu0 }
 0x2ab   :  { %v16937_v61 = vld [vmem:[#allocation4 + $0x864] sm:$0xf0]  ;;  %v16845_v46 = vld [vmem:[#allocation4 + $0x58c] sm:$0xf]  ;;  %v13937_v50 = vor.u32 %v17045_v38, %v13934_v39 }
 0x2ac   :  { %v13740_v26 = vld [vmem:[#allocation4 + $0xa48] sm:$0xf]  ;;  %v13485_v7 = vor.u32 %v16937_v61, %v13484_v60  ;;  %5785 = vmatpush.bf16.msra.mxu1 %v13773_v57  ;;  %5811 = vmatpush.bf16.msra.mxu3 %v12753_v0  ;;  %v16973_v52 = vld [vmem:[#allocation4 + $0x98c] sm:$0xf]  ;;  %v13137_v57 = vor.u32 %v16845_v46, %v13134_v48  ;;  %v13393_v60 = vor.u32 %v16909_v47, %v13390_v51 }
 0x2ad   :  { %v17001_v1 = vld [vmem:[#allocation4 + $0xa64] sm:$0xf0]  ;;  %v13646_v53 = vld [vmem:[#allocation4 + $0x9a8] sm:$0xf0] }
 0x2ae   :  { %v13452_v24 = vld [vmem:[#allocation4 + $0x808] sm:$0xf]  ;;  %v13741_v9 = vor.u32 %v17001_v1, %v13740_v26  ;;  %5773 = vmatpush.bf16.msra.mxu0 %v13485_v7  ;;  %5799 = vmatpush.bf16.msra.mxu2 %v12465_v10  ;;  %v17037_v18 = vld [vmem:[#allocation4 + $0xb8c] sm:$0xf]  ;;  %v13649_v61 = vor.u32 %v16973_v52, %v13646_v53 }
 0x2af   :  { %v16929_v8 = vld [vmem:[#allocation4 + $0x824] sm:$0xf0]  ;;  %v13902_v56 = vld [vmem:[#allocation4 + $0xba8] sm:$0xf0] }
 0x2b0   :  { %v13708_v11 = vld [vmem:[#allocation4 + $0xa08] sm:$0xf]  ;;  %v13453_v23 = vor.u32 %v16929_v8, %v13452_v24  ;;  %5786 = vmatpush.bf16.msra.mxu1 %v13741_v9  ;;  %5812 = vmatpush.bf16.msra.mxu3 %v12721_v36  ;;  %v16837_v58 = vld [vmem:[#allocation4 + $0x54c] sm:$0xf]  ;;  %v13905_v1 = vor.u32 %v17037_v18, %v13902_v56 }
 0x2b1   :  { %v16993_v43 = vld [vmem:[#allocation4 + $0xa24] sm:$0xf0]  ;;  %v13102_v26 = vld [vmem:[#allocation4 + $0x568] sm:$0xf0] }
 0x2b2   :  { %v13709_v32 = vor.u32 %v16993_v43, %v13708_v11  ;;  %5774 = vmatpush.bf16.msra.mxu0 %v13453_v23  ;;  %5800 = vmatpush.bf16.msra.mxu2 %v12433_v37  ;;  %v16901_v63 = vld [vmem:[#allocation4 + $0x74c] sm:$0xf]  ;;  %v13105_v24 = vor.u32 %v16837_v58, %v13102_v26  ;;  %v5581_v23 = vpop.f32.mrf.mxu1 }
 0x2b3   :  { %v18276_v0 = vld [vmem:[#allocation7] sm:$0xff] }
 0x2b4   :  { %5787 = vmatpush.bf16.msra.mxu1 %v13709_v32  ;;  %5813 = vmatpush.bf16.msra.mxu3 %v12689_v40  ;;  %v13358_v3 = vld [vmem:[#allocation4 + $0x768] sm:$0xf0]  ;;  %v3623_v8 = vperm.slane %v18276_v0, 0 }
 0x2b5   :  { %5775 = vmatmul.bf16.vlgmr.msra.gmra.mxu0 %v18161_v30  ;;  %v16965_v5 = vld [vmem:[#allocation4 + $0x94c] sm:$0xf]  ;;  %5801 = vmatmul.bf16.vlgmr.msra.gmra.mxu2 %v18146_v33  ;;  %v13361_v9 = vor.u32 %v16901_v63, %v13358_v3  ;;  %v5607_v3 = vpop.f32.mrf.mxu3 }
 0x2b6   :  { %5819 = vmatpush.bf16.msrb.mxu0 %v13169_v42  ;;  %5845 = vmatpush.bf16.msrb.mxu2 %v13681_v55  ;;  %v13614_v6 = vld [vmem:[#allocation4 + $0x968] sm:$0xf0]  ;;  %v5569_v22 = vadd.f32 %v5568_v49, %v3623_v8 }
 0x2b7   :  { %v17029_v29 = vld [vmem:[#allocation4 + $0xb4c] sm:$0xf]  ;;  %5788 = vmatmul.bf16.vlgmr.msra.gmra.mxu1 %v18163_v35  ;;  %5814 = vmatmul.bf16.vlgmr.msra.gmra.mxu3 %v18150_v41  ;;  %v13617_v10 = vor.u32 %v16965_v5, %v13614_v6 }
 0x2b8   :  { %5832 = vmatpush.bf16.msrb.mxu1 %v13425_v45  ;;  %5858 = vmatpush.bf16.msrb.mxu3 %v13937_v50  ;;  %v13870_v7 = vld [vmem:[#allocation4 + $0xb68] sm:$0xf0]  ;;  %v5582_v45 = vadd.f32 %v5581_v23, %v5569_v22 }
 0x2b9   :  { %v16829_v11 = vld [vmem:[#allocation4 + $0x50c] sm:$0xf]  ;;  %v13873_v13 = vor.u32 %v17029_v29, %v13870_v7 }
 0x2ba   :  { %5820 = vmatpush.bf16.msrb.mxu0 %v13137_v57  ;;  %5846 = vmatpush.bf16.msrb.mxu2 %v13649_v61  ;;  %v13070_v43 = vld [vmem:[#allocation4 + $0x528] sm:$0xf0]  ;;  %v5583_v6 = vpop.f32.mrf.mxu1 }
 0x2bb   :  { %v16893_v12 = vld [vmem:[#allocation4 + $0x70c] sm:$0xf]  ;;  %v13073_v62 = vor.u32 %v16829_v11, %v13070_v43  ;;  %v13396_v6 = vld [vmem:[#allocation4 + $0x790] sm:$0xf] }
 0x2bc   :  { %5833 = vmatpush.bf16.msrb.mxu1 %v13393_v60  ;;  %5859 = vmatpush.bf16.msrb.mxu3 %v13905_v1  ;;  %v13326_v36 = vld [vmem:[#allocation4 + $0x728] sm:$0xf0]  ;;  %v5594_v60 = vpop.f32.mrf.mxu2  ;;  %v5570_v1 = vpop.f32.mrf.mxu0 }
 0x2bd   :  { %v16957_v14 = vld [vmem:[#allocation4 + $0x90c] sm:$0xf]  ;;  %v13329_v27 = vor.u32 %v16893_v12, %v13326_v36  ;;  %v5595_v63 = vadd.f32 %v5594_v60, %v5582_v45  ;;  %v5609_v45 = vpop.f32.mrf.mxu3  ;;  %v12628_v60 = vld [vmem:[#allocation4 + $0x190] sm:$0xf] }
 0x2be   :  { %v13582_v17 = vld [vmem:[#allocation4 + $0x928] sm:$0xf0]  ;;  %5821 = vmatpush.bf16.msrb.mxu0 %v13105_v24  ;;  %5847 = vmatpush.bf16.msrb.mxu2 %v13617_v10  ;;  %v16786_v1 = vld [vmem:[#allocation4 + $0x3ac] sm:$0xf0] }
 0x2bf   :  { %v17021_v19 = vld [vmem:[#allocation4 + $0xb0c] sm:$0xf]  ;;  %v13585_v28 = vor.u32 %v16957_v14, %v13582_v17  ;;  %v18283_v10 = vadd.f32 %v5607_v3, %v5595_v63  ;;  %v13140_v3 = vld [vmem:[#allocation4 + $0x590] sm:$0xf] }
 0x2c0   :  { %v13838_v20 = vld [vmem:[#allocation4 + $0xb28] sm:$0xf0]  ;;  %5834 = vmatpush.bf16.msrb.mxu1 %v13361_v9  ;;  %5860 = vmatpush.bf16.msrb.mxu3 %v13873_v13 }
 0x2c1   :  { %v16821_v31 = vld [vmem:[#allocation4 + $0x4cc] sm:$0xf]  ;;  %v13841_v38 = vor.u32 %v17021_v19, %v13838_v20 }
 0x2c2   :  { %v13038_v32 = vld [vmem:[#allocation4 + $0x4e8] sm:$0xf0]  ;;  %5822 = vmatpush.bf16.msrb.mxu0 %v13073_v62  ;;  %5848 = vmatpush.bf16.msrb.mxu2 %v13585_v28 }
 0x2c3   :  { %v16885_v37 = vld [vmem:[#allocation4 + $0x6cc] sm:$0xf]  ;;  %v13041_v48 = vor.u32 %v16821_v31, %v13038_v32 }
 0x2c4   :  { %v13294_v39 = vld [vmem:[#allocation4 + $0x6e8] sm:$0xf0]  ;;  %5835 = vmatpush.bf16.msrb.mxu1 %v13329_v27  ;;  %5861 = vmatpush.bf16.msrb.mxu3 %v13841_v38  ;;  %v5596_v38 = vpop.f32.mrf.mxu2 }
 0x2c5   :  { %v16949_v40 = vld [vmem:[#allocation4 + $0x8cc] sm:$0xf]  ;;  %v13297_v47 = vor.u32 %v16885_v37, %v13294_v39  ;;  %v12660_v39 = vld [vmem:[#allocation4 + $0x1d0] sm:$0xf] }
 0x2c6   :  { %v13550_v42 = vld [vmem:[#allocation4 + $0x8e8] sm:$0xf0]  ;;  %5823 = vmatpush.bf16.msrb.mxu0 %v13041_v48  ;;  %v13172_v48 = vld [vmem:[#allocation4 + $0x5d0] sm:$0xf] }
 0x2c7   :  { %v17013_v55 = vld [vmem:[#allocation4 + $0xacc] sm:$0xf]  ;;  %v13553_v50 = vor.u32 %v16949_v40, %v13550_v42  ;;  %v16730_v40 = vld [vmem:[#allocation4 + $0x1ec] sm:$0xf0] }
 0x2c8   :  { %v13806_v46 = vld [vmem:[#allocation4 + $0xae8] sm:$0xf0]  ;;  %5836 = vmatpush.bf16.msrb.mxu1 %v13297_v47  ;;  %v12916_v42 = vld [vmem:[#allocation4 + $0x3d0] sm:$0xf] }
 0x2c9   :  { %v16813_v51 = vld [vmem:[#allocation4 + $0x48c] sm:$0xf]  ;;  %v13809_v18 = vor.u32 %v17013_v55, %v13806_v46  ;;  %5849 = vmatpush.bf16.msrb.mxu2 %v13553_v50  ;;  %v16794_v46 = vld [vmem:[#allocation4 + $0x3ec] sm:$0xf0] }
 0x2ca   :  { %v13006_v52 = vld [vmem:[#allocation4 + $0x4a8] sm:$0xf0]  ;;  %v16858_v47 = vld [vmem:[#allocation4 + $0x5ec] sm:$0xf0] }
 0x2cb   :  { %v16877_v53 = vld [vmem:[#allocation4 + $0x68c] sm:$0xf]  ;;  %v13009_v5 = vor.u32 %v16813_v51, %v13006_v52  ;;  %5862 = vmatpush.bf16.msrb.mxu3 %v13809_v18  ;;  %v13428_v52 = vld [vmem:[#allocation4 + $0x7d0] sm:$0xf] }
 0x2cc   :  { %v13262_v56 = vld [vmem:[#allocation4 + $0x6a8] sm:$0xf0]  ;;  %v13332_v38 = vld [vmem:[#allocation4 + $0x710] sm:$0xf] }
 0x2cd   :  { %v16941_v57 = vld [vmem:[#allocation4 + $0x88c] sm:$0xf]  ;;  %v13265_v29 = vor.u32 %v16877_v53, %v13262_v56  ;;  %5824 = vmatpush.bf16.msrb.mxu0 %v13009_v5  ;;  %v16922_v53 = vld [vmem:[#allocation4 + $0x7ec] sm:$0xf0]  ;;  %v12661_v56 = vor.u32 %v16730_v40, %v12660_v39  ;;  %v5620_v40 = vpop.f32.mrf.mxu0 }
 0x2ce   :  { %v13518_v58 = vld [vmem:[#allocation4 + $0x8a8] sm:$0xf0]  ;;  %v13429_v63 = vor.u32 %v16922_v53, %v13428_v52  ;;  %v16850_v5 = vld [vmem:[#allocation4 + $0x5ac] sm:$0xf0]  ;;  %v5621_v45 = vadd.f32 %v5620_v40, %v18283_v10 }
 0x2cf   :  { %v17005_v61 = vld [vmem:[#allocation4 + $0xa8c] sm:$0xf]  ;;  %v13521_v7 = vor.u32 %v16941_v57, %v13518_v58  ;;  %5837 = vmatpush.bf16.msrb.mxu1 %v13265_v29  ;;  %v12917_v57 = vor.u32 %v16794_v46, %v12916_v42  ;;  %v13173_v58 = vor.u32 %v16858_v47, %v13172_v48  ;;  %v16914_v29 = vld [vmem:[#allocation4 + $0x7ac] sm:$0xf0] }
 0x2d0   :  { %v13774_v26 = vld [vmem:[#allocation4 + $0xaa8] sm:$0xf0]  ;;  %v16898_v39 = vld [vmem:[#allocation4 + $0x72c] sm:$0xf0] }
 0x2d1   :  { %v16805_v24 = vld [vmem:[#allocation4 + $0x44c] sm:$0xf]  ;;  %v13777_v11 = vor.u32 %v17005_v61, %v13774_v26  ;;  %5850 = vmatpush.bf16.msrb.mxu2 %v13521_v7  ;;  %v16722_v61 = vld [vmem:[#allocation4 + $0x1ac] sm:$0xf0]  ;;  %v13333_v52 = vor.u32 %v16898_v39, %v13332_v38 }
 0x2d2   :  { %v12974_v8 = vld [vmem:[#allocation4 + $0x468] sm:$0xf0]  ;;  %v12884_v26 = vld [vmem:[#allocation4 + $0x390] sm:$0xf]  ;;  %v12629_v7 = vor.u32 %v16722_v61, %v12628_v60  ;;  %v3624_v61 = vperm.slane %v18276_v0, 1 }
 0x2d3   :  { %v16869_v9 = vld [vmem:[#allocation4 + $0x64c] sm:$0xf]  ;;  %v12977_v17 = vor.u32 %v16805_v24, %v12974_v8  ;;  %5863 = vmatpush.bf16.msrb.mxu3 %v13777_v11  ;;  %v12885_v24 = vor.u32 %v16786_v1, %v12884_v26  ;;  %v13141_v8 = vor.u32 %v16850_v5, %v13140_v3  ;;  %v16714_v11 = vld [vmem:[#allocation4 + $0x16c] sm:$0xf0] }
 0x2d4   :  { %v13230_v43 = vld [vmem:[#allocation4 + $0x668] sm:$0xf0]  ;;  %v12532_v47 = vld [vmem:[#allocation4 + $0xd0] sm:$0xf] }
 0x2d5   :  { %v16933_v12 = vld [vmem:[#allocation4 + $0x84c] sm:$0xf]  ;;  %v13233_v49 = vor.u32 %v16869_v9, %v13230_v43  ;;  %5825 = vmatpush.bf16.msrb.mxu0 %v12977_v17  ;;  %v12596_v9 = vld [vmem:[#allocation4 + $0x150] sm:$0xf] }
 0x2d6   :  { %v13486_v13 = vld [vmem:[#allocation4 + $0x868] sm:$0xf0]  ;;  %v12852_v43 = vld [vmem:[#allocation4 + $0x350] sm:$0xf] }
 0x2d7   :  { %v16997_v36 = vld [vmem:[#allocation4 + $0xa4c] sm:$0xf]  ;;  %v13489_v62 = vor.u32 %v16933_v12, %v13486_v13  ;;  %5838 = vmatpush.bf16.msrb.mxu1 %v13233_v49  ;;  %v13397_v12 = vor.u32 %v16914_v29, %v13396_v6  ;;  %v16778_v13 = vld [vmem:[#allocation4 + $0x36c] sm:$0xf0] }
 0x2d8   :  { %v13742_v14 = vld [vmem:[#allocation4 + $0xa68] sm:$0xf0]  ;;  %v13364_v17 = vld [vmem:[#allocation4 + $0x750] sm:$0xf]  ;;  %v12853_v49 = vor.u32 %v16778_v13, %v12852_v43  ;;  %v5622_v13 = vpop.f32.mrf.mxu0 }
 0x2d9   :  { %v16797_v19 = vld [vmem:[#allocation4 + $0x40c] sm:$0xf]  ;;  %v13745_v28 = vor.u32 %v16997_v36, %v13742_v14  ;;  %5851 = vmatpush.bf16.msrb.mxu2 %v13489_v62  ;;  %v13108_v36 = vld [vmem:[#allocation4 + $0x550] sm:$0xf] }
 0x2da   :  { %v12942_v20 = vld [vmem:[#allocation4 + $0x428] sm:$0xf0]  ;;  %v16842_v14 = vld [vmem:[#allocation4 + $0x56c] sm:$0xf0] }
 0x2db   :  { %v16861_v22 = vld [vmem:[#allocation4 + $0x60c] sm:$0xf]  ;;  %v12945_v55 = vor.u32 %v16797_v19, %v12942_v20  ;;  %5864 = vmatpush.bf16.msrb.mxu3 %v13745_v28  ;;  %v16906_v19 = vld [vmem:[#allocation4 + $0x76c] sm:$0xf0]  ;;  %v12597_v20 = vor.u32 %v16714_v11, %v12596_v9  ;;  %v13109_v62 = vor.u32 %v16842_v14, %v13108_v36 }
 0x2dc   :  { %v13198_v23 = vld [vmem:[#allocation4 + $0x628] sm:$0xf0]  ;;  %v13365_v28 = vor.u32 %v16906_v19, %v13364_v17  ;;  %v16762_v53 = vld [vmem:[#allocation4 + $0x2ec] sm:$0xf0] }
 0x2dd   :  { %v16925_v27 = vld [vmem:[#allocation4 + $0x80c] sm:$0xf]  ;;  %v13201_v50 = vor.u32 %v16861_v22, %v13198_v23  ;;  %5826 = vmatpush.bf16.msrb.mxu0 %v12945_v55  ;;  %v12564_v22 = vld [vmem:[#allocation4 + $0x110] sm:$0xf]  ;;  %v5633_v55 = vpop.f32.mrf.mxu1 }
 0x2de   :  { %v13454_v31 = vld [vmem:[#allocation4 + $0x828] sm:$0xf0]  ;;  %v16706_v23 = vld [vmem:[#allocation4 + $0x12c] sm:$0xf0] }
 0x2df   :  { %v16989_v32 = vld [vmem:[#allocation4 + $0xa0c] sm:$0xf]  ;;  %v13457_v51 = vor.u32 %v16925_v27, %v13454_v31  ;;  %5839 = vmatpush.bf16.msrb.mxu1 %v13201_v50  ;;  %v12820_v27 = vld [vmem:[#allocation4 + $0x310] sm:$0xf]  ;;  %v12565_v42 = vor.u32 %v16706_v23, %v12564_v22 }
 0x2e0   :  { %v13710_v37 = vld [vmem:[#allocation4 + $0xa28] sm:$0xf0]  ;;  %5827 = vmatmul.bf16.vlgmr.msrb.gmra.mxu0 %v18148_v34  ;;  %v16770_v31 = vld [vmem:[#allocation4 + $0x32c] sm:$0xf0] }
 0x2e1   :  { %v13713_v18 = vor.u32 %v16989_v32, %v13710_v37  ;;  %5852 = vmatpush.bf16.msrb.mxu2 %v13457_v51  ;;  %5871 = vmatpush.bf16.msra.mxu0 %v12661_v56  ;;  %v13076_v32 = vld [vmem:[#allocation4 + $0x510] sm:$0xf]  ;;  %v12821_v46 = vor.u32 %v16770_v31, %v12820_v27 }
 0x2e2   :  { %5840 = vmatmul.bf16.vlgmr.msrb.gmra.mxu1 %v18154_v44  ;;  %v16834_v37 = vld [vmem:[#allocation4 + $0x52c] sm:$0xf0] }
 0x2e3   :  { %5865 = vmatpush.bf16.msrb.mxu3 %v13713_v18  ;;  %5884 = vmatpush.bf16.msra.mxu1 %v12917_v57  ;;  %v13077_v48 = vor.u32 %v16834_v37, %v13076_v32  ;;  %v16698_v50 = vld [vmem:[#allocation4 + $0xec] sm:$0xf0]  ;;  %v18290_v57 = vadd.f32 %v5633_v55, %v5621_v45 }
 0x2e4   :  { %5853 = vmatmul.bf16.vlgmr.msrb.gmra.mxu2 %v18161_v30  ;;  %v12788_v51 = vld [vmem:[#allocation4 + $0x2d0] sm:$0xf]  ;;  %v12533_v10 = vor.u32 %v16698_v50, %v12532_v47 }
 0x2e5   :  { %5897 = vmatpush.bf16.msra.mxu2 %v13173_v58  ;;  %5872 = vmatpush.bf16.msra.mxu0 %v12629_v7  ;;  %v13044_v18 = vld [vmem:[#allocation4 + $0x4d0] sm:$0xf]  ;;  %v12789_v26 = vor.u32 %v16762_v53, %v12788_v51  ;;  %v5635_v14 = vpop.f32.mrf.mxu1 }
 0x2e6   :  { %5866 = vmatmul.bf16.vlgmr.msrb.gmra.mxu3 %v18163_v35  ;;  %v16826_v56 = vld [vmem:[#allocation4 + $0x4ec] sm:$0xf0]  ;;  %v12630_v14 = vld [vmem:[#allocation4 + $0x1b0] sm:$0xf0] }
 0x2e7   :  { %5910 = vmatpush.bf16.msra.mxu3 %v13429_v63  ;;  %5885 = vmatpush.bf16.msra.mxu1 %v12885_v24  ;;  %v13300_v58 = vld [vmem:[#allocation4 + $0x6d0] sm:$0xf]  ;;  %v13045_v63 = vor.u32 %v16826_v56, %v13044_v18 }
 0x2e8   :  { %v16890_v60 = vld [vmem:[#allocation4 + $0x6ec] sm:$0xf0] }
 0x2e9   :  { %5898 = vmatpush.bf16.msra.mxu2 %v13141_v8  ;;  %5873 = vmatpush.bf16.msra.mxu0 %v12597_v20  ;;  %v12500_v1 = vld [vmem:[#allocation4 + $0x90] sm:$0xf]  ;;  %v13301_v6 = vor.u32 %v16890_v60, %v13300_v58  ;;  %v5646_v8 = vpop.f32.mrf.mxu2 }
 0x2ea   :  { %v16690_v3 = vld [vmem:[#allocation4 + $0xac] sm:$0xf0]  ;;  %v5647_v43 = vadd.f32 %v5646_v8, %v3624_v61 }
 0x2eb   :  { %5911 = vmatpush.bf16.msra.mxu3 %v13397_v12  ;;  %5886 = vmatpush.bf16.msra.mxu1 %v12853_v49  ;;  %v12756_v5 = vld [vmem:[#allocation4 + $0x290] sm:$0xf]  ;;  %v5659_v12 = vpop.f32.mrf.mxu3  ;;  %v12501_v36 = vor.u32 %v16690_v3, %v12500_v1 }
 0x2ec   :  { %v16754_v29 = vld [vmem:[#allocation4 + $0x2ac] sm:$0xf0]  ;;  %v18293_v22 = vadd.f32 %v5659_v12, %v5647_v43 }
 0x2ed   :  { %5899 = vmatpush.bf16.msra.mxu2 %v13109_v62  ;;  %5874 = vmatpush.bf16.msra.mxu0 %v12565_v42  ;;  %v13012_v7 = vld [vmem:[#allocation4 + $0x490] sm:$0xf]  ;;  %v12757_v17 = vor.u32 %v16754_v29, %v12756_v5  ;;  %v16790_v5 = vld [vmem:[#allocation4 + $0x3d4] sm:$0xf] }
 0x2ee   :  { %v16818_v24 = vld [vmem:[#allocation4 + $0x4ac] sm:$0xf0] }
 0x2ef   :  { %5912 = vmatpush.bf16.msra.mxu3 %v13365_v28  ;;  %5887 = vmatpush.bf16.msra.mxu1 %v12821_v46  ;;  %v13268_v9 = vld [vmem:[#allocation4 + $0x690] sm:$0xf]  ;;  %v13013_v19 = vor.u32 %v16818_v24, %v13012_v7 }
 0x2f0   :  { %v16882_v11 = vld [vmem:[#allocation4 + $0x6ac] sm:$0xf0] }
 0x2f1   :  { %5900 = vmatpush.bf16.msra.mxu2 %v13077_v48  ;;  %5875 = vmatpush.bf16.msra.mxu0 %v12533_v10  ;;  %v12468_v20 = vld [vmem:[#allocation4 + $0x50] sm:$0xf]  ;;  %v13269_v23 = vor.u32 %v16882_v11, %v13268_v9  ;;  %v5648_v53 = vpop.f32.mrf.mxu2 }
 0x2f2   :  { %v16682_v49 = vld [vmem:[#allocation4 + $0x6c] sm:$0xf0]  ;;  %v12566_v53 = vld [vmem:[#allocation4 + $0x130] sm:$0xf0] }
 0x2f3   :  { %5913 = vmatpush.bf16.msra.mxu3 %v13333_v52  ;;  %5888 = vmatpush.bf16.msra.mxu1 %v12789_v26  ;;  %v12724_v62 = vld [vmem:[#allocation4 + $0x250] sm:$0xf]  ;;  %v12469_v38 = vor.u32 %v16682_v49, %v12468_v20  ;;  %v5661_v60 = vpop.f32.mrf.mxu3  ;;  %v16726_v26 = vld [vmem:[#allocation4 + $0x1d4] sm:$0xf] }
 0x2f4   :  { %v16746_v27 = vld [vmem:[#allocation4 + $0x26c] sm:$0xf0]  ;;  %v5672_v60 = vpop.f32.mrf.mxu0 }
 0x2f5   :  { %5901 = vmatpush.bf16.msra.mxu2 %v13045_v63  ;;  %v12980_v28 = vld [vmem:[#allocation4 + $0x450] sm:$0xf]  ;;  %5876 = vmatpush.bf16.msra.mxu0 %v12501_v36  ;;  %v12725_v42 = vor.u32 %v16746_v27, %v12724_v62  ;;  %v12662_v63 = vld [vmem:[#allocation4 + $0x1f0] sm:$0xf0] }
 0x2f6   :  { %v16810_v31 = vld [vmem:[#allocation4 + $0x46c] sm:$0xf0]  ;;  %v12665_v8 = vor.u32 %v16726_v26, %v12662_v63  ;;  %v16718_v36 = vld [vmem:[#allocation4 + $0x194] sm:$0xf] }
 0x2f7   :  { %5914 = vmatpush.bf16.msra.mxu3 %v13301_v6  ;;  %v13236_v32 = vld [vmem:[#allocation4 + $0x650] sm:$0xf]  ;;  %5889 = vmatpush.bf16.msra.mxu1 %v12757_v17  ;;  %v12981_v45 = vor.u32 %v16810_v31, %v12980_v28  ;;  %v12918_v6 = vld [vmem:[#allocation4 + $0x3f0] sm:$0xf0]  ;;  %v12633_v62 = vor.u32 %v16718_v36, %v12630_v14 }
 0x2f8   :  { %v16874_v37 = vld [vmem:[#allocation4 + $0x66c] sm:$0xf0]  ;;  %v12921_v12 = vor.u32 %v16790_v5, %v12918_v6  ;;  %v16782_v17 = vld [vmem:[#allocation4 + $0x394] sm:$0xf]  ;;  %v5685_v5 = vpop.f32.mrf.mxu1 }
 0x2f9   :  { %v12436_v39 = vld [vmem:[#allocation4 + $0x10] sm:$0xf]  ;;  %5902 = vmatpush.bf16.msra.mxu2 %v13013_v19  ;;  %v13237_v47 = vor.u32 %v16874_v37, %v13236_v32  ;;  %5877 = vmatpush.bf16.msra.mxu0 %v12469_v38  ;;  %v12886_v19 = vld [vmem:[#allocation4 + $0x3b0] sm:$0xf0] }
 0x2fa   :  { %v16674_v40 = vld [vmem:[#allocation4 + $0x2c] sm:$0xf0]  ;;  %v12889_v31 = vor.u32 %v16782_v17, %v12886_v19  ;;  %v16710_v37 = vld [vmem:[#allocation4 + $0x154] sm:$0xf]  ;;  %v5698_v19 = vpop.f32.mrf.mxu2 }
 0x2fb   :  { %v12692_v55 = vld [vmem:[#allocation4 + $0x210] sm:$0xf]  ;;  %5915 = vmatpush.bf16.msra.mxu3 %v13269_v23  ;;  %v12437_v61 = vor.u32 %v16674_v40, %v12436_v39  ;;  %5890 = vmatpush.bf16.msra.mxu1 %v12725_v42  ;;  %v12598_v38 = vld [vmem:[#allocation4 + $0x170] sm:$0xf0] }
 0x2fc   :  { %v16738_v46 = vld [vmem:[#allocation4 + $0x22c] sm:$0xf0]  ;;  %v16774_v39 = vld [vmem:[#allocation4 + $0x354] sm:$0xf] }
 0x2fd   :  { %v12948_v48 = vld [vmem:[#allocation4 + $0x410] sm:$0xf]  ;;  %5903 = vmatpush.bf16.msra.mxu2 %v12981_v45  ;;  %v12693_v1 = vor.u32 %v16738_v46, %v12692_v55  ;;  %5878 = vmatpush.bf16.msra.mxu0 %v12437_v61  ;;  %v12854_v40 = vld [vmem:[#allocation4 + $0x370] sm:$0xf0]  ;;  %v12601_v55 = vor.u32 %v16710_v37, %v12598_v38  ;;  %v5674_v38 = vpop.f32.mrf.mxu0 }
 0x2fe   :  { %v16802_v50 = vld [vmem:[#allocation4 + $0x42c] sm:$0xf0]  ;;  %v16974_v38 = vld [vmem:[#allocation4 + $0x994] sm:$0xf] }
 0x2ff   :  { %v13204_v51 = vld [vmem:[#allocation4 + $0x610] sm:$0xf]  ;;  %v12949_v3 = vor.u32 %v16802_v50, %v12948_v48  ;;  %5916 = vmatpush.bf16.msra.mxu3 %v13237_v47  ;;  %5891 = vmatpush.bf16.msra.mxu1 %v12693_v1  ;;  %v12857_v50 = vor.u32 %v16774_v39, %v12854_v40 }
 0x300   :  { %v16866_v52 = vld [vmem:[#allocation4 + $0x62c] sm:$0xf0]  ;;  %5879 = vmatmul.bf16.vlgmr.msra.gmra.mxu0 %v18146_v33 }
 0x301   :  { %v13684_v18 = vld [vmem:[#allocation4 + $0x9d0] sm:$0xf]  ;;  %v13205_v29 = vor.u32 %v16866_v52, %v13204_v51  ;;  %5904 = vmatpush.bf16.msra.mxu2 %v12949_v3  ;;  %v16702_v52 = vld [vmem:[#allocation4 + $0x114] sm:$0xf]  ;;  %v5673_v3 = vadd.f32 %v5672_v60, %v18293_v22 }
 0x302   :  { %v16986_v56 = vld [vmem:[#allocation4 + $0x9ec] sm:$0xf0]  ;;  %5892 = vmatmul.bf16.vlgmr.msra.gmra.mxu1 %v18150_v41 }
 0x303   :  { %v13940_v58 = vld [vmem:[#allocation4 + $0xbd0] sm:$0xf]  ;;  %v13685_v7 = vor.u32 %v16986_v56, %v13684_v18  ;;  %5917 = vmatpush.bf16.msra.mxu3 %v13205_v29  ;;  %v16766_v18 = vld [vmem:[#allocation4 + $0x314] sm:$0xf] }
 0x304   :  { %v17050_v10 = vld [vmem:[#allocation4 + $0xbec] sm:$0xf0]  ;;  %5905 = vmatmul.bf16.vlgmr.msra.gmra.mxu2 %v18148_v34  ;;  %v12822_v56 = vld [vmem:[#allocation4 + $0x330] sm:$0xf0] }
 0x305   :  { %v13941_v24 = vor.u32 %v17050_v10, %v13940_v58  ;;  %v13652_v9 = vld [vmem:[#allocation4 + $0x990] sm:$0xf]  ;;  %5923 = vmatpush.bf16.msrb.mxu0 %v13685_v7  ;;  %5949 = vmatpush.bf16.msrb.mxu2 %v12665_v8  ;;  %v12569_v10 = vor.u32 %v16702_v52, %v12566_v53  ;;  %v12825_v6 = vor.u32 %v16766_v18, %v12822_v56  ;;  %v16694_v7 = vld [vmem:[#allocation4 + $0xd4] sm:$0xf] }
 0x306   :  { %v16978_v11 = vld [vmem:[#allocation4 + $0x9ac] sm:$0xf0]  ;;  %5918 = vmatmul.bf16.vlgmr.msra.gmra.mxu3 %v18154_v44  ;;  %v16758_v8 = vld [vmem:[#allocation4 + $0x2d4] sm:$0xf] }
 0x307   :  { %v13908_v43 = vld [vmem:[#allocation4 + $0xb90] sm:$0xf]  ;;  %v13653_v20 = vor.u32 %v16978_v11, %v13652_v9  ;;  %5936 = vmatpush.bf16.msrb.mxu1 %v13941_v24  ;;  %5962 = vmatpush.bf16.msrb.mxu3 %v12921_v12  ;;  %v12534_v24 = vld [vmem:[#allocation4 + $0xf0] sm:$0xf0]  ;;  %v5686_v11 = vadd.f32 %v5685_v5, %v5673_v3 }
 0x308   :  { %v17042_v13 = vld [vmem:[#allocation4 + $0xbac] sm:$0xf0]  ;;  %v12790_v9 = vld [vmem:[#allocation4 + $0x2f0] sm:$0xf0] }
 0x309   :  { %v13909_v49 = vor.u32 %v17042_v13, %v13908_v43  ;;  %v13620_v23 = vld [vmem:[#allocation4 + $0x950] sm:$0xf]  ;;  %5924 = vmatpush.bf16.msrb.mxu0 %v13653_v20  ;;  %5950 = vmatpush.bf16.msrb.mxu2 %v12633_v62  ;;  %v12537_v13 = vor.u32 %v16694_v7, %v12534_v24  ;;  %v12793_v22 = vor.u32 %v16758_v8, %v12790_v9  ;;  %v12502_v62 = vld [vmem:[#allocation4 + $0xb0] sm:$0xf0] }
 0x30a   :  { %v16970_v27 = vld [vmem:[#allocation4 + $0x96c] sm:$0xf0]  ;;  %v16742_v52 = vld [vmem:[#allocation4 + $0x254] sm:$0xf] }
 0x30b   :  { %v13876_v28 = vld [vmem:[#allocation4 + $0xb50] sm:$0xf]  ;;  %v13621_v42 = vor.u32 %v16970_v27, %v13620_v23  ;;  %5937 = vmatpush.bf16.msrb.mxu1 %v13909_v49  ;;  %5963 = vmatpush.bf16.msrb.mxu3 %v12889_v31  ;;  %v16686_v49 = vld [vmem:[#allocation4 + $0x94] sm:$0xf]  ;;  %v5699_v23 = vadd.f32 %v5698_v19, %v5686_v11  ;;  %v5711_v27 = vpop.f32.mrf.mxu3 }
 0x30c   :  { %v17034_v32 = vld [vmem:[#allocation4 + $0xb6c] sm:$0xf0]  ;;  %v12758_v31 = vld [vmem:[#allocation4 + $0x2b0] sm:$0xf0]  ;;  %v12505_v40 = vor.u32 %v16686_v49, %v12502_v62 }
 0x30d   :  { %v13877_v45 = vor.u32 %v17034_v32, %v13876_v28  ;;  %v13588_v46 = vld [vmem:[#allocation4 + $0x910] sm:$0xf]  ;;  %5925 = vmatpush.bf16.msrb.mxu0 %v13621_v42  ;;  %5951 = vmatpush.bf16.msrb.mxu2 %v12601_v55  ;;  %v16750_v28 = vld [vmem:[#allocation4 + $0x294] sm:$0xf]  ;;  %v18300_v37 = vadd.f32 %v5711_v27, %v5699_v23 }
 0x30e   :  { %v16962_v48 = vld [vmem:[#allocation4 + $0x92c] sm:$0xf0]  ;;  %v12726_v53 = vld [vmem:[#allocation4 + $0x270] sm:$0xf0] }
 0x30f   :  { %v13844_v47 = vld [vmem:[#allocation4 + $0xb10] sm:$0xf]  ;;  %v13589_v58 = vor.u32 %v16962_v48, %v13588_v46  ;;  %5938 = vmatpush.bf16.msrb.mxu1 %v13877_v45  ;;  %5964 = vmatpush.bf16.msrb.mxu3 %v12857_v50  ;;  %v5687_v46 = vpop.f32.mrf.mxu1  ;;  %v12761_v48 = vor.u32 %v16750_v28, %v12758_v31  ;;  %v16678_v50 = vld [vmem:[#allocation4 + $0x54] sm:$0xf]  ;;  %v12729_v3 = vor.u32 %v16742_v52, %v12726_v53 }
 0x310   :  { %v17026_v51 = vld [vmem:[#allocation4 + $0xb2c] sm:$0xf0]  ;;  %v12438_v5 = vld [vmem:[#allocation4 + $0x30] sm:$0xf0] }
 0x311   :  { %v13845_v61 = vor.u32 %v17026_v51, %v13844_v47  ;;  %v13556_v26 = vld [vmem:[#allocation4 + $0x8d0] sm:$0xf]  ;;  %5926 = vmatpush.bf16.msrb.mxu0 %v13589_v58  ;;  %5952 = vmatpush.bf16.msrb.mxu2 %v12569_v10  ;;  %v12470_v51 = vld [vmem:[#allocation4 + $0x70] sm:$0xf0] }
 0x312   :  { %v16954_v63 = vld [vmem:[#allocation4 + $0x8ec] sm:$0xf0]  ;;  %v16854_v24 = vld [vmem:[#allocation4 + $0x5d4] sm:$0xf] }
 0x313   :  { %v13812_v1 = vld [vmem:[#allocation4 + $0xad0] sm:$0xf]  ;;  %v13557_v43 = vor.u32 %v16954_v63, %v13556_v26  ;;  %5939 = vmatpush.bf16.msrb.mxu1 %v13845_v61  ;;  %5965 = vmatpush.bf16.msrb.mxu3 %v12825_v6  ;;  %v12473_v61 = vor.u32 %v16678_v50, %v12470_v51  ;;  %v16670_v63 = vld [vmem:[#allocation4 + $0x14] sm:$0xf]  ;;  %v5713_v7 = vpop.f32.mrf.mxu3 }
 0x314   :  { %v17018_v29 = vld [vmem:[#allocation4 + $0xaec] sm:$0xf0]  ;;  %v16734_v6 = vld [vmem:[#allocation4 + $0x214] sm:$0xf] }
 0x315   :  { %v13813_v12 = vor.u32 %v17018_v29, %v13812_v1  ;;  %v13524_v36 = vld [vmem:[#allocation4 + $0x890] sm:$0xf]  ;;  %5927 = vmatpush.bf16.msrb.mxu0 %v13557_v43  ;;  %5953 = vmatpush.bf16.msrb.mxu2 %v12537_v13  ;;  %v5700_v1 = vpop.f32.mrf.mxu2  ;;  %v12694_v29 = vld [vmem:[#allocation4 + $0x230] sm:$0xf0] }
 0x316   :  { %v16946_v14 = vld [vmem:[#allocation4 + $0x8ac] sm:$0xf0]  ;;  %v13174_v8 = vld [vmem:[#allocation4 + $0x5f0] sm:$0xf0] }
 0x317   :  { %v13780_v17 = vld [vmem:[#allocation4 + $0xa90] sm:$0xf]  ;;  %v13525_v32 = vor.u32 %v16946_v14, %v13524_v36  ;;  %5940 = vmatpush.bf16.msrb.mxu1 %v13813_v12  ;;  %5966 = vmatpush.bf16.msrb.mxu3 %v12793_v22  ;;  %v16918_v9 = vld [vmem:[#allocation4 + $0x7d4] sm:$0xf]  ;;  %v12441_v14 = vor.u32 %v16670_v63, %v12438_v5  ;;  %v12697_v22 = vor.u32 %v16734_v6, %v12694_v29 }
 0x318   :  { %v17010_v20 = vld [vmem:[#allocation4 + $0xaac] sm:$0xf0]  ;;  %v13430_v43 = vld [vmem:[#allocation4 + $0x7f0] sm:$0xf0] }
 0x319   :  { %v13781_v39 = vor.u32 %v17010_v20, %v13780_v17  ;;  %v13492_v42 = vld [vmem:[#allocation4 + $0x850] sm:$0xf]  ;;  %5928 = vmatpush.bf16.msrb.mxu0 %v13525_v32  ;;  %5954 = vmatpush.bf16.msrb.mxu2 %v12505_v40  ;;  %v16982_v12 = vld [vmem:[#allocation4 + $0x9d4] sm:$0xf]  ;;  %v13177_v20 = vor.u32 %v16854_v24, %v13174_v8  ;;  %v13433_v49 = vor.u32 %v16918_v9, %v13430_v43  ;;  %v5724_v9 = vpop.f32.mrf.mxu0 }
 0x31a   :  { %v16938_v45 = vld [vmem:[#allocation4 + $0x86c] sm:$0xf0]  ;;  %v13686_v13 = vld [vmem:[#allocation4 + $0x9f0] sm:$0xf0] }
 0x31b   :  { %v13748_v55 = vld [vmem:[#allocation4 + $0xa50] sm:$0xf]  ;;  %v13493_v18 = vor.u32 %v16938_v45, %v13492_v42  ;;  %5941 = vmatpush.bf16.msrb.mxu1 %v13781_v39  ;;  %5967 = vmatpush.bf16.msrb.mxu3 %v12761_v48  ;;  %v17046_v17 = vld [vmem:[#allocation4 + $0xbd4] sm:$0xf]  ;;  %v13689_v62 = vor.u32 %v16982_v12, %v13686_v13  ;;  %v5737_v12 = vpop.f32.mrf.mxu1 }
 0x31c   :  { %v17002_v47 = vld [vmem:[#allocation4 + $0xa6c] sm:$0xf0]  ;;  %v13942_v19 = vld [vmem:[#allocation4 + $0xbf0] sm:$0xf0] }
 0x31d   :  { %v13460_v56 = vld [vmem:[#allocation4 + $0x810] sm:$0xf]  ;;  %v13749_v60 = vor.u32 %v17002_v47, %v13748_v55  ;;  %5929 = vmatpush.bf16.msrb.mxu0 %v13493_v18  ;;  %5955 = vmatpush.bf16.msrb.mxu2 %v12473_v61  ;;  %v16846_v23 = vld [vmem:[#allocation4 + $0x594] sm:$0xf]  ;;  %v13945_v31 = vor.u32 %v17046_v17, %v13942_v19  ;;  %v3625_v61 = vperm.slane %v18276_v0, 2 }
 0x31e   :  { %v16930_v58 = vld [vmem:[#allocation4 + $0x82c] sm:$0xf0]  ;;  %v13142_v27 = vld [vmem:[#allocation4 + $0x5b0] sm:$0xf0] }
 0x31f   :  { %v13716_v10 = vld [vmem:[#allocation4 + $0xa10] sm:$0xf]  ;;  %v13461_v11 = vor.u32 %v16930_v58, %v13460_v56  ;;  %5942 = vmatpush.bf16.msrb.mxu1 %v13749_v60  ;;  %5968 = vmatpush.bf16.msrb.mxu3 %v12729_v3  ;;  %v16910_v28 = vld [vmem:[#allocation4 + $0x794] sm:$0xf]  ;;  %v13145_v45 = vor.u32 %v16846_v23, %v13142_v27  ;;  %v5725_v43 = vadd.f32 %v5724_v9, %v3625_v61 }
 0x320   :  { %v16994_v26 = vld [vmem:[#allocation4 + $0xa2c] sm:$0xf0]  ;;  %v13398_v32 = vld [vmem:[#allocation4 + $0x7b0] sm:$0xf0] }
 0x321   :  { %v13717_v36 = vor.u32 %v16994_v26, %v13716_v10  ;;  %5930 = vmatpush.bf16.msrb.mxu0 %v13461_v11  ;;  %v13654_v39 = vld [vmem:[#allocation4 + $0x9b0] sm:$0xf0]  ;;  %5956 = vmatpush.bf16.msrb.mxu2 %v12441_v14  ;;  %v13401_v55 = vor.u32 %v16910_v28, %v13398_v32 }
 0x322   :  { %v17038_v40 = vld [vmem:[#allocation4 + $0xb94] sm:$0xf]  ;;  %v13657_v46 = vor.u32 %v16974_v38, %v13654_v39 }
 0x323   :  { %5943 = vmatpush.bf16.msrb.mxu1 %v13717_v36  ;;  %v13910_v42 = vld [vmem:[#allocation4 + $0xbb0] sm:$0xf0]  ;;  %5969 = vmatpush.bf16.msrb.mxu3 %v12697_v22 }
 0x324   :  { %v16838_v48 = vld [vmem:[#allocation4 + $0x554] sm:$0xf]  ;;  %v13913_v51 = vor.u32 %v17038_v40, %v13910_v42  ;;  %5931 = vmatmul.bf16.vlgmr.msrb.gmra.mxu0 %v18161_v30  ;;  %5957 = vmatmul.bf16.vlgmr.msrb.gmra.mxu2 %v18146_v33 }
 0x325   :  { %5975 = vmatpush.bf16.msra.mxu0 %v13177_v20  ;;  %6001 = vmatpush.bf16.msra.mxu2 %v13689_v62  ;;  %v13110_v47 = vld [vmem:[#allocation4 + $0x570] sm:$0xf0]  ;;  %v5738_v62 = vadd.f32 %v5737_v12, %v5725_v43 }
 0x326   :  { %v16902_v50 = vld [vmem:[#allocation4 + $0x754] sm:$0xf]  ;;  %5944 = vmatmul.bf16.vlgmr.msrb.gmra.mxu1 %v18163_v35  ;;  %v13113_v60 = vor.u32 %v16838_v48, %v13110_v47  ;;  %5970 = vmatmul.bf16.vlgmr.msrb.gmra.mxu3 %v18150_v41  ;;  %v5750_v48 = vpop.f32.mrf.mxu2 }
 0x327   :  { %5988 = vmatpush.bf16.msra.mxu1 %v13433_v49  ;;  %6014 = vmatpush.bf16.msra.mxu3 %v13945_v31  ;;  %v13366_v52 = vld [vmem:[#allocation4 + $0x770] sm:$0xf0] }
 0x328   :  { %v16966_v53 = vld [vmem:[#allocation4 + $0x954] sm:$0xf]  ;;  %v13369_v10 = vor.u32 %v16902_v50, %v13366_v52  ;;  %v5726_v52 = vpop.f32.mrf.mxu0 }
 0x329   :  { %v13622_v18 = vld [vmem:[#allocation4 + $0x970] sm:$0xf0]  ;;  %5976 = vmatpush.bf16.msra.mxu0 %v13145_v45  ;;  %6002 = vmatpush.bf16.msra.mxu2 %v13657_v46 }
 0x32a   :  { %v17030_v56 = vld [vmem:[#allocation4 + $0xb54] sm:$0xf]  ;;  %v13625_v26 = vor.u32 %v16966_v53, %v13622_v18  ;;  %v5763_v53 = vpop.f32.mrf.mxu3 }
 0x32b   :  { %v13878_v58 = vld [vmem:[#allocation4 + $0xb70] sm:$0xf0]  ;;  %5989 = vmatpush.bf16.msra.mxu1 %v13401_v55  ;;  %6015 = vmatpush.bf16.msra.mxu3 %v13913_v51  ;;  %v5751_v51 = vadd.f32 %v5750_v48, %v5738_v62  ;;  %v12924_v62 = vld [vmem:[#allocation4 + $0x3d8] sm:$0xf] }
 0x32c   :  { %v16830_v63 = vld [vmem:[#allocation4 + $0x514] sm:$0xf]  ;;  %v13881_v5 = vor.u32 %v17030_v56, %v13878_v58  ;;  %v5739_v56 = vpop.f32.mrf.mxu1 }
 0x32d   :  { %v13078_v1 = vld [vmem:[#allocation4 + $0x530] sm:$0xf0]  ;;  %5977 = vmatpush.bf16.msra.mxu0 %v13113_v60  ;;  %6003 = vmatpush.bf16.msra.mxu2 %v13625_v26  ;;  %v16851_v56 = vld [vmem:[#allocation4 + $0x5b4] sm:$0xf0] }
 0x32e   :  { %v16894_v3 = vld [vmem:[#allocation4 + $0x714] sm:$0xf]  ;;  %v13081_v11 = vor.u32 %v16830_v63, %v13078_v1  ;;  %v18307_v63 = vadd.f32 %v5763_v53, %v5751_v51  ;;  %v12892_v51 = vld [vmem:[#allocation4 + $0x398] sm:$0xf] }
 0x32f   :  { %v13334_v6 = vld [vmem:[#allocation4 + $0x730] sm:$0xf0]  ;;  %5990 = vmatpush.bf16.msra.mxu1 %v13369_v10  ;;  %6016 = vmatpush.bf16.msra.mxu3 %v13881_v5  ;;  %v16787_v53 = vld [vmem:[#allocation4 + $0x3b4] sm:$0xf0] }
 0x330   :  { %v16958_v29 = vld [vmem:[#allocation4 + $0x914] sm:$0xf]  ;;  %v13337_v0 = vor.u32 %v16894_v3, %v13334_v6 }
 0x331   :  { %v13590_v7 = vld [vmem:[#allocation4 + $0x930] sm:$0xf0]  ;;  %5978 = vmatpush.bf16.msra.mxu0 %v13081_v11 }
 0x332   :  { %v17022_v24 = vld [vmem:[#allocation4 + $0xb14] sm:$0xf]  ;;  %v13593_v13 = vor.u32 %v16958_v29, %v13590_v7 }
 0x333   :  { %v13846_v8 = vld [vmem:[#allocation4 + $0xb30] sm:$0xf0]  ;;  %5991 = vmatpush.bf16.msra.mxu1 %v13337_v0 }
 0x334   :  { %v16822_v36 = vld [vmem:[#allocation4 + $0x4d4] sm:$0xf]  ;;  %v13849_v19 = vor.u32 %v17022_v24, %v13846_v8  ;;  %6004 = vmatpush.bf16.msra.mxu2 %v13593_v13 }
 0x335   :  { %v13046_v14 = vld [vmem:[#allocation4 + $0x4f0] sm:$0xf0] }
 0x336   :  { %v16886_v17 = vld [vmem:[#allocation4 + $0x6d4] sm:$0xf]  ;;  %v13049_v28 = vor.u32 %v16822_v36, %v13046_v14  ;;  %6017 = vmatpush.bf16.msra.mxu3 %v13849_v19 }
 0x337   :  { %v13302_v22 = vld [vmem:[#allocation4 + $0x6f0] sm:$0xf0] }
 0x338   :  { %v16950_v20 = vld [vmem:[#allocation4 + $0x8d4] sm:$0xf]  ;;  %v13305_v31 = vor.u32 %v16886_v17, %v13302_v22  ;;  %5979 = vmatpush.bf16.msra.mxu0 %v13049_v28  ;;  %v5752_v22 = vpop.f32.mrf.mxu2  ;;  %v16795_v28 = vld [vmem:[#allocation4 + $0x3f4] sm:$0xf0] }
 0x339   :  { %v13558_v49 = vld [vmem:[#allocation4 + $0x8f0] sm:$0xf0]  ;;  %v16835_v22 = vld [vmem:[#allocation4 + $0x534] sm:$0xf0] }
 0x33a   :  { %v17014_v23 = vld [vmem:[#allocation4 + $0xad4] sm:$0xf]  ;;  %v13561_v32 = vor.u32 %v16950_v20, %v13558_v49  ;;  %5992 = vmatpush.bf16.msra.mxu1 %v13305_v31  ;;  %v12668_v20 = vld [vmem:[#allocation4 + $0x1d8] sm:$0xf] }
 0x33b   :  { %v13814_v27 = vld [vmem:[#allocation4 + $0xaf0] sm:$0xf0]  ;;  %v16731_v49 = vld [vmem:[#allocation4 + $0x1f4] sm:$0xf0] }
 0x33c   :  { %v16814_v38 = vld [vmem:[#allocation4 + $0x494] sm:$0xf]  ;;  %v13817_v42 = vor.u32 %v17014_v23, %v13814_v27  ;;  %6005 = vmatpush.bf16.msra.mxu2 %v13561_v32  ;;  %v5765_v23 = vpop.f32.mrf.mxu3  ;;  %v13180_v31 = vld [vmem:[#allocation4 + $0x5d8] sm:$0xf] }
 0x33d   :  { %v13014_v39 = vld [vmem:[#allocation4 + $0x4b0] sm:$0xf0]  ;;  %v16859_v32 = vld [vmem:[#allocation4 + $0x5f4] sm:$0xf0] }
 0x33e   :  { %v16878_v40 = vld [vmem:[#allocation4 + $0x694] sm:$0xf]  ;;  %v13017_v18 = vor.u32 %v16814_v38, %v13014_v39  ;;  %6018 = vmatpush.bf16.msra.mxu3 %v13817_v42  ;;  %v16923_v42 = vld [vmem:[#allocation4 + $0x7f4] sm:$0xf0]  ;;  %v13181_v48 = vor.u32 %v16859_v32, %v13180_v31 }
 0x33f   :  { %v13270_v45 = vld [vmem:[#allocation4 + $0x6b0] sm:$0xf0] }
 0x340   :  { %v16942_v55 = vld [vmem:[#allocation4 + $0x894] sm:$0xf]  ;;  %v13273_v58 = vor.u32 %v16878_v40, %v13270_v45  ;;  %5980 = vmatpush.bf16.msra.mxu0 %v13017_v18  ;;  %v13436_v40 = vld [vmem:[#allocation4 + $0x7d8] sm:$0xf] }
 0x341   :  { %v13526_v46 = vld [vmem:[#allocation4 + $0x8b0] sm:$0xf0]  ;;  %v13437_v52 = vor.u32 %v16923_v42, %v13436_v40  ;;  %v13148_v18 = vld [vmem:[#allocation4 + $0x598] sm:$0xf] }
 0x342   :  { %v17006_v47 = vld [vmem:[#allocation4 + $0xa94] sm:$0xf]  ;;  %v13529_v60 = vor.u32 %v16942_v55, %v13526_v46  ;;  %5993 = vmatpush.bf16.msra.mxu1 %v13273_v58  ;;  %v12669_v55 = vor.u32 %v16731_v49, %v12668_v20  ;;  %v12925_v46 = vor.u32 %v16795_v28, %v12924_v62  ;;  %v13404_v58 = vld [vmem:[#allocation4 + $0x798] sm:$0xf]  ;;  %v5776_v62 = vpop.f32.mrf.mxu0  ;;  %v5789_v28 = vpop.f32.mrf.mxu1 }
 0x343   :  { %v13782_v50 = vld [vmem:[#allocation4 + $0xab0] sm:$0xf0]  ;;  %v13340_v20 = vld [vmem:[#allocation4 + $0x718] sm:$0xf] }
 0x344   :  { %v16806_v61 = vld [vmem:[#allocation4 + $0x454] sm:$0xf]  ;;  %v13785_v1 = vor.u32 %v17006_v47, %v13782_v50  ;;  %6006 = vmatpush.bf16.msra.mxu2 %v13529_v60  ;;  %v12636_v47 = vld [vmem:[#allocation4 + $0x198] sm:$0xf] }
 0x345   :  { %v12982_v10 = vld [vmem:[#allocation4 + $0x470] sm:$0xf0]  ;;  %v16723_v50 = vld [vmem:[#allocation4 + $0x1b4] sm:$0xf0] }
 0x346   :  { %v16870_v26 = vld [vmem:[#allocation4 + $0x654] sm:$0xf]  ;;  %v12985_v24 = vor.u32 %v16806_v61, %v12982_v10  ;;  %6019 = vmatpush.bf16.msra.mxu3 %v13785_v1  ;;  %v16915_v60 = vld [vmem:[#allocation4 + $0x7b4] sm:$0xf0]  ;;  %v12637_v61 = vor.u32 %v16723_v50, %v12636_v47  ;;  %v12893_v10 = vor.u32 %v16787_v53, %v12892_v51  ;;  %v18316_v51 = vld [vmem:[#allocation7] sm:$0xff] }
 0x347   :  { %v13238_v3 = vld [vmem:[#allocation4 + $0x670] sm:$0xf0]  ;;  %v12604_v1 = vld [vmem:[#allocation4 + $0x158] sm:$0xf] }
 0x348   :  { %v16934_v5 = vld [vmem:[#allocation4 + $0x854] sm:$0xf]  ;;  %v13241_v11 = vor.u32 %v16870_v26, %v13238_v3  ;;  %5981 = vmatpush.bf16.msra.mxu0 %v12985_v24  ;;  %v13149_v26 = vor.u32 %v16851_v56, %v13148_v18  ;;  %v16715_v3 = vld [vmem:[#allocation4 + $0x174] sm:$0xf0] }
 0x349   :  { %v13494_v6 = vld [vmem:[#allocation4 + $0x870] sm:$0xf0]  ;;  %v16843_v24 = vld [vmem:[#allocation4 + $0x574] sm:$0xf0] }
 0x34a   :  { %v16998_v29 = vld [vmem:[#allocation4 + $0xa54] sm:$0xf]  ;;  %v13497_v43 = vor.u32 %v16934_v5, %v13494_v6  ;;  %5994 = vmatpush.bf16.msra.mxu1 %v13241_v11  ;;  %v12860_v5 = vld [vmem:[#allocation4 + $0x358] sm:$0xf]  ;;  %v13405_v6 = vor.u32 %v16915_v60, %v13404_v58  ;;  %v12605_v11 = vor.u32 %v16715_v3, %v12604_v1  ;;  %v5802_v3 = vpop.f32.mrf.mxu2 }
 0x34b   :  { %v13750_v7 = vld [vmem:[#allocation4 + $0xa70] sm:$0xf0]  ;;  %v16899_v49 = vld [vmem:[#allocation4 + $0x734] sm:$0xf0] }
 0x34c   :  { %v16798_v8 = vld [vmem:[#allocation4 + $0x414] sm:$0xf]  ;;  %v13753_v36 = vor.u32 %v16998_v29, %v13750_v7  ;;  %6007 = vmatpush.bf16.msra.mxu2 %v13497_v43  ;;  %v16779_v29 = vld [vmem:[#allocation4 + $0x374] sm:$0xf0]  ;;  %v13341_v42 = vor.u32 %v16899_v49, %v13340_v20 }
 0x34d   :  { %v12950_v9 = vld [vmem:[#allocation4 + $0x430] sm:$0xf0]  ;;  %v13116_v7 = vld [vmem:[#allocation4 + $0x558] sm:$0xf]  ;;  %v12861_v43 = vor.u32 %v16779_v29, %v12860_v5 }
 0x34e   :  { %v16862_v12 = vld [vmem:[#allocation4 + $0x614] sm:$0xf]  ;;  %v12953_v27 = vor.u32 %v16798_v8, %v12950_v9  ;;  %6020 = vmatpush.bf16.msra.mxu3 %v13753_v36  ;;  %v13372_v8 = vld [vmem:[#allocation4 + $0x758] sm:$0xf] }
 0x34f   :  { %v13206_v0 = vld [vmem:[#allocation4 + $0x630] sm:$0xf0]  ;;  %v16907_v9 = vld [vmem:[#allocation4 + $0x774] sm:$0xf0] }
 0x350   :  { %v16926_v13 = vld [vmem:[#allocation4 + $0x814] sm:$0xf]  ;;  %v13209_v38 = vor.u32 %v16862_v12, %v13206_v0  ;;  %5982 = vmatpush.bf16.msra.mxu0 %v12953_v27  ;;  %v13117_v12 = vor.u32 %v16843_v24, %v13116_v7  ;;  %v12572_v0 = vld [vmem:[#allocation4 + $0x118] sm:$0xf]  ;;  %v5777_v27 = vadd.f32 %v5776_v62, %v18307_v63  ;;  %v3626_v63 = vperm.slane %v18316_v51, 3  ;;  %v5815_v7 = vpop.f32.mrf.mxu3  ;;  %v5778_v24 = vpop.f32.mrf.mxu0 }
 0x351   :  { %v13462_v14 = vld [vmem:[#allocation4 + $0x830] sm:$0xf0]  ;;  %v12828_v36 = vld [vmem:[#allocation4 + $0x318] sm:$0xf] }
 0x352   :  { %v16990_v17 = vld [vmem:[#allocation4 + $0xa14] sm:$0xf]  ;;  %v13465_v39 = vor.u32 %v16926_v13, %v13462_v14  ;;  %5995 = vmatpush.bf16.msra.mxu1 %v13209_v38  ;;  %v16707_v13 = vld [vmem:[#allocation4 + $0x134] sm:$0xf0]  ;;  %v13373_v14 = vor.u32 %v16907_v9, %v13372_v8  ;;  %v5803_v29 = vadd.f32 %v5802_v3, %v3626_v63  ;;  %v5791_v9 = vpop.f32.mrf.mxu1 }
 0x353   :  { %v13718_v19 = vld [vmem:[#allocation4 + $0xa30] sm:$0xf0]  ;;  %5983 = vmatmul.bf16.vlgmr.msra.gmra.mxu0 %v18148_v34  ;;  %v12573_v23 = vor.u32 %v16707_v13, %v12572_v0  ;;  %v12540_v38 = vld [vmem:[#allocation4 + $0xd8] sm:$0xf] }
 0x354   :  { %v13721_v45 = vor.u32 %v16990_v17, %v13718_v19  ;;  %6008 = vmatpush.bf16.msra.mxu2 %v13465_v39  ;;  %6027 = vmatpush.bf16.msrb.mxu0 %v12669_v55  ;;  %v16771_v17 = vld [vmem:[#allocation4 + $0x334] sm:$0xf0] }
 0x355   :  { %5996 = vmatmul.bf16.vlgmr.msra.gmra.mxu1 %v18154_v44  ;;  %v13084_v19 = vld [vmem:[#allocation4 + $0x518] sm:$0xf]  ;;  %v12829_v31 = vor.u32 %v16771_v17, %v12828_v36  ;;  %v18319_v36 = vadd.f32 %v5815_v7, %v5803_v29 }
 0x356   :  { %6021 = vmatpush.bf16.msra.mxu3 %v13721_v45  ;;  %6040 = vmatpush.bf16.msrb.mxu1 %v12925_v46  ;;  %v13085_v32 = vor.u32 %v16835_v22, %v13084_v19  ;;  %v16699_v39 = vld [vmem:[#allocation4 + $0xf4] sm:$0xf0] }
 0x357   :  { %6009 = vmatmul.bf16.vlgmr.msra.gmra.mxu2 %v18161_v30  ;;  %v12796_v40 = vld [vmem:[#allocation4 + $0x2d8] sm:$0xf] }
 0x358   :  { %6053 = vmatpush.bf16.msrb.mxu2 %v13181_v48  ;;  %6028 = vmatpush.bf16.msrb.mxu0 %v12637_v61  ;;  %v16763_v45 = vld [vmem:[#allocation4 + $0x2f4] sm:$0xf0]  ;;  %v18314_v48 = vadd.f32 %v5789_v28, %v5777_v27 }
 0x359   :  { %6022 = vmatmul.bf16.vlgmr.msra.gmra.mxu3 %v18163_v35  ;;  %v13052_v55 = vld [vmem:[#allocation4 + $0x4d8] sm:$0xf]  ;;  %v12797_v53 = vor.u32 %v16763_v45, %v12796_v40 }
 0x35a   :  { %6066 = vmatpush.bf16.msrb.mxu3 %v13437_v52  ;;  %6041 = vmatpush.bf16.msrb.mxu1 %v12893_v10  ;;  %v16827_v46 = vld [vmem:[#allocation4 + $0x4f4] sm:$0xf0]  ;;  %v12541_v52 = vor.u32 %v16699_v39, %v12540_v38 }
 0x35b   :  { %v13308_v47 = vld [vmem:[#allocation4 + $0x6d8] sm:$0xf]  ;;  %v13053_v18 = vor.u32 %v16827_v46, %v13052_v55  ;;  %v5804_v46 = vpop.f32.mrf.mxu2 }
 0x35c   :  { %6054 = vmatpush.bf16.msrb.mxu2 %v13149_v26  ;;  %6029 = vmatpush.bf16.msrb.mxu0 %v12605_v11  ;;  %v16891_v50 = vld [vmem:[#allocation4 + $0x6f4] sm:$0xf0] }
 0x35d   :  { %v12508_v56 = vld [vmem:[#allocation4 + $0x98] sm:$0xf]  ;;  %v13309_v61 = vor.u32 %v16891_v50, %v13308_v47 }
 0x35e   :  { %6067 = vmatpush.bf16.msrb.mxu3 %v13405_v6  ;;  %6042 = vmatpush.bf16.msrb.mxu1 %v12861_v43  ;;  %v16691_v58 = vld [vmem:[#allocation4 + $0xb4] sm:$0xf0] }
 0x35f   :  { %v12764_v60 = vld [vmem:[#allocation4 + $0x298] sm:$0xf]  ;;  %v12509_v8 = vor.u32 %v16691_v58, %v12508_v56  ;;  %v16727_v56 = vld [vmem:[#allocation4 + $0x1dc] sm:$0xf] }
 0x360   :  { %6055 = vmatpush.bf16.msrb.mxu2 %v13117_v12  ;;  %6030 = vmatpush.bf16.msrb.mxu0 %v12573_v23  ;;  %v16755_v10 = vld [vmem:[#allocation4 + $0x2b4] sm:$0xf0]  ;;  %v12670_v58 = vld [vmem:[#allocation4 + $0x1f8] sm:$0xf0] }
 0x361   :  { %v13020_v26 = vld [vmem:[#allocation4 + $0x498] sm:$0xf]  ;;  %v12765_v11 = vor.u32 %v16755_v10, %v12764_v60  ;;  %v16791_v10 = vld [vmem:[#allocation4 + $0x3dc] sm:$0xf] }
 0x362   :  { %6068 = vmatpush.bf16.msrb.mxu3 %v13373_v14  ;;  %6043 = vmatpush.bf16.msrb.mxu1 %v12829_v31  ;;  %v16819_v1 = vld [vmem:[#allocation4 + $0x4b4] sm:$0xf0] }
 0x363   :  { %v13276_v5 = vld [vmem:[#allocation4 + $0x698] sm:$0xf]  ;;  %v13021_v43 = vor.u32 %v16819_v1, %v13020_v26  ;;  %v12926_v26 = vld [vmem:[#allocation4 + $0x3f8] sm:$0xf0] }
 0x364   :  { %6056 = vmatpush.bf16.msrb.mxu2 %v13085_v32  ;;  %v16883_v6 = vld [vmem:[#allocation4 + $0x6b4] sm:$0xf0]  ;;  %6031 = vmatpush.bf16.msrb.mxu0 %v12541_v52  ;;  %v5817_v52 = vpop.f32.mrf.mxu3 }
 0x365   :  { %v12476_v12 = vld [vmem:[#allocation4 + $0x58] sm:$0xf]  ;;  %v13277_v14 = vor.u32 %v16883_v6, %v13276_v5  ;;  %v12673_v6 = vor.u32 %v16727_v56, %v12670_v58  ;;  %v12830_v52 = vld [vmem:[#allocation4 + $0x338] sm:$0xf0] }
 0x366   :  { %6069 = vmatpush.bf16.msrb.mxu3 %v13341_v42  ;;  %6044 = vmatpush.bf16.msrb.mxu1 %v12797_v53  ;;  %v16683_v0 = vld [vmem:[#allocation4 + $0x74] sm:$0xf0] }
 0x367   :  { %v12732_v13 = vld [vmem:[#allocation4 + $0x258] sm:$0xf]  ;;  %v12477_v62 = vor.u32 %v16683_v0, %v12476_v12  ;;  %v16783_v12 = vld [vmem:[#allocation4 + $0x39c] sm:$0xf] }
 0x368   :  { %6057 = vmatpush.bf16.msrb.mxu2 %v13053_v18  ;;  %v16747_v17 = vld [vmem:[#allocation4 + $0x274] sm:$0xf0]  ;;  %6032 = vmatpush.bf16.msrb.mxu0 %v12509_v8  ;;  %v12929_v8 = vor.u32 %v16791_v10, %v12926_v26  ;;  %v12894_v0 = vld [vmem:[#allocation4 + $0x3b8] sm:$0xf0] }
 0x369   :  { %v12988_v19 = vld [vmem:[#allocation4 + $0x458] sm:$0xf]  ;;  %v12733_v28 = vor.u32 %v16747_v17, %v12732_v13 }
 0x36a   :  { %6070 = vmatpush.bf16.msrb.mxu3 %v13309_v61  ;;  %v16811_v22 = vld [vmem:[#allocation4 + $0x474] sm:$0xf0]  ;;  %6045 = vmatpush.bf16.msrb.mxu1 %v12765_v11  ;;  %v16719_v11 = vld [vmem:[#allocation4 + $0x19c] sm:$0xf] }
 0x36b   :  { %v13244_v20 = vld [vmem:[#allocation4 + $0x658] sm:$0xf]  ;;  %v12989_v31 = vor.u32 %v16811_v22, %v12988_v19 }
 0x36c   :  { %v16875_v49 = vld [vmem:[#allocation4 + $0x674] sm:$0xf0]  ;;  %6058 = vmatpush.bf16.msrb.mxu2 %v13021_v43  ;;  %6033 = vmatpush.bf16.msrb.mxu0 %v12477_v62  ;;  %v12638_v43 = vld [vmem:[#allocation4 + $0x1b8] sm:$0xf0] }
 0x36d   :  { %v12444_v23 = vld [vmem:[#allocation4 + $0x18] sm:$0xf]  ;;  %v13245_v40 = vor.u32 %v16875_v49, %v13244_v20  ;;  %v12641_v17 = vor.u32 %v16719_v11, %v12638_v43  ;;  %v12897_v49 = vor.u32 %v16783_v12, %v12894_v0 }
 0x36e   :  { %v16675_v27 = vld [vmem:[#allocation4 + $0x34] sm:$0xf0]  ;;  %6071 = vmatpush.bf16.msrb.mxu3 %v13277_v14  ;;  %6046 = vmatpush.bf16.msrb.mxu1 %v12733_v28  ;;  %v16775_v28 = vld [vmem:[#allocation4 + $0x35c] sm:$0xf] }
 0x36f   :  { %v12700_v32 = vld [vmem:[#allocation4 + $0x218] sm:$0xf]  ;;  %v12445_v53 = vor.u32 %v16675_v27, %v12444_v23  ;;  %v16711_v23 = vld [vmem:[#allocation4 + $0x15c] sm:$0xf] }
 0x370   :  { %v16739_v38 = vld [vmem:[#allocation4 + $0x234] sm:$0xf0]  ;;  %6059 = vmatpush.bf16.msrb.mxu2 %v12989_v31  ;;  %v12606_v27 = vld [vmem:[#allocation4 + $0x178] sm:$0xf0] }
 0x371   :  { %v12956_v39 = vld [vmem:[#allocation4 + $0x418] sm:$0xf]  ;;  %v12701_v60 = vor.u32 %v16739_v38, %v12700_v32  ;;  %6034 = vmatpush.bf16.msrb.mxu0 %v12445_v53  ;;  %v12862_v31 = vld [vmem:[#allocation4 + $0x378] sm:$0xf0] }
 0x372   :  { %v16803_v42 = vld [vmem:[#allocation4 + $0x434] sm:$0xf0]  ;;  %6072 = vmatpush.bf16.msrb.mxu3 %v13245_v40 }
 0x373   :  { %v13212_v45 = vld [vmem:[#allocation4 + $0x618] sm:$0xf]  ;;  %v12957_v61 = vor.u32 %v16803_v42, %v12956_v39  ;;  %6047 = vmatpush.bf16.msrb.mxu1 %v12701_v60  ;;  %v12609_v39 = vor.u32 %v16711_v23, %v12606_v27  ;;  %v12766_v23 = vld [vmem:[#allocation4 + $0x2b8] sm:$0xf0] }
 0x374   :  { %v16867_v55 = vld [vmem:[#allocation4 + $0x634] sm:$0xf0]  ;;  %6035 = vmatmul.bf16.vlgmr.msrb.gmra.mxu0 %v18146_v33 }
 0x375   :  { %v13692_v47 = vld [vmem:[#allocation4 + $0x9d8] sm:$0xf]  ;;  %v13213_v1 = vor.u32 %v16867_v55, %v13212_v45  ;;  %6060 = vmatpush.bf16.msrb.mxu2 %v12957_v61  ;;  %v12865_v55 = vor.u32 %v16775_v28, %v12862_v31 }
 0x376   :  { %v16987_v50 = vld [vmem:[#allocation4 + $0x9f4] sm:$0xf0]  ;;  %6048 = vmatmul.bf16.vlgmr.msrb.gmra.mxu1 %v18150_v41 }
 0x377   :  { %v13948_v63 = vld [vmem:[#allocation4 + $0xbd8] sm:$0xf]  ;;  %v13693_v3 = vor.u32 %v16987_v50, %v13692_v47  ;;  %6073 = vmatpush.bf16.msrb.mxu3 %v13213_v1  ;;  %v16703_v47 = vld [vmem:[#allocation4 + $0x11c] sm:$0xf]  ;;  %v5841_v1 = vpop.f32.mrf.mxu1 }
 0x378   :  { %v17051_v18 = vld [vmem:[#allocation4 + $0xbf4] sm:$0xf0]  ;;  %6061 = vmatmul.bf16.vlgmr.msrb.gmra.mxu2 %v18148_v34  ;;  %v12574_v50 = vld [vmem:[#allocation4 + $0x138] sm:$0xf0] }
 0x379   :  { %v13949_v5 = vor.u32 %v17051_v18, %v13948_v63  ;;  %v13660_v29 = vld [vmem:[#allocation4 + $0x998] sm:$0xf]  ;;  %6079 = vmatpush.bf16.msra.mxu0 %v13693_v3  ;;  %6105 = vmatpush.bf16.msra.mxu2 %v12673_v6  ;;  %v16767_v63 = vld [vmem:[#allocation4 + $0x31c] sm:$0xf]  ;;  %v5828_v18 = vpop.f32.mrf.mxu0  ;;  %v12577_v58 = vor.u32 %v16703_v47, %v12574_v50 }
 0x37a   :  { %v16979_v7 = vld [vmem:[#allocation4 + $0x9b4] sm:$0xf0]  ;;  %6074 = vmatmul.bf16.vlgmr.msrb.gmra.mxu3 %v18154_v44  ;;  %v5829_v26 = vadd.f32 %v5828_v18, %v18319_v36  ;;  %v12833_v3 = vor.u32 %v16767_v63, %v12830_v52  ;;  %v16695_v6 = vld [vmem:[#allocation4 + $0xdc] sm:$0xf] }
 0x37b   :  { %v13916_v24 = vld [vmem:[#allocation4 + $0xb98] sm:$0xf]  ;;  %v13661_v13 = vor.u32 %v16979_v7, %v13660_v29  ;;  %6092 = vmatpush.bf16.msra.mxu1 %v13949_v5  ;;  %6118 = vmatpush.bf16.msra.mxu3 %v12929_v8  ;;  %v12542_v29 = vld [vmem:[#allocation4 + $0xf8] sm:$0xf0] }
 0x37c   :  { %v17043_v9 = vld [vmem:[#allocation4 + $0xbb4] sm:$0xf0]  ;;  %v16759_v7 = vld [vmem:[#allocation4 + $0x2dc] sm:$0xf]  ;;  %v5842_v8 = vadd.f32 %v5841_v1, %v5829_v26  ;;  %v12545_v43 = vor.u32 %v16695_v6, %v12542_v29 }
 0x37d   :  { %v13917_v14 = vor.u32 %v17043_v9, %v13916_v24  ;;  %v13628_v19 = vld [vmem:[#allocation4 + $0x958] sm:$0xf]  ;;  %6080 = vmatpush.bf16.msra.mxu0 %v13661_v13  ;;  %6106 = vmatpush.bf16.msra.mxu2 %v12641_v17  ;;  %v12798_v24 = vld [vmem:[#allocation4 + $0x2f8] sm:$0xf0] }
 0x37e   :  { %v16971_v22 = vld [vmem:[#allocation4 + $0x974] sm:$0xf0]  ;;  %v12801_v36 = vor.u32 %v16759_v7, %v12798_v24  ;;  %v16679_v47 = vld [vmem:[#allocation4 + $0x5c] sm:$0xf] }
 0x37f   :  { %v13884_v20 = vld [vmem:[#allocation4 + $0xb58] sm:$0xf]  ;;  %v13629_v32 = vor.u32 %v16971_v22, %v13628_v19  ;;  %6093 = vmatpush.bf16.msra.mxu1 %v13917_v14  ;;  %6119 = vmatpush.bf16.msra.mxu3 %v12897_v49  ;;  %v5854_v14 = vpop.f32.mrf.mxu2  ;;  %v16687_v19 = vld [vmem:[#allocation4 + $0x9c] sm:$0xf]  ;;  %v5867_v49 = vpop.f32.mrf.mxu3 }
 0x380   :  { %v17035_v62 = vld [vmem:[#allocation4 + $0xb74] sm:$0xf0]  ;;  %v12510_v22 = vld [vmem:[#allocation4 + $0xb8] sm:$0xf0] }
 0x381   :  { %v13885_v38 = vor.u32 %v17035_v62, %v13884_v20  ;;  %v13596_v40 = vld [vmem:[#allocation4 + $0x918] sm:$0xf]  ;;  %6081 = vmatpush.bf16.msra.mxu0 %v13629_v32  ;;  %6107 = vmatpush.bf16.msra.mxu2 %v12609_v39  ;;  %v5855_v20 = vadd.f32 %v5854_v14, %v5842_v8  ;;  %v16751_v62 = vld [vmem:[#allocation4 + $0x29c] sm:$0xf]  ;;  %v5830_v31 = vpop.f32.mrf.mxu0 }
 0x382   :  { %v16963_v42 = vld [vmem:[#allocation4 + $0x934] sm:$0xf0]  ;;  %v12478_v50 = vld [vmem:[#allocation4 + $0x78] sm:$0xf0] }
 0x383   :  { %v13852_v45 = vld [vmem:[#allocation4 + $0xb18] sm:$0xf]  ;;  %v13597_v53 = vor.u32 %v16963_v42, %v13596_v40  ;;  %6094 = vmatpush.bf16.msra.mxu1 %v13885_v38  ;;  %6120 = vmatpush.bf16.msra.mxu3 %v12865_v55  ;;  %v18326_v28 = vadd.f32 %v5867_v49, %v5855_v20  ;;  %v12513_v38 = vor.u32 %v16687_v19, %v12510_v22  ;;  %v16743_v63 = vld [vmem:[#allocation4 + $0x25c] sm:$0xf] }
 0x384   :  { %v17027_v46 = vld [vmem:[#allocation4 + $0xb34] sm:$0xf0]  ;;  %v12769_v55 = vor.u32 %v16751_v62, %v12766_v23  ;;  %v12734_v52 = vld [vmem:[#allocation4 + $0x278] sm:$0xf0] }
 0x385   :  { %v13853_v56 = vor.u32 %v17027_v46, %v13852_v45  ;;  %v13564_v60 = vld [vmem:[#allocation4 + $0x8d8] sm:$0xf]  ;;  %6082 = vmatpush.bf16.msra.mxu0 %v13597_v53  ;;  %6108 = vmatpush.bf16.msra.mxu2 %v12577_v58  ;;  %v5843_v45 = vpop.f32.mrf.mxu1  ;;  %v16671_v26 = vld [vmem:[#allocation4 + $0x1c] sm:$0xf] }
 0x386   :  { %v16955_v61 = vld [vmem:[#allocation4 + $0x8f4] sm:$0xf0]  ;;  %v16735_v6 = vld [vmem:[#allocation4 + $0x21c] sm:$0xf] }
 0x387   :  { %v13820_v10 = vld [vmem:[#allocation4 + $0xad8] sm:$0xf]  ;;  %v13565_v9 = vor.u32 %v16955_v61, %v13564_v60  ;;  %6095 = vmatpush.bf16.msra.mxu1 %v13853_v56  ;;  %6121 = vmatpush.bf16.msra.mxu3 %v12833_v3  ;;  %v12481_v60 = vor.u32 %v16679_v47, %v12478_v50  ;;  %v5856_v1 = vpop.f32.mrf.mxu2  ;;  %v12737_v3 = vor.u32 %v16743_v63, %v12734_v52  ;;  %v12702_v29 = vld [vmem:[#allocation4 + $0x238] sm:$0xf0]  ;;  %v5869_v7 = vpop.f32.mrf.mxu3 }
 0x388   :  { %v17019_v5 = vld [vmem:[#allocation4 + $0xaf4] sm:$0xf0]  ;;  %v16855_v24 = vld [vmem:[#allocation4 + $0x5dc] sm:$0xf]  ;;  %v12705_v19 = vor.u32 %v16735_v6, %v12702_v29 }
 0x389   :  { %v13821_v11 = vor.u32 %v17019_v5, %v13820_v10  ;;  %v13532_v12 = vld [vmem:[#allocation4 + $0x898] sm:$0xf]  ;;  %6083 = vmatpush.bf16.msra.mxu0 %v13565_v9  ;;  %6109 = vmatpush.bf16.msra.mxu2 %v12545_v43  ;;  %v12446_v5 = vld [vmem:[#allocation4 + $0x38] sm:$0xf0] }
 0x38a   :  { %v16947_v0 = vld [vmem:[#allocation4 + $0x8b4] sm:$0xf0]  ;;  %v13182_v8 = vld [vmem:[#allocation4 + $0x5f8] sm:$0xf0]  ;;  %v12449_v14 = vor.u32 %v16671_v26, %v12446_v5 }
 0x38b   :  { %v13788_v13 = vld [vmem:[#allocation4 + $0xa98] sm:$0xf]  ;;  %v13533_v27 = vor.u32 %v16947_v0, %v13532_v12  ;;  %6096 = vmatpush.bf16.msra.mxu1 %v13821_v11  ;;  %6122 = vmatpush.bf16.msra.mxu3 %v12801_v36  ;;  %v16919_v9 = vld [vmem:[#allocation4 + $0x7dc] sm:$0xf]  ;;  %v13185_v22 = vor.u32 %v16855_v24, %v13182_v8 }
 0x38c   :  { %v17011_v17 = vld [vmem:[#allocation4 + $0xab4] sm:$0xf0]  ;;  %v13438_v43 = vld [vmem:[#allocation4 + $0x7f8] sm:$0xf0] }
 0x38d   :  { %v13789_v32 = vor.u32 %v17011_v17, %v13788_v13  ;;  %v13500_v39 = vld [vmem:[#allocation4 + $0x858] sm:$0xf]  ;;  %6084 = vmatpush.bf16.msra.mxu0 %v13533_v27  ;;  %6110 = vmatpush.bf16.msra.mxu2 %v12513_v38  ;;  %v16983_v12 = vld [vmem:[#allocation4 + $0x9dc] sm:$0xf]  ;;  %v13441_v20 = vor.u32 %v16919_v9, %v13438_v43 }
 0x38e   :  { %v16939_v40 = vld [vmem:[#allocation4 + $0x874] sm:$0xf0]  ;;  %v13694_v0 = vld [vmem:[#allocation4 + $0x9f8] sm:$0xf0] }
 0x38f   :  { %v13756_v42 = vld [vmem:[#allocation4 + $0xa58] sm:$0xf]  ;;  %v13501_v53 = vor.u32 %v16939_v40, %v13500_v39  ;;  %6097 = vmatpush.bf16.msra.mxu1 %v13789_v32  ;;  %6123 = vmatpush.bf16.msra.mxu3 %v12769_v55  ;;  %v17047_v36 = vld [vmem:[#allocation4 + $0xbdc] sm:$0xf]  ;;  %v13697_v49 = vor.u32 %v16983_v12, %v13694_v0  ;;  %v5893_v12 = vpop.f32.mrf.mxu1 }
 0x390   :  { %v17003_v46 = vld [vmem:[#allocation4 + $0xa74] sm:$0xf0]  ;;  %v13950_v17 = vld [vmem:[#allocation4 + $0xbf8] sm:$0xf0] }
 0x391   :  { %v13468_v18 = vld [vmem:[#allocation4 + $0x818] sm:$0xf]  ;;  %v13757_v58 = vor.u32 %v17003_v46, %v13756_v42  ;;  %6085 = vmatpush.bf16.msra.mxu0 %v13501_v53  ;;  %6111 = vmatpush.bf16.msra.mxu2 %v12481_v60  ;;  %v16847_v62 = vld [vmem:[#allocation4 + $0x59c] sm:$0xf]  ;;  %v13953_v31 = vor.u32 %v17047_v36, %v13950_v17 }
 0x392   :  { %v16931_v56 = vld [vmem:[#allocation4 + $0x834] sm:$0xf0]  ;;  %v13150_v23 = vld [vmem:[#allocation4 + $0x5b8] sm:$0xf0] }
 0x393   :  { %v13724_v61 = vld [vmem:[#allocation4 + $0xa18] sm:$0xf]  ;;  %v13469_v11 = vor.u32 %v16931_v56, %v13468_v18  ;;  %6098 = vmatpush.bf16.msra.mxu1 %v13757_v58  ;;  %6124 = vmatpush.bf16.msra.mxu3 %v12737_v3  ;;  %v16911_v27 = vld [vmem:[#allocation4 + $0x79c] sm:$0xf]  ;;  %v13153_v45 = vor.u32 %v16847_v62, %v13150_v23 }
 0x394   :  { %v16995_v10 = vld [vmem:[#allocation4 + $0xa34] sm:$0xf0]  ;;  %v13406_v32 = vld [vmem:[#allocation4 + $0x7b8] sm:$0xf0] }
 0x395   :  { %v13725_v13 = vor.u32 %v16995_v10, %v13724_v61  ;;  %6086 = vmatpush.bf16.msra.mxu0 %v13469_v11  ;;  %v16975_v38 = vld [vmem:[#allocation4 + $0x99c] sm:$0xf]  ;;  %6112 = vmatpush.bf16.msra.mxu2 %v12449_v14  ;;  %v13409_v55 = vor.u32 %v16911_v27, %v13406_v32  ;;  %v3627_v10 = vperm.slane %v18316_v51, 4  ;;  %v5880_v11 = vpop.f32.mrf.mxu0 }
 0x396   :  { %v13662_v39 = vld [vmem:[#allocation4 + $0x9b8] sm:$0xf0] }
 0x397   :  { %6099 = vmatpush.bf16.msra.mxu1 %v13725_v13  ;;  %v17039_v40 = vld [vmem:[#allocation4 + $0xb9c] sm:$0xf]  ;;  %6125 = vmatpush.bf16.msra.mxu3 %v12705_v19  ;;  %v13665_v46 = vor.u32 %v16975_v38, %v13662_v39 }
 0x398   :  { %v13918_v42 = vld [vmem:[#allocation4 + $0xbb8] sm:$0xf0]  ;;  %6087 = vmatmul.bf16.vlgmr.msra.gmra.mxu0 %v18161_v30  ;;  %6113 = vmatmul.bf16.vlgmr.msra.gmra.mxu2 %v18146_v33 }
 0x399   :  { %6131 = vmatpush.bf16.msrb.mxu0 %v13185_v22  ;;  %6157 = vmatpush.bf16.msrb.mxu2 %v13697_v49  ;;  %v16839_v47 = vld [vmem:[#allocation4 + $0x55c] sm:$0xf]  ;;  %v13921_v52 = vor.u32 %v17039_v40, %v13918_v42 }
 0x39a   :  { %v13118_v50 = vld [vmem:[#allocation4 + $0x578] sm:$0xf0]  ;;  %6100 = vmatmul.bf16.vlgmr.msra.gmra.mxu1 %v18163_v35  ;;  %6126 = vmatmul.bf16.vlgmr.msra.gmra.mxu3 %v18150_v41  ;;  %v5881_v41 = vadd.f32 %v5880_v11, %v3627_v10 }
 0x39b   :  { %6144 = vmatpush.bf16.msrb.mxu1 %v13441_v20  ;;  %v16903_v63 = vld [vmem:[#allocation4 + $0x75c] sm:$0xf]  ;;  %6170 = vmatpush.bf16.msrb.mxu3 %v13953_v31  ;;  %v13121_v61 = vor.u32 %v16839_v47, %v13118_v50  ;;  %v5906_v50 = vpop.f32.mrf.mxu2 }
 0x39c   :  { %v13374_v53 = vld [vmem:[#allocation4 + $0x778] sm:$0xf0]  ;;  %v5894_v62 = vadd.f32 %v5893_v12, %v5881_v41 }
 0x39d   :  { %v16967_v18 = vld [vmem:[#allocation4 + $0x95c] sm:$0xf]  ;;  %6132 = vmatpush.bf16.msrb.mxu0 %v13153_v45  ;;  %6158 = vmatpush.bf16.msrb.mxu2 %v13665_v46  ;;  %v13377_v26 = vor.u32 %v16903_v63, %v13374_v53 }
 0x39e   :  { %v13630_v56 = vld [vmem:[#allocation4 + $0x978] sm:$0xf0]  ;;  %v5907_v53 = vadd.f32 %v5906_v50, %v5894_v62  ;;  %v17082_v62 = vld [vmem:[#allocation9 + $0xec] sm:$0xf0] }
 0x39f   :  { %v17031_v58 = vld [vmem:[#allocation4 + $0xb5c] sm:$0xf]  ;;  %6145 = vmatpush.bf16.msrb.mxu1 %v13409_v55  ;;  %v13633_v1 = vor.u32 %v16967_v18, %v13630_v56  ;;  %6171 = vmatpush.bf16.msrb.mxu3 %v13921_v52  ;;  %v5882_v18 = vpop.f32.mrf.mxu0  ;;  %v5919_v56 = vpop.f32.mrf.mxu3 }
 0x3a0   :  { %v13886_v60 = vld [vmem:[#allocation4 + $0xb78] sm:$0xf0]  ;;  %v14180_v18 = vld [vmem:[#allocation9 + $0x1c0] sm:$0xf] }
 0x3a1   :  { %v16831_v3 = vld [vmem:[#allocation4 + $0x51c] sm:$0xf]  ;;  %v13889_v29 = vor.u32 %v17031_v58, %v13886_v60  ;;  %6133 = vmatpush.bf16.msrb.mxu0 %v13121_v61  ;;  %6159 = vmatpush.bf16.msrb.mxu2 %v13633_v1  ;;  %v5895_v60 = vpop.f32.mrf.mxu1 }
 0x3a2   :  { %v13086_v5 = vld [vmem:[#allocation4 + $0x538] sm:$0xf0]  ;;  %v14308_v60 = vld [vmem:[#allocation9 + $0x2c0] sm:$0xf] }
 0x3a3   :  { %v16895_v6 = vld [vmem:[#allocation4 + $0x71c] sm:$0xf]  ;;  %v13089_v43 = vor.u32 %v16831_v3, %v13086_v5  ;;  %6146 = vmatpush.bf16.msrb.mxu1 %v13377_v26  ;;  %6172 = vmatpush.bf16.msrb.mxu3 %v13889_v29  ;;  %v18333_v5 = vadd.f32 %v5919_v56, %v5907_v53  ;;  %v17078_v53 = vld [vmem:[#allocation9 + $0xcc] sm:$0xf0] }
 0x3a4   :  { %v13342_v7 = vld [vmem:[#allocation4 + $0x738] sm:$0xf0] }
 0x3a5   :  { %v16959_v24 = vld [vmem:[#allocation4 + $0x91c] sm:$0xf]  ;;  %v13345_v0 = vor.u32 %v16895_v6, %v13342_v7  ;;  %6134 = vmatpush.bf16.msrb.mxu0 %v13089_v43 }
 0x3a6   :  { %v13598_v8 = vld [vmem:[#allocation4 + $0x938] sm:$0xf0] }
 0x3a7   :  { %v17023_v9 = vld [vmem:[#allocation4 + $0xb1c] sm:$0xf]  ;;  %v13601_v13 = vor.u32 %v16959_v24, %v13598_v8  ;;  %6147 = vmatpush.bf16.msrb.mxu1 %v13345_v0 }
 0x3a8   :  { %v13854_v33 = vld [vmem:[#allocation4 + $0xb38] sm:$0xf0] }
 0x3a9   :  { %v16823_v14 = vld [vmem:[#allocation4 + $0x4dc] sm:$0xf]  ;;  %v13857_v19 = vor.u32 %v17023_v9, %v13854_v33  ;;  %6160 = vmatpush.bf16.msrb.mxu2 %v13601_v13 }
 0x3aa   :  { %v13054_v36 = vld [vmem:[#allocation4 + $0x4f8] sm:$0xf0] }
 0x3ab   :  { %v16887_v17 = vld [vmem:[#allocation4 + $0x6dc] sm:$0xf]  ;;  %v13057_v31 = vor.u32 %v16823_v14, %v13054_v36  ;;  %6173 = vmatpush.bf16.msrb.mxu3 %v13857_v19 }
 0x3ac   :  { %v13310_v22 = vld [vmem:[#allocation4 + $0x6f8] sm:$0xf0] }
 0x3ad   :  { %v16951_v20 = vld [vmem:[#allocation4 + $0x8dc] sm:$0xf]  ;;  %v13313_v32 = vor.u32 %v16887_v17, %v13310_v22  ;;  %6135 = vmatpush.bf16.msrb.mxu0 %v13057_v31 }
 0x3ae   :  { %v13566_v49 = vld [vmem:[#allocation4 + $0x8f8] sm:$0xf0] }
 0x3af   :  { %v17015_v23 = vld [vmem:[#allocation4 + $0xadc] sm:$0xf]  ;;  %v13569_v38 = vor.u32 %v16951_v20, %v13566_v49  ;;  %6148 = vmatpush.bf16.msrb.mxu1 %v13313_v32  ;;  %v5908_v20 = vpop.f32.mrf.mxu2  ;;  %v14068_v49 = vld [vmem:[#allocation9 + $0xe0] sm:$0xf]  ;;  %v17114_v32 = vld [vmem:[#allocation9 + $0x1ec] sm:$0xf0] }
 0x3b0   :  { %v13822_v27 = vld [vmem:[#allocation4 + $0xaf8] sm:$0xf0]  ;;  %v14404_v20 = vld [vmem:[#allocation9 + $0x380] sm:$0xf] }
 0x3b1   :  { %v16815_v39 = vld [vmem:[#allocation4 + $0x49c] sm:$0xf]  ;;  %v13825_v45 = vor.u32 %v17015_v23, %v13822_v27  ;;  %6161 = vmatpush.bf16.msrb.mxu2 %v13569_v38  ;;  %v14196_v23 = vld [vmem:[#allocation9 + $0x1e0] sm:$0xf]  ;;  %v5921_v27 = vpop.f32.mrf.mxu3 }
 0x3b2   :  { %v13022_v40 = vld [vmem:[#allocation4 + $0x4b8] sm:$0xf0]  ;;  %v14324_v38 = vld [vmem:[#allocation9 + $0x2e0] sm:$0xf]  ;;  %v14197_v50 = vor.u32 %v17114_v32, %v14196_v23 }
 0x3b3   :  { %v16879_v42 = vld [vmem:[#allocation4 + $0x69c] sm:$0xf]  ;;  %v13025_v58 = vor.u32 %v16815_v39, %v13022_v40  ;;  %6174 = vmatpush.bf16.msrb.mxu3 %v13825_v45  ;;  %v17146_v39 = vld [vmem:[#allocation9 + $0x2ec] sm:$0xf0]  ;;  %v14452_v45 = vld [vmem:[#allocation9 + $0x3e0] sm:$0xf] }
 0x3b4   :  { %v13278_v55 = vld [vmem:[#allocation4 + $0x6b8] sm:$0xf0]  ;;  %v14004_v32 = vld [vmem:[#allocation9 + $0x60] sm:$0xf] }
 0x3b5   :  { %v16943_v46 = vld [vmem:[#allocation4 + $0x89c] sm:$0xf]  ;;  %v13281_v61 = vor.u32 %v16879_v42, %v13278_v55  ;;  %6136 = vmatpush.bf16.msrb.mxu0 %v13025_v58  ;;  %v17178_v55 = vld [vmem:[#allocation9 + $0x3ec] sm:$0xf0] }
 0x3b6   :  { %v13534_v47 = vld [vmem:[#allocation4 + $0x8b8] sm:$0xf0]  ;;  %v14453_v56 = vor.u32 %v17178_v55, %v14452_v45  ;;  %v17110_v58 = vld [vmem:[#allocation9 + $0x1cc] sm:$0xf0]  ;;  %v14260_v45 = vld [vmem:[#allocation9 + $0x260] sm:$0xf] }
 0x3b7   :  { %v17007_v63 = vld [vmem:[#allocation4 + $0xa9c] sm:$0xf]  ;;  %v13537_v10 = vor.u32 %v16943_v46, %v13534_v47  ;;  %6149 = vmatpush.bf16.msrb.mxu1 %v13281_v61  ;;  %v14069_v47 = vor.u32 %v17082_v62, %v14068_v49  ;;  %v17142_v61 = vld [vmem:[#allocation9 + $0x2cc] sm:$0xf0]  ;;  %v5932_v49 = vpop.f32.mrf.mxu0 }
 0x3b8   :  { %v13790_v52 = vld [vmem:[#allocation4 + $0xab8] sm:$0xf0]  ;;  %v5933_v23 = vadd.f32 %v5932_v49, %v18333_v5  ;;  %v17130_v55 = vld [vmem:[#allocation9 + $0x26c] sm:$0xf0]  ;;  %v13956_v49 = vld [vmem:[#allocation9] sm:$0xf] }
 0x3b9   :  { %v16807_v26 = vld [vmem:[#allocation4 + $0x45c] sm:$0xf]  ;;  %v13793_v6 = vor.u32 %v17007_v63, %v13790_v52  ;;  %6162 = vmatpush.bf16.msrb.mxu2 %v13537_v10  ;;  %v14325_v63 = vor.u32 %v17146_v39, %v14324_v38  ;;  %v14052_v52 = vld [vmem:[#allocation9 + $0xc0] sm:$0xf]  ;;  %v17066_v38 = vld [vmem:[#allocation9 + $0x6c] sm:$0xf0] }
 0x3ba   :  { %v12990_v1 = vld [vmem:[#allocation4 + $0x478] sm:$0xf0]  ;;  %v14436_v10 = vld [vmem:[#allocation9 + $0x3c0] sm:$0xf]  ;;  %v14005_v5 = vor.u32 %v17066_v38, %v14004_v32 }
 0x3bb   :  { %v16871_v3 = vld [vmem:[#allocation4 + $0x65c] sm:$0xf]  ;;  %v12993_v33 = vor.u32 %v16807_v26, %v12990_v1  ;;  %6175 = vmatpush.bf16.msrb.mxu3 %v13793_v6  ;;  %v17174_v26 = vld [vmem:[#allocation9 + $0x3cc] sm:$0xf0]  ;;  %v14053_v1 = vor.u32 %v17078_v53, %v14052_v52  ;;  %v14309_v6 = vor.u32 %v17142_v61, %v14308_v60  ;;  %v14132_v39 = vld [vmem:[#allocation9 + $0x160] sm:$0xf]  ;;  %v14261_v53 = vor.u32 %v17130_v55, %v14260_v45 }
 0x3bc   :  { %v13246_v29 = vld [vmem:[#allocation4 + $0x678] sm:$0xf0]  ;;  %v17094_v61 = vld [vmem:[#allocation9 + $0x14c] sm:$0xf0]  ;;  %v14212_v32 = vld [vmem:[#allocation9 + $0x200] sm:$0xf] }
 0x3bd   :  { %v16935_v7 = vld [vmem:[#allocation4 + $0x85c] sm:$0xf]  ;;  %v13249_v41 = vor.u32 %v16871_v3, %v13246_v29  ;;  %6137 = vmatpush.bf16.msrb.mxu0 %v12993_v33  ;;  %v14181_v3 = vor.u32 %v17110_v58, %v14180_v18  ;;  %v14036_v29 = vld [vmem:[#allocation9 + $0xa0] sm:$0xf] }
 0x3be   :  { %v13502_v24 = vld [vmem:[#allocation4 + $0x878] sm:$0xf0]  ;;  %v14292_v33 = vld [vmem:[#allocation9 + $0x2a0] sm:$0xf] }
 0x3bf   :  { %v16999_v8 = vld [vmem:[#allocation4 + $0xa5c] sm:$0xf]  ;;  %v13505_v12 = vor.u32 %v16935_v7, %v13502_v24  ;;  %6150 = vmatpush.bf16.msrb.mxu1 %v13249_v41  ;;  %v17074_v7 = vld [vmem:[#allocation9 + $0xac] sm:$0xf0]  ;;  %v14164_v24 = vld [vmem:[#allocation9 + $0x1a0] sm:$0xf] }
 0x3c0   :  { %v13758_v9 = vld [vmem:[#allocation4 + $0xa78] sm:$0xf0]  ;;  %v17170_v41 = vld [vmem:[#allocation9 + $0x3ac] sm:$0xf0]  ;;  %v13988_v18 = vld [vmem:[#allocation9 + $0x40] sm:$0xf] }
 0x3c1   :  { %v16799_v11 = vld [vmem:[#allocation4 + $0x41c] sm:$0xf]  ;;  %v13761_v36 = vor.u32 %v16999_v8, %v13758_v9  ;;  %6163 = vmatpush.bf16.msrb.mxu2 %v13505_v12  ;;  %v14437_v8 = vor.u32 %v17174_v26, %v14436_v10  ;;  %v17106_v9 = vld [vmem:[#allocation9 + $0x1ac] sm:$0xf0]  ;;  %v14037_v12 = vor.u32 %v17074_v7, %v14036_v29  ;;  %v14116_v58 = vld [vmem:[#allocation9 + $0x140] sm:$0xf]  ;;  %v5971_v7 = vpop.f32.mrf.mxu3 }
 0x3c2   :  { %v12958_v43 = vld [vmem:[#allocation4 + $0x438] sm:$0xf0]  ;;  %v14244_v10 = vld [vmem:[#allocation9 + $0x240] sm:$0xf]  ;;  %v17126_v26 = vld [vmem:[#allocation9 + $0x24c] sm:$0xf0] }
 0x3c3   :  { %v16863_v0 = vld [vmem:[#allocation4 + $0x61c] sm:$0xf]  ;;  %v12961_v31 = vor.u32 %v16799_v11, %v12958_v43  ;;  %6176 = vmatpush.bf16.msrb.mxu3 %v13761_v36  ;;  %v17138_v11 = vld [vmem:[#allocation9 + $0x2ac] sm:$0xf0]  ;;  %v14420_v43 = vld [vmem:[#allocation9 + $0x3a0] sm:$0xf] }
 0x3c4   :  { %v13214_v13 = vld [vmem:[#allocation4 + $0x638] sm:$0xf0]  ;;  %v17070_v36 = vld [vmem:[#allocation9 + $0x8c] sm:$0xf0]  ;;  %v14580_v55 = vld [vmem:[#allocation9 + $0x4e0] sm:$0xf] }
 0x3c5   :  { %v16927_v14 = vld [vmem:[#allocation4 + $0x81c] sm:$0xf]  ;;  %v13217_v40 = vor.u32 %v16863_v0, %v13214_v13  ;;  %6138 = vmatpush.bf16.msrb.mxu0 %v12961_v31  ;;  %v14165_v0 = vor.u32 %v17106_v9, %v14164_v24  ;;  %v14293_v13 = vor.u32 %v17138_v11, %v14292_v33  ;;  %v3213_v24 = vmul.f32 0.2, %v18188_v4 }
 0x3c6   :  { %v13470_v17 = vld [vmem:[#allocation4 + $0x838] sm:$0xf0]  ;;  %v14117_v11 = vor.u32 %v17094_v61, %v14116_v58  ;;  %v17306_v61 = vld [vmem:[#allocation9 + $0x7ec] sm:$0xf0] }
 0x3c7   :  { %v16991_v19 = vld [vmem:[#allocation4 + $0xa1c] sm:$0xf]  ;;  %v13473_v42 = vor.u32 %v16927_v14, %v13470_v17  ;;  %6151 = vmatpush.bf16.msrb.mxu1 %v13217_v40  ;;  %v14020_v14 = vld [vmem:[#allocation9 + $0x80] sm:$0xf]  ;;  %v14421_v17 = vor.u32 %v17170_v41, %v14420_v43  ;;  %v14245_v43 = vor.u32 %v17126_v26, %v14244_v10  ;;  %v3221_v10 = vmax.f32 %v18188_v4, %v3213_v24 }
 0x3c8   :  { %v13726_v22 = vld [vmem:[#allocation4 + $0xa38] sm:$0xf0]  ;;  %6139 = vmatmul.bf16.vlgmr.msrb.gmra.mxu0 %v18148_v34  ;;  %v17134_v34 = vld [vmem:[#allocation9 + $0x28c] sm:$0xf0]  ;;  %v14021_v62 = vor.u32 %v17070_v36, %v14020_v14  ;;  %v13972_v41 = vld [vmem:[#allocation9 + $0x20] sm:$0xf] }
 0x3c9   :  { %v13729_v46 = vor.u32 %v16991_v19, %v13726_v22  ;;  %6164 = vmatpush.bf16.msrb.mxu2 %v13473_v42  ;;  %7753 = vmatpush.bf16.msra.mxu0 %v14069_v47  ;;  %v17102_v19 = vld [vmem:[#allocation9 + $0x18c] sm:$0xf0]  ;;  %v14276_v22 = vld [vmem:[#allocation9 + $0x280] sm:$0xf]  ;;  %v18353_v24 = vpack.c.bf16 %v3221_v10, %v3221_v10 }
 0x3ca   :  { %6152 = vmatmul.bf16.vlgmr.msrb.gmra.mxu1 %v18154_v44  ;;  %v5945_v44 = vpop.f32.mrf.mxu1  ;;  %v14277_v31 = vor.u32 %v17134_v34, %v14276_v22  ;;  %v17098_v42 = vld [vmem:[#allocation9 + $0x16c] sm:$0xf0]  ;;  %v14388_v47 = vld [vmem:[#allocation9 + $0x360] sm:$0xf] }
 0x3cb   :  { %6177 = vmatpush.bf16.msrb.mxu3 %v13729_v46  ;;  %7766 = vmatpush.bf16.msra.mxu1 %v14197_v50  ;;  %v18340_v46 = vadd.f32 %v5945_v44, %v5933_v23  ;;  %v17162_v50 = vld [vmem:[#allocation9 + $0x36c] sm:$0xf0]  ;;  %v14133_v52 = vor.u32 %v17098_v42, %v14132_v39  ;;  %v14356_v22 = vld [vmem:[#allocation9 + $0x320] sm:$0xf] }
 0x3cc   :  { %6165 = vmatmul.bf16.vlgmr.msrb.gmra.mxu2 %v18161_v30  ;;  %v14148_v30 = vld [vmem:[#allocation9 + $0x180] sm:$0xf]  ;;  %v14389_v60 = vor.u32 %v17162_v50, %v14388_v47  ;;  %v17090_v36 = vld [vmem:[#allocation9 + $0x12c] sm:$0xf0] }
 0x3cd   :  { %7779 = vmatpush.bf16.msra.mxu2 %v14325_v63  ;;  %7754 = vmatpush.bf16.msra.mxu0 %v14053_v1  ;;  %v14149_v27 = vor.u32 %v17102_v19, %v14148_v30  ;;  %v3628_v63 = vperm.slane %v18316_v51, 5  ;;  %v5958_v1 = vpop.f32.mrf.mxu2  ;;  %v5934_v51 = vpop.f32.mrf.mxu0  ;;  %v14228_v30 = vld [vmem:[#allocation9 + $0x220] sm:$0xf]  ;;  %v3215_v19 = vmul.f32 0.2, %v18212_v59 }
 0x3ce   :  { %6178 = vmatmul.bf16.vlgmr.msrb.gmra.mxu3 %v18163_v35  ;;  %v17166_v35 = vld [vmem:[#allocation9 + $0x38c] sm:$0xf0]  ;;  %v14708_v50 = vld [vmem:[#allocation9 + $0x5e0] sm:$0xf] }
 0x3cf   :  { %7792 = vmatpush.bf16.msra.mxu3 %v14453_v56  ;;  %7767 = vmatpush.bf16.msra.mxu1 %v14181_v3  ;;  %v14405_v40 = vor.u32 %v17166_v35, %v14404_v20  ;;  %v17062_v56 = vld [vmem:[#allocation9 + $0x4c] sm:$0xf0]  ;;  %v14372_v3 = vld [vmem:[#allocation9 + $0x340] sm:$0xf]  ;;  %v5959_v29 = vadd.f32 %v5958_v1, %v3628_v63  ;;  %v3216_v20 = vmul.f32 0.2, %v18224_v15  ;;  %v5973_v63 = vpop.f32.mrf.mxu3 }
 0x3d0   :  { %v13989_v9 = vor.u32 %v17062_v56, %v13988_v18  ;;  %v17154_v34 = vld [vmem:[#allocation9 + $0x32c] sm:$0xf0]  ;;  %v14564_v51 = vld [vmem:[#allocation9 + $0x4c0] sm:$0xf] }
 0x3d1   :  { %7780 = vmatpush.bf16.msra.mxu2 %v14309_v6  ;;  %7755 = vmatpush.bf16.msra.mxu0 %v14037_v12  ;;  %v17158_v6 = vld [vmem:[#allocation9 + $0x34c] sm:$0xf0]  ;;  %v14357_v38 = vor.u32 %v17154_v34, %v14356_v22  ;;  %v14948_v4 = vld [vmem:[#allocation9 + $0x7c0] sm:$0xf] }
 0x3d2   :  { %v5947_v33 = vpop.f32.mrf.mxu1  ;;  %v17058_v12 = vld [vmem:[#allocation9 + $0x2c] sm:$0xf0]  ;;  %v14373_v14 = vor.u32 %v17158_v6, %v14372_v3  ;;  %v3223_v6 = vmax.f32 %v18212_v59, %v3215_v19  ;;  %v14676_v19 = vld [vmem:[#allocation9 + $0x5a0] sm:$0xf] }
 0x3d3   :  { %7793 = vmatpush.bf16.msra.mxu3 %v14437_v8  ;;  %7768 = vmatpush.bf16.msra.mxu1 %v14165_v0  ;;  %v3214_v8 = vmul.f32 0.2, %v18198_v21  ;;  %v14100_v0 = vld [vmem:[#allocation9 + $0x120] sm:$0xf]  ;;  %v13973_v35 = vor.u32 %v17058_v12, %v13972_v41  ;;  %v17118_v39 = vld [vmem:[#allocation9 + $0x20c] sm:$0xf0] }
 0x3d4   :  { %v14101_v23 = vor.u32 %v17090_v36, %v14100_v0  ;;  %v17150_v42 = vld [vmem:[#allocation9 + $0x30c] sm:$0xf0]  ;;  %v14213_v58 = vor.u32 %v17118_v39, %v14212_v32  ;;  %v14692_v33 = vld [vmem:[#allocation9 + $0x5c0] sm:$0xf] }
 0x3d5   :  { %7781 = vmatpush.bf16.msra.mxu2 %v14293_v13  ;;  %7756 = vmatpush.bf16.msra.mxu0 %v14021_v62  ;;  %v18345_v13 = vadd.f32 %v5971_v7, %v5959_v29  ;;  %v17054_v62 = vld [vmem:[#allocation9 + $0xc] sm:$0xf0]  ;;  %v5960_v45 = vpop.f32.mrf.mxu2  ;;  %v3222_v26 = vmax.f32 %v18198_v21, %v3214_v8  ;;  %v14820_v12 = vld [vmem:[#allocation9 + $0x6c0] sm:$0xf] }
 0x3d6   :  { %v17210_v47 = vld [vmem:[#allocation9 + $0x4ec] sm:$0xf0]  ;;  %v14532_v32 = vld [vmem:[#allocation9 + $0x480] sm:$0xf] }
 0x3d7   :  { %7794 = vmatpush.bf16.msra.mxu3 %v14421_v17  ;;  %7769 = vmatpush.bf16.msra.mxu1 %v14149_v27  ;;  %v17122_v17 = vld [vmem:[#allocation9 + $0x22c] sm:$0xf0]  ;;  %v14084_v27 = vld [vmem:[#allocation9 + $0x100] sm:$0xf]  ;;  %v14581_v3 = vor.u32 %v17210_v47, %v14580_v55  ;;  %v18355_v8 = vpack.c.bf16 %v3222_v26, %v3222_v26 }
 0x3d8   :  { %v14229_v44 = vor.u32 %v17122_v17, %v14228_v30  ;;  %v17274_v18 = vld [vmem:[#allocation9 + $0x6ec] sm:$0xf0]  ;;  %v14548_v30 = vld [vmem:[#allocation9 + $0x4a0] sm:$0xf] }
 0x3d9   :  { %7782 = vmatpush.bf16.msra.mxu2 %v14277_v31  ;;  %7757 = vmatpush.bf16.msra.mxu0 %v14005_v5  ;;  %v17086_v31 = vld [vmem:[#allocation9 + $0x10c] sm:$0xf0]  ;;  %v13957_v5 = vor.u32 %v17054_v62, %v13956_v49  ;;  %v14932_v62 = vld [vmem:[#allocation9 + $0x7a0] sm:$0xf] }
 0x3da   :  { %v14085_v56 = vor.u32 %v17086_v31, %v14084_v27  ;;  %v17238_v41 = vld [vmem:[#allocation9 + $0x5cc] sm:$0xf0]  ;;  %v14660_v39 = vld [vmem:[#allocation9 + $0x580] sm:$0xf] }
 0x3db   :  { %7795 = vmatpush.bf16.msra.mxu3 %v14405_v40  ;;  %7770 = vmatpush.bf16.msra.mxu1 %v14133_v52  ;;  %v14340_v40 = vld [vmem:[#allocation9 + $0x300] sm:$0xf]  ;;  %v17242_v52 = vld [vmem:[#allocation9 + $0x5ec] sm:$0xf0] }
 0x3dc   :  { %v14341_v1 = vor.u32 %v17150_v42, %v14340_v40  ;;  %v14709_v29 = vor.u32 %v17242_v52, %v14708_v50  ;;  %v17270_v0 = vld [vmem:[#allocation9 + $0x6cc] sm:$0xf0]  ;;  %v14788_v45 = vld [vmem:[#allocation9 + $0x680] sm:$0xf] }
 0x3dd   :  { %7783 = vmatpush.bf16.msra.mxu2 %v14261_v53  ;;  %7758 = vmatpush.bf16.msra.mxu0 %v13989_v9  ;;  %v14836_v53 = vld [vmem:[#allocation9 + $0x6e0] sm:$0xf]  ;;  %v17206_v9 = vld [vmem:[#allocation9 + $0x4cc] sm:$0xf0]  ;;  %v14821_v36 = vor.u32 %v17270_v0, %v14820_v12  ;;  %v6010_v12 = vpop.f32.mrf.mxu2 }
 0x3de   :  { %v14837_v7 = vor.u32 %v17274_v18, %v14836_v53  ;;  %v17302_v21 = vld [vmem:[#allocation9 + $0x7cc] sm:$0xf0]  ;;  %v14565_v59 = vor.u32 %v17206_v9, %v14564_v51  ;;  %v14916_v47 = vld [vmem:[#allocation9 + $0x780] sm:$0xf] }
 0x3df   :  { %7796 = vmatpush.bf16.msra.mxu3 %v14389_v60  ;;  %7771 = vmatpush.bf16.msra.mxu1 %v14117_v11  ;;  %v14964_v60 = vld [vmem:[#allocation9 + $0x7e0] sm:$0xf]  ;;  %v3224_v11 = vmax.f32 %v18224_v15, %v3216_v20  ;;  %v14693_v15 = vor.u32 %v17238_v41, %v14692_v33  ;;  %v17202_v17 = vld [vmem:[#allocation9 + $0x4ac] sm:$0xf0]  ;;  %v14949_v34 = vor.u32 %v17302_v21, %v14948_v4 }
 0x3e0   :  { %v17234_v20 = vld [vmem:[#allocation9 + $0x5ac] sm:$0xf0]  ;;  %v14516_v18 = vld [vmem:[#allocation9 + $0x460] sm:$0xf] }
 0x3e1   :  { %7784 = vmatpush.bf16.msra.mxu2 %v14245_v43  ;;  %7759 = vmatpush.bf16.msra.mxu0 %v13973_v35  ;;  %v14965_v43 = vor.u32 %v17306_v61, %v14964_v60  ;;  %v18359_v22 = vpack.c.bf16 %v3224_v11, %v3224_v11  ;;  %v14804_v35 = vld [vmem:[#allocation9 + $0x6a0] sm:$0xf]  ;;  %v17266_v49 = vld [vmem:[#allocation9 + $0x6ac] sm:$0xf0]  ;;  %v14677_v27 = vor.u32 %v17234_v20, %v14676_v19  ;;  %v5997_v61 = vpop.f32.mrf.mxu1  ;;  %v3218_v19 = vmul.f32 0.2, %v18248_v25 }
 0x3e2   :  { %v14805_v31 = vor.u32 %v17266_v49, %v14804_v35  ;;  %v17230_v42 = vld [vmem:[#allocation9 + $0x58c] sm:$0xf0]  ;;  %v14500_v11 = vld [vmem:[#allocation9 + $0x440] sm:$0xf] }
 0x3e3   :  { %7797 = vmatpush.bf16.msra.mxu3 %v14373_v14  ;;  %7772 = vmatpush.bf16.msra.mxu1 %v14101_v23  ;;  %v18357_v14 = vpack.c.bf16 %v3223_v6, %v3223_v6  ;;  %v17298_v23 = vld [vmem:[#allocation9 + $0x7ac] sm:$0xf0]  ;;  %v14661_v52 = vor.u32 %v17230_v42, %v14660_v39  ;;  %v14900_v6 = vld [vmem:[#allocation9 + $0x760] sm:$0xf]  ;;  %v3219_v42 = vmul.f32 0.2, %v18264_v16 }
 0x3e4   :  { %v14933_v40 = vor.u32 %v17298_v23, %v14932_v62  ;;  %v17262_v55 = vld [vmem:[#allocation9 + $0x68c] sm:$0xf0]  ;;  %v14628_v41 = vld [vmem:[#allocation9 + $0x540] sm:$0xf] }
 0x3e5   :  { %7785 = vmatpush.bf16.msra.mxu2 %v14229_v44  ;;  %7760 = vmatpush.bf16.msra.mxu0 %v13957_v5  ;;  %v14549_v44 = vor.u32 %v17202_v17, %v14548_v30  ;;  %v17294_v50 = vld [vmem:[#allocation9 + $0x78c] sm:$0xf0]  ;;  %v5984_v5 = vpop.f32.mrf.mxu0  ;;  %v14789_v53 = vor.u32 %v17262_v55, %v14788_v45  ;;  %v14756_v4 = vld [vmem:[#allocation9 + $0x640] sm:$0xf]  ;;  %v3217_v17 = vmul.f32 0.2, %v18238_v2 }
 0x3e6   :  { %v5985_v60 = vadd.f32 %v5984_v5, %v18345_v13  ;;  %v14917_v10 = vor.u32 %v17294_v50, %v14916_v47  ;;  %v17226_v26 = vld [vmem:[#allocation9 + $0x56c] sm:$0xf0]  ;;  %v14484_v23 = vld [vmem:[#allocation9 + $0x420] sm:$0xf]  ;;  %v3220_v47 = vmul.f32 0.2, %v18274_v54 }
 0x3e7   :  { %7798 = vmatpush.bf16.msra.mxu3 %v14357_v38  ;;  %7773 = vmatpush.bf16.msra.mxu1 %v14085_v56  ;;  %v17198_v38 = vld [vmem:[#allocation9 + $0x48c] sm:$0xf0]  ;;  %v14740_v39 = vld [vmem:[#allocation9 + $0x620] sm:$0xf] }
 0x3e8   :  { %7761 = vmatmul.bf16.vlgmr.msra.gmra.mxu0 %v18353_v24  ;;  %v14533_v63 = vor.u32 %v17198_v38, %v14532_v32  ;;  %v17194_v56 = vld [vmem:[#allocation9 + $0x46c] sm:$0xf0]  ;;  %v14868_v45 = vld [vmem:[#allocation9 + $0x720] sm:$0xf] }
 0x3e9   :  { %7786 = vmatpush.bf16.msra.mxu2 %v14213_v58  ;;  %7805 = vmatpush.bf16.msrb.mxu0 %v14581_v3  ;;  %v14644_v58 = vld [vmem:[#allocation9 + $0x560] sm:$0xf]  ;;  %v17258_v3 = vld [vmem:[#allocation9 + $0x66c] sm:$0xf0]  ;;  %v14517_v51 = vor.u32 %v17194_v56, %v14516_v18 }
 0x3ea   :  { %7774 = vmatmul.bf16.vlgmr.msra.gmra.mxu1 %v18355_v8  ;;  %v14645_v9 = vor.u32 %v17226_v26, %v14644_v58  ;;  %v17222_v0 = vld [vmem:[#allocation9 + $0x54c] sm:$0xf0]  ;;  %v14596_v18 = vld [vmem:[#allocation9 + $0x500] sm:$0xf] }
 0x3eb   :  { %7799 = vmatpush.bf16.msra.mxu3 %v14341_v1  ;;  %7818 = vmatpush.bf16.msrb.mxu1 %v14709_v29  ;;  %v14772_v1 = vld [vmem:[#allocation9 + $0x660] sm:$0xf]  ;;  %v17290_v29 = vld [vmem:[#allocation9 + $0x76c] sm:$0xf0]  ;;  %v14629_v49 = vor.u32 %v17222_v0, %v14628_v41  ;;  %v3225_v0 = vmax.f32 %v18238_v2, %v3217_v17  ;;  %v17172_v2 = vld [vmem:[#allocation9 + $0x3c4] sm:$0xf] }
 0x3ec   :  { %7787 = vmatmul.bf16.vlgmr.msra.gmra.mxu2 %v18357_v14  ;;  %v14773_v33 = vor.u32 %v17258_v3, %v14772_v1  ;;  %v14901_v13 = vor.u32 %v17290_v29, %v14900_v6  ;;  %v17254_v21 = vld [vmem:[#allocation9 + $0x64c] sm:$0xf0]  ;;  %v14724_v58 = vld [vmem:[#allocation9 + $0x600] sm:$0xf]  ;;  %v17080_v6 = vld [vmem:[#allocation9 + $0xe4] sm:$0xf] }
 0x3ed   :  { %7831 = vmatpush.bf16.msrb.mxu2 %v14837_v7  ;;  %7806 = vmatpush.bf16.msrb.mxu0 %v14565_v59  ;;  %v5998_v7 = vadd.f32 %v5997_v61, %v5985_v60  ;;  %v17286_v30 = vld [vmem:[#allocation9 + $0x74c] sm:$0xf0]  ;;  %v5986_v35 = vpop.f32.mrf.mxu0  ;;  %v14757_v62 = vor.u32 %v17254_v21, %v14756_v4  ;;  %v6012_v60 = vpop.f32.mrf.mxu2  ;;  %v14852_v26 = vld [vmem:[#allocation9 + $0x700] sm:$0xf]  ;;  %v14070_v29 = vld [vmem:[#allocation9 + $0xf0] sm:$0xf0]  ;;  %v3226_v4 = vmax.f32 %v18248_v25, %v3218_v19 }
 0x3ee   :  { %7800 = vmatmul.bf16.vlgmr.msra.gmra.mxu3 %v18359_v22  ;;  %v17218_v38 = vld [vmem:[#allocation9 + $0x52c] sm:$0xf0]  ;;  %v14054_v35 = vld [vmem:[#allocation9 + $0xd0] sm:$0xf0]  ;;  %v18376_v17 = vpack.c.bf16 %v3225_v0, %v3225_v0 }
 0x3ef   :  { %7844 = vmatpush.bf16.msrb.mxu3 %v14965_v43  ;;  %7819 = vmatpush.bf16.msrb.mxu1 %v14693_v15  ;;  %v17190_v43 = vld [vmem:[#allocation9 + $0x44c] sm:$0xf0]  ;;  %v6011_v59 = vadd.f32 %v6010_v12, %v5998_v7  ;;  %v6023_v15 = vpop.f32.mrf.mxu3  ;;  %v17112_v7 = vld [vmem:[#allocation9 + $0x1e4] sm:$0xf]  ;;  %v14438_v25 = vld [vmem:[#allocation9 + $0x3d0] sm:$0xf0]  ;;  %v18378_v19 = vpack.c.bf16 %v3226_v4, %v3226_v4 }
 0x3f0   :  { %v17282_v55 = vld [vmem:[#allocation9 + $0x72c] sm:$0xf0]  ;;  %v17176_v12 = vld [vmem:[#allocation9 + $0x3e4] sm:$0xf]  ;;  %v14006_v0 = vld [vmem:[#allocation9 + $0x70] sm:$0xf0] }
 0x3f1   :  { %7832 = vmatpush.bf16.msrb.mxu2 %v14821_v36  ;;  %7807 = vmatpush.bf16.msrb.mxu0 %v14549_v44  ;;  %v14884_v36 = vld [vmem:[#allocation9 + $0x740] sm:$0xf]  ;;  %v18368_v20 = vadd.f32 %v6023_v15, %v6011_v59  ;;  %v17186_v44 = vld [vmem:[#allocation9 + $0x42c] sm:$0xf0]  ;;  %v14869_v61 = vor.u32 %v17282_v55, %v14868_v45  ;;  %v14073_v59 = vor.u32 %v17080_v6, %v14070_v29  ;;  %v17132_v6 = vld [vmem:[#allocation9 + $0x284] sm:$0xf] }
 0x3f2   :  { %v14885_v32 = vor.u32 %v17286_v30, %v14884_v36  ;;  %v14485_v50 = vor.u32 %v17186_v44, %v14484_v23  ;;  %v17182_v5 = vld [vmem:[#allocation9 + $0x40c] sm:$0xf0]  ;;  %v3227_v15 = vmax.f32 %v18264_v16, %v3219_v42  ;;  %v14182_v44 = vld [vmem:[#allocation9 + $0x1d0] sm:$0xf0]  ;;  %v17104_v42 = vld [vmem:[#allocation9 + $0x1a4] sm:$0xf]  ;;  %v14441_v55 = vor.u32 %v17172_v2, %v14438_v25 }
 0x3f3   :  { %7845 = vmatpush.bf16.msrb.mxu3 %v14949_v34  ;;  %7820 = vmatpush.bf16.msrb.mxu1 %v14677_v27  ;;  %v14501_v34 = vor.u32 %v17190_v43, %v14500_v11  ;;  %v14612_v27 = vld [vmem:[#allocation9 + $0x520] sm:$0xf]  ;;  %v17214_v56 = vld [vmem:[#allocation9 + $0x50c] sm:$0xf0]  ;;  %v14326_v11 = vld [vmem:[#allocation9 + $0x2f0] sm:$0xf0] }
 0x3f4   :  { %v17278_v1 = vld [vmem:[#allocation9 + $0x70c] sm:$0xf0]  ;;  %v14597_v43 = vor.u32 %v17214_v56, %v14596_v18  ;;  %v18388_v18 = vld [vmem:[#allocation7] sm:$0xff]  ;;  %v14278_v29 = vld [vmem:[#allocation9 + $0x290] sm:$0xf0] }
 0x3f5   :  { %7833 = vmatpush.bf16.msrb.mxu2 %v14805_v31  ;;  %7808 = vmatpush.bf16.msrb.mxu0 %v14533_v63  ;;  %v5999_v31 = vpop.f32.mrf.mxu1  ;;  %v14468_v63 = vld [vmem:[#allocation9 + $0x400] sm:$0xf]  ;;  %v14853_v21 = vor.u32 %v17278_v1, %v14852_v26  ;;  %v3629_v56 = vperm.slane %v18388_v18, 6  ;;  %v17100_v26 = vld [vmem:[#allocation9 + $0x184] sm:$0xf] }
 0x3f6   :  { %v14310_v31 = vld [vmem:[#allocation9 + $0x2d0] sm:$0xf0]  ;;  %v17096_v4 = vld [vmem:[#allocation9 + $0x164] sm:$0xf] }
 0x3f7   :  { %7846 = vmatpush.bf16.msrb.mxu3 %v14933_v40  ;;  %7821 = vmatpush.bf16.msrb.mxu1 %v14661_v52  ;;  %v17250_v40 = vld [vmem:[#allocation9 + $0x62c] sm:$0xf0]  ;;  %v14613_v52 = vor.u32 %v17218_v38, %v14612_v27  ;;  %v6025_v3 = vpop.f32.mrf.mxu3  ;;  %v17140_v27 = vld [vmem:[#allocation9 + $0x2c4] sm:$0xf]  ;;  %v14118_v25 = vld [vmem:[#allocation9 + $0x150] sm:$0xf0] }
 0x3f8   :  { %v14313_v38 = vor.u32 %v17140_v27, %v14310_v31  ;;  %v14150_v3 = vld [vmem:[#allocation9 + $0x190] sm:$0xf0]  ;;  %v17092_v31 = vld [vmem:[#allocation9 + $0x144] sm:$0xf] }
 0x3f9   :  { %7834 = vmatpush.bf16.msrb.mxu2 %v14789_v53  ;;  %7809 = vmatpush.bf16.msrb.mxu0 %v14517_v51  ;;  %v14741_v53 = vor.u32 %v17250_v40, %v14740_v39  ;;  %v14469_v51 = vor.u32 %v17182_v5, %v14468_v63  ;;  %v17072_v39 = vld [vmem:[#allocation9 + $0xa4] sm:$0xf]  ;;  %v14038_v40 = vld [vmem:[#allocation9 + $0xb0] sm:$0xf0] }
 0x3fa   :  { %v14294_v63 = vld [vmem:[#allocation9 + $0x2b0] sm:$0xf0]  ;;  %v17168_v5 = vld [vmem:[#allocation9 + $0x3a4] sm:$0xf] }
 0x3fb   :  { %7847 = vmatpush.bf16.msrb.mxu3 %v14917_v10  ;;  %7822 = vmatpush.bf16.msrb.mxu1 %v14645_v9  ;;  %v17246_v10 = vld [vmem:[#allocation9 + $0x60c] sm:$0xf0]  ;;  %v14198_v9 = vld [vmem:[#allocation9 + $0x1f0] sm:$0xf0] }
 0x3fc   :  { %v14725_v41 = vor.u32 %v17246_v10, %v14724_v58  ;;  %v14201_v36 = vor.u32 %v17112_v7, %v14198_v9  ;;  %v14022_v10 = vld [vmem:[#allocation9 + $0x90] sm:$0xf0]  ;;  %v17164_v7 = vld [vmem:[#allocation9 + $0x384] sm:$0xf]  ;;  %v6036_v9 = vpop.f32.mrf.mxu0 }
 0x3fd   :  { %7835 = vmatpush.bf16.msrb.mxu2 %v14773_v33  ;;  %7810 = vmatpush.bf16.msrb.mxu0 %v14501_v34  ;;  %v17144_v33 = vld [vmem:[#allocation9 + $0x2e4] sm:$0xf]  ;;  %v13990_v27 = vld [vmem:[#allocation9 + $0x50] sm:$0xf0] }
 0x3fe   :  { %v14329_v30 = vor.u32 %v17144_v33, %v14326_v11  ;;  %v17076_v34 = vld [vmem:[#allocation9 + $0xc4] sm:$0xf]  ;;  %v6037_v11 = vadd.f32 %v6036_v9, %v3629_v56  ;;  %v13974_v56 = vld [vmem:[#allocation9 + $0x30] sm:$0xf0] }
 0x3ff   :  { %7848 = vmatpush.bf16.msrb.mxu3 %v14901_v13  ;;  %7823 = vmatpush.bf16.msrb.mxu1 %v14629_v49  ;;  %v14454_v13 = vld [vmem:[#allocation9 + $0x3f0] sm:$0xf0]  ;;  %v17108_v49 = vld [vmem:[#allocation9 + $0x1c4] sm:$0xf]  ;;  %v14057_v16 = vor.u32 %v17076_v34, %v14054_v35 }
 0x400   :  { %v14457_v23 = vor.u32 %v17176_v12, %v14454_v13  ;;  %v14281_v12 = vor.u32 %v17132_v6, %v14278_v29  ;;  %v17064_v13 = vld [vmem:[#allocation9 + $0x64] sm:$0xf]  ;;  %v14390_v35 = vld [vmem:[#allocation9 + $0x370] sm:$0xf0] }
 0x401   :  { %7836 = vmatpush.bf16.msrb.mxu2 %v14757_v62  ;;  %7811 = vmatpush.bf16.msrb.mxu0 %v14485_v50  ;;  %v3228_v62 = vmax.f32 %v18274_v54, %v3220_v47  ;;  %v14185_v54 = vor.u32 %v17108_v49, %v14182_v44  ;;  %v14166_v47 = vld [vmem:[#allocation9 + $0x1b0] sm:$0xf0]  ;;  %v17136_v50 = vld [vmem:[#allocation9 + $0x2a4] sm:$0xf]  ;;  %v14009_v49 = vor.u32 %v17064_v13, %v14006_v0 }
 0x402   :  { %v14169_v58 = vor.u32 %v17104_v42, %v14166_v47  ;;  %v14297_v60 = vor.u32 %v17136_v50, %v14294_v63  ;;  %v17160_v34 = vld [vmem:[#allocation9 + $0x364] sm:$0xf]  ;;  %v6075_v47 = vpop.f32.mrf.mxu3  ;;  %v14358_v6 = vld [vmem:[#allocation9 + $0x330] sm:$0xf0] }
 0x403   :  { %7849 = vmatpush.bf16.msrb.mxu3 %v14885_v32  ;;  %7824 = vmatpush.bf16.msrb.mxu1 %v14613_v52  ;;  %v18380_v32 = vpack.c.bf16 %v3227_v15, %v3227_v15  ;;  %v18382_v45 = vpack.c.bf16 %v3228_v62, %v3228_v62  ;;  %v14422_v52 = vld [vmem:[#allocation9 + $0x3b0] sm:$0xf0]  ;;  %v17128_v15 = vld [vmem:[#allocation9 + $0x264] sm:$0xf]  ;;  %v14393_v2 = vor.u32 %v17160_v34, %v14390_v35 }
 0x404   :  { %v14425_v1 = vor.u32 %v17168_v5, %v14422_v52  ;;  %v17060_v44 = vld [vmem:[#allocation9 + $0x44] sm:$0xf]  ;;  %v14121_v5 = vor.u32 %v17092_v31, %v14118_v25  ;;  %v14214_v13 = vld [vmem:[#allocation9 + $0x210] sm:$0xf0] }
 0x405   :  { %7837 = vmatpush.bf16.msrb.mxu2 %v14741_v53  ;;  %7812 = vmatpush.bf16.msrb.mxu0 %v14469_v51  ;;  %v14041_v53 = vor.u32 %v17072_v39, %v14038_v40  ;;  %v14406_v51 = vld [vmem:[#allocation9 + $0x390] sm:$0xf0]  ;;  %v17156_v39 = vld [vmem:[#allocation9 + $0x344] sm:$0xf]  ;;  %v13993_v50 = vor.u32 %v17060_v44, %v13990_v27 }
 0x406   :  { %v14374_v40 = vld [vmem:[#allocation9 + $0x350] sm:$0xf0]  ;;  %v17148_v0 = vld [vmem:[#allocation9 + $0x304] sm:$0xf] }
 0x407   :  { %7850 = vmatpush.bf16.msrb.mxu3 %v14869_v61  ;;  %7825 = vmatpush.bf16.msrb.mxu1 %v14597_v43  ;;  %v17068_v61 = vld [vmem:[#allocation9 + $0x84] sm:$0xf]  ;;  %v6049_v43 = vpop.f32.mrf.mxu1  ;;  %v14710_v35 = vld [vmem:[#allocation9 + $0x5f0] sm:$0xf0] }
 0x408   :  { %7813 = vmatmul.bf16.vlgmr.msrb.gmra.mxu0 %v18376_v17  ;;  %v14025_v33 = vor.u32 %v17068_v61, %v14022_v10  ;;  %v14377_v61 = vor.u32 %v17156_v39, %v14374_v40  ;;  %v14102_v10 = vld [vmem:[#allocation9 + $0x130] sm:$0xf0]  ;;  %v17304_v27 = vld [vmem:[#allocation9 + $0x7e4] sm:$0xf] }
 0x409   :  { %7838 = vmatpush.bf16.msrb.mxu2 %v14725_v41  ;;  %7857 = vmatpush.bf16.msra.mxu0 %v14073_v59  ;;  %v14153_v41 = vor.u32 %v17100_v26, %v14150_v3  ;;  %v14134_v59 = vld [vmem:[#allocation9 + $0x170] sm:$0xf0]  ;;  %v17120_v26 = vld [vmem:[#allocation9 + $0x224] sm:$0xf] }
 0x40a   :  { %7826 = vmatmul.bf16.vlgmr.msrb.gmra.mxu1 %v18378_v19  ;;  %v14137_v62 = vor.u32 %v17096_v4, %v14134_v59  ;;  %v17152_v3 = vld [vmem:[#allocation9 + $0x324] sm:$0xf]  ;;  %v14342_v4 = vld [vmem:[#allocation9 + $0x310] sm:$0xf0] }
 0x40b   :  { %7851 = vmatpush.bf16.msrb.mxu3 %v14853_v21  ;;  %7870 = vmatpush.bf16.msra.mxu1 %v14201_v36  ;;  %v14409_v21 = vor.u32 %v17164_v7, %v14406_v51  ;;  %v14262_v36 = vld [vmem:[#allocation9 + $0x270] sm:$0xf0]  ;;  %v17052_v7 = vld [vmem:[#allocation9 + $0x4] sm:$0xf] }
 0x40c   :  { %7839 = vmatmul.bf16.vlgmr.msrb.gmra.mxu2 %v18380_v32  ;;  %v13958_v51 = vld [vmem:[#allocation9 + $0x10] sm:$0xf0]  ;;  %v17208_v59 = vld [vmem:[#allocation9 + $0x4e4] sm:$0xf] }
 0x40d   :  { %7883 = vmatpush.bf16.msra.mxu2 %v14329_v30  ;;  %7858 = vmatpush.bf16.msra.mxu0 %v14057_v16  ;;  %v6050_v30 = vadd.f32 %v6049_v43, %v6037_v11  ;;  %v17124_v16 = vld [vmem:[#allocation9 + $0x244] sm:$0xf]  ;;  %v14086_v43 = vld [vmem:[#allocation9 + $0x110] sm:$0xf0]  ;;  %v13961_v34 = vor.u32 %v17052_v7, %v13958_v51 }
 0x40e   :  { %7852 = vmatmul.bf16.vlgmr.msrb.gmra.mxu3 %v18382_v45  ;;  %v17084_v11 = vld [vmem:[#allocation9 + $0x104] sm:$0xf]  ;;  %v14966_v31 = vld [vmem:[#allocation9 + $0x7f0] sm:$0xf0] }
 0x40f   :  { %7896 = vmatpush.bf16.msra.mxu3 %v14457_v23  ;;  %7871 = vmatpush.bf16.msra.mxu1 %v14185_v54  ;;  %v14265_v23 = vor.u32 %v17128_v15, %v14262_v36  ;;  %v14246_v54 = vld [vmem:[#allocation9 + $0x250] sm:$0xf0]  ;;  %v6051_v63 = vpop.f32.mrf.mxu1  ;;  %v17240_v36 = vld [vmem:[#allocation9 + $0x5e4] sm:$0xf] }
 0x410   :  { %v14249_v52 = vor.u32 %v17124_v16, %v14246_v54  ;;  %v14582_v15 = vld [vmem:[#allocation9 + $0x4f0] sm:$0xf0]  ;;  %v14713_v16 = vor.u32 %v17240_v36, %v14710_v35  ;;  %v17236_v40 = vld [vmem:[#allocation9 + $0x5c4] sm:$0xf] }
 0x411   :  { %7884 = vmatpush.bf16.msra.mxu2 %v14313_v38  ;;  %7859 = vmatpush.bf16.msra.mxu0 %v14041_v53  ;;  %v6062_v38 = vpop.f32.mrf.mxu2  ;;  %v17056_v53 = vld [vmem:[#allocation9 + $0x24] sm:$0xf]  ;;  %v14585_v25 = vor.u32 %v17208_v59, %v14582_v15  ;;  %v14566_v39 = vld [vmem:[#allocation9 + $0x4d0] sm:$0xf0] }
 0x412   :  { %v6063_v42 = vadd.f32 %v6062_v38, %v6050_v30  ;;  %v13977_v29 = vor.u32 %v17056_v53, %v13974_v56  ;;  %v6077_v30 = vpop.f32.mrf.mxu3  ;;  %v17204_v38 = vld [vmem:[#allocation9 + $0x4c4] sm:$0xf]  ;;  %v14934_v7 = vld [vmem:[#allocation9 + $0x7b0] sm:$0xf0] }
 0x413   :  { %7897 = vmatpush.bf16.msra.mxu3 %v14441_v55  ;;  %7872 = vmatpush.bf16.msra.mxu1 %v14169_v58  ;;  %v6038_v55 = vpop.f32.mrf.mxu0  ;;  %v17088_v58 = vld [vmem:[#allocation9 + $0x124] sm:$0xf]  ;;  %v14918_v59 = vld [vmem:[#allocation9 + $0x790] sm:$0xf0] }
 0x414   :  { %v14105_v9 = vor.u32 %v17088_v58, %v14102_v10  ;;  %v14694_v55 = vld [vmem:[#allocation9 + $0x5d0] sm:$0xf0]  ;;  %v17300_v63 = vld [vmem:[#allocation9 + $0x7c4] sm:$0xf] }
 0x415   :  { %7885 = vmatpush.bf16.msra.mxu2 %v14297_v60  ;;  %7860 = vmatpush.bf16.msra.mxu0 %v14025_v33  ;;  %v18391_v60 = vadd.f32 %v6075_v47, %v6063_v42  ;;  %v14969_v42 = vor.u32 %v17304_v27, %v14966_v31  ;;  %v17268_v47 = vld [vmem:[#allocation9 + $0x6c4] sm:$0xf]  ;;  %v14697_v53 = vor.u32 %v17236_v40, %v14694_v55  ;;  %v14646_v31 = vld [vmem:[#allocation9 + $0x570] sm:$0xf0] }
 0x416   :  { %v17200_v58 = vld [vmem:[#allocation9 + $0x4a4] sm:$0xf] }
 0x417   :  { %7898 = vmatpush.bf16.msra.mxu3 %v14425_v1  ;;  %7873 = vmatpush.bf16.msra.mxu1 %v14153_v41  ;;  %v14230_v1 = vld [vmem:[#allocation9 + $0x230] sm:$0xf0]  ;;  %v17116_v41 = vld [vmem:[#allocation9 + $0x204] sm:$0xf] }
 0x418   :  { %v14233_v33 = vor.u32 %v17120_v26, %v14230_v1  ;;  %v14217_v44 = vor.u32 %v17116_v41, %v14214_v13  ;;  %v17232_v10 = vld [vmem:[#allocation9 + $0x5a4] sm:$0xf]  ;;  %v14678_v1 = vld [vmem:[#allocation9 + $0x5b0] sm:$0xf0] }
 0x419   :  { %7886 = vmatpush.bf16.msra.mxu2 %v14281_v12  ;;  %7861 = vmatpush.bf16.msra.mxu0 %v14009_v49  ;;  %v14361_v12 = vor.u32 %v17152_v3, %v14358_v6  ;;  %v17272_v49 = vld [vmem:[#allocation9 + $0x6e4] sm:$0xf]  ;;  %v14806_v6 = vld [vmem:[#allocation9 + $0x6b0] sm:$0xf0] }
 0x41a   :  { %v17264_v3 = vld [vmem:[#allocation9 + $0x6a4] sm:$0xf]  ;;  %v14662_v13 = vld [vmem:[#allocation9 + $0x590] sm:$0xf0] }
 0x41b   :  { %7899 = vmatpush.bf16.msra.mxu3 %v14409_v21  ;;  %7874 = vmatpush.bf16.msra.mxu1 %v14137_v62  ;;  %v6064_v21 = vpop.f32.mrf.mxu2  ;;  %v14838_v62 = vld [vmem:[#allocation9 + $0x6f0] sm:$0xf0]  ;;  %v17228_v41 = vld [vmem:[#allocation9 + $0x584] sm:$0xf]  ;;  %v6088_v15 = vpop.f32.mrf.mxu0 }
 0x41c   :  { %v14841_v54 = vor.u32 %v17272_v49, %v14838_v62  ;;  %v17292_v21 = vld [vmem:[#allocation9 + $0x784] sm:$0xf]  ;;  %v6089_v30 = vadd.f32 %v6088_v15, %v18391_v60  ;;  %v14665_v35 = vor.u32 %v17228_v41, %v14662_v13 }
 0x41d   :  { %7887 = vmatpush.bf16.msra.mxu2 %v14265_v23  ;;  %7862 = vmatpush.bf16.msra.mxu0 %v13993_v50  ;;  %v14089_v23 = vor.u32 %v17084_v11, %v14086_v43  ;;  %v14822_v50 = vld [vmem:[#allocation9 + $0x6d0] sm:$0xf0]  ;;  %v17196_v11 = vld [vmem:[#allocation9 + $0x484] sm:$0xf]  ;;  %v14921_v27 = vor.u32 %v17292_v21, %v14918_v59 }
 0x41e   :  { %v14825_v56 = vor.u32 %v17268_v47, %v14822_v50  ;;  %v14534_v43 = vld [vmem:[#allocation9 + $0x490] sm:$0xf0]  ;;  %v17192_v62 = vld [vmem:[#allocation9 + $0x464] sm:$0xf] }
 0x41f   :  { %7900 = vmatpush.bf16.msra.mxu3 %v14393_v2  ;;  %7875 = vmatpush.bf16.msra.mxu1 %v14121_v5  ;;  %v14345_v2 = vor.u32 %v17148_v0, %v14342_v4  ;;  %v14950_v5 = vld [vmem:[#allocation9 + $0x7d0] sm:$0xf0]  ;;  %v17260_v0 = vld [vmem:[#allocation9 + $0x684] sm:$0xf]  ;;  %v14537_v36 = vor.u32 %v17196_v11, %v14534_v43 }
 0x420   :  { %v14953_v26 = vor.u32 %v17300_v63, %v14950_v5  ;;  %v14790_v4 = vld [vmem:[#allocation9 + $0x690] sm:$0xf0]  ;;  %v17188_v55 = vld [vmem:[#allocation9 + $0x444] sm:$0xf] }
 0x421   :  { %7888 = vmatpush.bf16.msra.mxu2 %v14249_v52  ;;  %7863 = vmatpush.bf16.msra.mxu0 %v13977_v29  ;;  %v14569_v52 = vor.u32 %v17204_v38, %v14566_v39  ;;  %v17296_v29 = vld [vmem:[#allocation9 + $0x7a4] sm:$0xf]  ;;  %v14793_v49 = vor.u32 %v17260_v0, %v14790_v4  ;;  %v14902_v38 = vld [vmem:[#allocation9 + $0x770] sm:$0xf0]  ;;  %v3630_v39 = vperm.slane %v18388_v18, 7 }
 0x422   :  { %v14502_v47 = vld [vmem:[#allocation9 + $0x450] sm:$0xf0]  ;;  %v17220_v50 = vld [vmem:[#allocation9 + $0x544] sm:$0xf] }
 0x423   :  { %7901 = vmatpush.bf16.msra.mxu3 %v14377_v61  ;;  %7876 = vmatpush.bf16.msra.mxu1 %v14105_v9  ;;  %v14550_v61 = vld [vmem:[#allocation9 + $0x4b0] sm:$0xf0]  ;;  %v14681_v9 = vor.u32 %v17232_v10, %v14678_v1  ;;  %v6090_v18 = vpop.f32.mrf.mxu0  ;;  %v14505_v1 = vor.u32 %v17188_v55, %v14502_v47  ;;  %v17248_v41 = vld [vmem:[#allocation9 + $0x624] sm:$0xf]  ;;  %v14460_v47 = vld [vmem:[#allocation9 + $0x3e8] sm:$0xf] }
 0x424   :  { %v14553_v51 = vor.u32 %v17200_v58, %v14550_v61  ;;  %v14630_v5 = vld [vmem:[#allocation9 + $0x550] sm:$0xf0]  ;;  %v17284_v58 = vld [vmem:[#allocation9 + $0x744] sm:$0xf]  ;;  %v14316_v18 = vld [vmem:[#allocation9 + $0x2c8] sm:$0xf] }
 0x425   :  { %7889 = vmatpush.bf16.msra.mxu2 %v14233_v33  ;;  %7864 = vmatpush.bf16.msra.mxu0 %v13961_v34  ;;  %v14809_v33 = vor.u32 %v17264_v3, %v14806_v6  ;;  %v6101_v34 = vpop.f32.mrf.mxu1  ;;  %v14886_v61 = vld [vmem:[#allocation9 + $0x750] sm:$0xf0]  ;;  %v14633_v6 = vor.u32 %v17220_v50, %v14630_v5  ;;  %v17280_v13 = vld [vmem:[#allocation9 + $0x724] sm:$0xf]  ;;  %v17179_v50 = vld [vmem:[#allocation9 + $0x3f4] sm:$0xf0] }
 0x426   :  { %v14889_v11 = vor.u32 %v17284_v58, %v14886_v61  ;;  %v14614_v43 = vld [vmem:[#allocation9 + $0x530] sm:$0xf0]  ;;  %v17180_v21 = vld [vmem:[#allocation9 + $0x404] sm:$0xf]  ;;  %v17079_v58 = vld [vmem:[#allocation9 + $0xd4] sm:$0xf0] }
 0x427   :  { %7902 = vmatpush.bf16.msra.mxu3 %v14361_v12  ;;  %7877 = vmatpush.bf16.msra.mxu1 %v14089_v23  ;;  %v14937_v12 = vor.u32 %v17296_v29, %v14934_v7  ;;  %v14518_v23 = vld [vmem:[#allocation9 + $0x470] sm:$0xf0]  ;;  %v17184_v7 = vld [vmem:[#allocation9 + $0x424] sm:$0xf]  ;;  %v14188_v61 = vld [vmem:[#allocation9 + $0x1c8] sm:$0xf] }
 0x428   :  { %7865 = vmatmul.bf16.vlgmr.msra.gmra.mxu0 %v18353_v24  ;;  %v14521_v60 = vor.u32 %v17192_v62, %v14518_v23  ;;  %v14870_v0 = vld [vmem:[#allocation9 + $0x730] sm:$0xf0]  ;;  %v17276_v23 = vld [vmem:[#allocation9 + $0x704] sm:$0xf] }
 0x429   :  { %7890 = vmatpush.bf16.msra.mxu2 %v14217_v44  ;;  %7909 = vmatpush.bf16.msrb.mxu0 %v14585_v25  ;;  %v17224_v44 = vld [vmem:[#allocation9 + $0x564] sm:$0xf]  ;;  %v14774_v25 = vld [vmem:[#allocation9 + $0x670] sm:$0xf0] }
 0x42a   :  { %7878 = vmatmul.bf16.vlgmr.msra.gmra.mxu1 %v18355_v8  ;;  %v14649_v40 = vor.u32 %v17224_v44, %v14646_v31  ;;  %v14470_v59 = vld [vmem:[#allocation9 + $0x410] sm:$0xf0]  ;;  %v14076_v31 = vld [vmem:[#allocation9 + $0xe8] sm:$0xf] }
 0x42b   :  { %7903 = vmatpush.bf16.msra.mxu3 %v14345_v2  ;;  %7922 = vmatpush.bf16.msrb.mxu1 %v14713_v16  ;;  %v17256_v2 = vld [vmem:[#allocation9 + $0x664] sm:$0xf]  ;;  %v18398_v16 = vadd.f32 %v6101_v34, %v6089_v30  ;;  %v14598_v34 = vld [vmem:[#allocation9 + $0x510] sm:$0xf0] }
 0x42c   :  { %7891 = vmatmul.bf16.vlgmr.msra.gmra.mxu2 %v18357_v14  ;;  %v17212_v30 = vld [vmem:[#allocation9 + $0x504] sm:$0xf]  ;;  %v14726_v62 = vld [vmem:[#allocation9 + $0x610] sm:$0xf0] }
 0x42d   :  { %7935 = vmatpush.bf16.msrb.mxu2 %v14841_v54  ;;  %7910 = vmatpush.bf16.msrb.mxu0 %v14569_v52  ;;  %v17288_v54 = vld [vmem:[#allocation9 + $0x764] sm:$0xf]  ;;  %v6103_v3 = vpop.f32.mrf.mxu1  ;;  %v14854_v44 = vld [vmem:[#allocation9 + $0x710] sm:$0xf0] }
 0x42e   :  { %7904 = vmatmul.bf16.vlgmr.msra.gmra.mxu3 %v18359_v22  ;;  %v14905_v63 = vor.u32 %v17288_v54, %v14902_v38  ;;  %v17252_v52 = vld [vmem:[#allocation9 + $0x644] sm:$0xf]  ;;  %v14473_v38 = vor.u32 %v17180_v21, %v14470_v59  ;;  %v14444_v3 = vld [vmem:[#allocation9 + $0x3c8] sm:$0xf]  ;;  %v17171_v21 = vld [vmem:[#allocation9 + $0x3b4] sm:$0xf0] }
 0x42f   :  { %7948 = vmatpush.bf16.msrb.mxu3 %v14969_v42  ;;  %7923 = vmatpush.bf16.msrb.mxu1 %v14697_v53  ;;  %v14777_v42 = vor.u32 %v17256_v2, %v14774_v25  ;;  %v14758_v53 = vld [vmem:[#allocation9 + $0x650] sm:$0xf0]  ;;  %v17083_v2 = vld [vmem:[#allocation9 + $0xf4] sm:$0xf0]  ;;  %v14204_v25 = vld [vmem:[#allocation9 + $0x1e8] sm:$0xf] }
 0x430   :  { %v14761_v29 = vor.u32 %v17252_v52, %v14758_v53  ;;  %v14077_v5 = vor.u32 %v17083_v2, %v14076_v31  ;;  %v17167_v31 = vld [vmem:[#allocation9 + $0x394] sm:$0xf0] }
 0x431   :  { %7936 = vmatpush.bf16.msrb.mxu2 %v14825_v56  ;;  %7911 = vmatpush.bf16.msrb.mxu0 %v14553_v51  ;;  %v6114_v56 = vpop.f32.mrf.mxu2  ;;  %v14486_v51 = vld [vmem:[#allocation9 + $0x430] sm:$0xf0] }
 0x432   :  { %v6115_v10 = vadd.f32 %v6114_v56, %v3630_v39  ;;  %v14489_v4 = vor.u32 %v17184_v7, %v14486_v51  ;;  %v17115_v39 = vld [vmem:[#allocation9 + $0x1f4] sm:$0xf0]  ;;  %v14060_v56 = vld [vmem:[#allocation9 + $0xc8] sm:$0xf] }
 0x433   :  { %7949 = vmatpush.bf16.msrb.mxu3 %v14953_v26  ;;  %7924 = vmatpush.bf16.msrb.mxu1 %v14681_v9  ;;  %v6127_v26 = vpop.f32.mrf.mxu3  ;;  %v17216_v9 = vld [vmem:[#allocation9 + $0x524] sm:$0xf]  ;;  %v14205_v52 = vor.u32 %v17115_v39, %v14204_v25  ;;  %v14012_v39 = vld [vmem:[#allocation9 + $0x68] sm:$0xf] }
 0x434   :  { %v14617_v15 = vor.u32 %v17216_v9, %v14614_v43  ;;  %v14044_v9 = vld [vmem:[#allocation9 + $0xa8] sm:$0xf] }
 0x435   :  { %7937 = vmatpush.bf16.msrb.mxu2 %v14809_v33  ;;  %7912 = vmatpush.bf16.msrb.mxu0 %v14537_v36  ;;  %v18401_v33 = vadd.f32 %v6127_v26, %v6115_v10  ;;  %v14461_v10 = vor.u32 %v17179_v50, %v14460_v47  ;;  %v17111_v26 = vld [vmem:[#allocation9 + $0x1d4] sm:$0xf0]  ;;  %v14172_v43 = vld [vmem:[#allocation9 + $0x1a8] sm:$0xf] }
 0x436   :  { %v14189_v7 = vor.u32 %v17111_v26, %v14188_v61  ;;  %v17099_v50 = vld [vmem:[#allocation9 + $0x174] sm:$0xf0]  ;;  %v13996_v26 = vld [vmem:[#allocation9 + $0x48] sm:$0xf] }
 0x437   :  { %7950 = vmatpush.bf16.msrb.mxu3 %v14937_v12  ;;  %7925 = vmatpush.bf16.msrb.mxu1 %v14665_v35  ;;  %v14742_v12 = vld [vmem:[#allocation9 + $0x630] sm:$0xf0]  ;;  %v17244_v35 = vld [vmem:[#allocation9 + $0x604] sm:$0xf] }
 0x438   :  { %v14745_v36 = vor.u32 %v17248_v41, %v14742_v12  ;;  %v14729_v55 = vor.u32 %v17244_v35, %v14726_v62  ;;  %v17107_v12 = vld [vmem:[#allocation9 + $0x1b4] sm:$0xf0]  ;;  %v14156_v35 = vld [vmem:[#allocation9 + $0x188] sm:$0xf] }
 0x439   :  { %7938 = vmatpush.bf16.msrb.mxu2 %v14793_v49  ;;  %7913 = vmatpush.bf16.msrb.mxu0 %v14521_v60  ;;  %v14873_v49 = vor.u32 %v17280_v13, %v14870_v0  ;;  %v14332_v60 = vld [vmem:[#allocation9 + $0x2e8] sm:$0xf]  ;;  %v17139_v0 = vld [vmem:[#allocation9 + $0x2b4] sm:$0xf0] }
 0x43a   :  { %v14300_v13 = vld [vmem:[#allocation9 + $0x2a8] sm:$0xf]  ;;  %v17103_v62 = vld [vmem:[#allocation9 + $0x194] sm:$0xf0] }
 0x43b   :  { %7951 = vmatpush.bf16.msrb.mxu3 %v14921_v27  ;;  %7926 = vmatpush.bf16.msrb.mxu1 %v14649_v40  ;;  %v6116_v27 = vpop.f32.mrf.mxu2  ;;  %v6129_v54 = vpop.f32.mrf.mxu3  ;;  %v17147_v40 = vld [vmem:[#allocation9 + $0x2f4] sm:$0xf0] }
 0x43c   :  { %v14333_v53 = vor.u32 %v17147_v40, %v14332_v60  ;;  %v14412_v27 = vld [vmem:[#allocation9 + $0x388] sm:$0xf]  ;;  %v14157_v54 = vor.u32 %v17103_v62, %v14156_v35  ;;  %v17067_v60 = vld [vmem:[#allocation9 + $0x74] sm:$0xf0] }
 0x43d   :  { %7939 = vmatpush.bf16.msrb.mxu2 %v14777_v42  ;;  %7914 = vmatpush.bf16.msrb.mxu0 %v14505_v1  ;;  %v14601_v42 = vor.u32 %v17212_v30, %v14598_v34  ;;  %v17143_v1 = vld [vmem:[#allocation9 + $0x2d4] sm:$0xf0]  ;;  %v14028_v30 = vld [vmem:[#allocation9 + $0x88] sm:$0xf]  ;;  %v14413_v47 = vor.u32 %v17167_v31, %v14412_v27 }
 0x43e   :  { %v14317_v51 = vor.u32 %v17143_v1, %v14316_v18  ;;  %v17071_v34 = vld [vmem:[#allocation9 + $0x94] sm:$0xf0]  ;;  %v14140_v40 = vld [vmem:[#allocation9 + $0x168] sm:$0xf] }
 0x43f   :  { %7952 = vmatpush.bf16.msrb.mxu3 %v14905_v63  ;;  %7927 = vmatpush.bf16.msrb.mxu1 %v14633_v6  ;;  %v14857_v63 = vor.u32 %v17276_v23, %v14854_v44  ;;  %v17175_v6 = vld [vmem:[#allocation9 + $0x3d4] sm:$0xf0]  ;;  %v14284_v23 = vld [vmem:[#allocation9 + $0x288] sm:$0xf]  ;;  %v14029_v2 = vor.u32 %v17071_v34, %v14028_v30  ;;  %v14141_v61 = vor.u32 %v17099_v50, %v14140_v40 }
 0x440   :  { %v14445_v41 = vor.u32 %v17175_v6, %v14444_v3  ;;  %v17135_v44 = vld [vmem:[#allocation9 + $0x294] sm:$0xf0]  ;;  %v14124_v1 = vld [vmem:[#allocation9 + $0x148] sm:$0xf] }
 0x441   :  { %7940 = vmatpush.bf16.msrb.mxu2 %v14761_v29  ;;  %7915 = vmatpush.bf16.msrb.mxu0 %v14489_v4  ;;  %v14061_v29 = vor.u32 %v17079_v58, %v14060_v56  ;;  %v14428_v4 = vld [vmem:[#allocation9 + $0x3a8] sm:$0xf]  ;;  %v14013_v58 = vor.u32 %v17067_v60, %v14012_v39  ;;  %v17063_v18 = vld [vmem:[#allocation9 + $0x54] sm:$0xf0] }
 0x442   :  { %v17095_v6 = vld [vmem:[#allocation9 + $0x154] sm:$0xf0]  ;;  %v14236_v35 = vld [vmem:[#allocation9 + $0x228] sm:$0xf] }
 0x443   :  { %7953 = vmatpush.bf16.msrb.mxu3 %v14889_v11  ;;  %7928 = vmatpush.bf16.msrb.mxu1 %v14617_v15  ;;  %v17075_v11 = vld [vmem:[#allocation9 + $0xb4] sm:$0xf0]  ;;  %v14173_v15 = vor.u32 %v17107_v12, %v14172_v43  ;;  %v14364_v62 = vld [vmem:[#allocation9 + $0x328] sm:$0xf] }
 0x444   :  { %v14045_v59 = vor.u32 %v17075_v11, %v14044_v9  ;;  %v14380_v11 = vld [vmem:[#allocation9 + $0x348] sm:$0xf]  ;;  %v17159_v43 = vld [vmem:[#allocation9 + $0x354] sm:$0xf0] }
 0x445   :  { %7941 = vmatpush.bf16.msrb.mxu2 %v14745_v36  ;;  %7916 = vmatpush.bf16.msrb.mxu0 %v14473_v38  ;;  %v14301_v36 = vor.u32 %v17139_v0, %v14300_v13  ;;  %v6140_v25 = vpop.f32.mrf.mxu0  ;;  %v14285_v38 = vor.u32 %v17135_v44, %v14284_v23  ;;  %v14125_v0 = vor.u32 %v17095_v6, %v14124_v1  ;;  %v17091_v34 = vld [vmem:[#allocation9 + $0x134] sm:$0xf0]  ;;  %v13964_v27 = vld [vmem:[#allocation9 + $0x8] sm:$0xf] }
 0x446   :  { %v14381_v30 = vor.u32 %v17159_v43, %v14380_v11  ;;  %v17155_v23 = vld [vmem:[#allocation9 + $0x334] sm:$0xf0]  ;;  %v14220_v39 = vld [vmem:[#allocation9 + $0x208] sm:$0xf] }
 0x447   :  { %7954 = vmatpush.bf16.msrb.mxu3 %v14873_v49  ;;  %7929 = vmatpush.bf16.msrb.mxu1 %v14601_v42  ;;  %v14429_v49 = vor.u32 %v17171_v21, %v14428_v4  ;;  %v6141_v42 = vadd.f32 %v6140_v25, %v18401_v33  ;;  %v13980_v21 = vld [vmem:[#allocation9 + $0x28] sm:$0xf]  ;;  %v17055_v31 = vld [vmem:[#allocation9 + $0x14] sm:$0xf0]  ;;  %v14365_v40 = vor.u32 %v17155_v23, %v14364_v62 }
 0x448   :  { %7917 = vmatmul.bf16.vlgmr.msrb.gmra.mxu0 %v18376_v17  ;;  %v17307_v1 = vld [vmem:[#allocation9 + $0x7f4] sm:$0xf0]  ;;  %v14812_v23 = vld [vmem:[#allocation9 + $0x6a8] sm:$0xf] }
 0x449   :  { %7942 = vmatpush.bf16.msrb.mxu2 %v14729_v55  ;;  %7961 = vmatpush.bf16.msra.mxu0 %v14077_v5  ;;  %v6153_v55 = vpop.f32.mrf.mxu1  ;;  %v17131_v5 = vld [vmem:[#allocation9 + $0x274] sm:$0xf0] }
 0x44a   :  { %7930 = vmatmul.bf16.vlgmr.msrb.gmra.mxu1 %v18378_v19  ;;  %v6154_v56 = vadd.f32 %v6153_v55, %v6141_v42  ;;  %v17119_v42 = vld [vmem:[#allocation9 + $0x214] sm:$0xf0]  ;;  %v14348_v55 = vld [vmem:[#allocation9 + $0x308] sm:$0xf] }
 0x44b   :  { %7955 = vmatpush.bf16.msrb.mxu3 %v14857_v63  ;;  %7974 = vmatpush.bf16.msra.mxu1 %v14205_v52  ;;  %v14268_v63 = vld [vmem:[#allocation9 + $0x268] sm:$0xf]  ;;  %v17239_v43 = vld [vmem:[#allocation9 + $0x5d4] sm:$0xf0] }
 0x44c   :  { %7943 = vmatmul.bf16.vlgmr.msrb.gmra.mxu2 %v18380_v32  ;;  %v14396_v52 = vld [vmem:[#allocation9 + $0x368] sm:$0xf]  ;;  %v17235_v62 = vld [vmem:[#allocation9 + $0x5b4] sm:$0xf0] }
 0x44d   :  { %7987 = vmatpush.bf16.msra.mxu2 %v14333_v53  ;;  %7962 = vmatpush.bf16.msra.mxu0 %v14061_v29  ;;  %v17163_v53 = vld [vmem:[#allocation9 + $0x374] sm:$0xf0]  ;;  %v14252_v29 = vld [vmem:[#allocation9 + $0x248] sm:$0xf]  ;;  %v6142_v13 = vpop.f32.mrf.mxu0 }
 0x44e   :  { %7956 = vmatmul.bf16.vlgmr.msrb.gmra.mxu3 %v18382_v45  ;;  %v14397_v33 = vor.u32 %v17163_v53, %v14396_v52  ;;  %v14716_v52 = vld [vmem:[#allocation9 + $0x5e8] sm:$0xf]  ;;  %v13965_v53 = vor.u32 %v17055_v31, %v13964_v27  ;;  %v17271_v13 = vld [vmem:[#allocation9 + $0x6d4] sm:$0xf0] }
 0x44f   :  { %8000 = vmatpush.bf16.msra.mxu3 %v14461_v10  ;;  %7975 = vmatpush.bf16.msra.mxu1 %v14189_v7  ;;  %v14269_v10 = vor.u32 %v17131_v5, %v14268_v63  ;;  %v6166_v3 = vpop.f32.mrf.mxu2  ;;  %v17127_v7 = vld [vmem:[#allocation9 + $0x254] sm:$0xf0]  ;;  %v14588_v63 = vld [vmem:[#allocation9 + $0x4e8] sm:$0xf] }
 0x450   :  { %v14253_v4 = vor.u32 %v17127_v7, %v14252_v29  ;;  %v17211_v5 = vld [vmem:[#allocation9 + $0x4f4] sm:$0xf0]  ;;  %v14572_v7 = vld [vmem:[#allocation9 + $0x4c8] sm:$0xf] }
 0x451   :  { %7988 = vmatpush.bf16.msra.mxu2 %v14317_v51  ;;  %7963 = vmatpush.bf16.msra.mxu0 %v14045_v59  ;;  %v6167_v51 = vadd.f32 %v6166_v3, %v6154_v56  ;;  %v6179_v9 = vpop.f32.mrf.mxu3  ;;  %v17059_v59 = vld [vmem:[#allocation9 + $0x34] sm:$0xf0]  ;;  %v14940_v27 = vld [vmem:[#allocation9 + $0x7a8] sm:$0xf] }
 0x452   :  { %v13981_v44 = vor.u32 %v17059_v59, %v13980_v21  ;;  %v17243_v56 = vld [vmem:[#allocation9 + $0x5f4] sm:$0xf0]  ;;  %v14556_v59 = vld [vmem:[#allocation9 + $0x4a8] sm:$0xf] }
 0x453   :  { %8001 = vmatpush.bf16.msra.mxu3 %v14445_v41  ;;  %7976 = vmatpush.bf16.msra.mxu1 %v14173_v15  ;;  %v13997_v41 = vor.u32 %v17063_v18, %v13996_v26  ;;  %v18408_v12 = vadd.f32 %v6179_v9, %v6167_v51  ;;  %v14108_v15 = vld [vmem:[#allocation9 + $0x128] sm:$0xf]  ;;  %v14221_v26 = vor.u32 %v17119_v42, %v14220_v39  ;;  %v17207_v51 = vld [vmem:[#allocation9 + $0x4d4] sm:$0xf0] }
 0x454   :  { %v14972_v18 = vld [vmem:[#allocation9 + $0x7e8] sm:$0xf]  ;;  %v14717_v6 = vor.u32 %v17243_v56, %v14716_v52  ;;  %v14573_v21 = vor.u32 %v17207_v51, %v14572_v7  ;;  %v17299_v31 = vld [vmem:[#allocation9 + $0x7b4] sm:$0xf0] }
 0x455   :  { %7989 = vmatpush.bf16.msra.mxu2 %v14301_v36  ;;  %7964 = vmatpush.bf16.msra.mxu0 %v14029_v2  ;;  %v6155_v36 = vpop.f32.mrf.mxu1  ;;  %v14109_v2 = vor.u32 %v17091_v34, %v14108_v15  ;;  %v14700_v9 = vld [vmem:[#allocation9 + $0x5c8] sm:$0xf]  ;;  %v14973_v11 = vor.u32 %v17307_v1, %v14972_v18  ;;  %v14941_v42 = vor.u32 %v17299_v31, %v14940_v27  ;;  %v17295_v52 = vld [vmem:[#allocation9 + $0x794] sm:$0xf0] }
 0x456   :  { %v14701_v15 = vor.u32 %v17239_v43, %v14700_v9  ;;  %v14684_v34 = vld [vmem:[#allocation9 + $0x5a8] sm:$0xf]  ;;  %v17195_v18 = vld [vmem:[#allocation9 + $0x474] sm:$0xf0] }
 0x457   :  { %8002 = vmatpush.bf16.msra.mxu3 %v14429_v49  ;;  %7977 = vmatpush.bf16.msra.mxu1 %v14157_v54  ;;  %v17123_v49 = vld [vmem:[#allocation9 + $0x234] sm:$0xf0]  ;;  %v14092_v54 = vld [vmem:[#allocation9 + $0x108] sm:$0xf]  ;;  %v6168_v60 = vpop.f32.mrf.mxu2 }
 0x458   :  { %v14237_v25 = vor.u32 %v17123_v49, %v14236_v35  ;;  %v18410_v35 = vld [vmem:[#allocation12] sm:$0xf]  ;;  %v14540_v39 = vld [vmem:[#allocation9 + $0x488] sm:$0xf]  ;;  %v17199_v60 = vld [vmem:[#allocation9 + $0x494] sm:$0xf0] }
 0x459   :  { %7990 = vmatpush.bf16.msra.mxu2 %v14285_v38  ;;  %7965 = vmatpush.bf16.msra.mxu0 %v14013_v58  ;;  %v17087_v38 = vld [vmem:[#allocation9 + $0x114] sm:$0xf0]  ;;  %v6181_v50 = vpop.f32.mrf.mxu3  ;;  %v14844_v58 = vld [vmem:[#allocation9 + $0x6e8] sm:$0xf] }
 0x45a   :  { %v17263_v50 = vld [vmem:[#allocation9 + $0x694] sm:$0xf0]  ;;  %v14652_v1 = vld [vmem:[#allocation9 + $0x568] sm:$0xf] }
 0x45b   :  { %8003 = vmatpush.bf16.msra.mxu3 %v14413_v47  ;;  %7978 = vmatpush.bf16.msra.mxu1 %v14141_v61  ;;  %v17151_v47 = vld [vmem:[#allocation9 + $0x314] sm:$0xf0]  ;;  %v14908_v51 = vld [vmem:[#allocation9 + $0x768] sm:$0xf] }
 0x45c   :  { %v17275_v61 = vld [vmem:[#allocation9 + $0x6f4] sm:$0xf0]  ;;  %v14349_v3 = vor.u32 %v17151_v47, %v14348_v55  ;;  %v14796_v47 = vld [vmem:[#allocation9 + $0x688] sm:$0xf] }
 0x45d   :  { %7991 = vmatpush.bf16.msra.mxu2 %v14269_v10  ;;  %7966 = vmatpush.bf16.msra.mxu0 %v13997_v41  ;;  %v14093_v10 = vor.u32 %v17087_v38, %v14092_v54  ;;  %v14845_v29 = vor.u32 %v17275_v61, %v14844_v58  ;;  %v14828_v41 = vld [vmem:[#allocation9 + $0x6c8] sm:$0xf]  ;;  %v14685_v54 = vor.u32 %v17235_v62, %v14684_v34  ;;  %v17231_v55 = vld [vmem:[#allocation9 + $0x594] sm:$0xf0] }
 0x45e   :  { %v14829_v36 = vor.u32 %v17271_v13, %v14828_v41  ;;  %v14541_v58 = vor.u32 %v17199_v60, %v14540_v39  ;;  %v17259_v7 = vld [vmem:[#allocation9 + $0x674] sm:$0xf0]  ;;  %v14508_v13 = vld [vmem:[#allocation9 + $0x448] sm:$0xf] }
 0x45f   :  { %8004 = vmatpush.bf16.msra.mxu3 %v14397_v33  ;;  %7979 = vmatpush.bf16.msra.mxu1 %v14125_v0  ;;  %v14589_v33 = vor.u32 %v17211_v5, %v14588_v63  ;;  %v14956_v0 = vld [vmem:[#allocation9 + $0x7c8] sm:$0xf]  ;;  %v17291_v9 = vld [vmem:[#allocation9 + $0x774] sm:$0xf0] }
 0x460   :  { %v14924_v5 = vld [vmem:[#allocation9 + $0x788] sm:$0xf]  ;;  %v17187_v39 = vld [vmem:[#allocation9 + $0x434] sm:$0xf0] }
 0x461   :  { %7992 = vmatpush.bf16.msra.mxu2 %v14253_v4  ;;  %7967 = vmatpush.bf16.msra.mxu0 %v13981_v44  ;;  %v17303_v4 = vld [vmem:[#allocation9 + $0x7d4] sm:$0xf0]  ;;  %v14620_v60 = vld [vmem:[#allocation9 + $0x528] sm:$0xf] }
 0x462   :  { %v14957_v49 = vor.u32 %v17303_v4, %v14956_v0  ;;  %v17267_v44 = vld [vmem:[#allocation9 + $0x6b4] sm:$0xf0]  ;;  %v14636_v4 = vld [vmem:[#allocation9 + $0x548] sm:$0xf] }
 0x463   :  { %8005 = vmatpush.bf16.msra.mxu3 %v14381_v30  ;;  %7980 = vmatpush.bf16.msra.mxu1 %v14109_v2  ;;  %v17203_v30 = vld [vmem:[#allocation9 + $0x4b4] sm:$0xf0]  ;;  %v14813_v38 = vor.u32 %v17267_v44, %v14812_v23  ;;  %v14892_v23 = vld [vmem:[#allocation9 + $0x748] sm:$0xf] }
 0x464   :  { %v14557_v2 = vor.u32 %v17203_v30, %v14556_v59  ;;  %v17191_v0 = vld [vmem:[#allocation9 + $0x454] sm:$0xf0] }
 0x465   :  { %7993 = vmatpush.bf16.msra.mxu2 %v14237_v25  ;;  %7968 = vmatpush.bf16.msra.mxu0 %v13965_v53  ;;  %v6465_v25 = vperm.slane %v18410_v35, 0  ;;  %v7762_v63 = vpop.f32.mrf.mxu0  ;;  %v17255_v30 = vld [vmem:[#allocation9 + $0x654] sm:$0xf0]  ;;  %v14509_v31 = vor.u32 %v17191_v0, %v14508_v13  ;;  %v14334_v13 = vld [vmem:[#allocation9 + $0x2f8] sm:$0xf0] }
 0x466   :  { %v17287_v44 = vld [vmem:[#allocation9 + $0x754] sm:$0xf0] }
 0x467   :  { %8006 = vmatpush.bf16.msra.mxu3 %v14365_v40  ;;  %7981 = vmatpush.bf16.msra.mxu1 %v14093_v10  ;;  %v14668_v40 = vld [vmem:[#allocation9 + $0x588] sm:$0xf]  ;;  %v7763_v53 = vadd.f32 %v7762_v63, %v6465_v25  ;;  %v7775_v56 = vpop.f32.mrf.mxu1  ;;  %v14797_v10 = vor.u32 %v17263_v50, %v14796_v47  ;;  %v17251_v47 = vld [vmem:[#allocation9 + $0x634] sm:$0xf0] }
 0x468   :  { %7969 = vmatmul.bf16.vlgmr.msra.gmra.mxu0 %v18353_v24  ;;  %v14669_v61 = vor.u32 %v17231_v55, %v14668_v40  ;;  %v14893_v40 = vor.u32 %v17287_v44, %v14892_v23  ;;  %v14748_v55 = vld [vmem:[#allocation9 + $0x628] sm:$0xf]  ;;  %v17283_v63 = vld [vmem:[#allocation9 + $0x734] sm:$0xf0]  ;;  %v17109_v23 = vld [vmem:[#allocation9 + $0x1cc] sm:$0xf] }
 0x469   :  { %7994 = vmatpush.bf16.msra.mxu2 %v14221_v26  ;;  %8013 = vmatpush.bf16.msrb.mxu0 %v14589_v33  ;;  %v14524_v26 = vld [vmem:[#allocation9 + $0x468] sm:$0xf]  ;;  %v14925_v33 = vor.u32 %v17295_v52, %v14924_v5 }
 0x46a   :  { %7982 = vmatmul.bf16.vlgmr.msra.gmra.mxu1 %v18355_v8  ;;  %v14876_v50 = vld [vmem:[#allocation9 + $0x728] sm:$0xf] }
 0x46b   :  { %8007 = vmatpush.bf16.msra.mxu3 %v14349_v3  ;;  %8026 = vmatpush.bf16.msrb.mxu1 %v14717_v6  ;;  %v7776_v3 = vadd.f32 %v7775_v56, %v7763_v53  ;;  %v17227_v6 = vld [vmem:[#allocation9 + $0x574] sm:$0xf0]  ;;  %v14476_v52 = vld [vmem:[#allocation9 + $0x408] sm:$0xf] }
 0x46c   :  { %7995 = vmatmul.bf16.vlgmr.msra.gmra.mxu2 %v18357_v14  ;;  %v14653_v43 = vor.u32 %v17227_v6, %v14652_v1  ;;  %v17183_v53 = vld [vmem:[#allocation9 + $0x414] sm:$0xf0] }
 0x46d   :  { %8039 = vmatpush.bf16.msrb.mxu2 %v14845_v29  ;;  %8014 = vmatpush.bf16.msrb.mxu0 %v14573_v21  ;;  %v14780_v29 = vld [vmem:[#allocation9 + $0x668] sm:$0xf]  ;;  %v14909_v21 = vor.u32 %v17291_v9, %v14908_v51  ;;  %v7764_v62 = vpop.f32.mrf.mxu0  ;;  %v17279_v6 = vld [vmem:[#allocation9 + $0x714] sm:$0xf0]  ;;  %v14078_v51 = vld [vmem:[#allocation9 + $0xf8] sm:$0xf0] }
 0x46e   :  { %8008 = vmatmul.bf16.vlgmr.msra.gmra.mxu3 %v18359_v22  ;;  %v14781_v41 = vor.u32 %v17259_v7, %v14780_v29  ;;  %v17081_v7 = vld [vmem:[#allocation9 + $0xec] sm:$0xf]  ;;  %v14062_v62 = vld [vmem:[#allocation9 + $0xd8] sm:$0xf0] }
 0x46f   :  { %8052 = vmatpush.bf16.msrb.mxu3 %v14973_v11  ;;  %8027 = vmatpush.bf16.msrb.mxu1 %v14701_v15  ;;  %v14525_v11 = vor.u32 %v17195_v18, %v14524_v26  ;;  %v7788_v59 = vpop.f32.mrf.mxu2  ;;  %v17223_v15 = vld [vmem:[#allocation9 + $0x554] sm:$0xf0]  ;;  %v7777_v27 = vpop.f32.mrf.mxu1  ;;  %v14732_v26 = vld [vmem:[#allocation9 + $0x608] sm:$0xf]  ;;  %v14877_v18 = vor.u32 %v17283_v63, %v14876_v50  ;;  %v17113_v9 = vld [vmem:[#allocation9 + $0x1ec] sm:$0xf] }
 0x470   :  { %v7789_v34 = vadd.f32 %v7788_v59, %v7776_v3  ;;  %v14637_v25 = vor.u32 %v17223_v15, %v14636_v4  ;;  %v17247_v3 = vld [vmem:[#allocation9 + $0x614] sm:$0xf0]  ;;  %v14462_v59 = vld [vmem:[#allocation9 + $0x3f8] sm:$0xf0] }
 0x471   :  { %8040 = vmatpush.bf16.msrb.mxu2 %v14829_v36  ;;  %8015 = vmatpush.bf16.msrb.mxu0 %v14557_v2  ;;  %v14764_v36 = vld [vmem:[#allocation9 + $0x648] sm:$0xf]  ;;  %v14733_v4 = vor.u32 %v17247_v3, %v14732_v26  ;;  %v14190_v27 = vld [vmem:[#allocation9 + $0x1d8] sm:$0xf0]  ;;  %v17069_v26 = vld [vmem:[#allocation9 + $0x8c] sm:$0xf] }
 0x472   :  { %v14174_v63 = vld [vmem:[#allocation9 + $0x1b8] sm:$0xf0] }
 0x473   :  { %8053 = vmatpush.bf16.msrb.mxu3 %v14957_v49  ;;  %8028 = vmatpush.bf16.msrb.mxu1 %v14685_v54  ;;  %v7801_v49 = vpop.f32.mrf.mxu3  ;;  %v14765_v54 = vor.u32 %v17255_v30, %v14764_v36  ;;  %v14081_v36 = vor.u32 %v17081_v7, %v14078_v51  ;;  %v17165_v51 = vld [vmem:[#allocation9 + $0x38c] sm:$0xf] }
 0x474   :  { %v18417_v2 = vadd.f32 %v7801_v49, %v7789_v34  ;;  %v17077_v49 = vld [vmem:[#allocation9 + $0xcc] sm:$0xf] }
 0x475   :  { %8041 = vmatpush.bf16.msrb.mxu2 %v14813_v38  ;;  %8016 = vmatpush.bf16.msrb.mxu0 %v14541_v58  ;;  %v14492_v38 = vld [vmem:[#allocation9 + $0x428] sm:$0xf]  ;;  %v14749_v58 = vor.u32 %v17251_v47, %v14748_v55  ;;  %v14046_v55 = vld [vmem:[#allocation9 + $0xb8] sm:$0xf0]  ;;  %v17105_v47 = vld [vmem:[#allocation9 + $0x1ac] sm:$0xf] }
 0x476   :  { %v14493_v5 = vor.u32 %v17187_v39, %v14492_v38  ;;  %v14446_v38 = vld [vmem:[#allocation9 + $0x3d8] sm:$0xf0]  ;;  %v14065_v39 = vor.u32 %v17077_v49, %v14062_v62  ;;  %v17161_v62 = vld [vmem:[#allocation9 + $0x36c] sm:$0xf] }
 0x477   :  { %8054 = vmatpush.bf16.msrb.mxu3 %v14941_v42  ;;  %8029 = vmatpush.bf16.msrb.mxu1 %v14669_v61  ;;  %v17219_v42 = vld [vmem:[#allocation9 + $0x534] sm:$0xf0]  ;;  %v14604_v61 = vld [vmem:[#allocation9 + $0x508] sm:$0xf]  ;;  %v7790_v1 = vpop.f32.mrf.mxu2  ;;  %v14270_v49 = vld [vmem:[#allocation9 + $0x278] sm:$0xf0] }
 0x478   :  { %v14621_v56 = vor.u32 %v17219_v42, %v14620_v60  ;;  %v14193_v60 = vor.u32 %v17109_v23, %v14190_v27  ;;  %v17073_v42 = vld [vmem:[#allocation9 + $0xac] sm:$0xf]  ;;  %v14398_v23 = vld [vmem:[#allocation9 + $0x378] sm:$0xf0] }
 0x479   :  { %8042 = vmatpush.bf16.msrb.mxu2 %v14797_v10  ;;  %8017 = vmatpush.bf16.msrb.mxu0 %v14525_v11  ;;  %v17215_v10 = vld [vmem:[#allocation9 + $0x514] sm:$0xf0]  ;;  %v14477_v11 = vor.u32 %v17183_v53, %v14476_v52  ;;  %v14302_v52 = vld [vmem:[#allocation9 + $0x2b8] sm:$0xf0]  ;;  %v17169_v53 = vld [vmem:[#allocation9 + $0x3ac] sm:$0xf] }
 0x47a   :  { %v14605_v0 = vor.u32 %v17215_v10, %v14604_v61  ;;  %v14177_v61 = vor.u32 %v17105_v47, %v14174_v63  ;;  %v17101_v1 = vld [vmem:[#allocation9 + $0x18c] sm:$0xf] }
 0x47b   :  { %8055 = vmatpush.bf16.msrb.mxu3 %v14925_v33  ;;  %8030 = vmatpush.bf16.msrb.mxu1 %v14653_v43  ;;  %v14860_v33 = vld [vmem:[#allocation9 + $0x708] sm:$0xf]  ;;  %v7803_v29 = vpop.f32.mrf.mxu3  ;;  %v14206_v43 = vld [vmem:[#allocation9 + $0x1f8] sm:$0xf0]  ;;  %v17157_v63 = vld [vmem:[#allocation9 + $0x34c] sm:$0xf] }
 0x47c   :  { %v14861_v15 = vor.u32 %v17279_v6, %v14860_v33  ;;  %v14209_v30 = vor.u32 %v17113_v9, %v14206_v43  ;;  %v14158_v33 = vld [vmem:[#allocation9 + $0x198] sm:$0xf0]  ;;  %v17133_v6 = vld [vmem:[#allocation9 + $0x28c] sm:$0xf] }
 0x47d   :  { %8043 = vmatpush.bf16.msrb.mxu2 %v14781_v41  ;;  %8018 = vmatpush.bf16.msrb.mxu0 %v14509_v31  ;;  %v17145_v41 = vld [vmem:[#allocation9 + $0x2ec] sm:$0xf]  ;;  %v14286_v29 = vld [vmem:[#allocation9 + $0x298] sm:$0xf0] }
 0x47e   :  { %v14337_v34 = vor.u32 %v17145_v41, %v14334_v13  ;;  %v17141_v31 = vld [vmem:[#allocation9 + $0x2cc] sm:$0xf]  ;;  %v14414_v9 = vld [vmem:[#allocation9 + $0x398] sm:$0xf0]  ;;  %v14161_v13 = vor.u32 %v17101_v1, %v14158_v33 }
 0x47f   :  { %8056 = vmatpush.bf16.msrb.mxu3 %v14909_v21  ;;  %8031 = vmatpush.bf16.msrb.mxu1 %v14637_v25  ;;  %v17177_v21 = vld [vmem:[#allocation9 + $0x3ec] sm:$0xf]  ;;  %v14318_v25 = vld [vmem:[#allocation9 + $0x2d8] sm:$0xf0] }
 0x480   :  { %v14465_v44 = vor.u32 %v17177_v21, %v14462_v59  ;;  %v14014_v21 = vld [vmem:[#allocation9 + $0x78] sm:$0xf0]  ;;  %v17097_v59 = vld [vmem:[#allocation9 + $0x16c] sm:$0xf] }
 0x481   :  { %8044 = vmatpush.bf16.msrb.mxu2 %v14765_v54  ;;  %8019 = vmatpush.bf16.msrb.mxu0 %v14493_v5  ;;  %v17173_v54 = vld [vmem:[#allocation9 + $0x3cc] sm:$0xf] }
 0x482   :  { %v14449_v50 = vor.u32 %v17173_v54, %v14446_v38  ;;  %v17137_v5 = vld [vmem:[#allocation9 + $0x2ac] sm:$0xf]  ;;  %v14401_v38 = vor.u32 %v17161_v62, %v14398_v23  ;;  %v14590_v62 = vld [vmem:[#allocation9 + $0x4f8] sm:$0xf0] }
 0x483   :  { %8057 = vmatpush.bf16.msrb.mxu3 %v14893_v40  ;;  %8032 = vmatpush.bf16.msrb.mxu1 %v14621_v56  ;;  %v14321_v40 = vor.u32 %v17141_v31, %v14318_v25  ;;  %v14430_v56 = vld [vmem:[#allocation9 + $0x3b8] sm:$0xf0]  ;;  %v14305_v10 = vor.u32 %v17137_v5, %v14302_v52  ;;  %v17061_v31 = vld [vmem:[#allocation9 + $0x4c] sm:$0xf] }
 0x484   :  { %v14433_v3 = vor.u32 %v17169_v53, %v14430_v56  ;;  %v13998_v25 = vld [vmem:[#allocation9 + $0x58] sm:$0xf0]  ;;  %v17093_v54 = vld [vmem:[#allocation9 + $0x14c] sm:$0xf] }
 0x485   :  { %8045 = vmatpush.bf16.msrb.mxu2 %v14749_v58  ;;  %8020 = vmatpush.bf16.msrb.mxu0 %v14477_v11  ;;  %v14049_v58 = vor.u32 %v17073_v42, %v14046_v55  ;;  %v7814_v7 = vpop.f32.mrf.mxu0  ;;  %v14254_v42 = vld [vmem:[#allocation9 + $0x258] sm:$0xf0]  ;;  %v14001_v53 = vor.u32 %v17061_v31, %v13998_v25  ;;  %v17121_v33 = vld [vmem:[#allocation9 + $0x22c] sm:$0xf] }
 0x486   :  { %v7815_v11 = vadd.f32 %v7814_v7, %v18417_v2  ;;  %v14382_v5 = vld [vmem:[#allocation9 + $0x358] sm:$0xf0]  ;;  %v17241_v23 = vld [vmem:[#allocation9 + $0x5ec] sm:$0xf] }
 0x487   :  { %8058 = vmatpush.bf16.msrb.mxu3 %v14877_v18  ;;  %8033 = vmatpush.bf16.msrb.mxu1 %v14605_v0  ;;  %v14030_v18 = vld [vmem:[#allocation9 + $0x98] sm:$0xf0]  ;;  %v7827_v43 = vpop.f32.mrf.mxu1  ;;  %v14289_v0 = vor.u32 %v17133_v6, %v14286_v29  ;;  %v14385_v1 = vor.u32 %v17157_v63, %v14382_v5  ;;  %v17153_v29 = vld [vmem:[#allocation9 + $0x32c] sm:$0xf] }
 0x488   :  { %8021 = vmatmul.bf16.vlgmr.msrb.gmra.mxu0 %v18376_v17  ;;  %v14033_v41 = vor.u32 %v17069_v26, %v14030_v18  ;;  %v13982_v26 = vld [vmem:[#allocation9 + $0x38] sm:$0xf0]  ;;  %v17089_v18 = vld [vmem:[#allocation9 + $0x12c] sm:$0xf] }
 0x489   :  { %8046 = vmatpush.bf16.msrb.mxu2 %v14733_v4  ;;  %8065 = vmatpush.bf16.msra.mxu0 %v14081_v36  ;;  %v17065_v4 = vld [vmem:[#allocation9 + $0x6c] sm:$0xf]  ;;  %v14417_v36 = vor.u32 %v17165_v51, %v14414_v9  ;;  %v14238_v6 = vld [vmem:[#allocation9 + $0x238] sm:$0xf0] }
 0x48a   :  { %8034 = vmatmul.bf16.vlgmr.msrb.gmra.mxu1 %v18378_v19  ;;  %v14366_v7 = vld [vmem:[#allocation9 + $0x338] sm:$0xf0]  ;;  %v17053_v9 = vld [vmem:[#allocation9 + $0xc] sm:$0xf] }
 0x48b   :  { %8059 = vmatpush.bf16.msrb.mxu3 %v14861_v15  ;;  %8078 = vmatpush.bf16.msra.mxu1 %v14209_v30  ;;  %v7828_v15 = vadd.f32 %v7827_v43, %v7815_v11  ;;  %v14142_v30 = vld [vmem:[#allocation9 + $0x178] sm:$0xf0]  ;;  %v17237_v63 = vld [vmem:[#allocation9 + $0x5cc] sm:$0xf] }
 0x48c   :  { %8047 = vmatmul.bf16.vlgmr.msrb.gmra.mxu2 %v18380_v32  ;;  %v14145_v2 = vor.u32 %v17097_v59, %v14142_v30  ;;  %v13966_v11 = vld [vmem:[#allocation9 + $0x18] sm:$0xf0] }
 0x48d   :  { %8091 = vmatpush.bf16.msra.mxu2 %v14337_v34  ;;  %8066 = vmatpush.bf16.msra.mxu0 %v14065_v39  ;;  %v17129_v34 = vld [vmem:[#allocation9 + $0x26c] sm:$0xf]  ;;  %v14350_v30 = vld [vmem:[#allocation9 + $0x318] sm:$0xf0] }
 0x48e   :  { %8060 = vmatmul.bf16.vlgmr.msrb.gmra.mxu3 %v18382_v45  ;;  %v14273_v27 = vor.u32 %v17129_v34, %v14270_v49  ;;  %v17209_v49 = vld [vmem:[#allocation9 + $0x4ec] sm:$0xf]  ;;  %v14846_v31 = vld [vmem:[#allocation9 + $0x6f8] sm:$0xf0] }
 0x48f   :  { %8104 = vmatpush.bf16.msra.mxu3 %v14465_v44  ;;  %8079 = vmatpush.bf16.msra.mxu1 %v14193_v60  ;;  %v14017_v44 = vor.u32 %v17065_v4, %v14014_v21  ;;  %v7840_v39 = vpop.f32.mrf.mxu2  ;;  %v14126_v60 = vld [vmem:[#allocation9 + $0x158] sm:$0xf0]  ;;  %v7829_v52 = vpop.f32.mrf.mxu1  ;;  %v17117_v4 = vld [vmem:[#allocation9 + $0x20c] sm:$0xf]  ;;  %v14369_v21 = vor.u32 %v17153_v29, %v14366_v7 }
 0x490   :  { %v7841_v55 = vadd.f32 %v7840_v39, %v7828_v15  ;;  %v14222_v15 = vld [vmem:[#allocation9 + $0x218] sm:$0xf0] }
 0x491   :  { %8092 = vmatpush.bf16.msra.mxu2 %v14321_v40  ;;  %8067 = vmatpush.bf16.msra.mxu0 %v14049_v58  ;;  %v17125_v40 = vld [vmem:[#allocation9 + $0x24c] sm:$0xf]  ;;  %v7853_v47 = vpop.f32.mrf.mxu3  ;;  %v14129_v58 = vor.u32 %v17093_v54, %v14126_v60  ;;  %v14225_v54 = vor.u32 %v17117_v4, %v14222_v15  ;;  %v14974_v39 = vld [vmem:[#allocation9 + $0x7f8] sm:$0xf0] }
 0x492   :  { %v18424_v56 = vadd.f32 %v7853_v47, %v7841_v55  ;;  %v17205_v47 = vld [vmem:[#allocation9 + $0x4cc] sm:$0xf]  ;;  %v14702_v52 = vld [vmem:[#allocation9 + $0x5d8] sm:$0xf0] }
 0x493   :  { %8105 = vmatpush.bf16.msra.mxu3 %v14449_v50  ;;  %8080 = vmatpush.bf16.msra.mxu1 %v14177_v61  ;;  %v7816_v50 = vpop.f32.mrf.mxu0  ;;  %v14257_v61 = vor.u32 %v17125_v40, %v14254_v42  ;;  %v14593_v40 = vor.u32 %v17209_v49, %v14590_v62  ;;  %v14686_v7 = vld [vmem:[#allocation9 + $0x5b8] sm:$0xf0]  ;;  %v17197_v4 = vld [vmem:[#allocation9 + $0x48c] sm:$0xf] }
 0x494   :  { %v14574_v50 = vld [vmem:[#allocation9 + $0x4d8] sm:$0xf0] }
 0x495   :  { %8093 = vmatpush.bf16.msra.mxu2 %v14305_v10  ;;  %8068 = vmatpush.bf16.msra.mxu0 %v14033_v41  ;;  %v17057_v10 = vld [vmem:[#allocation9 + $0x2c] sm:$0xf]  ;;  %v14241_v41 = vor.u32 %v17121_v33, %v14238_v6  ;;  %v14558_v33 = vld [vmem:[#allocation9 + $0x4b8] sm:$0xf0] }
 0x496   :  { %v13985_v51 = vor.u32 %v17057_v10, %v13982_v26  ;;  %v14958_v10 = vld [vmem:[#allocation9 + $0x7d8] sm:$0xf0]  ;;  %v14577_v26 = vor.u32 %v17205_v47, %v14574_v50  ;;  %v17233_v6 = vld [vmem:[#allocation9 + $0x5ac] sm:$0xf] }
 0x497   :  { %8106 = vmatpush.bf16.msra.mxu3 %v14433_v3  ;;  %8081 = vmatpush.bf16.msra.mxu1 %v14161_v13  ;;  %v14110_v3 = vld [vmem:[#allocation9 + $0x138] sm:$0xf0]  ;;  %v17085_v13 = vld [vmem:[#allocation9 + $0x10c] sm:$0xf]  ;;  %v7842_v59 = vpop.f32.mrf.mxu2 }
 0x498   :  { %v14113_v43 = vor.u32 %v17089_v18, %v14110_v3  ;;  %v14705_v18 = vor.u32 %v17237_v63, %v14702_v52  ;;  %v17201_v3 = vld [vmem:[#allocation9 + $0x4ac] sm:$0xf]  ;;  %v14926_v49 = vld [vmem:[#allocation9 + $0x798] sm:$0xf0] }
 0x499   :  { %8094 = vmatpush.bf16.msra.mxu2 %v14289_v0  ;;  %8069 = vmatpush.bf16.msra.mxu0 %v14017_v44  ;;  %v14094_v0 = vld [vmem:[#allocation9 + $0x118] sm:$0xf0]  ;;  %v7855_v34 = vpop.f32.mrf.mxu3  ;;  %v13969_v44 = vor.u32 %v17053_v9, %v13966_v11  ;;  %v17297_v11 = vld [vmem:[#allocation9 + $0x7ac] sm:$0xf] }
 0x49a   :  { %v14097_v25 = vor.u32 %v17085_v13, %v14094_v0  ;;  %v14814_v9 = vld [vmem:[#allocation9 + $0x6b8] sm:$0xf0]  ;;  %v6466_v13 = vperm.slane %v18410_v35, 1  ;;  %v14689_v0 = vor.u32 %v17233_v6, %v14686_v7  ;;  %v17229_v59 = vld [vmem:[#allocation9 + $0x58c] sm:$0xf] }
 0x49b   :  { %8107 = vmatpush.bf16.msra.mxu3 %v14417_v36  ;;  %8082 = vmatpush.bf16.msra.mxu1 %v14145_v2  ;;  %v17149_v36 = vld [vmem:[#allocation9 + $0x30c] sm:$0xf]  ;;  %v14718_v2 = vld [vmem:[#allocation9 + $0x5f8] sm:$0xf0] }
 0x49c   :  { %v14353_v60 = vor.u32 %v17149_v36, %v14350_v30  ;;  %v14721_v42 = vor.u32 %v17241_v23, %v14718_v2  ;;  %v17261_v36 = vld [vmem:[#allocation9 + $0x68c] sm:$0xf]  ;;  %v14894_v6 = vld [vmem:[#allocation9 + $0x758] sm:$0xf0] }
 0x49d   :  { %8095 = vmatpush.bf16.msra.mxu2 %v14273_v27  ;;  %8070 = vmatpush.bf16.msra.mxu0 %v14001_v53  ;;  %v17273_v27 = vld [vmem:[#allocation9 + $0x6ec] sm:$0xf] }
 0x49e   :  { %v14849_v55 = vor.u32 %v17273_v27, %v14846_v31  ;;  %v17269_v53 = vld [vmem:[#allocation9 + $0x6cc] sm:$0xf]  ;;  %v14526_v27 = vld [vmem:[#allocation9 + $0x478] sm:$0xf0] }
 0x49f   :  { %8108 = vmatpush.bf16.msra.mxu3 %v14401_v38  ;;  %8083 = vmatpush.bf16.msra.mxu1 %v14129_v58  ;;  %v17305_v38 = vld [vmem:[#allocation9 + $0x7ec] sm:$0xf]  ;;  %v14830_v58 = vld [vmem:[#allocation9 + $0x6d8] sm:$0xf0] }
 0x4a0   :  { %v14977_v5 = vor.u32 %v17305_v38, %v14974_v39  ;;  %v17293_v34 = vld [vmem:[#allocation9 + $0x78c] sm:$0xf]  ;;  %v14654_v38 = vld [vmem:[#allocation9 + $0x578] sm:$0xf0] }
 0x4a1   :  { %8096 = vmatpush.bf16.msra.mxu2 %v14257_v61  ;;  %8071 = vmatpush.bf16.msra.mxu0 %v13985_v51  ;;  %v17301_v61 = vld [vmem:[#allocation9 + $0x7cc] sm:$0xf] }
 0x4a2   :  { %v14961_v29 = vor.u32 %v17301_v61, %v14958_v10  ;;  %v17265_v51 = vld [vmem:[#allocation9 + $0x6ac] sm:$0xf]  ;;  %v14638_v61 = vld [vmem:[#allocation9 + $0x558] sm:$0xf0] }
 0x4a3   :  { %8109 = vmatpush.bf16.msra.mxu3 %v14385_v1  ;;  %8084 = vmatpush.bf16.msra.mxu1 %v14113_v43  ;;  %v14833_v1 = vor.u32 %v17269_v53, %v14830_v58  ;;  %v14942_v43 = vld [vmem:[#allocation9 + $0x7b8] sm:$0xf0]  ;;  %v17193_v2 = vld [vmem:[#allocation9 + $0x46c] sm:$0xf] }
 0x4a4   :  { %v14945_v15 = vor.u32 %v17297_v11, %v14942_v43  ;;  %v17225_v31 = vld [vmem:[#allocation9 + $0x56c] sm:$0xf] }
 0x4a5   :  { %8097 = vmatpush.bf16.msra.mxu2 %v14241_v41  ;;  %8072 = vmatpush.bf16.msra.mxu0 %v13969_v44  ;;  %v14561_v41 = vor.u32 %v17201_v3, %v14558_v33  ;;  %v7866_v30 = vpop.f32.mrf.mxu0  ;;  %v17257_v39 = vld [vmem:[#allocation9 + $0x66c] sm:$0xf]  ;;  %v14657_v47 = vor.u32 %v17225_v31, %v14654_v38  ;;  %v15220_v38 = vld [vmem:[#allocation10 + $0x1e0] sm:$0xf] }
 0x4a6   :  { %v17189_v63 = vld [vmem:[#allocation9 + $0x44c] sm:$0xf] }
 0x4a7   :  { %8110 = vmatpush.bf16.msra.mxu3 %v14369_v21  ;;  %8085 = vmatpush.bf16.msra.mxu1 %v14097_v25  ;;  %v14542_v21 = vld [vmem:[#allocation9 + $0x498] sm:$0xf0]  ;;  %v7879_v62 = vpop.f32.mrf.mxu1  ;;  %v17221_v52 = vld [vmem:[#allocation9 + $0x54c] sm:$0xf] }
 0x4a8   :  { %8073 = vmatmul.bf16.vlgmr.msra.gmra.mxu0 %v18353_v24  ;;  %v14817_v24 = vor.u32 %v17265_v51, %v14814_v9  ;;  %v14545_v23 = vor.u32 %v17197_v4, %v14542_v21  ;;  %v17253_v10 = vld [vmem:[#allocation9 + $0x64c] sm:$0xf]  ;;  %v14641_v9 = vor.u32 %v17221_v52, %v14638_v61  ;;  %v14750_v21 = vld [vmem:[#allocation9 + $0x638] sm:$0xf0]  ;;  %v15076_v61 = vld [vmem:[#allocation10 + $0xc0] sm:$0xf] }
 0x4a9   :  { %8098 = vmatpush.bf16.msra.mxu2 %v14225_v54  ;;  %8117 = vmatpush.bf16.msrb.mxu0 %v14593_v40  ;;  %v14929_v54 = vor.u32 %v17293_v34, %v14926_v49  ;;  %v17289_v40 = vld [vmem:[#allocation9 + $0x76c] sm:$0xf] }
 0x4aa   :  { %8086 = vmatmul.bf16.vlgmr.msra.gmra.mxu1 %v18355_v8  ;;  %v14670_v8 = vld [vmem:[#allocation9 + $0x598] sm:$0xf0]  ;;  %v17285_v33 = vld [vmem:[#allocation9 + $0x74c] sm:$0xf] }
 0x4ab   :  { %8111 = vmatpush.bf16.msra.mxu3 %v14353_v60  ;;  %8130 = vmatpush.bf16.msrb.mxu1 %v14721_v42  ;;  %v14673_v35 = vor.u32 %v17229_v59, %v14670_v8  ;;  %v14782_v60 = vld [vmem:[#allocation9 + $0x678] sm:$0xf0]  ;;  %v17185_v43 = vld [vmem:[#allocation9 + $0x42c] sm:$0xf] }
 0x4ac   :  { %8099 = vmatmul.bf16.vlgmr.msra.gmra.mxu2 %v18357_v14  ;;  %v14798_v14 = vld [vmem:[#allocation9 + $0x698] sm:$0xf0]  ;;  %v14785_v50 = vor.u32 %v17257_v39, %v14782_v60  ;;  %v17249_v4 = vld [vmem:[#allocation9 + $0x62c] sm:$0xf]  ;;  %v17370_v60 = vld [vmem:[#allocation10 + $0x1ec] sm:$0xf0] }
 0x4ad   :  { %8143 = vmatpush.bf16.msrb.mxu2 %v14849_v55  ;;  %8118 = vmatpush.bf16.msrb.mxu0 %v14577_v26  ;;  %v14801_v44 = vor.u32 %v17261_v36, %v14798_v14  ;;  %v14910_v42 = vld [vmem:[#allocation9 + $0x778] sm:$0xf0]  ;;  %v14529_v55 = vor.u32 %v17193_v2, %v14526_v27  ;;  %v7868_v3 = vpop.f32.mrf.mxu0  ;;  %v17281_v59 = vld [vmem:[#allocation9 + $0x72c] sm:$0xf]  ;;  %v14753_v34 = vor.u32 %v17249_v4, %v14750_v21  ;;  %v15316_v4 = vld [vmem:[#allocation10 + $0x2a0] sm:$0xf] }
 0x4ae   :  { %8112 = vmatmul.bf16.vlgmr.msra.gmra.mxu3 %v18359_v22  ;;  %v7867_v22 = vadd.f32 %v7866_v30, %v6466_v13  ;;  %v14913_v53 = vor.u32 %v17289_v40, %v14910_v42  ;;  %v14766_v26 = vld [vmem:[#allocation9 + $0x658] sm:$0xf0]  ;;  %v17217_v13 = vld [vmem:[#allocation9 + $0x52c] sm:$0xf]  ;;  %v15348_v40 = vld [vmem:[#allocation10 + $0x2e0] sm:$0xf] }
 0x4af   :  { %8156 = vmatpush.bf16.msrb.mxu3 %v14977_v5  ;;  %8131 = vmatpush.bf16.msrb.mxu1 %v14705_v18  ;;  %v14510_v5 = vld [vmem:[#allocation9 + $0x458] sm:$0xf0]  ;;  %v7892_v58 = vpop.f32.mrf.mxu2  ;;  %v14769_v11 = vor.u32 %v17253_v10, %v14766_v26  ;;  %v17181_v36 = vld [vmem:[#allocation9 + $0x40c] sm:$0xf]  ;;  %v17402_v42 = vld [vmem:[#allocation10 + $0x2ec] sm:$0xf0] }
 0x4b0   :  { %v7880_v25 = vadd.f32 %v7879_v62, %v7867_v22  ;;  %v14513_v7 = vor.u32 %v17189_v63, %v14510_v5  ;;  %v14478_v14 = vld [vmem:[#allocation9 + $0x418] sm:$0xf0]  ;;  %v17213_v49 = vld [vmem:[#allocation9 + $0x50c] sm:$0xf]  ;;  %v17434_v63 = vld [vmem:[#allocation10 + $0x3ec] sm:$0xf0] }
 0x4b1   :  { %8144 = vmatpush.bf16.msrb.mxu2 %v14833_v1  ;;  %8119 = vmatpush.bf16.msrb.mxu0 %v14561_v41  ;;  %v7905_v1 = vpop.f32.mrf.mxu3  ;;  %v14494_v41 = vld [vmem:[#allocation9 + $0x438] sm:$0xf0]  ;;  %v17245_v62 = vld [vmem:[#allocation9 + $0x60c] sm:$0xf]  ;;  %v14481_v39 = vor.u32 %v17181_v36, %v14478_v14  ;;  %v17334_v10 = vld [vmem:[#allocation10 + $0xcc] sm:$0xf0] }
 0x4b2   :  { %v7893_v18 = vadd.f32 %v7892_v58, %v7880_v25  ;;  %v14497_v8 = vor.u32 %v17185_v43, %v14494_v41  ;;  %v14606_v22 = vld [vmem:[#allocation9 + $0x518] sm:$0xf0]  ;;  %v17277_v2 = vld [vmem:[#allocation9 + $0x70c] sm:$0xf]  ;;  %v15092_v25 = vld [vmem:[#allocation10 + $0xe0] sm:$0xf]  ;;  %v15349_v58 = vor.u32 %v17402_v42, %v15348_v40 }
 0x4b3   :  { %8157 = vmatpush.bf16.msrb.mxu3 %v14961_v29  ;;  %8132 = vmatpush.bf16.msrb.mxu1 %v14689_v0  ;;  %v7881_v29 = vpop.f32.mrf.mxu1  ;;  %v14897_v0 = vor.u32 %v17285_v33, %v14894_v6  ;;  %v14862_v27 = vld [vmem:[#allocation9 + $0x718] sm:$0xf0]  ;;  %v15204_v26 = vld [vmem:[#allocation10 + $0x1c0] sm:$0xf]  ;;  %v17398_v33 = vld [vmem:[#allocation10 + $0x2cc] sm:$0xf0] }
 0x4b4   :  { %v18431_v51 = vadd.f32 %v7905_v1, %v7893_v18  ;;  %v14865_v5 = vor.u32 %v17277_v2, %v14862_v27  ;;  %v17366_v1 = vld [vmem:[#allocation10 + $0x1cc] sm:$0xf0]  ;;  %v15332_v3 = vld [vmem:[#allocation10 + $0x2c0] sm:$0xf] }
 0x4b5   :  { %8145 = vmatpush.bf16.msrb.mxu2 %v14817_v24  ;;  %8120 = vmatpush.bf16.msrb.mxu0 %v14545_v23  ;;  %v14622_v24 = vld [vmem:[#allocation9 + $0x538] sm:$0xf0]  ;;  %v15460_v6 = vld [vmem:[#allocation10 + $0x3c0] sm:$0xf]  ;;  %v17430_v29 = vld [vmem:[#allocation10 + $0x3cc] sm:$0xf0] }
 0x4b6   :  { %v14625_v30 = vor.u32 %v17217_v13, %v14622_v24  ;;  %v15060_v43 = vld [vmem:[#allocation10 + $0xa0] sm:$0xf]  ;;  %v17330_v41 = vld [vmem:[#allocation10 + $0xac] sm:$0xf0] }
 0x4b7   :  { %8158 = vmatpush.bf16.msrb.mxu3 %v14945_v15  ;;  %8133 = vmatpush.bf16.msrb.mxu1 %v14673_v35  ;;  %v14878_v15 = vld [vmem:[#allocation9 + $0x738] sm:$0xf0]  ;;  %v7894_v35 = vpop.f32.mrf.mxu2  ;;  %v15188_v13 = vld [vmem:[#allocation10 + $0x1a0] sm:$0xf]  ;;  %v17362_v24 = vld [vmem:[#allocation10 + $0x1ac] sm:$0xf0] }
 0x4b8   :  { %v14881_v23 = vor.u32 %v17281_v59, %v14878_v15  ;;  %v17394_v21 = vld [vmem:[#allocation10 + $0x2ac] sm:$0xf0]  ;;  %v15444_v59 = vld [vmem:[#allocation10 + $0x3a0] sm:$0xf]  ;;  %v15189_v36 = vor.u32 %v17362_v24, %v15188_v13 }
 0x4b9   :  { %8146 = vmatpush.bf16.msrb.mxu2 %v14801_v44  ;;  %8121 = vmatpush.bf16.msrb.mxu0 %v14529_v55  ;;  %v14734_v44 = vld [vmem:[#allocation9 + $0x618] sm:$0xf0]  ;;  %v7907_v31 = vpop.f32.mrf.mxu3  ;;  %v14609_v55 = vor.u32 %v17213_v49, %v14606_v22  ;;  %v17426_v15 = vld [vmem:[#allocation10 + $0x3ac] sm:$0xf0]  ;;  %v15317_v14 = vor.u32 %v17394_v21, %v15316_v4  ;;  %v15284_v42 = vld [vmem:[#allocation10 + $0x260] sm:$0xf] }
 0x4ba   :  { %v15445_v49 = vor.u32 %v17426_v15, %v15444_v59  ;;  %v17358_v22 = vld [vmem:[#allocation10 + $0x18c] sm:$0xf0]  ;;  %v14996_v4 = vld [vmem:[#allocation10 + $0x20] sm:$0xf] }
 0x4bb   :  { %8159 = vmatpush.bf16.msrb.mxu3 %v14929_v54  ;;  %8134 = vmatpush.bf16.msrb.mxu1 %v14657_v47  ;;  %v17338_v54 = vld [vmem:[#allocation10 + $0xec] sm:$0xf0]  ;;  %v14737_v47 = vor.u32 %v17245_v62, %v14734_v44  ;;  %v15300_v62 = vld [vmem:[#allocation10 + $0x280] sm:$0xf] }
 0x4bc   :  { %v15093_v52 = vor.u32 %v17338_v54, %v15092_v25  ;;  %v17422_v35 = vld [vmem:[#allocation10 + $0x38c] sm:$0xf0]  ;;  %v15028_v25 = vld [vmem:[#allocation10 + $0x60] sm:$0xf] }
 0x4bd   :  { %8147 = vmatpush.bf16.msrb.mxu2 %v14785_v50  ;;  %8122 = vmatpush.bf16.msrb.mxu0 %v14513_v7  ;;  %v15476_v50 = vld [vmem:[#allocation10 + $0x3e0] sm:$0xf]  ;;  %v15077_v7 = vor.u32 %v17334_v10, %v15076_v61  ;;  %v17322_v54 = vld [vmem:[#allocation10 + $0x6c] sm:$0xf0] }
 0x4be   :  { %v15477_v18 = vor.u32 %v17434_v63, %v15476_v50  ;;  %v17354_v40 = vld [vmem:[#allocation10 + $0x16c] sm:$0xf0]  ;;  %v15029_v63 = vor.u32 %v17322_v54, %v15028_v25  ;;  %v15124_v59 = vld [vmem:[#allocation10 + $0x120] sm:$0xf] }
 0x4bf   :  { %8160 = vmatpush.bf16.msrb.mxu3 %v14913_v53  ;;  %8135 = vmatpush.bf16.msrb.mxu1 %v14641_v9  ;;  %v15221_v53 = vor.u32 %v17370_v60, %v15220_v38  ;;  %v15205_v9 = vor.u32 %v17366_v1, %v15204_v26  ;;  %v15156_v38 = vld [vmem:[#allocation10 + $0x160] sm:$0xf]  ;;  %v17418_v50 = vld [vmem:[#allocation10 + $0x36c] sm:$0xf0] }
 0x4c0   :  { %v17350_v26 = vld [vmem:[#allocation10 + $0x14c] sm:$0xf0]  ;;  %v15364_v25 = vld [vmem:[#allocation10 + $0x300] sm:$0xf] }
 0x4c1   :  { %8148 = vmatpush.bf16.msrb.mxu2 %v14769_v11  ;;  %8123 = vmatpush.bf16.msrb.mxu0 %v14497_v8  ;;  %v15333_v11 = vor.u32 %v17398_v33, %v15332_v3  ;;  %v15061_v8 = vor.u32 %v17330_v41, %v15060_v43  ;;  %v17382_v1 = vld [vmem:[#allocation10 + $0x24c] sm:$0xf0] }
 0x4c2   :  { %v17314_v21 = vld [vmem:[#allocation10 + $0x2c] sm:$0xf0] }
 0x4c3   :  { %8161 = vmatpush.bf16.msrb.mxu3 %v14897_v0  ;;  %8136 = vmatpush.bf16.msrb.mxu1 %v14625_v30  ;;  %v15461_v0 = vor.u32 %v17430_v29, %v15460_v6  ;;  %v15044_v30 = vld [vmem:[#allocation10 + $0x80] sm:$0xf]  ;;  %v17406_v54 = vld [vmem:[#allocation10 + $0x30c] sm:$0xf0] }
 0x4c4   :  { %v15396_v29 = vld [vmem:[#allocation10 + $0x340] sm:$0xf] }
 0x4c5   :  { %8149 = vmatpush.bf16.msrb.mxu2 %v14753_v34  ;;  %8124 = vmatpush.bf16.msrb.mxu0 %v14481_v39  ;;  %v15172_v34 = vld [vmem:[#allocation10 + $0x180] sm:$0xf] }
 0x4c6   :  { %v15173_v27 = vor.u32 %v17358_v22, %v15172_v34  ;;  %v17410_v34 = vld [vmem:[#allocation10 + $0x32c] sm:$0xf0]  ;;  %v14997_v22 = vor.u32 %v17314_v21, %v14996_v4  ;;  %v15572_v21 = vld [vmem:[#allocation10 + $0x4a0] sm:$0xf] }
 0x4c7   :  { %8162 = vmatpush.bf16.msrb.mxu3 %v14881_v23  ;;  %8137 = vmatpush.bf16.msrb.mxu1 %v14609_v55  ;;  %v7918_v23 = vpop.f32.mrf.mxu0  ;;  %v7931_v44 = vpop.f32.mrf.mxu1  ;;  %v17386_v55 = vld [vmem:[#allocation10 + $0x26c] sm:$0xf0] }
 0x4c8   :  { %8125 = vmatmul.bf16.vlgmr.msrb.gmra.mxu0 %v18376_v17  ;;  %v17326_v17 = vld [vmem:[#allocation10 + $0x8c] sm:$0xf0] }
 0x4c9   :  { %8150 = vmatpush.bf16.msrb.mxu2 %v14737_v47  ;;  %9727 = vmatpush.bf16.msra.mxu0 %v15093_v52  ;;  %v15045_v2 = vor.u32 %v17326_v17, %v15044_v30  ;;  %v15412_v47 = vld [vmem:[#allocation10 + $0x360] sm:$0xf]  ;;  %v6185_v30 = vmul.f32 0.2, %v18314_v48 }
 0x4ca   :  { %8138 = vmatmul.bf16.vlgmr.msrb.gmra.mxu1 %v18378_v19  ;;  %v17390_v19 = vld [vmem:[#allocation10 + $0x28c] sm:$0xf0]  ;;  %v15012_v52 = vld [vmem:[#allocation10 + $0x40] sm:$0xf]  ;;  %v15413_v61 = vor.u32 %v17418_v50, %v15412_v47 }
 0x4cb   :  { %8163 = vmatpush.bf16.msrb.mxu3 %v14865_v5  ;;  %9740 = vmatpush.bf16.msra.mxu1 %v15221_v53  ;;  %v15301_v31 = vor.u32 %v17390_v19, %v15300_v62  ;;  %v15285_v5 = vor.u32 %v17386_v55, %v15284_v42  ;;  %v17318_v53 = vld [vmem:[#allocation10 + $0x4c] sm:$0xf0]  ;;  %v15380_v17 = vld [vmem:[#allocation10 + $0x320] sm:$0xf] }
 0x4cc   :  { %8151 = vmatmul.bf16.vlgmr.msrb.gmra.mxu2 %v18380_v32  ;;  %v15428_v32 = vld [vmem:[#allocation10 + $0x380] sm:$0xf]  ;;  %v15013_v41 = vor.u32 %v17318_v53, %v15012_v52  ;;  %v17310_v19 = vld [vmem:[#allocation10 + $0xc] sm:$0xf0] }
 0x4cd   :  { %9753 = vmatpush.bf16.msra.mxu2 %v15349_v58  ;;  %9728 = vmatpush.bf16.msra.mxu0 %v15077_v7  ;;  %v15429_v60 = vor.u32 %v17422_v35, %v15428_v32  ;;  %v15140_v58 = vld [vmem:[#allocation10 + $0x140] sm:$0xf]  ;;  %v17414_v7 = vld [vmem:[#allocation10 + $0x34c] sm:$0xf0] }
 0x4ce   :  { %8164 = vmatmul.bf16.vlgmr.msrb.gmra.mxu3 %v18382_v45  ;;  %v7919_v45 = vadd.f32 %v7918_v23, %v18431_v51  ;;  %v15157_v51 = vor.u32 %v17354_v40, %v15156_v38  ;;  %v15397_v15 = vor.u32 %v17414_v7, %v15396_v29  ;;  %v14980_v62 = vld [vmem:[#allocation10] sm:$0xf]  ;;  %v17498_v55 = vld [vmem:[#allocation10 + $0x5ec] sm:$0xf0] }
 0x4cf   :  { %9766 = vmatpush.bf16.msra.mxu3 %v15477_v18  ;;  %9741 = vmatpush.bf16.msra.mxu1 %v15205_v9  ;;  %v7944_v10 = vpop.f32.mrf.mxu2  ;;  %v15268_v18 = vld [vmem:[#allocation10 + $0x240] sm:$0xf]  ;;  %v7920_v6 = vpop.f32.mrf.mxu0  ;;  %v6183_v9 = vmul.f32 0.2, %v18290_v57  ;;  %v14981_v42 = vor.u32 %v17310_v19, %v14980_v62  ;;  %v17530_v50 = vld [vmem:[#allocation10 + $0x6ec] sm:$0xf0] }
 0x4d0   :  { %v7932_v39 = vadd.f32 %v7931_v44, %v7919_v45  ;;  %v7933_v43 = vpop.f32.mrf.mxu1  ;;  %v15269_v24 = vor.u32 %v17382_v1, %v15268_v18  ;;  %v15108_v35 = vld [vmem:[#allocation10 + $0x100] sm:$0xf]  ;;  %v17342_v45 = vld [vmem:[#allocation10 + $0x10c] sm:$0xf0] }
 0x4d1   :  { %9754 = vmatpush.bf16.msra.mxu2 %v15333_v11  ;;  %9729 = vmatpush.bf16.msra.mxu0 %v15061_v8  ;;  %v7957_v33 = vpop.f32.mrf.mxu3  ;;  %v6184_v11 = vmul.f32 0.2, %v18300_v37  ;;  %v17346_v8 = vld [vmem:[#allocation10 + $0x12c] sm:$0xf0]  ;;  %v15236_v44 = vld [vmem:[#allocation10 + $0x200] sm:$0xf]  ;;  %v6191_v53 = vmax.f32 %v18290_v57, %v6183_v9 }
 0x4d2   :  { %v7945_v3 = vadd.f32 %v7944_v10, %v7932_v39  ;;  %v15125_v23 = vor.u32 %v17346_v8, %v15124_v59  ;;  %v15604_v39 = vld [vmem:[#allocation10 + $0x4e0] sm:$0xf]  ;;  %v17562_v52 = vld [vmem:[#allocation10 + $0x7ec] sm:$0xf0] }
 0x4d3   :  { %9767 = vmatpush.bf16.msra.mxu3 %v15461_v0  ;;  %9742 = vmatpush.bf16.msra.mxu1 %v15189_v36  ;;  %v15141_v0 = vor.u32 %v17350_v26, %v15140_v58  ;;  %v15252_v36 = vld [vmem:[#allocation10 + $0x220] sm:$0xf]  ;;  %v6192_v58 = vmax.f32 %v18300_v37, %v6184_v11  ;;  %v6193_v26 = vmax.f32 %v18314_v48, %v6185_v30  ;;  %v17494_v43 = vld [vmem:[#allocation10 + $0x5cc] sm:$0xf0] }
 0x4d4   :  { %v18440_v13 = vadd.f32 %v7957_v33, %v7945_v3  ;;  %v15732_v40 = vld [vmem:[#allocation10 + $0x5e0] sm:$0xf]  ;;  %v17462_v33 = vld [vmem:[#allocation10 + $0x4cc] sm:$0xf0]  ;;  %v18448_v9 = vpack.c.bf16 %v6191_v53, %v6191_v53 }
 0x4d5   :  { %9755 = vmatpush.bf16.msra.mxu2 %v15317_v14  ;;  %9730 = vmatpush.bf16.msra.mxu0 %v15045_v2  ;;  %v17378_v14 = vld [vmem:[#allocation10 + $0x22c] sm:$0xf0]  ;;  %v15381_v2 = vor.u32 %v17410_v34, %v15380_v17  ;;  %v15860_v47 = vld [vmem:[#allocation10 + $0x6e0] sm:$0xf]  ;;  %v15733_v18 = vor.u32 %v17498_v55, %v15732_v40  ;;  %v18450_v11 = vpack.c.bf16 %v6192_v58, %v6192_v58 }
 0x4d6   :  { %v15253_v32 = vor.u32 %v17378_v14, %v15252_v36  ;;  %v15861_v1 = vor.u32 %v17530_v50, %v15860_v47  ;;  %v15588_v3 = vld [vmem:[#allocation10 + $0x4c0] sm:$0xf]  ;;  %v17558_v37 = vld [vmem:[#allocation10 + $0x7cc] sm:$0xf0] }
 0x4d7   :  { %9768 = vmatpush.bf16.msra.mxu3 %v15445_v49  ;;  %9743 = vmatpush.bf16.msra.mxu1 %v15173_v27  ;;  %v6186_v49 = vmul.f32 0.2, %v18326_v28  ;;  %v7946_v27 = vpop.f32.mrf.mxu2  ;;  %v15716_v6 = vld [vmem:[#allocation10 + $0x5c0] sm:$0xf]  ;;  %v15589_v48 = vor.u32 %v17462_v33, %v15588_v3  ;;  %v17458_v59 = vld [vmem:[#allocation10 + $0x4ac] sm:$0xf0] }
 0x4d8   :  { %v15972_v57 = vld [vmem:[#allocation10 + $0x7c0] sm:$0xf]  ;;  %v17490_v14 = vld [vmem:[#allocation10 + $0x5ac] sm:$0xf0] }
 0x4d9   :  { %9756 = vmatpush.bf16.msra.mxu2 %v15301_v31  ;;  %9731 = vmatpush.bf16.msra.mxu0 %v15029_v63  ;;  %v17374_v31 = vld [vmem:[#allocation10 + $0x20c] sm:$0xf0]  ;;  %v7959_v38 = vpop.f32.mrf.mxu3  ;;  %v15109_v63 = vor.u32 %v17342_v45, %v15108_v35  ;;  %v6194_v29 = vmax.f32 %v18326_v28, %v6186_v49  ;;  %v15717_v28 = vor.u32 %v17494_v43, %v15716_v6  ;;  %v15828_v30 = vld [vmem:[#allocation10 + $0x6a0] sm:$0xf] }
 0x4da   :  { %v15973_v36 = vor.u32 %v17558_v37, %v15972_v57  ;;  %v17522_v17 = vld [vmem:[#allocation10 + $0x6ac] sm:$0xf0]  ;;  %v15956_v34 = vld [vmem:[#allocation10 + $0x7a0] sm:$0xf] }
 0x4db   :  { %9769 = vmatpush.bf16.msra.mxu3 %v15429_v60  ;;  %9744 = vmatpush.bf16.msra.mxu1 %v15157_v51  ;;  %v17466_v60 = vld [vmem:[#allocation10 + $0x4ec] sm:$0xf0]  ;;  %v15237_v51 = vor.u32 %v17374_v31, %v15236_v44  ;;  %v18454_v8 = vpack.c.bf16 %v6194_v29, %v6194_v29  ;;  %v18460_v62 = vld [vmem:[#allocation12] sm:$0xf] }
 0x4dc   :  { %v15605_v10 = vor.u32 %v17466_v60, %v15604_v39  ;;  %v17554_v49 = vld [vmem:[#allocation10 + $0x7ac] sm:$0xf0]  ;;  %v6467_v19 = vperm.slane %v18460_v62, 2  ;;  %v15556_v35 = vld [vmem:[#allocation10 + $0x480] sm:$0xf] }
 0x4dd   :  { %9757 = vmatpush.bf16.msra.mxu2 %v15285_v5  ;;  %9732 = vmatpush.bf16.msra.mxu0 %v15013_v41  ;;  %v15988_v5 = vld [vmem:[#allocation10 + $0x7e0] sm:$0xf]  ;;  %v17454_v45 = vld [vmem:[#allocation10 + $0x48c] sm:$0xf0] }
 0x4de   :  { %v15989_v7 = vor.u32 %v17562_v52, %v15988_v5  ;;  %v15844_v41 = vld [vmem:[#allocation10 + $0x6c0] sm:$0xf]  ;;  %v17486_v27 = vld [vmem:[#allocation10 + $0x58c] sm:$0xf0] }
 0x4df   :  { %9770 = vmatpush.bf16.msra.mxu3 %v15413_v61  ;;  %9745 = vmatpush.bf16.msra.mxu1 %v15141_v0  ;;  %v15365_v61 = vor.u32 %v17406_v54, %v15364_v25  ;;  %v17526_v0 = vld [vmem:[#allocation10 + $0x6cc] sm:$0xf0]  ;;  %v15684_v44 = vld [vmem:[#allocation10 + $0x580] sm:$0xf] }
 0x4e0   :  { %v15845_v4 = vor.u32 %v17526_v0, %v15844_v41  ;;  %v15812_v31 = vld [vmem:[#allocation10 + $0x680] sm:$0xf]  ;;  %v17518_v25 = vld [vmem:[#allocation10 + $0x68c] sm:$0xf0]  ;;  %v15685_v55 = vor.u32 %v17486_v27, %v15684_v44  ;;  %v6189_v44 = vmul.f32 0.2, %v18398_v16 }
 0x4e1   :  { %9758 = vmatpush.bf16.msra.mxu2 %v15269_v24  ;;  %9733 = vmatpush.bf16.msra.mxu0 %v14997_v22  ;;  %v18452_v24 = vpack.c.bf16 %v6193_v26, %v6193_v26  ;;  %v15573_v22 = vor.u32 %v17458_v59, %v15572_v21  ;;  %v15940_v38 = vld [vmem:[#allocation10 + $0x780] sm:$0xf]  ;;  %v17550_v39 = vld [vmem:[#allocation10 + $0x78c] sm:$0xf0]  ;;  %v15813_v47 = vor.u32 %v17518_v25, %v15812_v31  ;;  %v6187_v59 = vmul.f32 0.2, %v18340_v46 }
 0x4e2   :  { %v15540_v50 = vld [vmem:[#allocation10 + $0x460] sm:$0xf]  ;;  %v15941_v52 = vor.u32 %v17550_v39, %v15940_v38  ;;  %v17482_v53 = vld [vmem:[#allocation10 + $0x56c] sm:$0xf0]  ;;  %v6190_v31 = vmul.f32 0.2, %v18408_v12 }
 0x4e3   :  { %9771 = vmatpush.bf16.msra.mxu3 %v15397_v15  ;;  %9746 = vmatpush.bf16.msra.mxu1 %v15125_v23  ;;  %v15700_v15 = vld [vmem:[#allocation10 + $0x5a0] sm:$0xf]  ;;  %v17546_v26 = vld [vmem:[#allocation10 + $0x76c] sm:$0xf0] }
 0x4e4   :  { %v15701_v23 = vor.u32 %v17490_v14, %v15700_v15  ;;  %v15796_v58 = vld [vmem:[#allocation10 + $0x660] sm:$0xf]  ;;  %v17446_v6 = vld [vmem:[#allocation10 + $0x44c] sm:$0xf0]  ;;  %v6188_v15 = vmul.f32 0.2, %v18368_v20 }
 0x4e5   :  { %9759 = vmatpush.bf16.msra.mxu2 %v15253_v32  ;;  %9734 = vmatpush.bf16.msra.mxu0 %v14981_v42  ;;  %v15829_v32 = vor.u32 %v17522_v17, %v15828_v30  ;;  %v7970_v54 = vpop.f32.mrf.mxu0  ;;  %v15557_v42 = vor.u32 %v17454_v45, %v15556_v35  ;;  %v15524_v33 = vld [vmem:[#allocation10 + $0x440] sm:$0xf]  ;;  %v17478_v41 = vld [vmem:[#allocation10 + $0x54c] sm:$0xf0] }
 0x4e6   :  { %v7971_v60 = vadd.f32 %v7970_v54, %v6467_v19  ;;  %v15652_v29 = vld [vmem:[#allocation10 + $0x540] sm:$0xf]  ;;  %v17510_v57 = vld [vmem:[#allocation10 + $0x64c] sm:$0xf0]  ;;  %v15525_v14 = vor.u32 %v17446_v6, %v15524_v33  ;;  %v17432_v6 = vld [vmem:[#allocation10 + $0x3e4] sm:$0xf] }
 0x4e7   :  { %9772 = vmatpush.bf16.msra.mxu3 %v15381_v2  ;;  %9747 = vmatpush.bf16.msra.mxu1 %v15109_v63  ;;  %v15957_v2 = vor.u32 %v17554_v49, %v15956_v34  ;;  %v7983_v40 = vpop.f32.mrf.mxu1  ;;  %v17450_v63 = vld [vmem:[#allocation10 + $0x46c] sm:$0xf0]  ;;  %v15780_v0 = vld [vmem:[#allocation10 + $0x640] sm:$0xf]  ;;  %v15653_v17 = vor.u32 %v17478_v41, %v15652_v29  ;;  %v15478_v29 = vld [vmem:[#allocation10 + $0x3f0] sm:$0xf0] }
 0x4e8   :  { %9735 = vmatmul.bf16.vlgmr.msra.gmra.mxu0 %v18448_v9  ;;  %v7984_v5 = vadd.f32 %v7983_v40, %v7971_v60  ;;  %v17542_v21 = vld [vmem:[#allocation10 + $0x74c] sm:$0xf0]  ;;  %v15781_v34 = vor.u32 %v17510_v57, %v15780_v0  ;;  %v15508_v49 = vld [vmem:[#allocation10 + $0x420] sm:$0xf]  ;;  %v6197_v57 = vmax.f32 %v18398_v16, %v6189_v44 }
 0x4e9   :  { %9760 = vmatpush.bf16.msra.mxu2 %v15237_v51  ;;  %9779 = vmatpush.bf16.msrb.mxu0 %v15605_v10  ;;  %v15668_v51 = vld [vmem:[#allocation10 + $0x560] sm:$0xf]  ;;  %v17506_v45 = vld [vmem:[#allocation10 + $0x62c] sm:$0xf0] }
 0x4ea   :  { %9748 = vmatmul.bf16.vlgmr.msra.gmra.mxu1 %v18450_v11  ;;  %v15924_v10 = vld [vmem:[#allocation10 + $0x760] sm:$0xf]  ;;  %v17538_v27 = vld [vmem:[#allocation10 + $0x72c] sm:$0xf0] }
 0x4eb   :  { %9773 = vmatpush.bf16.msra.mxu3 %v15365_v61  ;;  %9792 = vmatpush.bf16.msrb.mxu1 %v15733_v18  ;;  %v17514_v61 = vld [vmem:[#allocation10 + $0x66c] sm:$0xf0]  ;;  %v15541_v18 = vor.u32 %v17450_v63, %v15540_v50  ;;  %v15636_v19 = vld [vmem:[#allocation10 + $0x520] sm:$0xf] }
 0x4ec   :  { %9761 = vmatmul.bf16.vlgmr.msra.gmra.mxu2 %v18452_v24  ;;  %v15797_v3 = vor.u32 %v17514_v61, %v15796_v58  ;;  %v15764_v35 = vld [vmem:[#allocation10 + $0x620] sm:$0xf]  ;;  %v17438_v38 = vld [vmem:[#allocation10 + $0x40c] sm:$0xf0]  ;;  %v15094_v58 = vld [vmem:[#allocation10 + $0xf0] sm:$0xf0] }
 0x4ed   :  { %9805 = vmatpush.bf16.msrb.mxu2 %v15861_v1  ;;  %9780 = vmatpush.bf16.msrb.mxu0 %v15589_v48  ;;  %v15669_v1 = vor.u32 %v17482_v53, %v15668_v51  ;;  %v15492_v54 = vld [vmem:[#allocation10 + $0x400] sm:$0xf]  ;;  %v15765_v60 = vor.u32 %v17506_v45, %v15764_v35  ;;  %v17502_v63 = vld [vmem:[#allocation10 + $0x60c] sm:$0xf0]  ;;  %v17336_v53 = vld [vmem:[#allocation10 + $0xe4] sm:$0xf] }
 0x4ee   :  { %9774 = vmatmul.bf16.vlgmr.msra.gmra.mxu3 %v18454_v8  ;;  %v15620_v40 = vld [vmem:[#allocation10 + $0x500] sm:$0xf]  ;;  %v17368_v61 = vld [vmem:[#allocation10 + $0x1e4] sm:$0xf]  ;;  %v15097_v0 = vor.u32 %v17336_v53, %v15094_v58  ;;  %v15430_v53 = vld [vmem:[#allocation10 + $0x390] sm:$0xf0] }
 0x4ef   :  { %9818 = vmatpush.bf16.msrb.mxu3 %v15989_v7  ;;  %9793 = vmatpush.bf16.msrb.mxu1 %v15717_v28  ;;  %v15925_v7 = vor.u32 %v17546_v26, %v15924_v10  ;;  %v7996_v43 = vpop.f32.mrf.mxu2  ;;  %v7972_v28 = vpop.f32.mrf.mxu0  ;;  %v15876_v51 = vld [vmem:[#allocation10 + $0x700] sm:$0xf]  ;;  %v15493_v10 = vor.u32 %v17438_v38, %v15492_v54  ;;  %v15222_v26 = vld [vmem:[#allocation10 + $0x1f0] sm:$0xf0]  ;;  %v17360_v35 = vld [vmem:[#allocation10 + $0x1a4] sm:$0xf] }
 0x4f0   :  { %v7997_v37 = vadd.f32 %v7996_v43, %v7984_v5  ;;  %v17534_v5 = vld [vmem:[#allocation10 + $0x70c] sm:$0xf0]  ;;  %v6196_v43 = vmax.f32 %v18368_v20, %v6188_v15  ;;  %v17332_v28 = vld [vmem:[#allocation10 + $0xc4] sm:$0xf]  ;;  %v15462_v20 = vld [vmem:[#allocation10 + $0x3d0] sm:$0xf0] }
 0x4f1   :  { %9806 = vmatpush.bf16.msrb.mxu2 %v15845_v4  ;;  %9781 = vmatpush.bf16.msrb.mxu0 %v15573_v22  ;;  %v8009_v48 = vpop.f32.mrf.mxu3  ;;  %v15908_v4 = vld [vmem:[#allocation10 + $0x740] sm:$0xf]  ;;  %v17442_v22 = vld [vmem:[#allocation10 + $0x42c] sm:$0xf0]  ;;  %v15877_v41 = vor.u32 %v17534_v5, %v15876_v51  ;;  %v15446_v54 = vld [vmem:[#allocation10 + $0x3b0] sm:$0xf0] }
 0x4f2   :  { %v18465_v30 = vadd.f32 %v8009_v48, %v7997_v37  ;;  %v15509_v25 = vor.u32 %v17442_v22, %v15508_v49  ;;  %v15225_v37 = vor.u32 %v17368_v61, %v15222_v26  ;;  %v15334_v49 = vld [vmem:[#allocation10 + $0x2d0] sm:$0xf0]  ;;  %v18475_v15 = vpack.c.bf16 %v6196_v43, %v6196_v43  ;;  %v17384_v43 = vld [vmem:[#allocation10 + $0x264] sm:$0xf] }
 0x4f3   :  { %9819 = vmatpush.bf16.msrb.mxu3 %v15973_v36  ;;  %9794 = vmatpush.bf16.msrb.mxu1 %v15701_v23  ;;  %v7985_v36 = vpop.f32.mrf.mxu1  ;;  %v15909_v23 = vor.u32 %v17542_v21, %v15908_v4  ;;  %v15078_v4 = vld [vmem:[#allocation10 + $0xd0] sm:$0xf0]  ;;  %v17364_v21 = vld [vmem:[#allocation10 + $0x1c4] sm:$0xf]  ;;  %v18477_v22 = vpack.c.bf16 %v6197_v57, %v6197_v57 }
 0x4f4   :  { %v6198_v36 = vmax.f32 %v18408_v12, %v6190_v31  ;;  %v15081_v16 = vor.u32 %v17332_v28, %v15078_v4  ;;  %v15318_v31 = vld [vmem:[#allocation10 + $0x2b0] sm:$0xf0]  ;;  %v17316_v28 = vld [vmem:[#allocation10 + $0x44] sm:$0xf] }
 0x4f5   :  { %9807 = vmatpush.bf16.msrb.mxu2 %v15829_v32  ;;  %9782 = vmatpush.bf16.msrb.mxu0 %v15557_v42  ;;  %v17474_v32 = vld [vmem:[#allocation10 + $0x52c] sm:$0xf0]  ;;  %v15302_v51 = vld [vmem:[#allocation10 + $0x290] sm:$0xf0] }
 0x4f6   :  { %v15637_v39 = vor.u32 %v17474_v32, %v15636_v19  ;;  %v17470_v42 = vld [vmem:[#allocation10 + $0x50c] sm:$0xf0]  ;;  %v15062_v32 = vld [vmem:[#allocation10 + $0xb0] sm:$0xf0]  ;;  %v18479_v45 = vpack.c.bf16 %v6198_v36, %v6198_v36 }
 0x4f7   :  { %9820 = vmatpush.bf16.msrb.mxu3 %v15957_v2  ;;  %9795 = vmatpush.bf16.msrb.mxu1 %v15685_v55  ;;  %v15892_v2 = vld [vmem:[#allocation10 + $0x720] sm:$0xf]  ;;  %v7998_v50 = vpop.f32.mrf.mxu2  ;;  %v15414_v57 = vld [vmem:[#allocation10 + $0x370] sm:$0xf0] }
 0x4f8   :  { %v15748_v55 = vld [vmem:[#allocation10 + $0x600] sm:$0xf]  ;;  %v15174_v50 = vld [vmem:[#allocation10 + $0x190] sm:$0xf0] }
 0x4f9   :  { %9808 = vmatpush.bf16.msrb.mxu2 %v15813_v47  ;;  %9783 = vmatpush.bf16.msrb.mxu0 %v15541_v18  ;;  %v15893_v47 = vor.u32 %v17538_v27, %v15892_v2  ;;  %v17400_v18 = vld [vmem:[#allocation10 + $0x2e4] sm:$0xf]  ;;  %v15749_v33 = vor.u32 %v17502_v63, %v15748_v55  ;;  %v15190_v2 = vld [vmem:[#allocation10 + $0x1b0] sm:$0xf0] }
 0x4fa   :  { %v17392_v27 = vld [vmem:[#allocation10 + $0x2a4] sm:$0xf]  ;;  %v15014_v4 = vld [vmem:[#allocation10 + $0x50] sm:$0xf0] }
 0x4fb   :  { %9821 = vmatpush.bf16.msrb.mxu3 %v15941_v52  ;;  %9796 = vmatpush.bf16.msrb.mxu1 %v15669_v1  ;;  %v8011_v52 = vpop.f32.mrf.mxu3  ;;  %v15350_v1 = vld [vmem:[#allocation10 + $0x2f0] sm:$0xf0]  ;;  %v17356_v55 = vld [vmem:[#allocation10 + $0x184] sm:$0xf] }
 0x4fc   :  { %v15353_v48 = vor.u32 %v17400_v18, %v15350_v1  ;;  %v17388_v63 = vld [vmem:[#allocation10 + $0x284] sm:$0xf]  ;;  %v15177_v26 = vor.u32 %v17356_v55, %v15174_v50  ;;  %v14982_v50 = vld [vmem:[#allocation10 + $0x10] sm:$0xf0] }
 0x4fd   :  { %9809 = vmatpush.bf16.msrb.mxu2 %v15797_v3  ;;  %9784 = vmatpush.bf16.msrb.mxu0 %v15525_v14  ;;  %v15621_v3 = vor.u32 %v17470_v42, %v15620_v40  ;;  %v15481_v14 = vor.u32 %v17432_v6, %v15478_v29  ;;  %v17324_v40 = vld [vmem:[#allocation10 + $0x84] sm:$0xf]  ;;  %v15046_v42 = vld [vmem:[#allocation10 + $0x90] sm:$0xf0]  ;;  %v15305_v18 = vor.u32 %v17388_v63, %v15302_v51 }
 0x4fe   :  { %v17420_v52 = vld [vmem:[#allocation10 + $0x384] sm:$0xf] }
 0x4ff   :  { %9822 = vmatpush.bf16.msrb.mxu3 %v15925_v7  ;;  %9797 = vmatpush.bf16.msrb.mxu1 %v15653_v17  ;;  %v6195_v7 = vmax.f32 %v18340_v46, %v6187_v59  ;;  %v15206_v17 = vld [vmem:[#allocation10 + $0x1d0] sm:$0xf0]  ;;  %v17428_v46 = vld [vmem:[#allocation10 + $0x3c4] sm:$0xf]  ;;  %v15433_v29 = vor.u32 %v17420_v52, %v15430_v53 }
 0x500   :  { %v15209_v12 = vor.u32 %v17364_v21, %v15206_v17  ;;  %v15465_v44 = vor.u32 %v17428_v46, %v15462_v20  ;;  %v17320_v1 = vld [vmem:[#allocation10 + $0x64] sm:$0xf]  ;;  %v15142_v17 = vld [vmem:[#allocation10 + $0x150] sm:$0xf0] }
 0x501   :  { %9810 = vmatpush.bf16.msrb.mxu2 %v15781_v34  ;;  %9785 = vmatpush.bf16.msrb.mxu0 %v15509_v25  ;;  %v17396_v34 = vld [vmem:[#allocation10 + $0x2c4] sm:$0xf]  ;;  %v18473_v59 = vpack.c.bf16 %v6195_v7, %v6195_v7  ;;  %v15158_v7 = vld [vmem:[#allocation10 + $0x170] sm:$0xf0] }
 0x502   :  { %v15337_v19 = vor.u32 %v17396_v34, %v15334_v49  ;;  %v17424_v25 = vld [vmem:[#allocation10 + $0x3a4] sm:$0xf]  ;;  %v15270_v49 = vld [vmem:[#allocation10 + $0x250] sm:$0xf0] }
 0x503   :  { %9823 = vmatpush.bf16.msrb.mxu3 %v15909_v23  ;;  %9798 = vmatpush.bf16.msrb.mxu1 %v15637_v39  ;;  %v17328_v23 = vld [vmem:[#allocation10 + $0xa4] sm:$0xf]  ;;  %v15193_v39 = vor.u32 %v17360_v35, %v15190_v2  ;;  %v15110_v52 = vld [vmem:[#allocation10 + $0x110] sm:$0xf0] }
 0x504   :  { %v15065_v38 = vor.u32 %v17328_v23, %v15062_v32  ;;  %v17348_v21 = vld [vmem:[#allocation10 + $0x144] sm:$0xf]  ;;  %v15017_v32 = vor.u32 %v17316_v28, %v15014_v4 }
 0x505   :  { %9811 = vmatpush.bf16.msrb.mxu2 %v15765_v60  ;;  %9786 = vmatpush.bf16.msrb.mxu0 %v15493_v10  ;;  %v15321_v60 = vor.u32 %v17392_v27, %v15318_v31  ;;  %v8022_v5 = vpop.f32.mrf.mxu0  ;;  %v15049_v10 = vor.u32 %v17324_v40, %v15046_v42  ;;  %v17380_v34 = vld [vmem:[#allocation10 + $0x244] sm:$0xf]  ;;  %v14998_v31 = vld [vmem:[#allocation10 + $0x30] sm:$0xf0] }
 0x506   :  { %v8023_v58 = vadd.f32 %v8022_v5, %v18465_v30  ;;  %v15273_v2 = vor.u32 %v17380_v34, %v15270_v49  ;;  %v17312_v27 = vld [vmem:[#allocation10 + $0x24] sm:$0xf]  ;;  %v15382_v42 = vld [vmem:[#allocation10 + $0x330] sm:$0xf0] }
 0x507   :  { %9824 = vmatpush.bf16.msrb.mxu3 %v15893_v47  ;;  %9799 = vmatpush.bf16.msrb.mxu1 %v15621_v3  ;;  %v15449_v47 = vor.u32 %v17424_v25, %v15446_v54  ;;  %v8035_v61 = vpop.f32.mrf.mxu1  ;;  %v15030_v3 = vld [vmem:[#allocation10 + $0x70] sm:$0xf0]  ;;  %v17344_v25 = vld [vmem:[#allocation10 + $0x124] sm:$0xf]  ;;  %v15001_v55 = vor.u32 %v17312_v27, %v14998_v31 }
 0x508   :  { %9787 = vmatmul.bf16.vlgmr.msrb.gmra.mxu0 %v18473_v59  ;;  %v8036_v6 = vadd.f32 %v8035_v61, %v8023_v58  ;;  %v17408_v40 = vld [vmem:[#allocation10 + $0x324] sm:$0xf]  ;;  %v15718_v49 = vld [vmem:[#allocation10 + $0x5d0] sm:$0xf0] }
 0x509   :  { %9812 = vmatpush.bf16.msrb.mxu2 %v15749_v33  ;;  %9831 = vmatpush.bf16.msra.mxu0 %v15097_v0  ;;  %v17352_v33 = vld [vmem:[#allocation10 + $0x164] sm:$0xf]  ;;  %v15385_v58 = vor.u32 %v17408_v40, %v15382_v42  ;;  %v6468_v42 = vperm.slane %v18460_v62, 3 }
 0x50a   :  { %9800 = vmatmul.bf16.vlgmr.msrb.gmra.mxu1 %v18475_v15  ;;  %v17416_v0 = vld [vmem:[#allocation10 + $0x364] sm:$0xf]  ;;  %v15161_v30 = vor.u32 %v17352_v33, %v15158_v7  ;;  %v15606_v33 = vld [vmem:[#allocation10 + $0x4f0] sm:$0xf0] }
 0x50b   :  { %9825 = vmatpush.bf16.msrb.mxu3 %v15877_v41  ;;  %9844 = vmatpush.bf16.msra.mxu1 %v15225_v37  ;;  %v15286_v41 = vld [vmem:[#allocation10 + $0x270] sm:$0xf0]  ;;  %v15033_v37 = vor.u32 %v17320_v1, %v15030_v3  ;;  %v15417_v36 = vor.u32 %v17416_v0, %v15414_v57  ;;  %v17340_v5 = vld [vmem:[#allocation10 + $0x104] sm:$0xf] }
 0x50c   :  { %9813 = vmatmul.bf16.vlgmr.msrb.gmra.mxu2 %v18477_v22  ;;  %v17372_v53 = vld [vmem:[#allocation10 + $0x204] sm:$0xf]  ;;  %v15734_v7 = vld [vmem:[#allocation10 + $0x5f0] sm:$0xf0]  ;;  %v15113_v0 = vor.u32 %v17340_v5, %v15110_v52 }
 0x50d   :  { %9857 = vmatpush.bf16.msra.mxu2 %v15353_v48  ;;  %9832 = vmatpush.bf16.msra.mxu0 %v15081_v16  ;;  %v15289_v48 = vor.u32 %v17384_v43, %v15286_v41  ;;  %v8024_v16 = vpop.f32.mrf.mxu0  ;;  %v17464_v3 = vld [vmem:[#allocation10 + $0x4e4] sm:$0xf]  ;;  %v15862_v41 = vld [vmem:[#allocation10 + $0x6f0] sm:$0xf0] }
 0x50e   :  { %9826 = vmatmul.bf16.vlgmr.msrb.gmra.mxu3 %v18479_v45  ;;  %v17528_v43 = vld [vmem:[#allocation10 + $0x6e4] sm:$0xf]  ;;  %v15609_v28 = vor.u32 %v17464_v3, %v15606_v33  ;;  %v15686_v52 = vld [vmem:[#allocation10 + $0x590] sm:$0xf0] }
 0x50f   :  { %9870 = vmatpush.bf16.msra.mxu3 %v15481_v14  ;;  %9845 = vmatpush.bf16.msra.mxu1 %v15209_v12  ;;  %v8048_v14 = vpop.f32.mrf.mxu2  ;;  %v17412_v12 = vld [vmem:[#allocation10 + $0x344] sm:$0xf]  ;;  %v8037_v23 = vpop.f32.mrf.mxu1 }
 0x510   :  { %v8049_v46 = vadd.f32 %v8048_v14, %v8036_v6  ;;  %v17496_v6 = vld [vmem:[#allocation10 + $0x5e4] sm:$0xf]  ;;  %v15590_v14 = vld [vmem:[#allocation10 + $0x4d0] sm:$0xf0] }
 0x511   :  { %9858 = vmatpush.bf16.msra.mxu2 %v15337_v19  ;;  %9833 = vmatpush.bf16.msra.mxu0 %v15065_v38  ;;  %v8061_v20 = vpop.f32.mrf.mxu3  ;;  %v15398_v19 = vld [vmem:[#allocation10 + $0x350] sm:$0xf0]  ;;  %v15737_v4 = vor.u32 %v17496_v6, %v15734_v7  ;;  %v17556_v16 = vld [vmem:[#allocation10 + $0x7c4] sm:$0xf] }
 0x512   :  { %v18486_v35 = vadd.f32 %v8061_v20, %v8049_v46  ;;  %v15401_v54 = vor.u32 %v17412_v12, %v15398_v19  ;;  %v15126_v38 = vld [vmem:[#allocation10 + $0x130] sm:$0xf0]  ;;  %v17524_v46 = vld [vmem:[#allocation10 + $0x6c4] sm:$0xf] }
 0x513   :  { %9871 = vmatpush.bf16.msra.mxu3 %v15465_v44  ;;  %9846 = vmatpush.bf16.msra.mxu1 %v15193_v39  ;;  %v15145_v44 = vor.u32 %v17348_v21, %v15142_v17  ;;  %v17376_v39 = vld [vmem:[#allocation10 + $0x224] sm:$0xf]  ;;  %v15129_v63 = vor.u32 %v17344_v25, %v15126_v38  ;;  %v15865_v21 = vor.u32 %v17528_v43, %v15862_v41  ;;  %v15846_v20 = vld [vmem:[#allocation10 + $0x6d0] sm:$0xf0] }
 0x514   :  { %v17492_v17 = vld [vmem:[#allocation10 + $0x5c4] sm:$0xf]  ;;  %v15974_v12 = vld [vmem:[#allocation10 + $0x7d0] sm:$0xf0] }
 0x515   :  { %9859 = vmatpush.bf16.msra.mxu2 %v15321_v60  ;;  %9834 = vmatpush.bf16.msra.mxu0 %v15049_v10  ;;  %v15254_v60 = vld [vmem:[#allocation10 + $0x230] sm:$0xf0]  ;;  %v15721_v23 = vor.u32 %v17492_v17, %v15718_v49  ;;  %v17488_v27 = vld [vmem:[#allocation10 + $0x5a4] sm:$0xf]  ;;  %v15977_v31 = vor.u32 %v17556_v16, %v15974_v12 }
 0x516   :  { %v15257_v51 = vor.u32 %v17376_v39, %v15254_v60  ;;  %v15238_v10 = vld [vmem:[#allocation10 + $0x210] sm:$0xf0]  ;;  %v17552_v39 = vld [vmem:[#allocation10 + $0x7a4] sm:$0xf] }
 0x517   :  { %9872 = vmatpush.bf16.msra.mxu3 %v15449_v47  ;;  %9847 = vmatpush.bf16.msra.mxu1 %v15177_v26  ;;  %v17308_v47 = vld [vmem:[#allocation10 + $0x4] sm:$0xf]  ;;  %v8050_v61 = vpop.f32.mrf.mxu2  ;;  %v15241_v57 = vor.u32 %v17372_v53, %v15238_v10  ;;  %v15702_v25 = vld [vmem:[#allocation10 + $0x5b0] sm:$0xf0] }
 0x518   :  { %v17404_v26 = vld [vmem:[#allocation10 + $0x304] sm:$0xf]  ;;  %v15830_v38 = vld [vmem:[#allocation10 + $0x6b0] sm:$0xf0] }
 0x519   :  { %9860 = vmatpush.bf16.msra.mxu2 %v15305_v18  ;;  %9835 = vmatpush.bf16.msra.mxu0 %v15033_v37  ;;  %v15366_v18 = vld [vmem:[#allocation10 + $0x310] sm:$0xf0]  ;;  %v8063_v1 = vpop.f32.mrf.mxu3  ;;  %v17560_v37 = vld [vmem:[#allocation10 + $0x7e4] sm:$0xf] }
 0x51a   :  { %v15958_v60 = vld [vmem:[#allocation10 + $0x7b0] sm:$0xf0]  ;;  %v17516_v53 = vld [vmem:[#allocation10 + $0x684] sm:$0xf] }
 0x51b   :  { %9873 = vmatpush.bf16.msra.mxu3 %v15433_v29  ;;  %9848 = vmatpush.bf16.msra.mxu1 %v15161_v30  ;;  %v14985_v29 = vor.u32 %v17308_v47, %v14982_v50  ;;  %v15990_v30 = vld [vmem:[#allocation10 + $0x7f0] sm:$0xf0]  ;;  %v17452_v50 = vld [vmem:[#allocation10 + $0x484] sm:$0xf]  ;;  %v15961_v5 = vor.u32 %v17552_v39, %v15958_v60 }
 0x51c   :  { %v15993_v34 = vor.u32 %v17560_v37, %v15990_v30  ;;  %v17548_v10 = vld [vmem:[#allocation10 + $0x784] sm:$0xf]  ;;  %v15798_v37 = vld [vmem:[#allocation10 + $0x670] sm:$0xf0] }
 0x51d   :  { %9861 = vmatpush.bf16.msra.mxu2 %v15289_v48  ;;  %9836 = vmatpush.bf16.msra.mxu0 %v15017_v32  ;;  %v15369_v48 = vor.u32 %v17404_v26, %v15366_v18  ;;  %v15849_v32 = vor.u32 %v17524_v46, %v15846_v20  ;;  %v15942_v26 = vld [vmem:[#allocation10 + $0x790] sm:$0xf0]  ;;  %v17448_v6 = vld [vmem:[#allocation10 + $0x464] sm:$0xf] }
 0x51e   :  { %v17480_v7 = vld [vmem:[#allocation10 + $0x564] sm:$0xf]  ;;  %v15945_v41 = vor.u32 %v17548_v10, %v15942_v26  ;;  %v15654_v46 = vld [vmem:[#allocation10 + $0x550] sm:$0xf0] }
 0x51f   :  { %9874 = vmatpush.bf16.msra.mxu3 %v15417_v36  ;;  %9849 = vmatpush.bf16.msra.mxu1 %v15145_v44  ;;  %v17460_v36 = vld [vmem:[#allocation10 + $0x4c4] sm:$0xf]  ;;  %v15782_v16 = vld [vmem:[#allocation10 + $0x650] sm:$0xf0] }
 0x520   :  { %v15593_v19 = vor.u32 %v17460_v36, %v15590_v14  ;;  %v17456_v44 = vld [vmem:[#allocation10 + $0x4a4] sm:$0xf]  ;;  %v15526_v14 = vld [vmem:[#allocation10 + $0x450] sm:$0xf0] }
 0x521   :  { %9862 = vmatpush.bf16.msra.mxu2 %v15273_v2  ;;  %9837 = vmatpush.bf16.msra.mxu0 %v15001_v55  ;;  %v15574_v2 = vld [vmem:[#allocation10 + $0x4b0] sm:$0xf0]  ;;  %v15705_v55 = vor.u32 %v17488_v27, %v15702_v25  ;;  %v17544_v30 = vld [vmem:[#allocation10 + $0x764] sm:$0xf] }
 0x522   :  { %v15577_v40 = vor.u32 %v17456_v44, %v15574_v2  ;;  %v17444_v36 = vld [vmem:[#allocation10 + $0x444] sm:$0xf]  ;;  %v15910_v44 = vld [vmem:[#allocation10 + $0x750] sm:$0xf0] }
 0x523   :  { %9875 = vmatpush.bf16.msra.mxu3 %v15401_v54  ;;  %9850 = vmatpush.bf16.msra.mxu1 %v15129_v63  ;;  %v17520_v54 = vld [vmem:[#allocation10 + $0x6a4] sm:$0xf]  ;;  %v15558_v63 = vld [vmem:[#allocation10 + $0x490] sm:$0xf0]  ;;  %v15529_v27 = vor.u32 %v17444_v36, %v15526_v14 }
 0x524   :  { %v15833_v47 = vor.u32 %v17520_v54, %v15830_v38  ;;  %v15561_v3 = vor.u32 %v17452_v50, %v15558_v63  ;;  %v17476_v17 = vld [vmem:[#allocation10 + $0x544] sm:$0xf]  ;;  %v15510_v39 = vld [vmem:[#allocation10 + $0x430] sm:$0xf0] }
 0x525   :  { %9863 = vmatpush.bf16.msra.mxu2 %v15257_v51  ;;  %9838 = vmatpush.bf16.msra.mxu0 %v14985_v29  ;;  %v17484_v51 = vld [vmem:[#allocation10 + $0x584] sm:$0xf]  ;;  %v8074_v61 = vpop.f32.mrf.mxu0  ;;  %v15542_v29 = vld [vmem:[#allocation10 + $0x470] sm:$0xf0]  ;;  %v15657_v25 = vor.u32 %v17476_v17, %v15654_v46  ;;  %v15212_v46 = vld [vmem:[#allocation10 + $0x1c8] sm:$0xf] }
 0x526   :  { %v8075_v18 = vadd.f32 %v8074_v61, %v6468_v42  ;;  %v15689_v62 = vor.u32 %v17484_v51, %v15686_v52  ;;  %v17508_v20 = vld [vmem:[#allocation10 + $0x644] sm:$0xf]  ;;  %v15638_v42 = vld [vmem:[#allocation10 + $0x530] sm:$0xf0] }
 0x527   :  { %9876 = vmatpush.bf16.msra.mxu3 %v15385_v58  ;;  %9851 = vmatpush.bf16.msra.mxu1 %v15113_v0  ;;  %v15814_v58 = vld [vmem:[#allocation10 + $0x690] sm:$0xf0]  ;;  %v8087_v1 = vpop.f32.mrf.mxu1  ;;  %v15785_v54 = vor.u32 %v17508_v20, %v15782_v16  ;;  %v17440_v38 = vld [vmem:[#allocation10 + $0x424] sm:$0xf]  ;;  %v17367_v16 = vld [vmem:[#allocation10 + $0x1d4] sm:$0xf0] }
 0x528   :  { %9839 = vmatmul.bf16.vlgmr.msra.gmra.mxu0 %v18448_v9  ;;  %v15817_v33 = vor.u32 %v17516_v53, %v15814_v58  ;;  %v8088_v43 = vadd.f32 %v8087_v1, %v8075_v18  ;;  %v15670_v0 = vld [vmem:[#allocation10 + $0x570] sm:$0xf0]  ;;  %v17472_v60 = vld [vmem:[#allocation10 + $0x524] sm:$0xf]  ;;  %v15513_v51 = vor.u32 %v17440_v38, %v15510_v39  ;;  %v15196_v38 = vld [vmem:[#allocation10 + $0x1a8] sm:$0xf] }
 0x529   :  { %9864 = vmatpush.bf16.msra.mxu2 %v15241_v57  ;;  %9883 = vmatpush.bf16.msrb.mxu0 %v15609_v28  ;;  %v17512_v57 = vld [vmem:[#allocation10 + $0x664] sm:$0xf]  ;;  %v15545_v28 = vor.u32 %v17448_v6, %v15542_v29  ;;  %v15894_v63 = vld [vmem:[#allocation10 + $0x730] sm:$0xf0]  ;;  %v15641_v53 = vor.u32 %v17472_v60, %v15638_v42  ;;  %v15100_v29 = vld [vmem:[#allocation10 + $0xe8] sm:$0xf] }
 0x52a   :  { %9852 = vmatmul.bf16.vlgmr.msra.gmra.mxu1 %v18450_v11  ;;  %v17536_v50 = vld [vmem:[#allocation10 + $0x724] sm:$0xf]  ;;  %v15494_v52 = vld [vmem:[#allocation10 + $0x410] sm:$0xf0]  ;;  %v17363_v60 = vld [vmem:[#allocation10 + $0x1b4] sm:$0xf0] }
 0x52b   :  { %9877 = vmatpush.bf16.msra.mxu3 %v15369_v48  ;;  %9896 = vmatpush.bf16.msrb.mxu1 %v15737_v4  ;;  %v15926_v48 = vld [vmem:[#allocation10 + $0x770] sm:$0xf0]  ;;  %v15673_v4 = vor.u32 %v17480_v7, %v15670_v0  ;;  %v17468_v61 = vld [vmem:[#allocation10 + $0x504] sm:$0xf]  ;;  %v15897_v18 = vor.u32 %v17536_v50, %v15894_v63  ;;  %v17339_v7 = vld [vmem:[#allocation10 + $0xf4] sm:$0xf0]  ;;  %v15197_v63 = vor.u32 %v17363_v60, %v15196_v38 }
 0x52c   :  { %9865 = vmatmul.bf16.vlgmr.msra.gmra.mxu2 %v18452_v24  ;;  %v15622_v10 = vld [vmem:[#allocation10 + $0x510] sm:$0xf0]  ;;  %v17500_v26 = vld [vmem:[#allocation10 + $0x604] sm:$0xf]  ;;  %v17371_v0 = vld [vmem:[#allocation10 + $0x1f4] sm:$0xf0]  ;;  %v15101_v36 = vor.u32 %v17339_v7, %v15100_v29 }
 0x52d   :  { %9909 = vmatpush.bf16.msrb.mxu2 %v15865_v21  ;;  %9884 = vmatpush.bf16.msrb.mxu0 %v15593_v19  ;;  %v15801_v21 = vor.u32 %v17512_v57, %v15798_v37  ;;  %v15356_v57 = vld [vmem:[#allocation10 + $0x2e8] sm:$0xf]  ;;  %v17403_v37 = vld [vmem:[#allocation10 + $0x2f4] sm:$0xf0] }
 0x52e   :  { %9878 = vmatmul.bf16.vlgmr.msra.gmra.mxu3 %v18454_v8  ;;  %v15357_v17 = vor.u32 %v17403_v37, %v15356_v57  ;;  %v17395_v42 = vld [vmem:[#allocation10 + $0x2b4] sm:$0xf0] }
 0x52f   :  { %9922 = vmatpush.bf16.msrb.mxu3 %v15993_v34  ;;  %9897 = vmatpush.bf16.msrb.mxu1 %v15721_v23  ;;  %v15929_v34 = vor.u32 %v17544_v30, %v15926_v48  ;;  %v8100_v49 = vpop.f32.mrf.mxu2  ;;  %v8076_v23 = vpop.f32.mrf.mxu0  ;;  %v15625_v30 = vor.u32 %v17468_v61, %v15622_v10  ;;  %v17359_v61 = vld [vmem:[#allocation10 + $0x194] sm:$0xf0]  ;;  %v15308_v10 = vld [vmem:[#allocation10 + $0x288] sm:$0xf] }
 0x530   :  { %v8101_v12 = vadd.f32 %v8100_v49, %v8088_v43  ;;  %v8089_v2 = vpop.f32.mrf.mxu1  ;;  %v15228_v43 = vld [vmem:[#allocation10 + $0x1e8] sm:$0xf]  ;;  %v17335_v49 = vld [vmem:[#allocation10 + $0xd4] sm:$0xf0] }
 0x531   :  { %9910 = vmatpush.bf16.msrb.mxu2 %v15849_v32  ;;  %9885 = vmatpush.bf16.msrb.mxu0 %v15577_v40  ;;  %v8113_v19 = vpop.f32.mrf.mxu3  ;;  %v17540_v32 = vld [vmem:[#allocation10 + $0x744] sm:$0xf]  ;;  %v15229_v14 = vor.u32 %v17371_v0, %v15228_v43  ;;  %v15468_v23 = vld [vmem:[#allocation10 + $0x3c8] sm:$0xf]  ;;  %v15213_v2 = vor.u32 %v17367_v16, %v15212_v46  ;;  %v17351_v16 = vld [vmem:[#allocation10 + $0x154] sm:$0xf0] }
 0x532   :  { %v15913_v40 = vor.u32 %v17540_v32, %v15910_v44  ;;  %v17431_v32 = vld [vmem:[#allocation10 + $0x3d4] sm:$0xf0]  ;;  %v15036_v43 = vld [vmem:[#allocation10 + $0x68] sm:$0xf] }
 0x533   :  { %9923 = vmatpush.bf16.msrb.mxu3 %v15977_v31  ;;  %9898 = vmatpush.bf16.msrb.mxu1 %v15705_v55  ;;  %v18493_v31 = vadd.f32 %v8113_v19, %v8101_v12  ;;  %v17504_v55 = vld [vmem:[#allocation10 + $0x624] sm:$0xf]  ;;  %v15340_v12 = vld [vmem:[#allocation10 + $0x2c8] sm:$0xf]  ;;  %v17399_v19 = vld [vmem:[#allocation10 + $0x2d4] sm:$0xf0]  ;;  %v15469_v39 = vor.u32 %v17431_v32, %v15468_v23 }
 0x534   :  { %v15164_v0 = vld [vmem:[#allocation10 + $0x168] sm:$0xf] }
 0x535   :  { %9911 = vmatpush.bf16.msrb.mxu2 %v15833_v47  ;;  %9886 = vmatpush.bf16.msrb.mxu0 %v15561_v3  ;;  %v15766_v47 = vld [vmem:[#allocation10 + $0x630] sm:$0xf0] }
 0x536   :  { %v15769_v58 = vor.u32 %v17504_v55, %v15766_v47  ;;  %v15750_v3 = vld [vmem:[#allocation10 + $0x610] sm:$0xf0]  ;;  %v15452_v55 = vld [vmem:[#allocation10 + $0x3a8] sm:$0xf]  ;;  %v17427_v47 = vld [vmem:[#allocation10 + $0x3b4] sm:$0xf0] }
 0x537   :  { %9924 = vmatpush.bf16.msrb.mxu3 %v15961_v5  ;;  %9899 = vmatpush.bf16.msrb.mxu1 %v15689_v62  ;;  %v17436_v5 = vld [vmem:[#allocation10 + $0x404] sm:$0xf]  ;;  %v8102_v1 = vpop.f32.mrf.mxu2  ;;  %v15753_v48 = vor.u32 %v17500_v26, %v15750_v3  ;;  %v17391_v26 = vld [vmem:[#allocation10 + $0x294] sm:$0xf0] }
 0x538   :  { %v17532_v62 = vld [vmem:[#allocation10 + $0x704] sm:$0xf]  ;;  %v15436_v1 = vld [vmem:[#allocation10 + $0x388] sm:$0xf]  ;;  %v17423_v3 = vld [vmem:[#allocation10 + $0x394] sm:$0xf0]  ;;  %v15309_v7 = vor.u32 %v17391_v26, %v15308_v10 }
 0x539   :  { %9912 = vmatpush.bf16.msrb.mxu2 %v15817_v33  ;;  %9887 = vmatpush.bf16.msrb.mxu0 %v15545_v28  ;;  %v15878_v33 = vld [vmem:[#allocation10 + $0x710] sm:$0xf0]  ;;  %v8115_v6 = vpop.f32.mrf.mxu3  ;;  %v15484_v28 = vld [vmem:[#allocation10 + $0x3e8] sm:$0xf]  ;;  %v15437_v37 = vor.u32 %v17423_v3, %v15436_v1  ;;  %v17343_v1 = vld [vmem:[#allocation10 + $0x114] sm:$0xf0] }
 0x53a   :  { %v15244_v3 = vld [vmem:[#allocation10 + $0x208] sm:$0xf] }
 0x53b   :  { %9925 = vmatpush.bf16.msrb.mxu3 %v15945_v41  ;;  %9900 = vmatpush.bf16.msrb.mxu1 %v15673_v4  ;;  %v15497_v41 = vor.u32 %v17436_v5, %v15494_v52  ;;  %v17435_v4 = vld [vmem:[#allocation10 + $0x3f4] sm:$0xf0]  ;;  %v15052_v5 = vld [vmem:[#allocation10 + $0x88] sm:$0xf] }
 0x53c   :  { %v15485_v20 = vor.u32 %v17435_v4, %v15484_v28  ;;  %v17327_v52 = vld [vmem:[#allocation10 + $0x94] sm:$0xf0]  ;;  %v15420_v4 = vld [vmem:[#allocation10 + $0x368] sm:$0xf] }
 0x53d   :  { %9913 = vmatpush.bf16.msrb.mxu2 %v15801_v21  ;;  %9888 = vmatpush.bf16.msrb.mxu0 %v15529_v27  ;;  %v15881_v21 = vor.u32 %v17532_v62, %v15878_v33  ;;  %v15341_v27 = vor.u32 %v17399_v19, %v15340_v12  ;;  %v15053_v6 = vor.u32 %v17327_v52, %v15052_v5  ;;  %v17387_v28 = vld [vmem:[#allocation10 + $0x274] sm:$0xf0]  ;;  %v15276_v12 = vld [vmem:[#allocation10 + $0x248] sm:$0xf] }
 0x53e   :  { %v17383_v19 = vld [vmem:[#allocation10 + $0x254] sm:$0xf0]  ;;  %v15388_v5 = vld [vmem:[#allocation10 + $0x328] sm:$0xf] }
 0x53f   :  { %9926 = vmatpush.bf16.msrb.mxu3 %v15929_v34  ;;  %9901 = vmatpush.bf16.msrb.mxu1 %v15657_v25  ;;  %v15084_v34 = vld [vmem:[#allocation10 + $0xc8] sm:$0xf]  ;;  %v15277_v60 = vor.u32 %v17383_v19, %v15276_v12  ;;  %v17411_v52 = vld [vmem:[#allocation10 + $0x334] sm:$0xf0] }
 0x540   :  { %v15085_v44 = vor.u32 %v17335_v49, %v15084_v34  ;;  %v15068_v25 = vld [vmem:[#allocation10 + $0xa8] sm:$0xf]  ;;  %v17319_v34 = vld [vmem:[#allocation10 + $0x54] sm:$0xf0] }
 0x541   :  { %9914 = vmatpush.bf16.msrb.mxu2 %v15785_v54  ;;  %9889 = vmatpush.bf16.msrb.mxu0 %v15513_v51  ;;  %v17331_v54 = vld [vmem:[#allocation10 + $0xb4] sm:$0xf0]  ;;  %v15148_v49 = vld [vmem:[#allocation10 + $0x148] sm:$0xf] }
 0x542   :  { %v15069_v50 = vor.u32 %v17331_v54, %v15068_v25  ;;  %v17495_v19 = vld [vmem:[#allocation10 + $0x5d4] sm:$0xf0] }
 0x543   :  { %9927 = vmatpush.bf16.msrb.mxu3 %v15913_v40  ;;  %9902 = vmatpush.bf16.msrb.mxu1 %v15641_v53  ;;  %v15324_v40 = vld [vmem:[#allocation10 + $0x2a8] sm:$0xf] }
 0x544   :  { %v15325_v51 = vor.u32 %v17395_v42, %v15324_v40  ;;  %v15180_v53 = vld [vmem:[#allocation10 + $0x188] sm:$0xf]  ;;  %v17315_v42 = vld [vmem:[#allocation10 + $0x34] sm:$0xf0] }
 0x545   :  { %9915 = vmatpush.bf16.msrb.mxu2 %v15769_v58  ;;  %9890 = vmatpush.bf16.msrb.mxu0 %v15497_v41  ;;  %v15453_v58 = vor.u32 %v17427_v47, %v15452_v55  ;;  %v15181_v29 = vor.u32 %v17359_v61, %v15180_v53  ;;  %v17323_v41 = vld [vmem:[#allocation10 + $0x74] sm:$0xf0]  ;;  %v15004_v40 = vld [vmem:[#allocation10 + $0x28] sm:$0xf] }
 0x546   :  { %v15132_v55 = vld [vmem:[#allocation10 + $0x128] sm:$0xf]  ;;  %v15005_v53 = vor.u32 %v17315_v42, %v15004_v40  ;;  %v17311_v61 = vld [vmem:[#allocation10 + $0x14] sm:$0xf0]  ;;  %v18502_v42 = vld [vmem:[#allocation13] sm:$0xf] }
 0x547   :  { %9928 = vmatpush.bf16.msrb.mxu3 %v15897_v18  ;;  %9903 = vmatpush.bf16.msrb.mxu1 %v15625_v30  ;;  %v8126_v18 = vpop.f32.mrf.mxu0  ;;  %v8139_v33 = vpop.f32.mrf.mxu1  ;;  %v17355_v30 = vld [vmem:[#allocation10 + $0x174] sm:$0xf0]  ;;  %v15708_v40 = vld [vmem:[#allocation10 + $0x5a8] sm:$0xf] }
 0x548   :  { %9891 = vmatmul.bf16.vlgmr.msrb.gmra.mxu0 %v18473_v59  ;;  %v8127_v62 = vadd.f32 %v8126_v18, %v18493_v31  ;;  %v15165_v31 = vor.u32 %v17355_v30, %v15164_v0  ;;  %v15116_v18 = vld [vmem:[#allocation10 + $0x108] sm:$0xf]  ;;  %v17467_v0 = vld [vmem:[#allocation10 + $0x4f4] sm:$0xf0] }
 0x549   :  { %9916 = vmatpush.bf16.msrb.mxu2 %v15753_v48  ;;  %9935 = vmatpush.bf16.msra.mxu0 %v15101_v36  ;;  %v15292_v48 = vld [vmem:[#allocation10 + $0x268] sm:$0xf]  ;;  %v15037_v36 = vor.u32 %v17323_v41, %v15036_v43  ;;  %v17499_v30 = vld [vmem:[#allocation10 + $0x5f4] sm:$0xf0] }
 0x54a   :  { %9904 = vmatmul.bf16.vlgmr.msrb.gmra.mxu1 %v18475_v15  ;;  %v8140_v57 = vadd.f32 %v8139_v33, %v8127_v62  ;;  %v15389_v62 = vor.u32 %v17411_v52, %v15388_v5  ;;  %v15612_v41 = vld [vmem:[#allocation10 + $0x4e8] sm:$0xf]  ;;  %v17555_v5 = vld [vmem:[#allocation10 + $0x7b4] sm:$0xf0] }
 0x54b   :  { %9929 = vmatpush.bf16.msrb.mxu3 %v15881_v21  ;;  %9948 = vmatpush.bf16.msra.mxu1 %v15229_v14  ;;  %v17419_v21 = vld [vmem:[#allocation10 + $0x374] sm:$0xf0]  ;;  %v15293_v14 = vor.u32 %v17387_v28, %v15292_v48  ;;  %v15868_v48 = vld [vmem:[#allocation10 + $0x6e8] sm:$0xf] }
 0x54c   :  { %9917 = vmatmul.bf16.vlgmr.msrb.gmra.mxu2 %v18477_v22  ;;  %v15421_v46 = vor.u32 %v17419_v21, %v15420_v4  ;;  %v17531_v28 = vld [vmem:[#allocation10 + $0x6f4] sm:$0xf0]  ;;  %v15117_v4 = vor.u32 %v17343_v1, %v15116_v18  ;;  %v15692_v18 = vld [vmem:[#allocation10 + $0x588] sm:$0xf] }
 0x54d   :  { %9961 = vmatpush.bf16.msra.mxu2 %v15357_v17  ;;  %9936 = vmatpush.bf16.msra.mxu0 %v15085_v44  ;;  %v15020_v17 = vld [vmem:[#allocation10 + $0x48] sm:$0xf] }
 0x54e   :  { %9930 = vmatmul.bf16.vlgmr.msrb.gmra.mxu3 %v18479_v45  ;;  %v15021_v54 = vor.u32 %v17319_v34, %v15020_v17  ;;  %v15613_v17 = vor.u32 %v17467_v0, %v15612_v41 }
 0x54f   :  { %9974 = vmatpush.bf16.msra.mxu3 %v15485_v20  ;;  %9949 = vmatpush.bf16.msra.mxu1 %v15213_v2  ;;  %v8152_v20 = vpop.f32.mrf.mxu2  ;;  %v8128_v44 = vpop.f32.mrf.mxu0  ;;  %v15404_v2 = vld [vmem:[#allocation10 + $0x348] sm:$0xf] }
 0x550   :  { %v8153_v23 = vadd.f32 %v8152_v20, %v8140_v57  ;;  %v8141_v25 = vpop.f32.mrf.mxu1  ;;  %v15740_v57 = vld [vmem:[#allocation10 + $0x5e8] sm:$0xf]  ;;  %v17463_v20 = vld [vmem:[#allocation10 + $0x4d4] sm:$0xf0] }
 0x551   :  { %9962 = vmatpush.bf16.msra.mxu2 %v15341_v27  ;;  %9937 = vmatpush.bf16.msra.mxu0 %v15069_v50  ;;  %v8165_v32 = vpop.f32.mrf.mxu3  ;;  %v17415_v27 = vld [vmem:[#allocation10 + $0x354] sm:$0xf0]  ;;  %v15741_v34 = vor.u32 %v17499_v30, %v15740_v57  ;;  %v15980_v44 = vld [vmem:[#allocation10 + $0x7c8] sm:$0xf] }
 0x552   :  { %v18500_v38 = vadd.f32 %v8165_v32, %v8153_v23  ;;  %v15405_v47 = vor.u32 %v17415_v27, %v15404_v2  ;;  %v17347_v50 = vld [vmem:[#allocation10 + $0x134] sm:$0xf0]  ;;  %v15852_v23 = vld [vmem:[#allocation10 + $0x6c8] sm:$0xf] }
 0x553   :  { %9975 = vmatpush.bf16.msra.mxu3 %v15469_v39  ;;  %9950 = vmatpush.bf16.msra.mxu1 %v15197_v63  ;;  %v15149_v39 = vor.u32 %v17351_v16, %v15148_v49  ;;  %v15260_v63 = vld [vmem:[#allocation10 + $0x228] sm:$0xf]  ;;  %v15133_v10 = vor.u32 %v17347_v50, %v15132_v55  ;;  %v15869_v49 = vor.u32 %v17531_v28, %v15868_v48  ;;  %v17527_v32 = vld [vmem:[#allocation10 + $0x6d4] sm:$0xf0] }
 0x554   :  { %v15724_v16 = vld [vmem:[#allocation10 + $0x5c8] sm:$0xf]  ;;  %v17559_v2 = vld [vmem:[#allocation10 + $0x7d4] sm:$0xf0] }
 0x555   :  { %9963 = vmatpush.bf16.msra.mxu2 %v15325_v51  ;;  %9938 = vmatpush.bf16.msra.mxu0 %v15053_v6  ;;  %v17379_v51 = vld [vmem:[#allocation10 + $0x234] sm:$0xf0]  ;;  %v15580_v25 = vld [vmem:[#allocation10 + $0x4a8] sm:$0xf]  ;;  %v15981_v55 = vor.u32 %v17559_v2, %v15980_v44 }
 0x556   :  { %v15261_v26 = vor.u32 %v17379_v51, %v15260_v63  ;;  %v17375_v6 = vld [vmem:[#allocation10 + $0x214] sm:$0xf0]  ;;  %v15836_v50 = vld [vmem:[#allocation10 + $0x6a8] sm:$0xf] }
 0x557   :  { %9976 = vmatpush.bf16.msra.mxu3 %v15453_v58  ;;  %9951 = vmatpush.bf16.msra.mxu1 %v15181_v29  ;;  %v14988_v58 = vld [vmem:[#allocation10 + $0x8] sm:$0xf]  ;;  %v8154_v33 = vpop.f32.mrf.mxu2  ;;  %v15245_v21 = vor.u32 %v17375_v6, %v15244_v3  ;;  %v17523_v63 = vld [vmem:[#allocation10 + $0x6b4] sm:$0xf0] }
 0x558   :  { %v15372_v29 = vld [vmem:[#allocation10 + $0x308] sm:$0xf]  ;;  %v17487_v3 = vld [vmem:[#allocation10 + $0x594] sm:$0xf0] }
 0x559   :  { %9964 = vmatpush.bf16.msra.mxu2 %v15309_v7  ;;  %9939 = vmatpush.bf16.msra.mxu0 %v15037_v36  ;;  %v17407_v7 = vld [vmem:[#allocation10 + $0x314] sm:$0xf0]  ;;  %v8167_v43 = vpop.f32.mrf.mxu3  ;;  %v15996_v36 = vld [vmem:[#allocation10 + $0x7e8] sm:$0xf]  ;;  %v15693_v57 = vor.u32 %v17487_v3, %v15692_v18 }
 0x55a   :  { %v15964_v51 = vld [vmem:[#allocation10 + $0x7a8] sm:$0xf]  ;;  %v17519_v33 = vld [vmem:[#allocation10 + $0x694] sm:$0xf0] }
 0x55b   :  { %9977 = vmatpush.bf16.msra.mxu3 %v15437_v37  ;;  %9952 = vmatpush.bf16.msra.mxu1 %v15165_v31  ;;  %v14989_v37 = vor.u32 %v17311_v61, %v14988_v58  ;;  %v17563_v31 = vld [vmem:[#allocation10 + $0x7f4] sm:$0xf0]  ;;  %v15837_v61 = vor.u32 %v17523_v63, %v15836_v50  ;;  %v15965_v1 = vor.u32 %v17555_v5, %v15964_v51  ;;  %v15548_v30 = vld [vmem:[#allocation10 + $0x468] sm:$0xf] }
 0x55c   :  { %v15997_v12 = vor.u32 %v17563_v31, %v15996_v36  ;;  %v17451_v48 = vld [vmem:[#allocation10 + $0x474] sm:$0xf0]  ;;  %v15676_v28 = vld [vmem:[#allocation10 + $0x568] sm:$0xf] }
 0x55d   :  { %9965 = vmatpush.bf16.msra.mxu2 %v15293_v14  ;;  %9940 = vmatpush.bf16.msra.mxu0 %v15021_v54  ;;  %v15373_v14 = vor.u32 %v17407_v7, %v15372_v29  ;;  %v15725_v54 = vor.u32 %v17495_v19, %v15724_v16  ;;  %v15948_v29 = vld [vmem:[#allocation10 + $0x788] sm:$0xf]  ;;  %v17551_v7 = vld [vmem:[#allocation10 + $0x794] sm:$0xf0] }
 0x55e   :  { %v17483_v36 = vld [vmem:[#allocation10 + $0x574] sm:$0xf0]  ;;  %v15804_v31 = vld [vmem:[#allocation10 + $0x668] sm:$0xf] }
 0x55f   :  { %9978 = vmatpush.bf16.msra.mxu3 %v15421_v46  ;;  %9953 = vmatpush.bf16.msra.mxu1 %v15149_v39  ;;  %v15596_v46 = vld [vmem:[#allocation10 + $0x4c8] sm:$0xf]  ;;  %v15853_v39 = vor.u32 %v17527_v32, %v15852_v23  ;;  %v17479_v44 = vld [vmem:[#allocation10 + $0x554] sm:$0xf0] }
 0x560   :  { %v15597_v27 = vor.u32 %v17463_v20, %v15596_v46  ;;  %v15677_v46 = vor.u32 %v17483_v36, %v15676_v28  ;;  %v15532_v16 = vld [vmem:[#allocation10 + $0x448] sm:$0xf]  ;;  %v17369_v36 = vld [vmem:[#allocation10 + $0x1ec] sm:$0xf] }
 0x561   :  { %9966 = vmatpush.bf16.msra.mxu2 %v15277_v60  ;;  %9941 = vmatpush.bf16.msra.mxu0 %v15005_v53  ;;  %v17459_v60 = vld [vmem:[#allocation10 + $0x4b4] sm:$0xf0]  ;;  %v8439_v53 = vperm.slane %v18502_v42, 0  ;;  %v15660_v19 = vld [vmem:[#allocation10 + $0x548] sm:$0xf] }
 0x562   :  { %v15581_v52 = vor.u32 %v17459_v60, %v15580_v25  ;;  %v15788_v2 = vld [vmem:[#allocation10 + $0x648] sm:$0xf]  ;;  %v15661_v63 = vor.u32 %v17479_v44, %v15660_v19  ;;  %v17333_v44 = vld [vmem:[#allocation10 + $0xcc] sm:$0xf] }
 0x563   :  { %9979 = vmatpush.bf16.msra.mxu3 %v15405_v47  ;;  %9954 = vmatpush.bf16.msra.mxu1 %v15133_v10  ;;  %v17491_v47 = vld [vmem:[#allocation10 + $0x5b4] sm:$0xf0]  ;;  %v15564_v10 = vld [vmem:[#allocation10 + $0x488] sm:$0xf] }
 0x564   :  { %v15709_v58 = vor.u32 %v17491_v47, %v15708_v40  ;;  %v15916_v60 = vld [vmem:[#allocation10 + $0x748] sm:$0xf]  ;;  %v17543_v40 = vld [vmem:[#allocation10 + $0x754] sm:$0xf0] }
 0x565   :  { %9967 = vmatpush.bf16.msra.mxu2 %v15261_v26  ;;  %9942 = vmatpush.bf16.msra.mxu0 %v14989_v37  ;;  %v17455_v26 = vld [vmem:[#allocation10 + $0x494] sm:$0xf0]  ;;  %v9736_v6 = vpop.f32.mrf.mxu0  ;;  %v15516_v5 = vld [vmem:[#allocation10 + $0x428] sm:$0xf] }
 0x566   :  { %v9737_v43 = vadd.f32 %v9736_v6, %v8439_v53  ;;  %v15565_v0 = vor.u32 %v17455_v26, %v15564_v10  ;;  %v15644_v53 = vld [vmem:[#allocation10 + $0x528] sm:$0xf]  ;;  %v17507_v26 = vld [vmem:[#allocation10 + $0x634] sm:$0xf0] }
 0x567   :  { %9980 = vmatpush.bf16.msra.mxu3 %v15389_v62  ;;  %9955 = vmatpush.bf16.msra.mxu1 %v15117_v4  ;;  %v15820_v62 = vld [vmem:[#allocation10 + $0x688] sm:$0xf]  ;;  %v9749_v41 = vpop.f32.mrf.mxu1 }
 0x568   :  { %9943 = vmatmul.bf16.vlgmr.msra.gmra.mxu0 %v18448_v9  ;;  %v15821_v37 = vor.u32 %v17519_v33, %v15820_v62  ;;  %v9750_v4 = vadd.f32 %v9749_v41, %v9737_v43  ;;  %v15772_v10 = vld [vmem:[#allocation10 + $0x628] sm:$0xf]  ;;  %v17439_v33 = vld [vmem:[#allocation10 + $0x414] sm:$0xf0] }
 0x569   :  { %9968 = vmatpush.bf16.msra.mxu2 %v15245_v21  ;;  %9987 = vmatpush.bf16.msrb.mxu0 %v15613_v17  ;;  %v15949_v21 = vor.u32 %v17551_v7, %v15948_v29  ;;  %v15932_v17 = vld [vmem:[#allocation10 + $0x768] sm:$0xf]  ;;  %v15773_v29 = vor.u32 %v17507_v26, %v15772_v10  ;;  %v17471_v43 = vld [vmem:[#allocation10 + $0x514] sm:$0xf0]  ;;  %v17393_v10 = vld [vmem:[#allocation10 + $0x2ac] sm:$0xf] }
 0x56a   :  { %9956 = vmatmul.bf16.vlgmr.msra.gmra.mxu1 %v18450_v11  ;;  %v15900_v18 = vld [vmem:[#allocation10 + $0x728] sm:$0xf]  ;;  %v15326_v26 = vld [vmem:[#allocation10 + $0x2b8] sm:$0xf0] }
 0x56b   :  { %9981 = vmatpush.bf16.msra.mxu3 %v15373_v14  ;;  %10000 = vmatpush.bf16.msrb.mxu1 %v15741_v34  ;;  %v17515_v14 = vld [vmem:[#allocation10 + $0x674] sm:$0xf0]  ;;  %v15500_v62 = vld [vmem:[#allocation10 + $0x408] sm:$0xf] }
 0x56c   :  { %9969 = vmatmul.bf16.vlgmr.msra.gmra.mxu2 %v18452_v24  ;;  %v17547_v34 = vld [vmem:[#allocation10 + $0x774] sm:$0xf0]  ;;  %v15805_v20 = vor.u32 %v17515_v14, %v15804_v31  ;;  %v15628_v7 = vld [vmem:[#allocation10 + $0x508] sm:$0xf]  ;;  %v15501_v31 = vor.u32 %v17439_v33, %v15500_v62  ;;  %v15230_v14 = vld [vmem:[#allocation10 + $0x1f8] sm:$0xf0]  ;;  %v15329_v33 = vor.u32 %v17393_v10, %v15326_v26 }
 0x56d   :  { %10013 = vmatpush.bf16.msrb.mxu2 %v15869_v49  ;;  %9988 = vmatpush.bf16.msrb.mxu0 %v15597_v27  ;;  %v15549_v49 = vor.u32 %v17451_v48, %v15548_v30  ;;  %v15933_v23 = vor.u32 %v17547_v34, %v15932_v17  ;;  %v17511_v27 = vld [vmem:[#allocation10 + $0x654] sm:$0xf0]  ;;  %v15756_v41 = vld [vmem:[#allocation10 + $0x608] sm:$0xf]  ;;  %v17401_v17 = vld [vmem:[#allocation10 + $0x2ec] sm:$0xf] }
 0x56e   :  { %9982 = vmatmul.bf16.vlgmr.msra.gmra.mxu3 %v18454_v8  ;;  %v15789_v51 = vor.u32 %v17511_v27, %v15788_v2  ;;  %v15884_v30 = vld [vmem:[#allocation10 + $0x708] sm:$0xf]  ;;  %v17535_v48 = vld [vmem:[#allocation10 + $0x714] sm:$0xf0]  ;;  %v15358_v34 = vld [vmem:[#allocation10 + $0x2f8] sm:$0xf0] }
 0x56f   :  { %10026 = vmatpush.bf16.msrb.mxu3 %v15997_v12  ;;  %10001 = vmatpush.bf16.msrb.mxu1 %v15725_v54  ;;  %v17447_v12 = vld [vmem:[#allocation10 + $0x454] sm:$0xf0]  ;;  %v9762_v32 = vpop.f32.mrf.mxu2  ;;  %v15086_v2 = vld [vmem:[#allocation10 + $0xd8] sm:$0xf0]  ;;  %v17365_v27 = vld [vmem:[#allocation10 + $0x1cc] sm:$0xf] }
 0x570   :  { %v9763_v25 = vadd.f32 %v9762_v32, %v9750_v4  ;;  %v15533_v47 = vor.u32 %v17447_v12, %v15532_v16  ;;  %v17337_v4 = vld [vmem:[#allocation10 + $0xec] sm:$0xf]  ;;  %v15486_v16 = vld [vmem:[#allocation10 + $0x3f8] sm:$0xf0]  ;;  %v15885_v12 = vor.u32 %v17535_v48, %v15884_v30  ;;  %v15361_v32 = vor.u32 %v17401_v17, %v15358_v34 }
 0x571   :  { %10014 = vmatpush.bf16.msrb.mxu2 %v15853_v39  ;;  %9989 = vmatpush.bf16.msrb.mxu0 %v15581_v52  ;;  %v9775_v54 = vpop.f32.mrf.mxu3  ;;  %v9738_v39 = vpop.f32.mrf.mxu0  ;;  %v17443_v52 = vld [vmem:[#allocation10 + $0x434] sm:$0xf0]  ;;  %v17421_v30 = vld [vmem:[#allocation10 + $0x38c] sm:$0xf]  ;;  %v15438_v48 = vld [vmem:[#allocation10 + $0x398] sm:$0xf0] }
 0x572   :  { %v18509_v50 = vadd.f32 %v9775_v54, %v9763_v25  ;;  %v15517_v3 = vor.u32 %v17443_v52, %v15516_v5  ;;  %v15214_v54 = vld [vmem:[#allocation10 + $0x1d8] sm:$0xf0]  ;;  %v17397_v39 = vld [vmem:[#allocation10 + $0x2cc] sm:$0xf] }
 0x573   :  { %10027 = vmatpush.bf16.msrb.mxu3 %v15981_v55  ;;  %10002 = vmatpush.bf16.msrb.mxu1 %v15709_v58  ;;  %v9751_v55 = vpop.f32.mrf.mxu1  ;;  %v15917_v58 = vor.u32 %v17543_v40, %v15916_v60  ;;  %v15342_v60 = vld [vmem:[#allocation10 + $0x2d8] sm:$0xf0]  ;;  %v17429_v40 = vld [vmem:[#allocation10 + $0x3cc] sm:$0xf] }
 0x574   :  { %v15470_v55 = vld [vmem:[#allocation10 + $0x3d8] sm:$0xf0]  ;;  %v17329_v5 = vld [vmem:[#allocation10 + $0xac] sm:$0xf] }
 0x575   :  { %10015 = vmatpush.bf16.msrb.mxu2 %v15837_v61  ;;  %9990 = vmatpush.bf16.msrb.mxu0 %v15565_v0  ;;  %v17475_v61 = vld [vmem:[#allocation10 + $0x534] sm:$0xf0]  ;;  %v15070_v52 = vld [vmem:[#allocation10 + $0xb8] sm:$0xf0]  ;;  %v17353_v34 = vld [vmem:[#allocation10 + $0x16c] sm:$0xf] }
 0x576   :  { %v15645_v6 = vor.u32 %v17475_v61, %v15644_v53  ;;  %v17361_v53 = vld [vmem:[#allocation10 + $0x1ac] sm:$0xf]  ;;  %v15198_v61 = vld [vmem:[#allocation10 + $0x1b8] sm:$0xf0] }
 0x577   :  { %10028 = vmatpush.bf16.msrb.mxu3 %v15965_v1  ;;  %10003 = vmatpush.bf16.msrb.mxu1 %v15693_v57  ;;  %v17539_v1 = vld [vmem:[#allocation10 + $0x734] sm:$0xf0]  ;;  %v9764_v57 = vpop.f32.mrf.mxu2  ;;  %v15201_v62 = vor.u32 %v17361_v53, %v15198_v61  ;;  %v15038_v17 = vld [vmem:[#allocation10 + $0x78] sm:$0xf0] }
 0x578   :  { %v15901_v0 = vor.u32 %v17539_v1, %v15900_v18  ;;  %v17425_v18 = vld [vmem:[#allocation10 + $0x3ac] sm:$0xf]  ;;  %v15454_v1 = vld [vmem:[#allocation10 + $0x3b8] sm:$0xf0] }
 0x579   :  { %10016 = vmatpush.bf16.msrb.mxu2 %v15821_v37  ;;  %9991 = vmatpush.bf16.msrb.mxu0 %v15549_v49  ;;  %v17503_v37 = vld [vmem:[#allocation10 + $0x614] sm:$0xf0]  ;;  %v9777_v28 = vpop.f32.mrf.mxu3  ;;  %v15629_v49 = vor.u32 %v17471_v43, %v15628_v7  ;;  %v17357_v7 = vld [vmem:[#allocation10 + $0x18c] sm:$0xf]  ;;  %v15457_v43 = vor.u32 %v17425_v18, %v15454_v1  ;;  %v15310_v57 = vld [vmem:[#allocation10 + $0x298] sm:$0xf0] }
 0x57a   :  { %v17313_v18 = vld [vmem:[#allocation10 + $0x2c] sm:$0xf]  ;;  %v15006_v1 = vld [vmem:[#allocation10 + $0x38] sm:$0xf0] }
 0x57b   :  { %10029 = vmatpush.bf16.msrb.mxu3 %v15949_v21  ;;  %10004 = vmatpush.bf16.msrb.mxu1 %v15677_v46  ;;  %v15102_v21 = vld [vmem:[#allocation10 + $0xf8] sm:$0xf0]  ;;  %v15757_v46 = vor.u32 %v17503_v37, %v15756_v41 }
 0x57c   :  { %v15105_v19 = vor.u32 %v17337_v4, %v15102_v21  ;;  %v15182_v41 = vld [vmem:[#allocation10 + $0x198] sm:$0xf0] }
 0x57d   :  { %10017 = vmatpush.bf16.msrb.mxu2 %v15805_v20  ;;  %9992 = vmatpush.bf16.msrb.mxu0 %v15533_v47  ;;  %v17433_v20 = vld [vmem:[#allocation10 + $0x3ec] sm:$0xf]  ;;  %v15089_v47 = vor.u32 %v17333_v44, %v15086_v2 }
 0x57e   :  { %v15489_v25 = vor.u32 %v17433_v20, %v15486_v16  ;;  %v15166_v20 = vld [vmem:[#allocation10 + $0x178] sm:$0xf0]  ;;  %v17385_v16 = vld [vmem:[#allocation10 + $0x26c] sm:$0xf] }
 0x57f   :  { %10030 = vmatpush.bf16.msrb.mxu3 %v15933_v23  ;;  %10005 = vmatpush.bf16.msrb.mxu1 %v15661_v63  ;;  %v15233_v23 = vor.u32 %v17369_v36, %v15230_v14  ;;  %v15217_v63 = vor.u32 %v17365_v27, %v15214_v54  ;;  %v15185_v36 = vor.u32 %v17357_v7, %v15182_v41  ;;  %v17321_v14 = vld [vmem:[#allocation10 + $0x6c] sm:$0xf]  ;;  %v15022_v27 = vld [vmem:[#allocation10 + $0x58] sm:$0xf0] }
 0x580   :  { %v17317_v2 = vld [vmem:[#allocation10 + $0x4c] sm:$0xf]  ;;  %v15009_v41 = vor.u32 %v17313_v18, %v15006_v1  ;;  %v15582_v1 = vld [vmem:[#allocation10 + $0x4b8] sm:$0xf0] }
 0x581   :  { %10018 = vmatpush.bf16.msrb.mxu2 %v15789_v51  ;;  %9993 = vmatpush.bf16.msrb.mxu0 %v15517_v3  ;;  %v15345_v51 = vor.u32 %v17397_v39, %v15342_v60  ;;  %v15073_v3 = vor.u32 %v17329_v5, %v15070_v52  ;;  %v15150_v60 = vld [vmem:[#allocation10 + $0x158] sm:$0xf0]  ;;  %v17413_v5 = vld [vmem:[#allocation10 + $0x34c] sm:$0xf] }
 0x582   :  { %v15406_v52 = vld [vmem:[#allocation10 + $0x358] sm:$0xf0]  ;;  %v17409_v7 = vld [vmem:[#allocation10 + $0x32c] sm:$0xf] }
 0x583   :  { %10031 = vmatpush.bf16.msrb.mxu3 %v15917_v58  ;;  %10006 = vmatpush.bf16.msrb.mxu1 %v15645_v6  ;;  %v15473_v58 = vor.u32 %v17429_v40, %v15470_v55  ;;  %v17325_v6 = vld [vmem:[#allocation10 + $0x8c] sm:$0xf]  ;;  %v15278_v55 = vld [vmem:[#allocation10 + $0x258] sm:$0xf0] }
 0x584   :  { %v17381_v40 = vld [vmem:[#allocation10 + $0x24c] sm:$0xf] }
 0x585   :  { %10019 = vmatpush.bf16.msrb.mxu2 %v15773_v29  ;;  %9994 = vmatpush.bf16.msrb.mxu0 %v15501_v31  ;;  %v15054_v29 = vld [vmem:[#allocation10 + $0x98] sm:$0xf0]  ;;  %v9788_v37 = vpop.f32.mrf.mxu0  ;;  %v15281_v26 = vor.u32 %v17381_v40, %v15278_v55  ;;  %v17493_v55 = vld [vmem:[#allocation10 + $0x5cc] sm:$0xf] }
 0x586   :  { %v9789_v28 = vadd.f32 %v9788_v37, %v18509_v50  ;;  %v15057_v21 = vor.u32 %v17325_v6, %v15054_v29  ;;  %v15169_v50 = vor.u32 %v17353_v34, %v15166_v20  ;;  %v17377_v6 = vld [vmem:[#allocation10 + $0x22c] sm:$0xf]  ;;  %v15262_v29 = vld [vmem:[#allocation10 + $0x238] sm:$0xf0] }
 0x587   :  { %10032 = vmatpush.bf16.msrb.mxu3 %v15901_v0  ;;  %10007 = vmatpush.bf16.msrb.mxu1 %v15629_v49  ;;  %v17389_v0 = vld [vmem:[#allocation10 + $0x28c] sm:$0xf]  ;;  %v9801_v4 = vpop.f32.mrf.mxu1  ;;  %v15598_v40 = vld [vmem:[#allocation10 + $0x4d8] sm:$0xf0] }
 0x588   :  { %9995 = vmatmul.bf16.vlgmr.msrb.gmra.mxu0 %v18473_v59  ;;  %v15313_v31 = vor.u32 %v17389_v0, %v15310_v57  ;;  %v9802_v49 = vadd.f32 %v9801_v4, %v9789_v28  ;;  %v17309_v0 = vld [vmem:[#allocation10 + $0xc] sm:$0xf]  ;;  %v14990_v57 = vld [vmem:[#allocation10 + $0x18] sm:$0xf0] }
 0x589   :  { %10020 = vmatpush.bf16.msrb.mxu2 %v15757_v46  ;;  %10039 = vmatpush.bf16.msra.mxu0 %v15105_v19  ;;  %v15441_v46 = vor.u32 %v17421_v30, %v15438_v48  ;;  %v17417_v19 = vld [vmem:[#allocation10 + $0x36c] sm:$0xf]  ;;  %v15265_v30 = vor.u32 %v17377_v6, %v15262_v29  ;;  %v15118_v28 = vld [vmem:[#allocation10 + $0x118] sm:$0xf0] }
 0x58a   :  { %10008 = vmatmul.bf16.vlgmr.msrb.gmra.mxu1 %v18475_v15  ;;  %v17341_v48 = vld [vmem:[#allocation10 + $0x10c] sm:$0xf]  ;;  %v15838_v29 = vld [vmem:[#allocation10 + $0x6b8] sm:$0xf0] }
 0x58b   :  { %10033 = vmatpush.bf16.msrb.mxu3 %v15885_v12  ;;  %10052 = vmatpush.bf16.msra.mxu1 %v15233_v23  ;;  %v15294_v12 = vld [vmem:[#allocation10 + $0x278] sm:$0xf0]  ;;  %v17373_v4 = vld [vmem:[#allocation10 + $0x20c] sm:$0xf] }
 0x58c   :  { %10021 = vmatmul.bf16.vlgmr.msrb.gmra.mxu2 %v18477_v22  ;;  %v15422_v23 = vld [vmem:[#allocation10 + $0x378] sm:$0xf0]  ;;  %v15297_v44 = vor.u32 %v17385_v16, %v15294_v12  ;;  %v17497_v20 = vld [vmem:[#allocation10 + $0x5ec] sm:$0xf]  ;;  %v14993_v16 = vor.u32 %v17309_v0, %v14990_v57 }
 0x58d   :  { %10065 = vmatpush.bf16.msra.mxu2 %v15361_v32  ;;  %10040 = vmatpush.bf16.msra.mxu0 %v15089_v47  ;;  %v15041_v32 = vor.u32 %v17321_v14, %v15038_v17  ;;  %v15425_v54 = vor.u32 %v17417_v19, %v15422_v23  ;;  %v17405_v14 = vld [vmem:[#allocation10 + $0x30c] sm:$0xf]  ;;  %v15374_v17 = vld [vmem:[#allocation10 + $0x318] sm:$0xf0] }
 0x58e   :  { %10034 = vmatmul.bf16.vlgmr.msrb.gmra.mxu3 %v18479_v45  ;;  %v15742_v12 = vld [vmem:[#allocation10 + $0x5f8] sm:$0xf0]  ;;  %v17529_v19 = vld [vmem:[#allocation10 + $0x6ec] sm:$0xf] }
 0x58f   :  { %10078 = vmatpush.bf16.msra.mxu3 %v15489_v25  ;;  %10053 = vmatpush.bf16.msra.mxu1 %v15217_v63  ;;  %v17349_v25 = vld [vmem:[#allocation10 + $0x14c] sm:$0xf]  ;;  %v9814_v39 = vpop.f32.mrf.mxu2  ;;  %v9803_v53 = vpop.f32.mrf.mxu1  ;;  %v15870_v23 = vld [vmem:[#allocation10 + $0x6f8] sm:$0xf0] }
 0x590   :  { %v9815_v47 = vadd.f32 %v9814_v39, %v9802_v49  ;;  %v15153_v10 = vor.u32 %v17349_v25, %v15150_v60  ;;  %v17465_v49 = vld [vmem:[#allocation10 + $0x4ec] sm:$0xf]  ;;  %v15873_v39 = vor.u32 %v17529_v19, %v15870_v23  ;;  %v15982_v53 = vld [vmem:[#allocation10 + $0x7d8] sm:$0xf0] }
 0x591   :  { %10066 = vmatpush.bf16.msra.mxu2 %v15345_v51  ;;  %10041 = vmatpush.bf16.msra.mxu0 %v15073_v3  ;;  %v9827_v63 = vpop.f32.mrf.mxu3  ;;  %v9790_v51 = vpop.f32.mrf.mxu0  ;;  %v17345_v3 = vld [vmem:[#allocation10 + $0x12c] sm:$0xf]  ;;  %v15806_v19 = vld [vmem:[#allocation10 + $0x678] sm:$0xf0] }
 0x592   :  { %v18516_v61 = vadd.f32 %v9827_v63, %v9815_v47  ;;  %v17461_v60 = vld [vmem:[#allocation10 + $0x4cc] sm:$0xf]  ;;  %v15726_v63 = vld [vmem:[#allocation10 + $0x5d8] sm:$0xf0] }
 0x593   :  { %10079 = vmatpush.bf16.msra.mxu3 %v15473_v58  ;;  %10054 = vmatpush.bf16.msra.mxu1 %v15201_v62  ;;  %v15025_v58 = vor.u32 %v17317_v2, %v15022_v27  ;;  %v15409_v62 = vor.u32 %v17413_v5, %v15406_v52  ;;  %v15998_v2 = vld [vmem:[#allocation10 + $0x7f8] sm:$0xf0]  ;;  %v15377_v27 = vor.u32 %v17405_v14, %v15374_v17  ;;  %v17525_v51 = vld [vmem:[#allocation10 + $0x6cc] sm:$0xf] }
 0x594   :  { %v15854_v5 = vld [vmem:[#allocation10 + $0x6d8] sm:$0xf0]  ;;  %v17557_v52 = vld [vmem:[#allocation10 + $0x7cc] sm:$0xf] }
 0x595   :  { %10067 = vmatpush.bf16.msra.mxu2 %v15329_v33  ;;  %10042 = vmatpush.bf16.msra.mxu0 %v15057_v21  ;;  %v15134_v33 = vld [vmem:[#allocation10 + $0x138] sm:$0xf0]  ;;  %v17457_v18 = vld [vmem:[#allocation10 + $0x4ac] sm:$0xf] }
 0x596   :  { %v15137_v37 = vor.u32 %v17345_v3, %v15134_v33  ;;  %v17489_v3 = vld [vmem:[#allocation10 + $0x5ac] sm:$0xf]  ;;  %v15710_v33 = vld [vmem:[#allocation10 + $0x5b8] sm:$0xf0] }
 0x597   :  { %10080 = vmatpush.bf16.msra.mxu3 %v15457_v43  ;;  %10055 = vmatpush.bf16.msra.mxu1 %v15185_v36  ;;  %v15390_v43 = vld [vmem:[#allocation10 + $0x338] sm:$0xf0]  ;;  %v9816_v36 = vpop.f32.mrf.mxu2  ;;  %v17521_v6 = vld [vmem:[#allocation10 + $0x6ac] sm:$0xf]  ;;  %v15713_v0 = vor.u32 %v17489_v3, %v15710_v33 }
 0x598   :  { %v15393_v21 = vor.u32 %v17409_v7, %v15390_v43  ;;  %v17553_v7 = vld [vmem:[#allocation10 + $0x7ac] sm:$0xf]  ;;  %v15966_v43 = vld [vmem:[#allocation10 + $0x7b8] sm:$0xf0]  ;;  %v15841_v57 = vor.u32 %v17521_v6, %v15838_v29 }
 0x599   :  { %10068 = vmatpush.bf16.msra.mxu2 %v15313_v31  ;;  %10043 = vmatpush.bf16.msra.mxu0 %v15041_v32  ;;  %v15246_v31 = vld [vmem:[#allocation10 + $0x218] sm:$0xf0]  ;;  %v9829_v34 = vpop.f32.mrf.mxu3  ;;  %v15121_v32 = vor.u32 %v17341_v48, %v15118_v28  ;;  %v15969_v48 = vor.u32 %v17553_v7, %v15966_v43  ;;  %v17545_v23 = vld [vmem:[#allocation10 + $0x76c] sm:$0xf] }
 0x59a   :  { %v15694_v28 = vld [vmem:[#allocation10 + $0x598] sm:$0xf0]  ;;  %v17449_v34 = vld [vmem:[#allocation10 + $0x46c] sm:$0xf] }
 0x59b   :  { %10081 = vmatpush.bf16.msra.mxu3 %v15441_v46  ;;  %10056 = vmatpush.bf16.msra.mxu1 %v15169_v50  ;;  %v15614_v46 = vld [vmem:[#allocation10 + $0x4f8] sm:$0xf0]  ;;  %v15249_v50 = vor.u32 %v17373_v4, %v15246_v31  ;;  %v17517_v4 = vld [vmem:[#allocation10 + $0x68c] sm:$0xf] }
 0x59c   :  { %v15617_v25 = vor.u32 %v17465_v49, %v15614_v46  ;;  %v15950_v36 = vld [vmem:[#allocation10 + $0x798] sm:$0xf0]  ;;  %v17481_v46 = vld [vmem:[#allocation10 + $0x56c] sm:$0xf] }
 0x59d   :  { %10069 = vmatpush.bf16.msra.mxu2 %v15297_v44  ;;  %10044 = vmatpush.bf16.msra.mxu0 %v15025_v58  ;;  %v17561_v44 = vld [vmem:[#allocation10 + $0x7ec] sm:$0xf]  ;;  %v15601_v58 = vor.u32 %v17461_v60, %v15598_v40  ;;  %v15550_v49 = vld [vmem:[#allocation10 + $0x478] sm:$0xf0] }
 0x59e   :  { %v16001_v47 = vor.u32 %v17561_v44, %v15998_v2  ;;  %v15662_v40 = vld [vmem:[#allocation10 + $0x558] sm:$0xf0]  ;;  %v17473_v3 = vld [vmem:[#allocation10 + $0x52c] sm:$0xf] }
 0x59f   :  { %10082 = vmatpush.bf16.msra.mxu3 %v15425_v54  ;;  %10057 = vmatpush.bf16.msra.mxu1 %v15153_v10  ;;  %v15745_v54 = vor.u32 %v17497_v20, %v15742_v12  ;;  %v15729_v10 = vor.u32 %v17493_v55, %v15726_v63  ;;  %v17513_v12 = vld [vmem:[#allocation10 + $0x66c] sm:$0xf]  ;;  %v15646_v33 = vld [vmem:[#allocation10 + $0x538] sm:$0xf0] }
 0x5a0   :  { %v15809_v2 = vor.u32 %v17513_v12, %v15806_v19  ;;  %v17509_v55 = vld [vmem:[#allocation10 + $0x64c] sm:$0xf]  ;;  %v15774_v29 = vld [vmem:[#allocation10 + $0x638] sm:$0xf0]  ;;  %v17587_v12 = vld [vmem:[%s18765_s9 + $0xb8] sm:$0xff] }
 0x5a1   :  { %10070 = vmatpush.bf16.msra.mxu2 %v15281_v26  ;;  %10045 = vmatpush.bf16.msra.mxu0 %v15009_v41  ;;  %v15857_v26 = vor.u32 %v17525_v51, %v15854_v5  ;;  %v15585_v41 = vor.u32 %v17457_v18, %v15582_v1  ;;  %v17541_v5 = vld [vmem:[#allocation10 + $0x74c] sm:$0xf]  ;;  %v15518_v1 = vld [vmem:[#allocation10 + $0x438] sm:$0xf0]  ;;  %v17595_v19 = vld [vmem:[%s18765_s9 + $0xf8] sm:$0xff] }
 0x5a2   :  { %v17441_v18 = vld [vmem:[#allocation10 + $0x42c] sm:$0xf]  ;;  %v15902_v43 = vld [vmem:[#allocation10 + $0x738] sm:$0xf0] }
 0x5a3   :  { %10083 = vmatpush.bf16.msra.mxu3 %v15409_v62  ;;  %10058 = vmatpush.bf16.msra.mxu1 %v15137_v37  ;;  %v15985_v62 = vor.u32 %v17557_v52, %v15982_v53  ;;  %v17453_v37 = vld [vmem:[#allocation10 + $0x48c] sm:$0xf]  ;;  %v15918_v52 = vld [vmem:[#allocation10 + $0x758] sm:$0xf0] }
 0x5a4   :  { %v17505_v6 = vld [vmem:[#allocation10 + $0x62c] sm:$0xf] }
 0x5a5   :  { %10071 = vmatpush.bf16.msra.mxu2 %v15265_v30  ;;  %10046 = vmatpush.bf16.msra.mxu0 %v14993_v16  ;;  %v17485_v30 = vld [vmem:[#allocation10 + $0x58c] sm:$0xf]  ;;  %v15678_v16 = vld [vmem:[#allocation10 + $0x578] sm:$0xf0] }
 0x5a6   :  { %v15697_v14 = vor.u32 %v17485_v30, %v15694_v28  ;;  %v15681_v44 = vor.u32 %v17481_v46, %v15678_v16  ;;  %v17537_v7 = vld [vmem:[#allocation10 + $0x72c] sm:$0xf]  ;;  %v17579_v16 = vld [vmem:[%s18765_s9 + $0x78] sm:$0xff] }
 0x5a7   :  { %10084 = vmatpush.bf16.msra.mxu3 %v15393_v21  ;;  %10059 = vmatpush.bf16.msra.mxu1 %v15121_v32  ;;  %v18522_v21 = vpop.f32.mrf.mxu0  ;;  %v15934_v32 = vld [vmem:[#allocation10 + $0x778] sm:$0xf0]  ;;  %v17469_v30 = vld [vmem:[#allocation10 + $0x50c] sm:$0xf] }
 0x5a8   :  { %10047 = vmatmul.bf16.vlgmr.msra.gmra.mxu0 %v18448_v9  ;;  %v15566_v9 = vld [vmem:[#allocation10 + $0x498] sm:$0xf0] }
 0x5a9   :  { %10072 = vmatpush.bf16.msra.mxu2 %v15249_v50  ;;  %10091 = vmatpush.bf16.msrb.mxu0 %v15617_v25  ;;  %v15569_v31 = vor.u32 %v17453_v37, %v15566_v9  ;;  %v15553_v50 = vor.u32 %v17449_v34, %v15550_v49  ;;  %v15534_v25 = vld [vmem:[#allocation10 + $0x458] sm:$0xf0]  ;;  %v17437_v37 = vld [vmem:[#allocation10 + $0x40c] sm:$0xf] }
 0x5aa   :  { %10060 = vmatmul.bf16.vlgmr.msra.gmra.mxu1 %v18450_v11  ;;  %v15822_v11 = vld [vmem:[#allocation10 + $0x698] sm:$0xf0] }
 0x5ab   :  { %10085 = vmatpush.bf16.msra.mxu3 %v15377_v27  ;;  %10104 = vmatpush.bf16.msrb.mxu1 %v15745_v54  ;;  %v15825_v17 = vor.u32 %v17517_v4, %v15822_v11  ;;  %v17445_v27 = vld [vmem:[#allocation10 + $0x44c] sm:$0xf]  ;;  %v15502_v9 = vld [vmem:[#allocation10 + $0x418] sm:$0xf0] }
 0x5ac   :  { %10073 = vmatmul.bf16.vlgmr.msra.gmra.mxu2 %v18452_v24  ;;  %v17549_v24 = vld [vmem:[#allocation10 + $0x78c] sm:$0xf]  ;;  %v15630_v4 = vld [vmem:[#allocation10 + $0x518] sm:$0xf0] }
 0x5ad   :  { %10117 = vmatpush.bf16.msrb.mxu2 %v15873_v39  ;;  %10092 = vmatpush.bf16.msrb.mxu0 %v15601_v58  ;;  %v15953_v20 = vor.u32 %v17549_v24, %v15950_v36  ;;  %v17477_v54 = vld [vmem:[#allocation10 + $0x54c] sm:$0xf]  ;;  %v15937_v39 = vor.u32 %v17545_v23, %v15934_v32  ;;  %v15537_v58 = vor.u32 %v17445_v27, %v15534_v25  ;;  %v15758_v24 = vld [vmem:[#allocation10 + $0x618] sm:$0xf0]  ;;  %v17585_v27 = vld [vmem:[%s18765_s9 + $0xa8] sm:$0xff] }
 0x5ae   :  { %10086 = vmatmul.bf16.vlgmr.msra.gmra.mxu3 %v18454_v8  ;;  %v18524_v8 = vpop.f32.mrf.mxu1  ;;  %v17501_v11 = vld [vmem:[#allocation10 + $0x60c] sm:$0xf]  ;;  %v15633_v34 = vor.u32 %v17469_v30, %v15630_v4  ;;  %v17570_v23 = vld [vmem:[%s18765_s9 + $0x30] sm:$0xff] }
 0x5af   :  { %10130 = vmatpush.bf16.msrb.mxu3 %v16001_v47  ;;  %10105 = vmatpush.bf16.msrb.mxu1 %v15729_v10  ;;  %v18526_v60 = vpop.f32.mrf.mxu2  ;;  %v15790_v47 = vld [vmem:[#allocation10 + $0x658] sm:$0xf0]  ;;  %v9842_v51 = vpop.f32.mrf.mxu0  ;;  %v15665_v10 = vor.u32 %v17477_v54, %v15662_v40  ;;  %v15761_v49 = vor.u32 %v17501_v11, %v15758_v24  ;;  %v17568_v25 = vld [vmem:[%s18765_s9 + $0x20] sm:$0xff] }
 0x5b0   :  { %v17578_v32 = vld [vmem:[%s18765_s9 + $0x70] sm:$0xff]  ;;  %v17576_v54 = vld [vmem:[%s18765_s9 + $0x60] sm:$0xff]  ;;  %v17583_v51 = vld [vmem:[%s18765_s9 + $0x98] sm:$0xff] }
 0x5b1   :  { %10118 = vmatpush.bf16.msrb.mxu2 %v15857_v26  ;;  %10093 = vmatpush.bf16.msrb.mxu0 %v15585_v41  ;;  %v18528_v63 = vpop.f32.mrf.mxu3  ;;  %v15793_v26 = vor.u32 %v17509_v55, %v15790_v47  ;;  %v15521_v41 = vor.u32 %v17441_v18, %v15518_v1  ;;  %v17592_v40 = vld [vmem:[%s18765_s9 + $0xe0] sm:$0xff]  ;;  %v17567_v55 = vld [vmem:[%s18765_s9 + $0x18] sm:$0xff]  ;;  %v17574_v18 = vld [vmem:[%s18765_s9 + $0x50] sm:$0xff] }
 0x5b2   :  { %v17575_v47 = vld [vmem:[%s18765_s9 + $0x58] sm:$0xff]  ;;  %v17582_v1 = vld [vmem:[%s18765_s9 + $0x90] sm:$0xff]  ;;  %v17564_v30 = vld [vmem:[%s18765_s9] sm:$0xff] }
 0x5b3   :  { %10131 = vmatpush.bf16.msrb.mxu3 %v15985_v62  ;;  %10106 = vmatpush.bf16.msrb.mxu1 %v15713_v0  ;;  %v15921_v62 = vor.u32 %v17541_v5, %v15918_v52  ;;  %v15649_v0 = vor.u32 %v17473_v3, %v15646_v33  ;;  %v17591_v5 = vld [vmem:[%s18765_s9 + $0xd8] sm:$0xff]  ;;  %v17590_v3 = vld [vmem:[%s18765_s9 + $0xd0] sm:$0xff]  ;;  %v8169_v33 = vmul.f32 0.2, %v18424_v56 }
 0x5b5   :  { %10119 = vmatpush.bf16.msrb.mxu2 %v15841_v57  ;;  %10094 = vmatpush.bf16.msrb.mxu0 %v15569_v31  ;;  %v15777_v57 = vor.u32 %v17505_v6, %v15774_v29  ;;  %v17533_v31 = vld [vmem:[#allocation10 + $0x70c] sm:$0xf]  ;;  %v17573_v6 = vld [vmem:[%s18765_s9 + $0x48] sm:$0xff] }
 0x5b6   :  { %v9855_v53 = vpop.f32.mrf.mxu1  ;;  %v17581_v29 = vld [vmem:[%s18765_s9 + $0x88] sm:$0xff] }
 0x5b7   :  { %10132 = vmatpush.bf16.msrb.mxu3 %v15969_v48  ;;  %10107 = vmatpush.bf16.msrb.mxu1 %v15697_v14  ;;  %v15905_v48 = vor.u32 %v17537_v7, %v15902_v43  ;;  %v9868_v28 = vpop.f32.mrf.mxu2  ;;  %v15886_v14 = vld [vmem:[#allocation10 + $0x718] sm:$0xf0]  ;;  %v8170_v7 = vmul.f32 0.2, %v18440_v13  ;;  %v8171_v43 = vmul.f32 0.2, %v18486_v35 }
 0x5b8   :  { %v15889_v46 = vor.u32 %v17533_v31, %v15886_v14  ;;  %v17580_v28 = vld [vmem:[%s18765_s9 + $0x80] sm:$0xff]  ;;  %v17611_v14 = vld [vmem:[%s18767_s11 + $0x78] sm:$0xff] }
 0x5b9   :  { %10120 = vmatpush.bf16.msrb.mxu2 %v15825_v17  ;;  %10095 = vmatpush.bf16.msrb.mxu0 %v15553_v50  ;;  %v9881_v36 = vpop.f32.mrf.mxu3  ;;  %v15505_v17 = vor.u32 %v17437_v37, %v15502_v9  ;;  %v17586_v50 = vld [vmem:[%s18765_s9 + $0xb0] sm:$0xff]  ;;  %v8172_v37 = vmul.f32 0.2, %v18500_v38  ;;  %v8174_v4 = vmax.f32 %v18440_v13, %v8170_v7  ;;  %v8175_v11 = vmax.f32 %v18486_v35, %v8171_v43 }
 0x5ba   :  { %v17603_v36 = vld [vmem:[%s18767_s11 + $0x38] sm:$0xff] }
 0x5bb   :  { %10133 = vmatpush.bf16.msrb.mxu3 %v15953_v20  ;;  %10108 = vmatpush.bf16.msrb.mxu1 %v15681_v44  ;;  %v17571_v20 = vld [vmem:[%s18765_s9 + $0x38] sm:$0xff]  ;;  %v17594_v44 = vld [vmem:[%s18765_s9 + $0xf0] sm:$0xff]  ;;  %v8176_v31 = vmax.f32 %v18500_v38, %v8172_v37  ;;  %v8178_v35 = vpack.c.bf16 %v8174_v4, %v8174_v4 }
 0x5bc   :  { %v17619_v38 = vld [vmem:[%s18767_s11 + $0xb8] sm:$0xff] }
 0x5bd   :  { %10121 = vmatpush.bf16.msrb.mxu2 %v15809_v2  ;;  %10096 = vmatpush.bf16.msrb.mxu0 %v15537_v58  ;;  %v17569_v2 = vld [vmem:[%s18765_s9 + $0x28] sm:$0xff] }
 0x5bf   :  { %10134 = vmatpush.bf16.msrb.mxu3 %v15937_v39  ;;  %10109 = vmatpush.bf16.msrb.mxu1 %v15665_v10  ;;  %v17584_v39 = vld [vmem:[%s18765_s9 + $0xa0] sm:$0xff] }
 0x5c1   :  { %10122 = vmatpush.bf16.msrb.mxu2 %v15793_v26  ;;  %10097 = vmatpush.bf16.msrb.mxu0 %v15521_v41  ;;  %v17566_v26 = vld [vmem:[%s18765_s9 + $0x10] sm:$0xff]  ;;  %v8440_v41 = vperm.slane %v18502_v42, 1  ;;  %v17572_v42 = vld [vmem:[%s18765_s9 + $0x40] sm:$0xff] }
 0x5c3   :  { %10135 = vmatpush.bf16.msrb.mxu3 %v15921_v62  ;;  %10110 = vmatpush.bf16.msrb.mxu1 %v15649_v0  ;;  %v17565_v62 = vld [vmem:[%s18765_s9 + $0x8] sm:$0xff]  ;;  %v9841_v24 = vadd.f32 %v18522_v21, %v8440_v41  ;;  %v8179_v21 = vpack.c.bf16 %v8175_v11, %v8175_v11  ;;  %v17612_v41 = vld [vmem:[%s18767_s11 + $0x80] sm:$0xff] }
 0x5c4   :  { %v17589_v0 = vld [vmem:[%s18765_s9 + $0xc8] sm:$0xff] }
 0x5c5   :  { %10123 = vmatpush.bf16.msrb.mxu2 %v15777_v57  ;;  %10098 = vmatpush.bf16.msrb.mxu0 %v15505_v17  ;;  %v9854_v17 = vadd.f32 %v18524_v8, %v9841_v24  ;;  %v17601_v8 = vld [vmem:[%s18767_s11 + $0x28] sm:$0xff] }
 0x5c7   :  { %10136 = vmatpush.bf16.msrb.mxu3 %v15905_v48  ;;  %10111 = vmatpush.bf16.msrb.mxu1 %v15633_v34  ;;  %v8173_v48 = vmax.f32 %v18424_v56, %v8169_v33  ;;  %v17588_v56 = vld [vmem:[%s18765_s9 + $0xc0] sm:$0xff]  ;;  %v17602_v34 = vld [vmem:[%s18767_s11 + $0x30] sm:$0xff]  ;;  %v17613_v33 = vld [vmem:[%s18767_s11 + $0x88] sm:$0xff] }
 0x5c8   :  { %10099 = vmatmul.bf16.vlgmr.msrb.gmra.mxu0 %v18473_v59  ;;  %v17577_v59 = vld [vmem:[%s18765_s9 + $0x68] sm:$0xff] }
 0x5c9   :  { %10124 = vmatpush.bf16.msrb.mxu2 %v15761_v49  ;;  %10415 = vmatpush.bf16.msra.mxu0 %v17571_v20  ;;  %v8177_v13 = vpack.c.bf16 %v8173_v48, %v8173_v48  ;;  %v8180_v49 = vpack.c.bf16 %v8176_v31, %v8176_v31  ;;  %v9867_v20 = vadd.f32 %v18526_v60, %v9854_v17 }
 0x5ca   :  { %10112 = vmatmul.bf16.vlgmr.msrb.gmra.mxu1 %v18475_v15  ;;  %v17593_v15 = vld [vmem:[%s18765_s9 + $0xe8] sm:$0xff] }
 0x5cb   :  { %10137 = vmatpush.bf16.msrb.mxu3 %v15889_v46  ;;  %10428 = vmatpush.bf16.msra.mxu1 %v17579_v16  ;;  %v17610_v46 = vld [vmem:[%s18767_s11 + $0x70] sm:$0xff]  ;;  %v9880_v60 = vadd.f32 %v18528_v63, %v9867_v20 }
 0x5cc   :  { %10125 = vmatmul.bf16.vlgmr.msrb.gmra.mxu2 %v18477_v22  ;;  %v18570_v22 = vpop.f32.mrf.mxu0  ;;  %v17618_v16 = vld [vmem:[%s18767_s11 + $0xb0] sm:$0xff] }
 0x5cd   :  { %10441 = vmatpush.bf16.msra.mxu2 %v17587_v12  ;;  %10416 = vmatpush.bf16.msra.mxu0 %v17570_v23  ;;  %v17609_v12 = vld [vmem:[%s18767_s11 + $0x68] sm:$0xff]  ;;  %v9893_v23 = vadd.f32 %v18570_v22, %v9880_v60 }
 0x5ce   :  { %10138 = vmatmul.bf16.vlgmr.msrb.gmra.mxu3 %v18479_v45  ;;  %v18572_v45 = vpop.f32.mrf.mxu1 }
 0x5cf   :  { %10454 = vmatpush.bf16.msra.mxu3 %v17595_v19  ;;  %10429 = vmatpush.bf16.msra.mxu1 %v17578_v32  ;;  %v18598_v52 = vpop.f32.mrf.mxu2  ;;  %v9906_v63 = vadd.f32 %v18572_v45, %v9893_v23 }
 0x5d1   :  { %10442 = vmatpush.bf16.msra.mxu2 %v17586_v50  ;;  %10417 = vmatpush.bf16.msra.mxu0 %v17569_v2  ;;  %v18600_v53 = vpop.f32.mrf.mxu3  ;;  %v17600_v50 = vld [vmem:[%s18767_s11 + $0x20] sm:$0xff]  ;;  %v9919_v22 = vadd.f32 %v18598_v52, %v9906_v63  ;;  %v17614_v52 = vld [vmem:[%s18767_s11 + $0x90] sm:$0xff]  ;;  %v17627_v63 = vld [vmem:[%s18767_s11 + $0xf8] sm:$0xff] }
 0x5d2   :  { %v17608_v2 = vld [vmem:[%s18767_s11 + $0x60] sm:$0xff] }
 0x5d3   :  { %10455 = vmatpush.bf16.msra.mxu3 %v17594_v44  ;;  %10430 = vmatpush.bf16.msra.mxu1 %v17577_v59  ;;  %v17617_v44 = vld [vmem:[%s18767_s11 + $0xa8] sm:$0xff]  ;;  %v17599_v59 = vld [vmem:[%s18767_s11 + $0x18] sm:$0xff] }
 0x5d4   :  { %v9894_v58 = vpop.f32.mrf.mxu0 }
 0x5d5   :  { %10443 = vmatpush.bf16.msra.mxu2 %v17585_v27  ;;  %10418 = vmatpush.bf16.msra.mxu0 %v17568_v25  ;;  %v17616_v27 = vld [vmem:[%s18767_s11 + $0xa0] sm:$0xff]  ;;  %v10143_v58 = vmul.f32 0.2, %v18516_v61 }
 0x5d6   :  { %v9907_v10 = vpop.f32.mrf.mxu1 }
 0x5d7   :  { %10456 = vmatpush.bf16.msra.mxu3 %v17593_v15  ;;  %10431 = vmatpush.bf16.msra.mxu1 %v17576_v54  ;;  %v9920_v57 = vpop.f32.mrf.mxu2  ;;  %v17607_v15 = vld [vmem:[%s18767_s11 + $0x58] sm:$0xff]  ;;  %v17605_v10 = vld [vmem:[%s18767_s11 + $0x48] sm:$0xff] }
 0x5d9   :  { %10444 = vmatpush.bf16.msra.mxu2 %v17584_v39  ;;  %10419 = vmatpush.bf16.msra.mxu0 %v17567_v55  ;;  %v9933_v9 = vpop.f32.mrf.mxu3  ;;  %v17615_v55 = vld [vmem:[%s18767_s11 + $0x98] sm:$0xff] }
 0x5db   :  { %10457 = vmatpush.bf16.msra.mxu3 %v17592_v40  ;;  %10432 = vmatpush.bf16.msra.mxu1 %v17575_v47  ;;  %v17598_v40 = vld [vmem:[%s18767_s11 + $0x10] sm:$0xff] }
 0x5dc   :  { %v17606_v47 = vld [vmem:[%s18767_s11 + $0x50] sm:$0xff] }
 0x5dd   :  { %10445 = vmatpush.bf16.msra.mxu2 %v17583_v51  ;;  %10420 = vmatpush.bf16.msra.mxu0 %v17566_v26  ;;  %v9932_v51 = vadd.f32 %v18600_v53, %v9919_v22  ;;  %v17661_v53 = vld [vmem:[#allocation13] sm:$0xf]  ;;  %v17625_v22 = vld [vmem:[%s18767_s11 + $0xe8] sm:$0xff] }
 0x5df   :  { %10458 = vmatpush.bf16.msra.mxu3 %v17591_v5  ;;  %10433 = vmatpush.bf16.msra.mxu1 %v17574_v18  ;;  %v17597_v5 = vld [vmem:[%s18767_s11 + $0x8] sm:$0xff]  ;;  %v10144_v26 = vmul.f32 0.2, %v9932_v51 }
 0x5e1   :  { %10446 = vmatpush.bf16.msra.mxu2 %v17582_v1  ;;  %10421 = vmatpush.bf16.msra.mxu0 %v17565_v62  ;;  %v8441_v1 = vperm.slane %v17661_v53, 2  ;;  %v17596_v62 = vld [vmem:[%s18767_s11] sm:$0xff]  ;;  %v10148_v7 = vmax.f32 %v9932_v51, %v10144_v26 }
 0x5e3   :  { %10459 = vmatpush.bf16.msra.mxu3 %v17590_v3  ;;  %10434 = vmatpush.bf16.msra.mxu1 %v17573_v6  ;;  %v10147_v6 = vmax.f32 %v18516_v61, %v10143_v58  ;;  %v10152_v57 = vpack.c.bf16 %v10148_v7, %v10148_v7  ;;  %v17620_v58 = vld [vmem:[%s18767_s11 + $0xc0] sm:$0xff] }
 0x5e5   :  { %10447 = vmatpush.bf16.msra.mxu2 %v17581_v29  ;;  %10422 = vmatpush.bf16.msra.mxu0 %v17564_v30  ;;  %v9944_v19 = vpop.f32.mrf.mxu0  ;;  %v17604_v29 = vld [vmem:[%s18767_s11 + $0x40] sm:$0xff] }
 0x5e6   :  { %v9945_v43 = vadd.f32 %v9944_v19, %v8441_v1 }
 0x5e7   :  { %10460 = vmatpush.bf16.msra.mxu3 %v17589_v0  ;;  %10435 = vmatpush.bf16.msra.mxu1 %v17572_v42  ;;  %v9957_v32 = vpop.f32.mrf.mxu1  ;;  %v10151_v0 = vpack.c.bf16 %v10147_v6, %v10147_v6 }
 0x5e8   :  { %10423 = vmatmul.bf16.vlgmr.msra.gmra.mxu0 %v8177_v13  ;;  %v9958_v37 = vadd.f32 %v9957_v32, %v9945_v43  ;;  %v17629_v32 = vld [vmem:[#allocation16 + $0x8] sm:$0xff] }
 0x5e9   :  { %10448 = vmatpush.bf16.msra.mxu2 %v17580_v28  ;;  %10558 = vmatpush.bf16.msrb.mxu0 %v17629_v32  ;;  %v17655_v32 = vld [vmem:[#allocation21] ss:$0 sm:$0xff] }
 0x5ea   :  { %10436 = vmatmul.bf16.vlgmr.msra.gmra.mxu1 %v8178_v35 }
 0x5eb   :  { %10461 = vmatpush.bf16.msra.mxu3 %v17588_v56  ;;  %10757 = vmatpush.bf16.msrb.mxu1 %v17603_v36 }
 0x5ec   :  { %10449 = vmatmul.bf16.vlgmr.msra.gmra.mxu2 %v8179_v21 }
 0x5ed   :  { %10770 = vmatpush.bf16.msrb.mxu2 %v17611_v14  ;;  %v9946_v45 = vpop.f32.mrf.mxu0 }
 0x5ee   :  { %10462 = vmatmul.bf16.vlgmr.msra.gmra.mxu3 %v8180_v49 }
 0x5ef   :  { %10758 = vmatpush.bf16.msrb.mxu1 %v17602_v34  ;;  %10783 = vmatpush.bf16.msrb.mxu3 %v17619_v38  ;;  %v9970_v25 = vpop.f32.mrf.mxu2  ;;  %v9959_v39 = vpop.f32.mrf.mxu1  ;;  %v8442_v34 = vperm.slane %v17661_v53, 3 }
 0x5f0   :  { %v9971_v61 = vadd.f32 %v9970_v25, %v9958_v37 }
 0x5f1   :  { %10771 = vmatpush.bf16.msrb.mxu2 %v17610_v46  ;;  %v9983_v54 = vpop.f32.mrf.mxu3 }
 0x5f2   :  { %v9984_v9 = vadd.f32 %v9983_v54, %v9971_v61  ;;  %v17624_v54 = vld [vmem:[%s18767_s11 + $0xe0] sm:$0xff] }
 0x5f3   :  { %10759 = vmatpush.bf16.msrb.mxu1 %v17601_v8  ;;  %10784 = vmatpush.bf16.msrb.mxu3 %v17618_v16 }
 0x5f5   :  { %10772 = vmatpush.bf16.msrb.mxu2 %v17609_v12 }
 0x5f7   :  { %10760 = vmatpush.bf16.msrb.mxu1 %v17600_v50  ;;  %10785 = vmatpush.bf16.msrb.mxu3 %v17617_v44  ;;  %v9972_v18 = vpop.f32.mrf.mxu2 }
 0x5f9   :  { %10773 = vmatpush.bf16.msrb.mxu2 %v17608_v2  ;;  %v9985_v3 = vpop.f32.mrf.mxu3  ;;  %v17628_v2 = vld [vmem:[#allocation16] sm:$0xff] }
 0x5fa   :  { %10559 = vmatpush.bf16.msrb.mxu0 %v17628_v2 }
 0x5fb   :  { %10761 = vmatpush.bf16.msrb.mxu1 %v17599_v59  ;;  %10786 = vmatpush.bf16.msrb.mxu3 %v17616_v27  ;;  %v17626_v59 = vld [vmem:[%s18767_s11 + $0xf0] sm:$0xff] }
 0x5fd   :  { %10774 = vmatpush.bf16.msrb.mxu2 %v17607_v15 }
 0x5fe   :  { %10796 = vmatpush.bf16.msra.mxu0 %v17627_v63 }
 0x5ff   :  { %10762 = vmatpush.bf16.msrb.mxu1 %v17598_v40  ;;  %10787 = vmatpush.bf16.msrb.mxu3 %v17615_v55  ;;  %v17623_v55 = vld [vmem:[%s18767_s11 + $0xd8] sm:$0xff] }
 0x601   :  { %10775 = vmatpush.bf16.msrb.mxu2 %v17606_v47  ;;  %v17622_v47 = vld [vmem:[%s18767_s11 + $0xd0] sm:$0xff] }
 0x602   :  { %10797 = vmatpush.bf16.msra.mxu0 %v17626_v59 }
 0x603   :  { %10763 = vmatpush.bf16.msrb.mxu1 %v17597_v5  ;;  %10788 = vmatpush.bf16.msrb.mxu3 %v17614_v52  ;;  %v17621_v52 = vld [vmem:[%s18767_s11 + $0xc8] sm:$0xff] }
 0x605   :  { %10776 = vmatpush.bf16.msrb.mxu2 %v17605_v10  ;;  %v9996_v30 = vpop.f32.mrf.mxu0  ;;  %v17653_v10 = vld [vmem:[#allocation15] ss:$0 sm:$0xff] }
 0x606   :  { %v9997_v42 = vadd.f32 %v9996_v30, %v9984_v9  ;;  %10798 = vmatpush.bf16.msra.mxu0 %v17625_v22 }
 0x607   :  { %10764 = vmatpush.bf16.msrb.mxu1 %v17596_v62  ;;  %10789 = vmatpush.bf16.msrb.mxu3 %v17613_v33  ;;  %v10009_v48 = vpop.f32.mrf.mxu1 }
 0x608   :  { %v10010_v28 = vadd.f32 %v10009_v48, %v9997_v42 }
 0x609   :  { %10777 = vmatpush.bf16.msrb.mxu2 %v17604_v29 }
 0x60a   :  { %10765 = vmatmul.bf16.vlgmr.msrb.gmra.mxu1 %v10151_v0  ;;  %10799 = vmatpush.bf16.msra.mxu0 %v17624_v54 }
 0x60b   :  { %10790 = vmatpush.bf16.msrb.mxu3 %v17612_v41 }
 0x60c   :  { %10778 = vmatmul.bf16.vlgmr.msrb.gmra.mxu2 %v10152_v57 }
 0x60d   :  { %v9998_v56 = vpop.f32.mrf.mxu0 }
 0x60e   :  { %10800 = vmatpush.bf16.msra.mxu0 %v17623_v55 }
 0x60f   :  { %v10022_v4 = vpop.f32.mrf.mxu2  ;;  %v10011_v36 = vpop.f32.mrf.mxu1 }
 0x610   :  { %v10023_v11 = vadd.f32 %v10022_v4, %v10010_v28 }
 0x611   :  { %v10035_v24 = vpop.f32.mrf.mxu3 }
 0x612   :  { %v10036_v31 = vadd.f32 %v10035_v24, %v10023_v11  ;;  %10801 = vmatpush.bf16.msra.mxu0 %v17622_v47 }
 0x614   :  { %v10145_v14 = vmul.f32 0.2, %v10036_v31 }
 0x616   :  { %v10149_v13 = vmax.f32 %v10036_v31, %v10145_v14  ;;  %10802 = vmatpush.bf16.msra.mxu0 %v17621_v52  ;;  %v17633_v31 = vld [vmem:[#allocation19 + $0x18] sm:$0xff]  ;;  %v17632_v14 = vld [vmem:[#allocation19 + $0x10] sm:$0xff] }
 0x617   :  { %v10024_v35 = vpop.f32.mrf.mxu2  ;;  %10861 = vmatpush.bf16.msra.mxu1 %v17633_v31 }
 0x618   :  { %v10153_v21 = vpack.c.bf16 %v10149_v13, %v10149_v13  ;;  %v17631_v13 = vld [vmem:[#allocation19 + $0x8] sm:$0xff]  ;;  %v17630_v35 = vld [vmem:[#allocation19] sm:$0xff] }
 0x619   :  { %v10037_v17 = vpop.f32.mrf.mxu3 }
 0x61a   :  { %10791 = vmatmul.bf16.vlgmr.msrb.gmra.mxu3 %v10153_v21  ;;  %10803 = vmatpush.bf16.msra.mxu0 %v17620_v58 }
 0x61b   :  { %10862 = vmatpush.bf16.msra.mxu1 %v17632_v14 }
 0x61f   :  { %10863 = vmatpush.bf16.msra.mxu1 %v17631_v13 }
 0x623   :  { %10864 = vmatpush.bf16.msra.mxu1 %v17630_v35 }
 0x625   :  { %v10048_v38 = vpop.f32.mrf.mxu0 }
 0x626   :  { %v10049_v49 = vadd.f32 %v10048_v38, %v8442_v34 }
 0x627   :  { %v10061_v46 = vpop.f32.mrf.mxu1 }
 0x628   :  { %v10062_v20 = vadd.f32 %v10061_v46, %v10049_v49  ;;  %v17654_v46 = vld [vmem:[#allocation18] ss:$0 sm:$0xff] }
 0x62d   :  { %v10050_v60 = vpop.f32.mrf.mxu0 }
 0x62f   :  { %v10074_v8 = vpop.f32.mrf.mxu2  ;;  %v10063_v19 = vpop.f32.mrf.mxu1 }
 0x630   :  { %v10075_v16 = vadd.f32 %v10074_v8, %v10062_v20 }
 0x631   :  { %v10087_v12 = vpop.f32.mrf.mxu3 }
 0x632   :  { %v10088_v23 = vadd.f32 %v10087_v12, %v10075_v16 }
 0x637   :  { %v10076_v50 = vpop.f32.mrf.mxu2 }
 0x639   :  { %v10089_v44 = vpop.f32.mrf.mxu3 }
 0x645   :  { %v10100_v27 = vpop.f32.mrf.mxu0 }
 0x646   :  { %v10101_v1 = vadd.f32 %v10100_v27, %v10088_v23 }
 0x647   :  { %v10113_v15 = vpop.f32.mrf.mxu1 }
 0x648   :  { %v10114_v43 = vadd.f32 %v10113_v15, %v10101_v1 }
 0x64d   :  { %v10102_v39 = vpop.f32.mrf.mxu0 }
 0x64f   :  { %v10126_v25 = vpop.f32.mrf.mxu2  ;;  %v10115_v40 = vpop.f32.mrf.mxu1 }
 0x650   :  { %v10127_v0 = vadd.f32 %v10126_v25, %v10114_v43 }
 0x651   :  { %v10139_v45 = vpop.f32.mrf.mxu3 }
 0x652   :  { %v10140_v61 = vadd.f32 %v10139_v45, %v10127_v0 }
 0x654   :  { %v10146_v30 = vmul.f32 0.2, %v10140_v61 }
 0x656   :  { %v10150_v48 = vmax.f32 %v10140_v61, %v10146_v30 }
 0x657   :  { %v10128_v51 = vpop.f32.mrf.mxu2 }
 0x658   :  { %v10154_v42 = vpack.c.bf16 %v10150_v48, %v10150_v48 }
 0x659   :  { %v10141_v5 = vpop.f32.mrf.mxu3 }
 0x665   :  { %v10424_v26 = vpop.f32.mrf.mxu0 }
 0x666   :  { %v10425_v53 = vadd.f32 %v17653_v10, %v10424_v26 }
 0x667   :  { %v10437_v18 = vpop.f32.mrf.mxu1 }
 0x668   :  { %v10438_v3 = vadd.f32 %v10437_v18, %v10425_v53 }
 0x66d   :  { %v10426_v29 = vpop.f32.mrf.mxu0 }
 0x66f   :  { %v10450_v62 = vpop.f32.mrf.mxu2  ;;  %v10439_v7 = vpop.f32.mrf.mxu1 }
 0x670   :  { %v10451_v33 = vadd.f32 %v10450_v62, %v10438_v3 }
 0x671   :  { %v10463_v6 = vpop.f32.mrf.mxu3 }
 0x672   :  { %v10464_v41 = vadd.f32 %v10463_v6, %v10451_v33 }
 0x674   :  { %v10531_v57 = vpack.c.bf16 %v10464_v41, %v10464_v41 }
 0x676   :  { %16138 = vmatmul.msk.bf16.vlgmr.msrb.gmra.mxu0 %vm10548_vm0, %v10531_v57 }
 0x677   :  { %v10452_v37 = vpop.f32.mrf.mxu2 }
 0x679   :  { %v10465_v9 = vpop.f32.mrf.mxu3 }
 0x686   :  { %10804 = vmatmul.bf16.vlgmr.msra.gmra.mxu0 %v10154_v42 }
 0x687   :  { %v10766_v28 = vpop.f32.mrf.mxu1 }
 0x68f   :  { %v10779_v4 = vpop.f32.mrf.mxu2  ;;  %v10768_v11 = vpop.f32.mrf.mxu1 }
 0x697   :  { %v10781_v24 = vpop.f32.mrf.mxu2 }
 0x69d   :  { %v10792_v56 = vpop.f32.mrf.mxu3 }
 0x6a5   :  { %v10794_v36 = vpop.f32.mrf.mxu3 }
 0x6f3   :  { %v10561_v21 = vpop.f32.mrf.mxu0 }
 0x6f4   :  { %v10767_v17 = vadd.f32 %v10766_v28, %v10561_v21 }
 0x6f6   :  { %v10780_v38 = vadd.f32 %v10779_v4, %v10767_v17 }
 0x6f8   :  { %v10793_v49 = vadd.f32 %v10792_v56, %v10780_v38 }
 0x6fb   :  { %v10563_v34 = vpop.f32.mrf.mxu0 }
 0x703   :  { %v10805_v20 = vpop.f32.mrf.mxu0 }
 0x704   :  { %v10806_v8 = vadd.f32 %v10805_v20, %v10793_v49 }
 0x706   :  { %v10813_v16 = vadd.f32 %v17654_v46, %v10806_v8 }
 0x708   :  { %v10814_v12 = vmul.f32 0.2, %v10813_v16 }
 0x70a   :  { %v10815_v60 = vmax.f32 %v10813_v16, %v10814_v12 }
 0x70b   :  { %v10807_v19 = vpop.f32.mrf.mxu0 }
 0x70c   :  { %v10816_v23 = vpack.c.bf16 %v10815_v60, %v10815_v60 }
 0x70e   :  { %16283 = vmatmul.msk.bf16.vlgmr.msra.gmra.mxu1 %vm10853_vm1, %v10816_v23 }
 0x78b   :  { %v10866_v50 = vpop.f32.mrf.mxu1 }
 0x78c   :  { %v10867_v44 = vadd.f32 %v17655_v32, %v10866_v50 }
 0x78e   :  { %10870 = vst [vmem:[%s18772_s16] sm:$0x3] %v10867_v44 }
 0x793   :  { %v10868_v2 = vpop.f32.mrf.mxu1 }
 0x794   :  { %10875 = vsyncpa [#allocation3], 1 }
 0x795   :  { %10876 = vsyncpa [#allocation5], 1 }
 0x796   :  { %10877 = vsyncpa [#allocation8], 1 }
 0x797   :  { %10878 = vsyncpa [#allocation11], 1 }
 0x798   :  { %10879 = vsyncpa [#allocation14], 1 }
 0x799   :  { %10880 = vsyncpa [#allocation17], 1 }
 0x79a   :  { %10881 = vsyncpa [#allocation20], 1 }

</bundles_post_ra>
